<compile_context>
chip_gen: v5e
topology: v5e:2x2
jax: 0.10.0
libtpu: 0.0.40
codegen_flags: <defaults>
</compile_context>

<pallas_src>
import functools
import math

import jax
import jax.numpy as jnp
import numpy as np
from jax import lax
from jax.experimental import pallas as pl
from jax.experimental.pallas import tpu as pltpu


BETA_0 = 0.1
BETA_1 = 20.0
OUT_PAD = 128          # lane-dense output slab width (sliced to output_dim)

# ----------------------------------------------------------------------------
# Parameter layout
# ----------------------------------------------------------------------------
# (prefix, out_dim, has_modify)
BLOCKS = (
    ("down1", 512, True),
    ("down2", 256, True),
    ("down3", 128, True),
    ("mid",   128, False),
    ("up3",   256, False),
    ("up2",   512, False),
)


def _blk_weight_names(prefix, has_modify):
    names = [prefix + "_d1_w", prefix + "_d2_w", prefix + "_tc_w"]
    if has_modify:
        names.append(prefix + "_m_w")
    return names


WEIGHT_ORDER = (
    ["embed_w", "pre_w", "sort1_w", "sort2_w"]
    + sum((_blk_weight_names(_p, _m) for _p, _o, _m in BLOCKS), [])
    + ["last_w"]
)

# Layers whose matmul stays f32 (weights are still stored bf16 in HBM and
# upcast in VMEM -- exact): tiny embedding trunk + the K=output_dim layers.
F32_DOT_LAYERS = frozenset(
    {"embed", "pre", "sort1", "sort2", "down1_d1", "down1_m"})


def _bias_slots():
    slots = [("embed", 64), ("pre", 64), ("sort1", 128), ("sort2", 128)]
    for prefix, out_dim, has_modify in BLOCKS:
        slots += [(prefix + "_d1", out_dim), (prefix + "_d2", out_dim),
                  (prefix + "_tc", out_dim)]
        if has_modify:
            slots.append((prefix + "_m", out_dim))
    slots.append(("last", OUT_PAD))
    return slots


BIAS_SLOTS = _bias_slots()
PK_OFFSETS, PK_WIDTHS = {}, {}
_off = 0
for _name, _w in BIAS_SLOTS:
    PK_OFFSETS[_name], PK_WIDTHS[_name] = _off, _w
    _off += max(128, -(-_w // 128) * 128)      # 128-lane aligned slots
PK_TOTAL = _off


# ----------------------------------------------------------------------------
# Shared math (used by both the kernel and the pure-JAX reference)
# ----------------------------------------------------------------------------
def _silu(u):
    return u * (1.0 / (1.0 + jnp.exp(-u)))


def _dot(name, h, w):
    """Matmul with bf16-stored weights, f32 accumulation."""
    if name in F32_DOT_LAYERS:
        return jnp.dot(h.astype(jnp.float32), w.astype(jnp.float32),
                       preferred_element_type=jnp.float32)
    return jnp.dot(h.astype(jnp.bfloat16), w.astype(jnp.bfloat16),
                   preferred_element_type=jnp.float32)


def gaussian_fourier(t, w):
    x_proj = t[:, None] * w[None, :] * (2.0 * np.pi)
    return jnp.concatenate([jnp.sin(x_proj), jnp.cos(x_proj)], axis=-1)


def _round_up(n, m):
    return -(-n // m) * m


# ----------------------------------------------------------------------------
# The fused Pallas kernel (one batch block per grid step)
# ----------------------------------------------------------------------------
def generatenet_kernel(*refs):
    x_ref, cond_ref, fourier_ref, t_ref, pk_ref = refs[:5]
    w_refs = dict(zip(WEIGHT_ORDER, refs[5:-1]))
    out_ref = refs[-1]

    def bias(name):
        off = PK_OFFSETS[name]
        return pk_ref[:, off:off + PK_WIDTHS[name]]

    def linear(h, name):
        return _dot(name, h, w_refs[name + "_w"][...]) + bias(name)

    def linear_cat(parts, name):
        # cat(parts, -1) @ W + b without materialising the concatenation:
        # split W at (aligned) row offsets instead.
        w_ref = w_refs[name + "_w"]
        acc, off = None, 0
        for part in parts:
            k = part.shape[1]
            c = _dot(name, part, w_ref[off:off + k, :])
            acc = c if acc is None else acc + c
            off += k
        return acc + bias(name)

    x = x_ref[...]                # (TB, output_dim) f32
    cond = cond_ref[...]          # (TB, cond_dim)   f32
    fourier = fourier_ref[...]    # (TB, 64)         f32
    t = t_ref[...]                # (TB, 1)          f32

    # embed(t) / pre_sort_condition / sort_t (shared weights for t and c)
    e_t = linear(fourier, "embed")
    e_c = _silu(linear(cond, "pre"))
    s_t = linear(_silu(linear(e_t, "sort1")), "sort2")
    s_c = linear(_silu(linear(e_c, "sort1")), "sort2")
    a_t = _silu(s_t)              # SiLU(embed_t), reused by every block
    a_c = _silu(s_c)              # SiLU(embed_c), reused by every block

    def res_block(x_parts, prefix, has_modify):
        # time_mlp + cond_mlp fused into one K=256 matmul (tc_w = [t_w; c_w]).
        h1 = (_silu(linear_cat(x_parts, prefix + "_d1"))
              + linear_cat([a_t, a_c], prefix + "_tc"))
        h2 = _silu(linear(h1, prefix + "_d2"))
        if has_modify:
            return [h2 + linear_cat(x_parts, prefix + "_m")]
        # identity skip: add slice-wise, keep result as lane-aligned parts
        parts_out, off = [], 0
        for part in x_parts:
            k = part.shape[1]
            parts_out.append(h2[:, off:off + k] + part)
            off += k
        return parts_out

    d1 = res_block([x], "down1", True)          # [(TB, 512)]
    d2 = res_block(d1, "down2", True)           # [(TB, 256)]
    d3 = res_block(d2, "down3", True)           # [(TB, 128)]
    u3 = res_block(d3, "mid", False)            # [(TB, 128)]
    u2 = res_block(d3 + u3, "up3", False)       # [(TB,128),(TB,128)]
    u1 = res_block(d2 + u2, "up2", False)       # [(TB,256),(TB,128),(TB,128)]

    h = linear_cat(d1 + u1, "last")             # (TB, 128) lane-dense

    # h / marginal_prob_std(t)[1], std computed in-kernel.
    # Cancellation-free: expm1(2*lmc) = 2*tanh(lmc)/(1 - tanh(lmc)).
    lmc = -0.25 * t * t * (BETA_1 - BETA_0) - 0.5 * t * BETA_0
    th = jnp.tanh(lmc)
    inv_std = lax.rsqrt(-2.0 * th / (1.0 - th))
    out_ref[...] = (h * inv_std).astype(out_ref.dtype)


# ----------------------------------------------------------------------------
# Wrapper
# ----------------------------------------------------------------------------
def generatenet_forward(params, x, t, condition, *, output_dim, block_b=128):
    B = x.shape[0]
    TB = min(block_b, _round_up(B, 8))
    Bp = _round_up(B, TB)

    x = x.astype(jnp.float32)
    condition = condition.astype(jnp.float32)
    t = t.astype(jnp.float32)
    if Bp != B:
        x = jnp.pad(x, ((0, Bp - B), (0, 0)))
        condition = jnp.pad(condition, ((0, Bp - B), (0, 0)))
        t = jnp.pad(t, (0, Bp - B), constant_values=1.0)

    # Tiny sin/cos prologue kept in the wrapper; std(t) is fused in-kernel.
    fourier = gaussian_fourier(t, params["fourier_w"]).astype(jnp.float32)
    t2 = t[:, None]

    weights = [params[k] for k in WEIGHT_ORDER]
    inputs = [x, condition, fourier, t2, params["bias_pack"]] + weights

    grid = (Bp // TB,)

    def batch_spec(width):
        return pl.BlockSpec((TB, width), lambda i: (i, 0))

    in_specs = (
        [batch_spec(x.shape[1]),
         batch_spec(condition.shape[1]),
         batch_spec(64),
         batch_spec(1),
         pl.BlockSpec((1, PK_TOTAL), lambda i: (0, 0))]
        + [pl.BlockSpec(tuple(w.shape), lambda i: (0, 0)) for w in weights]
    )
    out_specs = pl.BlockSpec((TB, OUT_PAD), lambda i: (i, 0))

    flops = sum(2 * Bp * int(w.shape[0]) * int(w.shape[1]) for w in weights)
    transcendentals = Bp * (4 * 128 + 64
                            + 2 * (512 + 256 + 128 + 128 + 256 + 512) + 4)
    bytes_accessed = (sum(int(np.prod(a.shape)) * a.dtype.itemsize
                          for a in inputs) + Bp * OUT_PAD * 4)

    out = pl.pallas_call(
        generatenet_kernel,
        grid=grid,
        out_shape=jax.ShapeDtypeStruct((Bp, OUT_PAD), jnp.float32),
        in_specs=in_specs,
        out_specs=out_specs,
        compiler_params=pltpu.CompilerParams(
            dimension_semantics=("parallel",),
            vmem_limit_bytes=32 * 1024 * 1024),
        cost_estimate=pl.CostEstimate(flops=int(flops),
                                      transcendentals=int(transcendentals),
                                      bytes_accessed=int(bytes_accessed)),
    )(*inputs)
    return out[:B, :output_dim]


# ----------------------------------------------------------------------------
# Pure-JAX reference (same bf16 weights, torch-style concatenations)
# ----------------------------------------------------------------------------
def reference_forward(params, x, t, condition, *, output_dim):
    p = params
    x = x.astype(jnp.float32)
    condition = condition.astype(jnp.float32)
    t = t.astype(jnp.float32)
    fourier = gaussian_fourier(t, p["fourier_w"])

    def lin(h, name):
        return _dot(name, h, p[name + "_w"]) + p[name + "_b"]

    e_t = lin(fourier, "embed")
    e_c = _silu(lin(condition, "pre"))

    def sort(h):
        return lin(_silu(lin(h, "sort1")), "sort2")

    s_t, s_c = sort(e_t), sort(e_c)
    tc_in = jnp.concatenate([_silu(s_t), _silu(s_c)], axis=-1)

    def block(xv, prefix, has_modify):
        h1 = _silu(lin(xv, prefix + "_d1")) + lin(tc_in, prefix + "_tc")
        h2 = _silu(lin(h1, prefix + "_d2"))
        skip = lin(xv, prefix + "_m") if has_modify else xv
        return h2 + skip

    d1 = block(x, "down1", True)
    d2 = block(d1, "down2", True)
    d3 = block(d2, "down3", True)
    u3 = block(d3, "mid", False)
    u2 = block(jnp.concatenate([d3, u3], -1), "up3", False)
    u1 = block(jnp.concatenate([d2, u2], -1), "up2", False)
    u0 = jnp.concatenate([d1, u1], -1)
    h = _dot("last", u0, p["last_w"]) + p["last_b"]

    lmc = -0.25 * t ** 2 * (BETA_1 - BETA_0) - 0.5 * t * BETA_0
    std = jnp.sqrt(-jnp.expm1(2.0 * lmc))
    return (h / std[:, None])[:, :output_dim]


# ----------------------------------------------------------------------------
# Parameter init (mimics nn.Linear: U(-1/sqrt(fan_in), 1/sqrt(fan_in)))
# ----------------------------------------------------------------------------
def _linear_init(key, in_dim, out_dim, col_pad=None):
    kw, kb = jax.random.split(key)
    bound = 1.0 / math.sqrt(in_dim)
    w = jax.random.uniform(kw, (in_dim, out_dim), jnp.float32, -bound, bound)
    b = jax.random.uniform(kb, (1, out_dim), jnp.float32, -bound, bound)
    if col_pad is not None and col_pad > out_dim:
        w = jnp.pad(w, ((0, 0), (0, col_pad - out_dim)))
        b = jnp.pad(b, ((0, 0), (0, col_pad - out_dim)))
    return w, b


def init_params(key, output_dim, cond_dim, embed_dim=64):
    keys = iter(jax.random.split(key, 64))
    p = {}
    # GaussianFourierProjection (frozen): randn(embed_dim // 2) * 30
    p["fourier_w"] = 30.0 * jax.random.normal(next(keys), (embed_dim // 2,),
                                              jnp.float32)
    p["embed_w"], p["embed_b"] = _linear_init(next(keys), embed_dim, embed_dim)
    p["pre_w"], p["pre_b"] = _linear_init(next(keys), cond_dim, embed_dim)
    p["sort1_w"], p["sort1_b"] = _linear_init(next(keys), embed_dim, 128)
    p["sort2_w"], p["sort2_b"] = _linear_init(next(keys), 128, 128)

    def add_block(prefix, in_dim, out_dim, t_dim=128):
        p[prefix + "_d1_w"], p[prefix + "_d1_b"] = _linear_init(
            next(keys), in_dim, out_dim)
        p[prefix + "_d2_w"], p[prefix + "_d2_b"] = _linear_init(
            next(keys), out_dim, out_dim)
        t_w, t_b = _linear_init(next(keys), t_dim, out_dim)
        c_w, c_b = _linear_init(next(keys), t_dim, out_dim)
        # time_mlp + cond_mlp fused: [a_t, a_c] @ [t_w; c_w] + (t_b + c_b)
        p[prefix + "_tc_w"] = jnp.concatenate([t_w, c_w], axis=0)
        p[prefix + "_tc_b"] = t_b + c_b
        if in_dim != out_dim:
            p[prefix + "_m_w"], p[prefix + "_m_b"] = _linear_init(
                next(keys), in_dim, out_dim)

    add_block("down1", output_dim, 512)
    add_block("down2", 512, 256)
    add_block("down3", 256, 128)
    add_block("mid", 128, 128)
    add_block("up3", 256, 256)
    add_block("up2", 512, 512)
    p["last_w"], p["last_b"] = _linear_init(next(keys), 1024, output_dim,
                                            col_pad=OUT_PAD)

    # bf16 weight storage (halves weight HBM traffic; f32 accumulation).
    for name in WEIGHT_ORDER:
        p[name] = p[name].astype(jnp.bfloat16)

    # Packed f32 bias vector: one DMA instead of ~30, 128-lane-aligned slots.
    pk = jnp.zeros((1, PK_TOTAL), jnp.float32)
    for name, width in BIAS_SLOTS:
        off = PK_OFFSETS[name]
        pk = pk.at[:, off:off + width].set(p[name + "_b"])
    p["bias_pack"] = pk
    return p


# ----------------------------------------------------------------------------
if __name__ == "__main__":
    key = jax.random.PRNGKey(0)
    k_params, k_x, k_t, k_c = jax.random.split(key, 4)

    B = 32
    output_dim = 8     # action dim (x lives here)
    cond_dim = 16      # = input_dim - output_dim (state / condition dim)
    embed_dim = 64

    params = init_params(k_params, output_dim, cond_dim, embed_dim)

    x = jax.random.normal(k_x, (B, output_dim), jnp.float32)
    t = jax.random.uniform(k_t, (B,), jnp.float32, minval=0.05, maxval=1.0)
    condition = jax.random.normal(k_c, (B, cond_dim), jnp.float32)

    # block_b=16 so this small harness exercises the batched (parallel) grid
    # (grid=(2,)); production sampling should use B >= 128 with block_b=128.
    fwd = jax.jit(functools.partial(generatenet_forward,
                                    output_dim=output_dim, block_b=16))
    out = jax.block_until_ready(fwd(params, x, t, condition))

    ref = reference_forward(params, x, t, condition, output_dim=output_dim)
    assert out.shape == (B, output_dim), out.shape
    max_err = float(jnp.max(jnp.abs(out - ref)))
    assert jnp.allclose(out, ref, atol=5e-3, rtol=5e-3), max_err

    print("KERNEL_OK")
</pallas_src>

<mosaic_0001>
module attributes {stable_mosaic.version = 11 : i64} {
  func.func @generatenet_kernel(%arg0: i32, %arg1: memref<16x8xf32, #tpu.memory_space<vmem>>, %arg2: memref<16x16xf32, #tpu.memory_space<vmem>>, %arg3: memref<16x64xf32, #tpu.memory_space<vmem>>, %arg4: memref<16x1xf32, #tpu.memory_space<vmem>>, %arg5: memref<1x6912xf32, #tpu.memory_space<vmem>>, %arg6: memref<64x64xbf16, #tpu.memory_space<vmem>>, %arg7: memref<16x64xbf16, #tpu.memory_space<vmem>>, %arg8: memref<64x128xbf16, #tpu.memory_space<vmem>>, %arg9: memref<128x128xbf16, #tpu.memory_space<vmem>>, %arg10: memref<8x512xbf16, #tpu.memory_space<vmem>>, %arg11: memref<512x512xbf16, #tpu.memory_space<vmem>>, %arg12: memref<256x512xbf16, #tpu.memory_space<vmem>>, %arg13: memref<8x512xbf16, #tpu.memory_space<vmem>>, %arg14: memref<512x256xbf16, #tpu.memory_space<vmem>>, %arg15: memref<256x256xbf16, #tpu.memory_space<vmem>>, %arg16: memref<256x256xbf16, #tpu.memory_space<vmem>>, %arg17: memref<512x256xbf16, #tpu.memory_space<vmem>>, %arg18: memref<256x128xbf16, #tpu.memory_space<vmem>>, %arg19: memref<128x128xbf16, #tpu.memory_space<vmem>>, %arg20: memref<256x128xbf16, #tpu.memory_space<vmem>>, %arg21: memref<256x128xbf16, #tpu.memory_space<vmem>>, %arg22: memref<128x128xbf16, #tpu.memory_space<vmem>>, %arg23: memref<128x128xbf16, #tpu.memory_space<vmem>>, %arg24: memref<256x128xbf16, #tpu.memory_space<vmem>>, %arg25: memref<256x256xbf16, #tpu.memory_space<vmem>>, %arg26: memref<256x256xbf16, #tpu.memory_space<vmem>>, %arg27: memref<256x256xbf16, #tpu.memory_space<vmem>>, %arg28: memref<512x512xbf16, #tpu.memory_space<vmem>>, %arg29: memref<512x512xbf16, #tpu.memory_space<vmem>>, %arg30: memref<256x512xbf16, #tpu.memory_space<vmem>>, %arg31: memref<1024x128xbf16, #tpu.memory_space<vmem>>, %arg32: memref<16x128xf32, #tpu.memory_space<vmem>>) attributes {dimension_semantics = [#tpu.dimension_semantics<parallel>], iteration_bounds = array<i64: 2>, scalar_prefetch = 0 : i64, scratch_operands = 0 : i64, tpu.core_type = #tpu.core_type<tc>, window_params = [{transform_indices = @transform_0, window_bounds = array<i64: 16, 8>}, {transform_indices = @transform_1, window_bounds = array<i64: 16, 16>}, {transform_indices = @transform_2, window_bounds = array<i64: 16, 64>}, {transform_indices = @transform_3, window_bounds = array<i64: 16, 1>}, {pipeline_mode = #tpu.pipeline_mode<synchronous>, transform_indices = @transform_4, window_bounds = array<i64: 1, 6912>}, {pipeline_mode = #tpu.pipeline_mode<synchronous>, transform_indices = @transform_5, window_bounds = array<i64: 64, 64>}, {pipeline_mode = #tpu.pipeline_mode<synchronous>, transform_indices = @transform_6, window_bounds = array<i64: 16, 64>}, {pipeline_mode = #tpu.pipeline_mode<synchronous>, transform_indices = @transform_7, window_bounds = array<i64: 64, 128>}, {pipeline_mode = #tpu.pipeline_mode<synchronous>, transform_indices = @transform_8, window_bounds = array<i64: 128, 128>}, {pipeline_mode = #tpu.pipeline_mode<synchronous>, transform_indices = @transform_9, window_bounds = array<i64: 8, 512>}, {pipeline_mode = #tpu.pipeline_mode<synchronous>, transform_indices = @transform_10, window_bounds = array<i64: 512, 512>}, {pipeline_mode = #tpu.pipeline_mode<synchronous>, transform_indices = @transform_11, window_bounds = array<i64: 256, 512>}, {pipeline_mode = #tpu.pipeline_mode<synchronous>, transform_indices = @transform_12, window_bounds = array<i64: 8, 512>}, {pipeline_mode = #tpu.pipeline_mode<synchronous>, transform_indices = @transform_13, window_bounds = array<i64: 512, 256>}, {pipeline_mode = #tpu.pipeline_mode<synchronous>, transform_indices = @transform_14, window_bounds = array<i64: 256, 256>}, {pipeline_mode = #tpu.pipeline_mode<synchronous>, transform_indices = @transform_15, window_bounds = array<i64: 256, 256>}, {pipeline_mode = #tpu.pipeline_mode<synchronous>, transform_indices = @transform_16, window_bounds = array<i64: 512, 256>}, {pipeline_mode = #tpu.pipeline_mode<synchronous>, transform_indices = @transform_17, window_bounds = array<i64: 256, 128>}, {pipeline_mode = #tpu.pipeline_mode<synchronous>, transform_indices = @transform_18, window_bounds = array<i64: 128, 128>}, {pipeline_mode = #tpu.pipeline_mode<synchronous>, transform_indices = @transform_19, window_bounds = array<i64: 256, 128>}, {pipeline_mode = #tpu.pipeline_mode<synchronous>, transform_indices = @transform_20, window_bounds = array<i64: 256, 128>}, {pipeline_mode = #tpu.pipeline_mode<synchronous>, transform_indices = @transform_21, window_bounds = array<i64: 128, 128>}, {pipeline_mode = #tpu.pipeline_mode<synchronous>, transform_indices = @transform_22, window_bounds = array<i64: 128, 128>}, {pipeline_mode = #tpu.pipeline_mode<synchronous>, transform_indices = @transform_23, window_bounds = array<i64: 256, 128>}, {pipeline_mode = #tpu.pipeline_mode<synchronous>, transform_indices = @transform_24, window_bounds = array<i64: 256, 256>}, {pipeline_mode = #tpu.pipeline_mode<synchronous>, transform_indices = @transform_25, window_bounds = array<i64: 256, 256>}, {pipeline_mode = #tpu.pipeline_mode<synchronous>, transform_indices = @transform_26, window_bounds = array<i64: 256, 256>}, {pipeline_mode = #tpu.pipeline_mode<synchronous>, transform_indices = @transform_27, window_bounds = array<i64: 512, 512>}, {pipeline_mode = #tpu.pipeline_mode<synchronous>, transform_indices = @transform_28, window_bounds = array<i64: 512, 512>}, {pipeline_mode = #tpu.pipeline_mode<synchronous>, transform_indices = @transform_29, window_bounds = array<i64: 256, 512>}, {pipeline_mode = #tpu.pipeline_mode<synchronous>, transform_indices = @transform_30, window_bounds = array<i64: 1024, 128>}, {transform_indices = @transform_31, window_bounds = array<i64: 16, 128>}]} {
    %c0 = arith.constant 0 : index
    %c0_0 = arith.constant 0 : index
    %0 = vector.load %arg1[%c0, %c0_0] : memref<16x8xf32, #tpu.memory_space<vmem>>, vector<16x8xf32>
    %c0_1 = arith.constant 0 : index
    %c0_2 = arith.constant 0 : index
    %1 = vector.load %arg2[%c0_1, %c0_2] : memref<16x16xf32, #tpu.memory_space<vmem>>, vector<16x16xf32>
    %c0_3 = arith.constant 0 : index
    %c0_4 = arith.constant 0 : index
    %2 = vector.load %arg3[%c0_3, %c0_4] : memref<16x64xf32, #tpu.memory_space<vmem>>, vector<16x64xf32>
    %c0_5 = arith.constant 0 : index
    %c0_6 = arith.constant 0 : index
    %3 = vector.load %arg4[%c0_5, %c0_6] : memref<16x1xf32, #tpu.memory_space<vmem>>, vector<16x1xf32>
    %c0_7 = arith.constant 0 : index
    %c0_8 = arith.constant 0 : index
    %4 = vector.load %arg6[%c0_7, %c0_8] : memref<64x64xbf16, #tpu.memory_space<vmem>>, vector<64x64xbf16>
    %5 = arith.extf %4 : vector<64x64xbf16> to vector<64x64xf32>
    %cst = arith.constant dense<0.000000e+00> : vector<16x64xf32>
    %6 = tpu.matmul %2, %5, %cst {dimension_numbers = #tpu.dot_dimension_numbers<[1], [0], [0], [1], [0, 0, 1, 1], [], []>} : vector<16x64xf32>, vector<64x64xf32>, vector<16x64xf32> -> vector<16x64xf32>
    %c0_9 = arith.constant 0 : index
    %c0_10 = arith.constant 0 : index
    %7 = vector.load %arg5[%c0_9, %c0_10] : memref<1x6912xf32, #tpu.memory_space<vmem>>, vector<1x64xf32>
    %8 = vector.broadcast %7 : vector<1x64xf32> to vector<16x64xf32>
    %9 = arith.addf %6, %8 : vector<16x64xf32>
    %c0_11 = arith.constant 0 : index
    %c0_12 = arith.constant 0 : index
    %10 = vector.load %arg7[%c0_11, %c0_12] : memref<16x64xbf16, #tpu.memory_space<vmem>>, vector<16x64xbf16>
    %11 = arith.extf %10 : vector<16x64xbf16> to vector<16x64xf32>
    %cst_13 = arith.constant dense<0.000000e+00> : vector<16x64xf32>
    %12 = tpu.matmul %1, %11, %cst_13 {dimension_numbers = #tpu.dot_dimension_numbers<[1], [0], [0], [1], [0, 0, 1, 1], [], []>} : vector<16x16xf32>, vector<16x64xf32>, vector<16x64xf32> -> vector<16x64xf32>
    %c0_14 = arith.constant 0 : index
    %c128 = arith.constant 128 : index
    %13 = vector.load %arg5[%c0_14, %c128] : memref<1x6912xf32, #tpu.memory_space<vmem>>, vector<1x64xf32>
    %14 = vector.broadcast %13 : vector<1x64xf32> to vector<16x64xf32>
    %15 = arith.addf %12, %14 : vector<16x64xf32>
    %cst_15 = arith.constant 0.000000e+00 : f32
    %16 = vector.broadcast %cst_15 : f32 to vector<16x64xf32>
    %17 = arith.subf %16, %15 : vector<16x64xf32>
    %18 = math.exp %17 : vector<16x64xf32>
    %cst_16 = arith.constant 1.000000e+00 : f32
    %19 = vector.broadcast %cst_16 : f32 to vector<16x64xf32>
    %20 = arith.addf %19, %18 : vector<16x64xf32>
    %cst_17 = arith.constant 1.000000e+00 : f32
    %21 = vector.broadcast %cst_17 : f32 to vector<16x64xf32>
    %22 = arith.divf %21, %20 : vector<16x64xf32>
    %23 = arith.mulf %15, %22 : vector<16x64xf32>
    %c0_18 = arith.constant 0 : index
    %c0_19 = arith.constant 0 : index
    %24 = vector.load %arg8[%c0_18, %c0_19] : memref<64x128xbf16, #tpu.memory_space<vmem>>, vector<64x128xbf16>
    %25 = arith.extf %24 : vector<64x128xbf16> to vector<64x128xf32>
    %cst_20 = arith.constant dense<0.000000e+00> : vector<16x128xf32>
    %26 = tpu.matmul %9, %25, %cst_20 {dimension_numbers = #tpu.dot_dimension_numbers<[1], [0], [0], [1], [0, 0, 1, 1], [], []>} : vector<16x64xf32>, vector<64x128xf32>, vector<16x128xf32> -> vector<16x128xf32>
    %c0_21 = arith.constant 0 : index
    %c256 = arith.constant 256 : index
    %27 = vector.load %arg5[%c0_21, %c256] : memref<1x6912xf32, #tpu.memory_space<vmem>>, vector<1x128xf32>
    %28 = vector.broadcast %27 : vector<1x128xf32> to vector<16x128xf32>
    %29 = arith.addf %26, %28 : vector<16x128xf32>
    %cst_22 = arith.constant 0.000000e+00 : f32
    %30 = vector.broadcast %cst_22 : f32 to vector<16x128xf32>
    %31 = arith.subf %30, %29 : vector<16x128xf32>
    %32 = math.exp %31 : vector<16x128xf32>
    %cst_23 = arith.constant 1.000000e+00 : f32
    %33 = vector.broadcast %cst_23 : f32 to vector<16x128xf32>
    %34 = arith.addf %33, %32 : vector<16x128xf32>
    %cst_24 = arith.constant 1.000000e+00 : f32
    %35 = vector.broadcast %cst_24 : f32 to vector<16x128xf32>
    %36 = arith.divf %35, %34 : vector<16x128xf32>
    %37 = arith.mulf %29, %36 : vector<16x128xf32>
    %c0_25 = arith.constant 0 : index
    %c0_26 = arith.constant 0 : index
    %38 = vector.load %arg9[%c0_25, %c0_26] : memref<128x128xbf16, #tpu.memory_space<vmem>>, vector<128x128xbf16>
    %39 = arith.extf %38 : vector<128x128xbf16> to vector<128x128xf32>
    %cst_27 = arith.constant dense<0.000000e+00> : vector<16x128xf32>
    %40 = tpu.matmul %37, %39, %cst_27 {dimension_numbers = #tpu.dot_dimension_numbers<[1], [0], [0], [1], [0, 0, 1, 1], [], []>} : vector<16x128xf32>, vector<128x128xf32>, vector<16x128xf32> -> vector<16x128xf32>
    %c0_28 = arith.constant 0 : index
    %c384 = arith.constant 384 : index
    %41 = vector.load %arg5[%c0_28, %c384] : memref<1x6912xf32, #tpu.memory_space<vmem>>, vector<1x128xf32>
    %42 = vector.broadcast %41 : vector<1x128xf32> to vector<16x128xf32>
    %43 = arith.addf %40, %42 : vector<16x128xf32>
    %c0_29 = arith.constant 0 : index
    %c0_30 = arith.constant 0 : index
    %44 = vector.load %arg8[%c0_29, %c0_30] : memref<64x128xbf16, #tpu.memory_space<vmem>>, vector<64x128xbf16>
    %45 = arith.extf %44 : vector<64x128xbf16> to vector<64x128xf32>
    %cst_31 = arith.constant dense<0.000000e+00> : vector<16x128xf32>
    %46 = tpu.matmul %23, %45, %cst_31 {dimension_numbers = #tpu.dot_dimension_numbers<[1], [0], [0], [1], [0, 0, 1, 1], [], []>} : vector<16x64xf32>, vector<64x128xf32>, vector<16x128xf32> -> vector<16x128xf32>
    %c0_32 = arith.constant 0 : index
    %c256_33 = arith.constant 256 : index
    %47 = vector.load %arg5[%c0_32, %c256_33] : memref<1x6912xf32, #tpu.memory_space<vmem>>, vector<1x128xf32>
    %48 = vector.broadcast %47 : vector<1x128xf32> to vector<16x128xf32>
    %49 = arith.addf %46, %48 : vector<16x128xf32>
    %cst_34 = arith.constant 0.000000e+00 : f32
    %50 = vector.broadcast %cst_34 : f32 to vector<16x128xf32>
    %51 = arith.subf %50, %49 : vector<16x128xf32>
    %52 = math.exp %51 : vector<16x128xf32>
    %cst_35 = arith.constant 1.000000e+00 : f32
    %53 = vector.broadcast %cst_35 : f32 to vector<16x128xf32>
    %54 = arith.addf %53, %52 : vector<16x128xf32>
    %cst_36 = arith.constant 1.000000e+00 : f32
    %55 = vector.broadcast %cst_36 : f32 to vector<16x128xf32>
    %56 = arith.divf %55, %54 : vector<16x128xf32>
    %57 = arith.mulf %49, %56 : vector<16x128xf32>
    %c0_37 = arith.constant 0 : index
    %c0_38 = arith.constant 0 : index
    %58 = vector.load %arg9[%c0_37, %c0_38] : memref<128x128xbf16, #tpu.memory_space<vmem>>, vector<128x128xbf16>
    %59 = arith.extf %58 : vector<128x128xbf16> to vector<128x128xf32>
    %cst_39 = arith.constant dense<0.000000e+00> : vector<16x128xf32>
    %60 = tpu.matmul %57, %59, %cst_39 {dimension_numbers = #tpu.dot_dimension_numbers<[1], [0], [0], [1], [0, 0, 1, 1], [], []>} : vector<16x128xf32>, vector<128x128xf32>, vector<16x128xf32> -> vector<16x128xf32>
    %c0_40 = arith.constant 0 : index
    %c384_41 = arith.constant 384 : index
    %61 = vector.load %arg5[%c0_40, %c384_41] : memref<1x6912xf32, #tpu.memory_space<vmem>>, vector<1x128xf32>
    %62 = vector.broadcast %61 : vector<1x128xf32> to vector<16x128xf32>
    %63 = arith.addf %60, %62 : vector<16x128xf32>
    %cst_42 = arith.constant 0.000000e+00 : f32
    %64 = vector.broadcast %cst_42 : f32 to vector<16x128xf32>
    %65 = arith.subf %64, %43 : vector<16x128xf32>
    %66 = math.exp %65 : vector<16x128xf32>
    %cst_43 = arith.constant 1.000000e+00 : f32
    %67 = vector.broadcast %cst_43 : f32 to vector<16x128xf32>
    %68 = arith.addf %67, %66 : vector<16x128xf32>
    %cst_44 = arith.constant 1.000000e+00 : f32
    %69 = vector.broadcast %cst_44 : f32 to vector<16x128xf32>
    %70 = arith.divf %69, %68 : vector<16x128xf32>
    %71 = arith.mulf %43, %70 : vector<16x128xf32>
    %cst_45 = arith.constant 0.000000e+00 : f32
    %72 = vector.broadcast %cst_45 : f32 to vector<16x128xf32>
    %73 = arith.subf %72, %63 : vector<16x128xf32>
    %74 = math.exp %73 : vector<16x128xf32>
    %cst_46 = arith.constant 1.000000e+00 : f32
    %75 = vector.broadcast %cst_46 : f32 to vector<16x128xf32>
    %76 = arith.addf %75, %74 : vector<16x128xf32>
    %cst_47 = arith.constant 1.000000e+00 : f32
    %77 = vector.broadcast %cst_47 : f32 to vector<16x128xf32>
    %78 = arith.divf %77, %76 : vector<16x128xf32>
    %79 = arith.mulf %63, %78 : vector<16x128xf32>
    %c0_48 = arith.constant 0 : index
    %c0_49 = arith.constant 0 : index
    %80 = vector.load %arg10[%c0_48, %c0_49] : memref<8x512xbf16, #tpu.memory_space<vmem>>, vector<8x512xbf16>
    %81 = arith.extf %80 : vector<8x512xbf16> to vector<8x512xf32>
    %cst_50 = arith.constant dense<0.000000e+00> : vector<16x512xf32>
    %82 = tpu.matmul %0, %81, %cst_50 {dimension_numbers = #tpu.dot_dimension_numbers<[1], [0], [0], [1], [0, 0, 1, 1], [], []>} : vector<16x8xf32>, vector<8x512xf32>, vector<16x512xf32> -> vector<16x512xf32>
    %c0_51 = arith.constant 0 : index
    %c512 = arith.constant 512 : index
    %83 = vector.load %arg5[%c0_51, %c512] : memref<1x6912xf32, #tpu.memory_space<vmem>>, vector<1x512xf32>
    %84 = vector.broadcast %83 : vector<1x512xf32> to vector<16x512xf32>
    %85 = arith.addf %82, %84 : vector<16x512xf32>
    %cst_52 = arith.constant 0.000000e+00 : f32
    %86 = vector.broadcast %cst_52 : f32 to vector<16x512xf32>
    %87 = arith.subf %86, %85 : vector<16x512xf32>
    %88 = math.exp %87 : vector<16x512xf32>
    %cst_53 = arith.constant 1.000000e+00 : f32
    %89 = vector.broadcast %cst_53 : f32 to vector<16x512xf32>
    %90 = arith.addf %89, %88 : vector<16x512xf32>
    %cst_54 = arith.constant 1.000000e+00 : f32
    %91 = vector.broadcast %cst_54 : f32 to vector<16x512xf32>
    %92 = arith.divf %91, %90 : vector<16x512xf32>
    %93 = arith.mulf %85, %92 : vector<16x512xf32>
    %c0_55 = arith.constant 0 : index
    %c0_56 = arith.constant 0 : index
    %94 = vector.load %arg12[%c0_55, %c0_56] : memref<256x512xbf16, #tpu.memory_space<vmem>>, vector<128x512xbf16>
    %95 = arith.truncf %71 : vector<16x128xf32> to vector<16x128xbf16>
    %cst_57 = arith.constant dense<0.000000e+00> : vector<16x512xf32>
    %96 = tpu.matmul %95, %94, %cst_57 {dimension_numbers = #tpu.dot_dimension_numbers<[1], [0], [0], [1], [0, 0, 1, 1], [], []>} : vector<16x128xbf16>, vector<128x512xbf16>, vector<16x512xf32> -> vector<16x512xf32>
    %c128_58 = arith.constant 128 : index
    %c0_59 = arith.constant 0 : index
    %97 = vector.load %arg12[%c128_58, %c0_59] : memref<256x512xbf16, #tpu.memory_space<vmem>>, vector<128x512xbf16>
    %98 = arith.truncf %79 : vector<16x128xf32> to vector<16x128xbf16>
    %cst_60 = arith.constant dense<0.000000e+00> : vector<16x512xf32>
    %99 = tpu.matmul %98, %97, %cst_60 {dimension_numbers = #tpu.dot_dimension_numbers<[1], [0], [0], [1], [0, 0, 1, 1], [], []>} : vector<16x128xbf16>, vector<128x512xbf16>, vector<16x512xf32> -> vector<16x512xf32>
    %100 = arith.addf %96, %99 : vector<16x512xf32>
    %c0_61 = arith.constant 0 : index
    %c1536 = arith.constant 1536 : index
    %101 = vector.load %arg5[%c0_61, %c1536] : memref<1x6912xf32, #tpu.memory_space<vmem>>, vector<1x512xf32>
    %102 = vector.broadcast %101 : vector<1x512xf32> to vector<16x512xf32>
    %103 = arith.addf %100, %102 : vector<16x512xf32>
    %104 = arith.addf %93, %103 : vector<16x512xf32>
    %c0_62 = arith.constant 0 : index
    %c0_63 = arith.constant 0 : index
    %105 = vector.load %arg11[%c0_62, %c0_63] : memref<512x512xbf16, #tpu.memory_space<vmem>>, vector<512x512xbf16>
    %106 = arith.truncf %104 : vector<16x512xf32> to vector<16x512xbf16>
    %cst_64 = arith.constant dense<0.000000e+00> : vector<16x512xf32>
    %107 = tpu.matmul %106, %105, %cst_64 {dimension_numbers = #tpu.dot_dimension_numbers<[1], [0], [0], [1], [0, 0, 1, 1], [], []>} : vector<16x512xbf16>, vector<512x512xbf16>, vector<16x512xf32> -> vector<16x512xf32>
    %c0_65 = arith.constant 0 : index
    %c1024 = arith.constant 1024 : index
    %108 = vector.load %arg5[%c0_65, %c1024] : memref<1x6912xf32, #tpu.memory_space<vmem>>, vector<1x512xf32>
    %109 = vector.broadcast %108 : vector<1x512xf32> to vector<16x512xf32>
    %110 = arith.addf %107, %109 : vector<16x512xf32>
    %cst_66 = arith.constant 0.000000e+00 : f32
    %111 = vector.broadcast %cst_66 : f32 to vector<16x512xf32>
    %112 = arith.subf %111, %110 : vector<16x512xf32>
    %113 = math.exp %112 : vector<16x512xf32>
    %cst_67 = arith.constant 1.000000e+00 : f32
    %114 = vector.broadcast %cst_67 : f32 to vector<16x512xf32>
    %115 = arith.addf %114, %113 : vector<16x512xf32>
    %cst_68 = arith.constant 1.000000e+00 : f32
    %116 = vector.broadcast %cst_68 : f32 to vector<16x512xf32>
    %117 = arith.divf %116, %115 : vector<16x512xf32>
    %118 = arith.mulf %110, %117 : vector<16x512xf32>
    %c0_69 = arith.constant 0 : index
    %c0_70 = arith.constant 0 : index
    %119 = vector.load %arg13[%c0_69, %c0_70] : memref<8x512xbf16, #tpu.memory_space<vmem>>, vector<8x512xbf16>
    %120 = arith.extf %119 : vector<8x512xbf16> to vector<8x512xf32>
    %cst_71 = arith.constant dense<0.000000e+00> : vector<16x512xf32>
    %121 = tpu.matmul %0, %120, %cst_71 {dimension_numbers = #tpu.dot_dimension_numbers<[1], [0], [0], [1], [0, 0, 1, 1], [], []>} : vector<16x8xf32>, vector<8x512xf32>, vector<16x512xf32> -> vector<16x512xf32>
    %c0_72 = arith.constant 0 : index
    %c2048 = arith.constant 2048 : index
    %122 = vector.load %arg5[%c0_72, %c2048] : memref<1x6912xf32, #tpu.memory_space<vmem>>, vector<1x512xf32>
    %123 = vector.broadcast %122 : vector<1x512xf32> to vector<16x512xf32>
    %124 = arith.addf %121, %123 : vector<16x512xf32>
    %125 = arith.addf %118, %124 : vector<16x512xf32>
    %c0_73 = arith.constant 0 : index
    %c0_74 = arith.constant 0 : index
    %126 = vector.load %arg14[%c0_73, %c0_74] : memref<512x256xbf16, #tpu.memory_space<vmem>>, vector<512x256xbf16>
    %127 = arith.truncf %125 : vector<16x512xf32> to vector<16x512xbf16>
    %cst_75 = arith.constant dense<0.000000e+00> : vector<16x256xf32>
    %128 = tpu.matmul %127, %126, %cst_75 {dimension_numbers = #tpu.dot_dimension_numbers<[1], [0], [0], [1], [0, 0, 1, 1], [], []>} : vector<16x512xbf16>, vector<512x256xbf16>, vector<16x256xf32> -> vector<16x256xf32>
    %c0_76 = arith.constant 0 : index
    %c2560 = arith.constant 2560 : index
    %129 = vector.load %arg5[%c0_76, %c2560] : memref<1x6912xf32, #tpu.memory_space<vmem>>, vector<1x256xf32>
    %130 = vector.broadcast %129 : vector<1x256xf32> to vector<16x256xf32>
    %131 = arith.addf %128, %130 : vector<16x256xf32>
    %cst_77 = arith.constant 0.000000e+00 : f32
    %132 = vector.broadcast %cst_77 : f32 to vector<16x256xf32>
    %133 = arith.subf %132, %131 : vector<16x256xf32>
    %134 = math.exp %133 : vector<16x256xf32>
    %cst_78 = arith.constant 1.000000e+00 : f32
    %135 = vector.broadcast %cst_78 : f32 to vector<16x256xf32>
    %136 = arith.addf %135, %134 : vector<16x256xf32>
    %cst_79 = arith.constant 1.000000e+00 : f32
    %137 = vector.broadcast %cst_79 : f32 to vector<16x256xf32>
    %138 = arith.divf %137, %136 : vector<16x256xf32>
    %139 = arith.mulf %131, %138 : vector<16x256xf32>
    %c0_80 = arith.constant 0 : index
    %c0_81 = arith.constant 0 : index
    %140 = vector.load %arg16[%c0_80, %c0_81] : memref<256x256xbf16, #tpu.memory_space<vmem>>, vector<128x256xbf16>
    %141 = arith.truncf %71 : vector<16x128xf32> to vector<16x128xbf16>
    %cst_82 = arith.constant dense<0.000000e+00> : vector<16x256xf32>
    %142 = tpu.matmul %141, %140, %cst_82 {dimension_numbers = #tpu.dot_dimension_numbers<[1], [0], [0], [1], [0, 0, 1, 1], [], []>} : vector<16x128xbf16>, vector<128x256xbf16>, vector<16x256xf32> -> vector<16x256xf32>
    %c128_83 = arith.constant 128 : index
    %c0_84 = arith.constant 0 : index
    %143 = vector.load %arg16[%c128_83, %c0_84] : memref<256x256xbf16, #tpu.memory_space<vmem>>, vector<128x256xbf16>
    %144 = arith.truncf %79 : vector<16x128xf32> to vector<16x128xbf16>
    %cst_85 = arith.constant dense<0.000000e+00> : vector<16x256xf32>
    %145 = tpu.matmul %144, %143, %cst_85 {dimension_numbers = #tpu.dot_dimension_numbers<[1], [0], [0], [1], [0, 0, 1, 1], [], []>} : vector<16x128xbf16>, vector<128x256xbf16>, vector<16x256xf32> -> vector<16x256xf32>
    %146 = arith.addf %142, %145 : vector<16x256xf32>
    %c0_86 = arith.constant 0 : index
    %c3072 = arith.constant 3072 : index
    %147 = vector.load %arg5[%c0_86, %c3072] : memref<1x6912xf32, #tpu.memory_space<vmem>>, vector<1x256xf32>
    %148 = vector.broadcast %147 : vector<1x256xf32> to vector<16x256xf32>
    %149 = arith.addf %146, %148 : vector<16x256xf32>
    %150 = arith.addf %139, %149 : vector<16x256xf32>
    %c0_87 = arith.constant 0 : index
    %c0_88 = arith.constant 0 : index
    %151 = vector.load %arg15[%c0_87, %c0_88] : memref<256x256xbf16, #tpu.memory_space<vmem>>, vector<256x256xbf16>
    %152 = arith.truncf %150 : vector<16x256xf32> to vector<16x256xbf16>
    %cst_89 = arith.constant dense<0.000000e+00> : vector<16x256xf32>
    %153 = tpu.matmul %152, %151, %cst_89 {dimension_numbers = #tpu.dot_dimension_numbers<[1], [0], [0], [1], [0, 0, 1, 1], [], []>} : vector<16x256xbf16>, vector<256x256xbf16>, vector<16x256xf32> -> vector<16x256xf32>
    %c0_90 = arith.constant 0 : index
    %c2816 = arith.constant 2816 : index
    %154 = vector.load %arg5[%c0_90, %c2816] : memref<1x6912xf32, #tpu.memory_space<vmem>>, vector<1x256xf32>
    %155 = vector.broadcast %154 : vector<1x256xf32> to vector<16x256xf32>
    %156 = arith.addf %153, %155 : vector<16x256xf32>
    %cst_91 = arith.constant 0.000000e+00 : f32
    %157 = vector.broadcast %cst_91 : f32 to vector<16x256xf32>
    %158 = arith.subf %157, %156 : vector<16x256xf32>
    %159 = math.exp %158 : vector<16x256xf32>
    %cst_92 = arith.constant 1.000000e+00 : f32
    %160 = vector.broadcast %cst_92 : f32 to vector<16x256xf32>
    %161 = arith.addf %160, %159 : vector<16x256xf32>
    %cst_93 = arith.constant 1.000000e+00 : f32
    %162 = vector.broadcast %cst_93 : f32 to vector<16x256xf32>
    %163 = arith.divf %162, %161 : vector<16x256xf32>
    %164 = arith.mulf %156, %163 : vector<16x256xf32>
    %c0_94 = arith.constant 0 : index
    %c0_95 = arith.constant 0 : index
    %165 = vector.load %arg17[%c0_94, %c0_95] : memref<512x256xbf16, #tpu.memory_space<vmem>>, vector<512x256xbf16>
    %166 = arith.truncf %125 : vector<16x512xf32> to vector<16x512xbf16>
    %cst_96 = arith.constant dense<0.000000e+00> : vector<16x256xf32>
    %167 = tpu.matmul %166, %165, %cst_96 {dimension_numbers = #tpu.dot_dimension_numbers<[1], [0], [0], [1], [0, 0, 1, 1], [], []>} : vector<16x512xbf16>, vector<512x256xbf16>, vector<16x256xf32> -> vector<16x256xf32>
    %c0_97 = arith.constant 0 : index
    %c3328 = arith.constant 3328 : index
    %168 = vector.load %arg5[%c0_97, %c3328] : memref<1x6912xf32, #tpu.memory_space<vmem>>, vector<1x256xf32>
    %169 = vector.broadcast %168 : vector<1x256xf32> to vector<16x256xf32>
    %170 = arith.addf %167, %169 : vector<16x256xf32>
    %171 = arith.addf %164, %170 : vector<16x256xf32>
    %c0_98 = arith.constant 0 : index
    %c0_99 = arith.constant 0 : index
    %172 = vector.load %arg18[%c0_98, %c0_99] : memref<256x128xbf16, #tpu.memory_space<vmem>>, vector<256x128xbf16>
    %173 = arith.truncf %171 : vector<16x256xf32> to vector<16x256xbf16>
    %cst_100 = arith.constant dense<0.000000e+00> : vector<16x128xf32>
    %174 = tpu.matmul %173, %172, %cst_100 {dimension_numbers = #tpu.dot_dimension_numbers<[1], [0], [0], [1], [0, 0, 1, 1], [], []>} : vector<16x256xbf16>, vector<256x128xbf16>, vector<16x128xf32> -> vector<16x128xf32>
    %c0_101 = arith.constant 0 : index
    %c3584 = arith.constant 3584 : index
    %175 = vector.load %arg5[%c0_101, %c3584] : memref<1x6912xf32, #tpu.memory_space<vmem>>, vector<1x128xf32>
    %176 = vector.broadcast %175 : vector<1x128xf32> to vector<16x128xf32>
    %177 = arith.addf %174, %176 : vector<16x128xf32>
    %cst_102 = arith.constant 0.000000e+00 : f32
    %178 = vector.broadcast %cst_102 : f32 to vector<16x128xf32>
    %179 = arith.subf %178, %177 : vector<16x128xf32>
    %180 = math.exp %179 : vector<16x128xf32>
    %cst_103 = arith.constant 1.000000e+00 : f32
    %181 = vector.broadcast %cst_103 : f32 to vector<16x128xf32>
    %182 = arith.addf %181, %180 : vector<16x128xf32>
    %cst_104 = arith.constant 1.000000e+00 : f32
    %183 = vector.broadcast %cst_104 : f32 to vector<16x128xf32>
    %184 = arith.divf %183, %182 : vector<16x128xf32>
    %185 = arith.mulf %177, %184 : vector<16x128xf32>
    %c0_105 = arith.constant 0 : index
    %c0_106 = arith.constant 0 : index
    %186 = vector.load %arg20[%c0_105, %c0_106] : memref<256x128xbf16, #tpu.memory_space<vmem>>, vector<128x128xbf16>
    %187 = arith.truncf %71 : vector<16x128xf32> to vector<16x128xbf16>
    %cst_107 = arith.constant dense<0.000000e+00> : vector<16x128xf32>
    %188 = tpu.matmul %187, %186, %cst_107 {dimension_numbers = #tpu.dot_dimension_numbers<[1], [0], [0], [1], [0, 0, 1, 1], [], []>} : vector<16x128xbf16>, vector<128x128xbf16>, vector<16x128xf32> -> vector<16x128xf32>
    %c128_108 = arith.constant 128 : index
    %c0_109 = arith.constant 0 : index
    %189 = vector.load %arg20[%c128_108, %c0_109] : memref<256x128xbf16, #tpu.memory_space<vmem>>, vector<128x128xbf16>
    %190 = arith.truncf %79 : vector<16x128xf32> to vector<16x128xbf16>
    %cst_110 = arith.constant dense<0.000000e+00> : vector<16x128xf32>
    %191 = tpu.matmul %190, %189, %cst_110 {dimension_numbers = #tpu.dot_dimension_numbers<[1], [0], [0], [1], [0, 0, 1, 1], [], []>} : vector<16x128xbf16>, vector<128x128xbf16>, vector<16x128xf32> -> vector<16x128xf32>
    %192 = arith.addf %188, %191 : vector<16x128xf32>
    %c0_111 = arith.constant 0 : index
    %c3840 = arith.constant 3840 : index
    %193 = vector.load %arg5[%c0_111, %c3840] : memref<1x6912xf32, #tpu.memory_space<vmem>>, vector<1x128xf32>
    %194 = vector.broadcast %193 : vector<1x128xf32> to vector<16x128xf32>
    %195 = arith.addf %192, %194 : vector<16x128xf32>
    %196 = arith.addf %185, %195 : vector<16x128xf32>
    %c0_112 = arith.constant 0 : index
    %c0_113 = arith.constant 0 : index
    %197 = vector.load %arg19[%c0_112, %c0_113] : memref<128x128xbf16, #tpu.memory_space<vmem>>, vector<128x128xbf16>
    %198 = arith.truncf %196 : vector<16x128xf32> to vector<16x128xbf16>
    %cst_114 = arith.constant dense<0.000000e+00> : vector<16x128xf32>
    %199 = tpu.matmul %198, %197, %cst_114 {dimension_numbers = #tpu.dot_dimension_numbers<[1], [0], [0], [1], [0, 0, 1, 1], [], []>} : vector<16x128xbf16>, vector<128x128xbf16>, vector<16x128xf32> -> vector<16x128xf32>
    %c0_115 = arith.constant 0 : index
    %c3712 = arith.constant 3712 : index
    %200 = vector.load %arg5[%c0_115, %c3712] : memref<1x6912xf32, #tpu.memory_space<vmem>>, vector<1x128xf32>
    %201 = vector.broadcast %200 : vector<1x128xf32> to vector<16x128xf32>
    %202 = arith.addf %199, %201 : vector<16x128xf32>
    %cst_116 = arith.constant 0.000000e+00 : f32
    %203 = vector.broadcast %cst_116 : f32 to vector<16x128xf32>
    %204 = arith.subf %203, %202 : vector<16x128xf32>
    %205 = math.exp %204 : vector<16x128xf32>
    %cst_117 = arith.constant 1.000000e+00 : f32
    %206 = vector.broadcast %cst_117 : f32 to vector<16x128xf32>
    %207 = arith.addf %206, %205 : vector<16x128xf32>
    %cst_118 = arith.constant 1.000000e+00 : f32
    %208 = vector.broadcast %cst_118 : f32 to vector<16x128xf32>
    %209 = arith.divf %208, %207 : vector<16x128xf32>
    %210 = arith.mulf %202, %209 : vector<16x128xf32>
    %c0_119 = arith.constant 0 : index
    %c0_120 = arith.constant 0 : index
    %211 = vector.load %arg21[%c0_119, %c0_120] : memref<256x128xbf16, #tpu.memory_space<vmem>>, vector<256x128xbf16>
    %212 = arith.truncf %171 : vector<16x256xf32> to vector<16x256xbf16>
    %cst_121 = arith.constant dense<0.000000e+00> : vector<16x128xf32>
    %213 = tpu.matmul %212, %211, %cst_121 {dimension_numbers = #tpu.dot_dimension_numbers<[1], [0], [0], [1], [0, 0, 1, 1], [], []>} : vector<16x256xbf16>, vector<256x128xbf16>, vector<16x128xf32> -> vector<16x128xf32>
    %c0_122 = arith.constant 0 : index
    %c3968 = arith.constant 3968 : index
    %214 = vector.load %arg5[%c0_122, %c3968] : memref<1x6912xf32, #tpu.memory_space<vmem>>, vector<1x128xf32>
    %215 = vector.broadcast %214 : vector<1x128xf32> to vector<16x128xf32>
    %216 = arith.addf %213, %215 : vector<16x128xf32>
    %217 = arith.addf %210, %216 : vector<16x128xf32>
    %c0_123 = arith.constant 0 : index
    %c0_124 = arith.constant 0 : index
    %218 = vector.load %arg22[%c0_123, %c0_124] : memref<128x128xbf16, #tpu.memory_space<vmem>>, vector<128x128xbf16>
    %219 = arith.truncf %217 : vector<16x128xf32> to vector<16x128xbf16>
    %cst_125 = arith.constant dense<0.000000e+00> : vector<16x128xf32>
    %220 = tpu.matmul %219, %218, %cst_125 {dimension_numbers = #tpu.dot_dimension_numbers<[1], [0], [0], [1], [0, 0, 1, 1], [], []>} : vector<16x128xbf16>, vector<128x128xbf16>, vector<16x128xf32> -> vector<16x128xf32>
    %c0_126 = arith.constant 0 : index
    %c4096 = arith.constant 4096 : index
    %221 = vector.load %arg5[%c0_126, %c4096] : memref<1x6912xf32, #tpu.memory_space<vmem>>, vector<1x128xf32>
    %222 = vector.broadcast %221 : vector<1x128xf32> to vector<16x128xf32>
    %223 = arith.addf %220, %222 : vector<16x128xf32>
    %cst_127 = arith.constant 0.000000e+00 : f32
    %224 = vector.broadcast %cst_127 : f32 to vector<16x128xf32>
    %225 = arith.subf %224, %223 : vector<16x128xf32>
    %226 = math.exp %225 : vector<16x128xf32>
    %cst_128 = arith.constant 1.000000e+00 : f32
    %227 = vector.broadcast %cst_128 : f32 to vector<16x128xf32>
    %228 = arith.addf %227, %226 : vector<16x128xf32>
    %cst_129 = arith.constant 1.000000e+00 : f32
    %229 = vector.broadcast %cst_129 : f32 to vector<16x128xf32>
    %230 = arith.divf %229, %228 : vector<16x128xf32>
    %231 = arith.mulf %223, %230 : vector<16x128xf32>
    %c0_130 = arith.constant 0 : index
    %c0_131 = arith.constant 0 : index
    %232 = vector.load %arg24[%c0_130, %c0_131] : memref<256x128xbf16, #tpu.memory_space<vmem>>, vector<128x128xbf16>
    %233 = arith.truncf %71 : vector<16x128xf32> to vector<16x128xbf16>
    %cst_132 = arith.constant dense<0.000000e+00> : vector<16x128xf32>
    %234 = tpu.matmul %233, %232, %cst_132 {dimension_numbers = #tpu.dot_dimension_numbers<[1], [0], [0], [1], [0, 0, 1, 1], [], []>} : vector<16x128xbf16>, vector<128x128xbf16>, vector<16x128xf32> -> vector<16x128xf32>
    %c128_133 = arith.constant 128 : index
    %c0_134 = arith.constant 0 : index
    %235 = vector.load %arg24[%c128_133, %c0_134] : memref<256x128xbf16, #tpu.memory_space<vmem>>, vector<128x128xbf16>
    %236 = arith.truncf %79 : vector<16x128xf32> to vector<16x128xbf16>
    %cst_135 = arith.constant dense<0.000000e+00> : vector<16x128xf32>
    %237 = tpu.matmul %236, %235, %cst_135 {dimension_numbers = #tpu.dot_dimension_numbers<[1], [0], [0], [1], [0, 0, 1, 1], [], []>} : vector<16x128xbf16>, vector<128x128xbf16>, vector<16x128xf32> -> vector<16x128xf32>
    %238 = arith.addf %234, %237 : vector<16x128xf32>
    %c0_136 = arith.constant 0 : index
    %c4352 = arith.constant 4352 : index
    %239 = vector.load %arg5[%c0_136, %c4352] : memref<1x6912xf32, #tpu.memory_space<vmem>>, vector<1x128xf32>
    %240 = vector.broadcast %239 : vector<1x128xf32> to vector<16x128xf32>
    %241 = arith.addf %238, %240 : vector<16x128xf32>
    %242 = arith.addf %231, %241 : vector<16x128xf32>
    %c0_137 = arith.constant 0 : index
    %c0_138 = arith.constant 0 : index
    %243 = vector.load %arg23[%c0_137, %c0_138] : memref<128x128xbf16, #tpu.memory_space<vmem>>, vector<128x128xbf16>
    %244 = arith.truncf %242 : vector<16x128xf32> to vector<16x128xbf16>
    %cst_139 = arith.constant dense<0.000000e+00> : vector<16x128xf32>
    %245 = tpu.matmul %244, %243, %cst_139 {dimension_numbers = #tpu.dot_dimension_numbers<[1], [0], [0], [1], [0, 0, 1, 1], [], []>} : vector<16x128xbf16>, vector<128x128xbf16>, vector<16x128xf32> -> vector<16x128xf32>
    %c0_140 = arith.constant 0 : index
    %c4224 = arith.constant 4224 : index
    %246 = vector.load %arg5[%c0_140, %c4224] : memref<1x6912xf32, #tpu.memory_space<vmem>>, vector<1x128xf32>
    %247 = vector.broadcast %246 : vector<1x128xf32> to vector<16x128xf32>
    %248 = arith.addf %245, %247 : vector<16x128xf32>
    %cst_141 = arith.constant 0.000000e+00 : f32
    %249 = vector.broadcast %cst_141 : f32 to vector<16x128xf32>
    %250 = arith.subf %249, %248 : vector<16x128xf32>
    %251 = math.exp %250 : vector<16x128xf32>
    %cst_142 = arith.constant 1.000000e+00 : f32
    %252 = vector.broadcast %cst_142 : f32 to vector<16x128xf32>
    %253 = arith.addf %252, %251 : vector<16x128xf32>
    %cst_143 = arith.constant 1.000000e+00 : f32
    %254 = vector.broadcast %cst_143 : f32 to vector<16x128xf32>
    %255 = arith.divf %254, %253 : vector<16x128xf32>
    %256 = arith.mulf %248, %255 : vector<16x128xf32>
    %257 = arith.addf %256, %217 : vector<16x128xf32>
    %c0_144 = arith.constant 0 : index
    %c0_145 = arith.constant 0 : index
    %258 = vector.load %arg25[%c0_144, %c0_145] : memref<256x256xbf16, #tpu.memory_space<vmem>>, vector<128x256xbf16>
    %259 = arith.truncf %217 : vector<16x128xf32> to vector<16x128xbf16>
    %cst_146 = arith.constant dense<0.000000e+00> : vector<16x256xf32>
    %260 = tpu.matmul %259, %258, %cst_146 {dimension_numbers = #tpu.dot_dimension_numbers<[1], [0], [0], [1], [0, 0, 1, 1], [], []>} : vector<16x128xbf16>, vector<128x256xbf16>, vector<16x256xf32> -> vector<16x256xf32>
    %c128_147 = arith.constant 128 : index
    %c0_148 = arith.constant 0 : index
    %261 = vector.load %arg25[%c128_147, %c0_148] : memref<256x256xbf16, #tpu.memory_space<vmem>>, vector<128x256xbf16>
    %262 = arith.truncf %257 : vector<16x128xf32> to vector<16x128xbf16>
    %cst_149 = arith.constant dense<0.000000e+00> : vector<16x256xf32>
    %263 = tpu.matmul %262, %261, %cst_149 {dimension_numbers = #tpu.dot_dimension_numbers<[1], [0], [0], [1], [0, 0, 1, 1], [], []>} : vector<16x128xbf16>, vector<128x256xbf16>, vector<16x256xf32> -> vector<16x256xf32>
    %264 = arith.addf %260, %263 : vector<16x256xf32>
    %c0_150 = arith.constant 0 : index
    %c4480 = arith.constant 4480 : index
    %265 = vector.load %arg5[%c0_150, %c4480] : memref<1x6912xf32, #tpu.memory_space<vmem>>, vector<1x256xf32>
    %266 = vector.broadcast %265 : vector<1x256xf32> to vector<16x256xf32>
    %267 = arith.addf %264, %266 : vector<16x256xf32>
    %cst_151 = arith.constant 0.000000e+00 : f32
    %268 = vector.broadcast %cst_151 : f32 to vector<16x256xf32>
    %269 = arith.subf %268, %267 : vector<16x256xf32>
    %270 = math.exp %269 : vector<16x256xf32>
    %cst_152 = arith.constant 1.000000e+00 : f32
    %271 = vector.broadcast %cst_152 : f32 to vector<16x256xf32>
    %272 = arith.addf %271, %270 : vector<16x256xf32>
    %cst_153 = arith.constant 1.000000e+00 : f32
    %273 = vector.broadcast %cst_153 : f32 to vector<16x256xf32>
    %274 = arith.divf %273, %272 : vector<16x256xf32>
    %275 = arith.mulf %267, %274 : vector<16x256xf32>
    %c0_154 = arith.constant 0 : index
    %c0_155 = arith.constant 0 : index
    %276 = vector.load %arg27[%c0_154, %c0_155] : memref<256x256xbf16, #tpu.memory_space<vmem>>, vector<128x256xbf16>
    %277 = arith.truncf %71 : vector<16x128xf32> to vector<16x128xbf16>
    %cst_156 = arith.constant dense<0.000000e+00> : vector<16x256xf32>
    %278 = tpu.matmul %277, %276, %cst_156 {dimension_numbers = #tpu.dot_dimension_numbers<[1], [0], [0], [1], [0, 0, 1, 1], [], []>} : vector<16x128xbf16>, vector<128x256xbf16>, vector<16x256xf32> -> vector<16x256xf32>
    %c128_157 = arith.constant 128 : index
    %c0_158 = arith.constant 0 : index
    %279 = vector.load %arg27[%c128_157, %c0_158] : memref<256x256xbf16, #tpu.memory_space<vmem>>, vector<128x256xbf16>
    %280 = arith.truncf %79 : vector<16x128xf32> to vector<16x128xbf16>
    %cst_159 = arith.constant dense<0.000000e+00> : vector<16x256xf32>
    %281 = tpu.matmul %280, %279, %cst_159 {dimension_numbers = #tpu.dot_dimension_numbers<[1], [0], [0], [1], [0, 0, 1, 1], [], []>} : vector<16x128xbf16>, vector<128x256xbf16>, vector<16x256xf32> -> vector<16x256xf32>
    %282 = arith.addf %278, %281 : vector<16x256xf32>
    %c0_160 = arith.constant 0 : index
    %c4992 = arith.constant 4992 : index
    %283 = vector.load %arg5[%c0_160, %c4992] : memref<1x6912xf32, #tpu.memory_space<vmem>>, vector<1x256xf32>
    %284 = vector.broadcast %283 : vector<1x256xf32> to vector<16x256xf32>
    %285 = arith.addf %282, %284 : vector<16x256xf32>
    %286 = arith.addf %275, %285 : vector<16x256xf32>
    %c0_161 = arith.constant 0 : index
    %c0_162 = arith.constant 0 : index
    %287 = vector.load %arg26[%c0_161, %c0_162] : memref<256x256xbf16, #tpu.memory_space<vmem>>, vector<256x256xbf16>
    %288 = arith.truncf %286 : vector<16x256xf32> to vector<16x256xbf16>
    %cst_163 = arith.constant dense<0.000000e+00> : vector<16x256xf32>
    %289 = tpu.matmul %288, %287, %cst_163 {dimension_numbers = #tpu.dot_dimension_numbers<[1], [0], [0], [1], [0, 0, 1, 1], [], []>} : vector<16x256xbf16>, vector<256x256xbf16>, vector<16x256xf32> -> vector<16x256xf32>
    %c0_164 = arith.constant 0 : index
    %c4736 = arith.constant 4736 : index
    %290 = vector.load %arg5[%c0_164, %c4736] : memref<1x6912xf32, #tpu.memory_space<vmem>>, vector<1x256xf32>
    %291 = vector.broadcast %290 : vector<1x256xf32> to vector<16x256xf32>
    %292 = arith.addf %289, %291 : vector<16x256xf32>
    %cst_165 = arith.constant 0.000000e+00 : f32
    %293 = vector.broadcast %cst_165 : f32 to vector<16x256xf32>
    %294 = arith.subf %293, %292 : vector<16x256xf32>
    %295 = math.exp %294 : vector<16x256xf32>
    %cst_166 = arith.constant 1.000000e+00 : f32
    %296 = vector.broadcast %cst_166 : f32 to vector<16x256xf32>
    %297 = arith.addf %296, %295 : vector<16x256xf32>
    %cst_167 = arith.constant 1.000000e+00 : f32
    %298 = vector.broadcast %cst_167 : f32 to vector<16x256xf32>
    %299 = arith.divf %298, %297 : vector<16x256xf32>
    %300 = arith.mulf %292, %299 : vector<16x256xf32>
    %301 = vector.extract_strided_slice %300 {offsets = [0, 0], sizes = [16, 128], strides = [1, 1]} : vector<16x256xf32> to vector<16x128xf32>
    %302 = arith.addf %301, %217 : vector<16x128xf32>
    %303 = vector.extract_strided_slice %300 {offsets = [0, 128], sizes = [16, 128], strides = [1, 1]} : vector<16x256xf32> to vector<16x128xf32>
    %304 = arith.addf %303, %257 : vector<16x128xf32>
    %c0_168 = arith.constant 0 : index
    %c0_169 = arith.constant 0 : index
    %305 = vector.load %arg28[%c0_168, %c0_169] : memref<512x512xbf16, #tpu.memory_space<vmem>>, vector<256x512xbf16>
    %306 = arith.truncf %171 : vector<16x256xf32> to vector<16x256xbf16>
    %cst_170 = arith.constant dense<0.000000e+00> : vector<16x512xf32>
    %307 = tpu.matmul %306, %305, %cst_170 {dimension_numbers = #tpu.dot_dimension_numbers<[1], [0], [0], [1], [0, 0, 1, 1], [], []>} : vector<16x256xbf16>, vector<256x512xbf16>, vector<16x512xf32> -> vector<16x512xf32>
    %c256_171 = arith.constant 256 : index
    %c0_172 = arith.constant 0 : index
    %308 = vector.load %arg28[%c256_171, %c0_172] : memref<512x512xbf16, #tpu.memory_space<vmem>>, vector<128x512xbf16>
    %309 = arith.truncf %302 : vector<16x128xf32> to vector<16x128xbf16>
    %cst_173 = arith.constant dense<0.000000e+00> : vector<16x512xf32>
    %310 = tpu.matmul %309, %308, %cst_173 {dimension_numbers = #tpu.dot_dimension_numbers<[1], [0], [0], [1], [0, 0, 1, 1], [], []>} : vector<16x128xbf16>, vector<128x512xbf16>, vector<16x512xf32> -> vector<16x512xf32>
    %311 = arith.addf %307, %310 : vector<16x512xf32>
    %c384_174 = arith.constant 384 : index
    %c0_175 = arith.constant 0 : index
    %312 = vector.load %arg28[%c384_174, %c0_175] : memref<512x512xbf16, #tpu.memory_space<vmem>>, vector<128x512xbf16>
    %313 = arith.truncf %304 : vector<16x128xf32> to vector<16x128xbf16>
    %cst_176 = arith.constant dense<0.000000e+00> : vector<16x512xf32>
    %314 = tpu.matmul %313, %312, %cst_176 {dimension_numbers = #tpu.dot_dimension_numbers<[1], [0], [0], [1], [0, 0, 1, 1], [], []>} : vector<16x128xbf16>, vector<128x512xbf16>, vector<16x512xf32> -> vector<16x512xf32>
    %315 = arith.addf %311, %314 : vector<16x512xf32>
    %c0_177 = arith.constant 0 : index
    %c5248 = arith.constant 5248 : index
    %316 = vector.load %arg5[%c0_177, %c5248] : memref<1x6912xf32, #tpu.memory_space<vmem>>, vector<1x512xf32>
    %317 = vector.broadcast %316 : vector<1x512xf32> to vector<16x512xf32>
    %318 = arith.addf %315, %317 : vector<16x512xf32>
    %cst_178 = arith.constant 0.000000e+00 : f32
    %319 = vector.broadcast %cst_178 : f32 to vector<16x512xf32>
    %320 = arith.subf %319, %318 : vector<16x512xf32>
    %321 = math.exp %320 : vector<16x512xf32>
    %cst_179 = arith.constant 1.000000e+00 : f32
    %322 = vector.broadcast %cst_179 : f32 to vector<16x512xf32>
    %323 = arith.addf %322, %321 : vector<16x512xf32>
    %cst_180 = arith.constant 1.000000e+00 : f32
    %324 = vector.broadcast %cst_180 : f32 to vector<16x512xf32>
    %325 = arith.divf %324, %323 : vector<16x512xf32>
    %326 = arith.mulf %318, %325 : vector<16x512xf32>
    %c0_181 = arith.constant 0 : index
    %c0_182 = arith.constant 0 : index
    %327 = vector.load %arg30[%c0_181, %c0_182] : memref<256x512xbf16, #tpu.memory_space<vmem>>, vector<128x512xbf16>
    %328 = arith.truncf %71 : vector<16x128xf32> to vector<16x128xbf16>
    %cst_183 = arith.constant dense<0.000000e+00> : vector<16x512xf32>
    %329 = tpu.matmul %328, %327, %cst_183 {dimension_numbers = #tpu.dot_dimension_numbers<[1], [0], [0], [1], [0, 0, 1, 1], [], []>} : vector<16x128xbf16>, vector<128x512xbf16>, vector<16x512xf32> -> vector<16x512xf32>
    %c128_184 = arith.constant 128 : index
    %c0_185 = arith.constant 0 : index
    %330 = vector.load %arg30[%c128_184, %c0_185] : memref<256x512xbf16, #tpu.memory_space<vmem>>, vector<128x512xbf16>
    %331 = arith.truncf %79 : vector<16x128xf32> to vector<16x128xbf16>
    %cst_186 = arith.constant dense<0.000000e+00> : vector<16x512xf32>
    %332 = tpu.matmul %331, %330, %cst_186 {dimension_numbers = #tpu.dot_dimension_numbers<[1], [0], [0], [1], [0, 0, 1, 1], [], []>} : vector<16x128xbf16>, vector<128x512xbf16>, vector<16x512xf32> -> vector<16x512xf32>
    %333 = arith.addf %329, %332 : vector<16x512xf32>
    %c0_187 = arith.constant 0 : index
    %c6272 = arith.constant 6272 : index
    %334 = vector.load %arg5[%c0_187, %c6272] : memref<1x6912xf32, #tpu.memory_space<vmem>>, vector<1x512xf32>
    %335 = vector.broadcast %334 : vector<1x512xf32> to vector<16x512xf32>
    %336 = arith.addf %333, %335 : vector<16x512xf32>
    %337 = arith.addf %326, %336 : vector<16x512xf32>
    %c0_188 = arith.constant 0 : index
    %c0_189 = arith.constant 0 : index
    %338 = vector.load %arg29[%c0_188, %c0_189] : memref<512x512xbf16, #tpu.memory_space<vmem>>, vector<512x512xbf16>
    %339 = arith.truncf %337 : vector<16x512xf32> to vector<16x512xbf16>
    %cst_190 = arith.constant dense<0.000000e+00> : vector<16x512xf32>
    %340 = tpu.matmul %339, %338, %cst_190 {dimension_numbers = #tpu.dot_dimension_numbers<[1], [0], [0], [1], [0, 0, 1, 1], [], []>} : vector<16x512xbf16>, vector<512x512xbf16>, vector<16x512xf32> -> vector<16x512xf32>
    %c0_191 = arith.constant 0 : index
    %c5760 = arith.constant 5760 : index
    %341 = vector.load %arg5[%c0_191, %c5760] : memref<1x6912xf32, #tpu.memory_space<vmem>>, vector<1x512xf32>
    %342 = vector.broadcast %341 : vector<1x512xf32> to vector<16x512xf32>
    %343 = arith.addf %340, %342 : vector<16x512xf32>
    %cst_192 = arith.constant 0.000000e+00 : f32
    %344 = vector.broadcast %cst_192 : f32 to vector<16x512xf32>
    %345 = arith.subf %344, %343 : vector<16x512xf32>
    %346 = math.exp %345 : vector<16x512xf32>
    %cst_193 = arith.constant 1.000000e+00 : f32
    %347 = vector.broadcast %cst_193 : f32 to vector<16x512xf32>
    %348 = arith.addf %347, %346 : vector<16x512xf32>
    %cst_194 = arith.constant 1.000000e+00 : f32
    %349 = vector.broadcast %cst_194 : f32 to vector<16x512xf32>
    %350 = arith.divf %349, %348 : vector<16x512xf32>
    %351 = arith.mulf %343, %350 : vector<16x512xf32>
    %352 = vector.extract_strided_slice %351 {offsets = [0, 0], sizes = [16, 256], strides = [1, 1]} : vector<16x512xf32> to vector<16x256xf32>
    %353 = arith.addf %352, %171 : vector<16x256xf32>
    %354 = vector.extract_strided_slice %351 {offsets = [0, 256], sizes = [16, 128], strides = [1, 1]} : vector<16x512xf32> to vector<16x128xf32>
    %355 = arith.addf %354, %302 : vector<16x128xf32>
    %356 = vector.extract_strided_slice %351 {offsets = [0, 384], sizes = [16, 128], strides = [1, 1]} : vector<16x512xf32> to vector<16x128xf32>
    %357 = arith.addf %356, %304 : vector<16x128xf32>
    %c0_195 = arith.constant 0 : index
    %c0_196 = arith.constant 0 : index
    %358 = vector.load %arg31[%c0_195, %c0_196] : memref<1024x128xbf16, #tpu.memory_space<vmem>>, vector<512x128xbf16>
    %359 = arith.truncf %125 : vector<16x512xf32> to vector<16x512xbf16>
    %cst_197 = arith.constant dense<0.000000e+00> : vector<16x128xf32>
    %360 = tpu.matmul %359, %358, %cst_197 {dimension_numbers = #tpu.dot_dimension_numbers<[1], [0], [0], [1], [0, 0, 1, 1], [], []>} : vector<16x512xbf16>, vector<512x128xbf16>, vector<16x128xf32> -> vector<16x128xf32>
    %c512_198 = arith.constant 512 : index
    %c0_199 = arith.constant 0 : index
    %361 = vector.load %arg31[%c512_198, %c0_199] : memref<1024x128xbf16, #tpu.memory_space<vmem>>, vector<256x128xbf16>
    %362 = arith.truncf %353 : vector<16x256xf32> to vector<16x256xbf16>
    %cst_200 = arith.constant dense<0.000000e+00> : vector<16x128xf32>
    %363 = tpu.matmul %362, %361, %cst_200 {dimension_numbers = #tpu.dot_dimension_numbers<[1], [0], [0], [1], [0, 0, 1, 1], [], []>} : vector<16x256xbf16>, vector<256x128xbf16>, vector<16x128xf32> -> vector<16x128xf32>
    %364 = arith.addf %360, %363 : vector<16x128xf32>
    %c768 = arith.constant 768 : index
    %c0_201 = arith.constant 0 : index
    %365 = vector.load %arg31[%c768, %c0_201] : memref<1024x128xbf16, #tpu.memory_space<vmem>>, vector<128x128xbf16>
    %366 = arith.truncf %355 : vector<16x128xf32> to vector<16x128xbf16>
    %cst_202 = arith.constant dense<0.000000e+00> : vector<16x128xf32>
    %367 = tpu.matmul %366, %365, %cst_202 {dimension_numbers = #tpu.dot_dimension_numbers<[1], [0], [0], [1], [0, 0, 1, 1], [], []>} : vector<16x128xbf16>, vector<128x128xbf16>, vector<16x128xf32> -> vector<16x128xf32>
    %368 = arith.addf %364, %367 : vector<16x128xf32>
    %c896 = arith.constant 896 : index
    %c0_203 = arith.constant 0 : index
    %369 = vector.load %arg31[%c896, %c0_203] : memref<1024x128xbf16, #tpu.memory_space<vmem>>, vector<128x128xbf16>
    %370 = arith.truncf %357 : vector<16x128xf32> to vector<16x128xbf16>
    %cst_204 = arith.constant dense<0.000000e+00> : vector<16x128xf32>
    %371 = tpu.matmul %370, %369, %cst_204 {dimension_numbers = #tpu.dot_dimension_numbers<[1], [0], [0], [1], [0, 0, 1, 1], [], []>} : vector<16x128xbf16>, vector<128x128xbf16>, vector<16x128xf32> -> vector<16x128xf32>
    %372 = arith.addf %368, %371 : vector<16x128xf32>
    %c0_205 = arith.constant 0 : index
    %c6784 = arith.constant 6784 : index
    %373 = vector.load %arg5[%c0_205, %c6784] : memref<1x6912xf32, #tpu.memory_space<vmem>>, vector<1x128xf32>
    %374 = vector.broadcast %373 : vector<1x128xf32> to vector<16x128xf32>
    %375 = arith.addf %372, %374 : vector<16x128xf32>
    %cst_206 = arith.constant -2.500000e-01 : f32
    %376 = vector.broadcast %cst_206 : f32 to vector<16x1xf32>
    %377 = arith.mulf %376, %3 : vector<16x1xf32>
    %378 = arith.mulf %377, %3 : vector<16x1xf32>
    %cst_207 = arith.constant 1.990000e+01 : f32
    %379 = vector.broadcast %cst_207 : f32 to vector<16x1xf32>
    %380 = arith.mulf %378, %379 : vector<16x1xf32>
    %cst_208 = arith.constant 5.000000e-01 : f32
    %381 = vector.broadcast %cst_208 : f32 to vector<16x1xf32>
    %382 = arith.mulf %381, %3 : vector<16x1xf32>
    %cst_209 = arith.constant 1.000000e-01 : f32
    %383 = vector.broadcast %cst_209 : f32 to vector<16x1xf32>
    %384 = arith.mulf %382, %383 : vector<16x1xf32>
    %385 = arith.subf %380, %384 : vector<16x1xf32>
    %386 = math.tanh %385 : vector<16x1xf32>
    %cst_210 = arith.constant -2.000000e+00 : f32
    %387 = vector.broadcast %cst_210 : f32 to vector<16x1xf32>
    %388 = arith.mulf %387, %386 : vector<16x1xf32>
    %cst_211 = arith.constant 1.000000e+00 : f32
    %389 = vector.broadcast %cst_211 : f32 to vector<16x1xf32>
    %390 = arith.subf %389, %386 : vector<16x1xf32>
    %391 = arith.divf %388, %390 : vector<16x1xf32>
    %392 = math.rsqrt %391 : vector<16x1xf32>
    %393 = vector.broadcast %392 : vector<16x1xf32> to vector<16x128xf32>
    %394 = arith.mulf %375, %393 : vector<16x128xf32>
    %c0_212 = arith.constant 0 : index
    %c0_213 = arith.constant 0 : index
    %395 = vector.load %arg32[%c0_212, %c0_213] : memref<16x128xf32, #tpu.memory_space<vmem>>, vector<16x128xf32>
    tpu.vector_store %arg32[%c0_212, %c0_213], %394 {strides = array<i32>} : memref<16x128xf32, #tpu.memory_space<vmem>>, vector<16x128xf32>,
    return
  }
  func.func @transform_0(%arg0: i32) -> (i32, i32) {
    %c0_i32 = arith.constant 0 : i32
    %c0_i32_0 = arith.constant 0 : i32
    return %arg0, %c0_i32 : i32, i32
  }
  func.func @transform_1(%arg0: i32) -> (i32, i32) {
    %c0_i32 = arith.constant 0 : i32
    %c0_i32_0 = arith.constant 0 : i32
    return %arg0, %c0_i32 : i32, i32
  }
  func.func @transform_2(%arg0: i32) -> (i32, i32) {
    %c0_i32 = arith.constant 0 : i32
    %c0_i32_0 = arith.constant 0 : i32
    return %arg0, %c0_i32 : i32, i32
  }
  func.func @transform_3(%arg0: i32) -> (i32, i32) {
    %c0_i32 = arith.constant 0 : i32
    %c0_i32_0 = arith.constant 0 : i32
    return %arg0, %c0_i32 : i32, i32
  }
  func.func @transform_4(%arg0: i32) -> (i32, i32) {
    %c0_i32 = arith.constant 0 : i32
    %c0_i32_0 = arith.constant 0 : i32
    %c0_i32_1 = arith.constant 0 : i32
    return %c0_i32, %c0_i32_0 : i32, i32
  }
  func.func @transform_5(%arg0: i32) -> (i32, i32) {
    %c0_i32 = arith.constant 0 : i32
    %c0_i32_0 = arith.constant 0 : i32
    %c0_i32_1 = arith.constant 0 : i32
    return %c0_i32, %c0_i32_0 : i32, i32
  }
  func.func @transform_6(%arg0: i32) -> (i32, i32) {
    %c0_i32 = arith.constant 0 : i32
    %c0_i32_0 = arith.constant 0 : i32
    %c0_i32_1 = arith.constant 0 : i32
    return %c0_i32, %c0_i32_0 : i32, i32
  }
  func.func @transform_7(%arg0: i32) -> (i32, i32) {
    %c0_i32 = arith.constant 0 : i32
    %c0_i32_0 = arith.constant 0 : i32
    %c0_i32_1 = arith.constant 0 : i32
    return %c0_i32, %c0_i32_0 : i32, i32
  }
  func.func @transform_8(%arg0: i32) -> (i32, i32) {
    %c0_i32 = arith.constant 0 : i32
    %c0_i32_0 = arith.constant 0 : i32
    %c0_i32_1 = arith.constant 0 : i32
    return %c0_i32, %c0_i32_0 : i32, i32
  }
  func.func @transform_9(%arg0: i32) -> (i32, i32) {
    %c0_i32 = arith.constant 0 : i32
    %c0_i32_0 = arith.constant 0 : i32
    %c0_i32_1 = arith.constant 0 : i32
    return %c0_i32, %c0_i32_0 : i32, i32
  }
  func.func @transform_10(%arg0: i32) -> (i32, i32) {
    %c0_i32 = arith.constant 0 : i32
    %c0_i32_0 = arith.constant 0 : i32
    %c0_i32_1 = arith.constant 0 : i32
    return %c0_i32, %c0_i32_0 : i32, i32
  }
  func.func @transform_11(%arg0: i32) -> (i32, i32) {
    %c0_i32 = arith.constant 0 : i32
    %c0_i32_0 = arith.constant 0 : i32
    %c0_i32_1 = arith.constant 0 : i32
    return %c0_i32, %c0_i32_0 : i32, i32
  }
  func.func @transform_12(%arg0: i32) -> (i32, i32) {
    %c0_i32 = arith.constant 0 : i32
    %c0_i32_0 = arith.constant 0 : i32
    %c0_i32_1 = arith.constant 0 : i32
    return %c0_i32, %c0_i32_0 : i32, i32
  }
  func.func @transform_13(%arg0: i32) -> (i32, i32) {
    %c0_i32 = arith.constant 0 : i32
    %c0_i32_0 = arith.constant 0 : i32
    %c0_i32_1 = arith.constant 0 : i32
    return %c0_i32, %c0_i32_0 : i32, i32
  }
  func.func @transform_14(%arg0: i32) -> (i32, i32) {
    %c0_i32 = arith.constant 0 : i32
    %c0_i32_0 = arith.constant 0 : i32
    %c0_i32_1 = arith.constant 0 : i32
    return %c0_i32, %c0_i32_0 : i32, i32
  }
  func.func @transform_15(%arg0: i32) -> (i32, i32) {
    %c0_i32 = arith.constant 0 : i32
    %c0_i32_0 = arith.constant 0 : i32
    %c0_i32_1 = arith.constant 0 : i32
    return %c0_i32, %c0_i32_0 : i32, i32
  }
  func.func @transform_16(%arg0: i32) -> (i32, i32) {
    %c0_i32 = arith.constant 0 : i32
    %c0_i32_0 = arith.constant 0 : i32
    %c0_i32_1 = arith.constant 0 : i32
    return %c0_i32, %c0_i32_0 : i32, i32
  }
  func.func @transform_17(%arg0: i32) -> (i32, i32) {
    %c0_i32 = arith.constant 0 : i32
    %c0_i32_0 = arith.constant 0 : i32
    %c0_i32_1 = arith.constant 0 : i32
    return %c0_i32, %c0_i32_0 : i32, i32
  }
  func.func @transform_18(%arg0: i32) -> (i32, i32) {
    %c0_i32 = arith.constant 0 : i32
    %c0_i32_0 = arith.constant 0 : i32
    %c0_i32_1 = arith.constant 0 : i32
    return %c0_i32, %c0_i32_0 : i32, i32
  }
  func.func @transform_19(%arg0: i32) -> (i32, i32) {
    %c0_i32 = arith.constant 0 : i32
    %c0_i32_0 = arith.constant 0 : i32
    %c0_i32_1 = arith.constant 0 : i32
    return %c0_i32, %c0_i32_0 : i32, i32
  }
  func.func @transform_20(%arg0: i32) -> (i32, i32) {
    %c0_i32 = arith.constant 0 : i32
    %c0_i32_0 = arith.constant 0 : i32
    %c0_i32_1 = arith.constant 0 : i32
    return %c0_i32, %c0_i32_0 : i32, i32
  }
  func.func @transform_21(%arg0: i32) -> (i32, i32) {
    %c0_i32 = arith.constant 0 : i32
    %c0_i32_0 = arith.constant 0 : i32
    %c0_i32_1 = arith.constant 0 : i32
    return %c0_i32, %c0_i32_0 : i32, i32
  }
  func.func @transform_22(%arg0: i32) -> (i32, i32) {
    %c0_i32 = arith.constant 0 : i32
    %c0_i32_0 = arith.constant 0 : i32
    %c0_i32_1 = arith.constant 0 : i32
    return %c0_i32, %c0_i32_0 : i32, i32
  }
  func.func @transform_23(%arg0: i32) -> (i32, i32) {
    %c0_i32 = arith.constant 0 : i32
    %c0_i32_0 = arith.constant 0 : i32
    %c0_i32_1 = arith.constant 0 : i32
    return %c0_i32, %c0_i32_0 : i32, i32
  }
  func.func @transform_24(%arg0: i32) -> (i32, i32) {
    %c0_i32 = arith.constant 0 : i32
    %c0_i32_0 = arith.constant 0 : i32
    %c0_i32_1 = arith.constant 0 : i32
    return %c0_i32, %c0_i32_0 : i32, i32
  }
  func.func @transform_25(%arg0: i32) -> (i32, i32) {
    %c0_i32 = arith.constant 0 : i32
    %c0_i32_0 = arith.constant 0 : i32
    %c0_i32_1 = arith.constant 0 : i32
    return %c0_i32, %c0_i32_0 : i32, i32
  }
  func.func @transform_26(%arg0: i32) -> (i32, i32) {
    %c0_i32 = arith.constant 0 : i32
    %c0_i32_0 = arith.constant 0 : i32
    %c0_i32_1 = arith.constant 0 : i32
    return %c0_i32, %c0_i32_0 : i32, i32
  }
  func.func @transform_27(%arg0: i32) -> (i32, i32) {
    %c0_i32 = arith.constant 0 : i32
    %c0_i32_0 = arith.constant 0 : i32
    %c0_i32_1 = arith.constant 0 : i32
    return %c0_i32, %c0_i32_0 : i32, i32
  }
  func.func @transform_28(%arg0: i32) -> (i32, i32) {
    %c0_i32 = arith.constant 0 : i32
    %c0_i32_0 = arith.constant 0 : i32
    %c0_i32_1 = arith.constant 0 : i32
    return %c0_i32, %c0_i32_0 : i32, i32
  }
  func.func @transform_29(%arg0: i32) -> (i32, i32) {
    %c0_i32 = arith.constant 0 : i32
    %c0_i32_0 = arith.constant 0 : i32
    %c0_i32_1 = arith.constant 0 : i32
    return %c0_i32, %c0_i32_0 : i32, i32
  }
  func.func @transform_30(%arg0: i32) -> (i32, i32) {
    %c0_i32 = arith.constant 0 : i32
    %c0_i32_0 = arith.constant 0 : i32
    %c0_i32_1 = arith.constant 0 : i32
    return %c0_i32, %c0_i32_0 : i32, i32
  }
  func.func @transform_31(%arg0: i32) -> (i32, i32) {
    %c0_i32 = arith.constant 0 : i32
    %c0_i32_0 = arith.constant 0 : i32
    return %arg0, %c0_i32 : i32, i32
  }
}

</mosaic_0001>

<bundles_post_ra>
// kernel: generatenet_forward.1
= control target key start
LH: loop header
LB: loop body
LE: loop exit
PB: predicated region body
PF: predicated region fallthrough
CT: control target
= control target key end

     0   :  { %s17769_s6 = smov 1   ;;  %s17770_s10 = smov 2   ;;  %s20351_s0 = inlined_call_operand.smem [shape: u32[32], index: -1, kind: input, shape index: {}] }
   0x1   :  { %s17839_s5 = sld [smem:[%s20351_s0]]   ;;  %s17771_s14 = smov 3  }
   0x2   :  { %s17844_s9 = sld [smem:[%s20351_s0 + %s17769_s6]]   ;;  %s17772_s18 = smov 4  }
   0x3   :  { %s17849_s13 = sld [smem:[%s20351_s0 + %s17770_s10]]   ;;  %s17773_s22 = smov 5  }
   0x4   :  { %s17854_s17 = sld [smem:[%s20351_s0 + %s17771_s14]]   ;;  %s17774_s26 = smov 6  }
   0x5   :  { %s17859_s21 = sld [smem:[%s20351_s0 + %s17772_s18]]   ;;  %s17775_s30 = smov 7  }
   0x6   :  { %s17864_s25 = sld [smem:[%s20351_s0 + %s17773_s22]]   ;;  %s17776_s4 = smov 8  }
   0x7   :  { %20401 = sst [smem:[#allocation52_spill]] %s17839_s5  ;;  %s17777_s10 = smov 9  }
   0x8   :  { %20402 = sst [smem:[#allocation53_spill]] %s17844_s9  ;;  %s17778_s15 = smov 10  }
   0x9   :  { %20403 = sst [smem:[#allocation54_spill]] %s17849_s13  ;;  %s17779_s20 = smov 11  }
   0xa   :  { %20404 = sst [smem:[#allocation55_spill]] %s17854_s17  ;;  %s17781_s1 = smov 13  }
   0xb   :  { %s17869_s29 = sld [smem:[%s20351_s0 + %s17774_s26]]   ;;  %s17780_s26 = smov 12  }
   0xc   :  { %20405 = sst [smem:[#allocation56_spill]] %s17864_s25  ;;  %s17782_s7 = smov 14  }
   0xd   :  { %s17874_s3 = sld [smem:[%s20351_s0 + %s17775_s30]]   ;;  %s17784_s22 = smov 16  }
   0xe   :  { %s17879_s8 = sld [smem:[%s20351_s0 + %s17776_s4]]   ;;  %s17785_s28 = smov 17  }
   0xf   :  { %s17884_s14 = sld [smem:[%s20351_s0 + %s17777_s10]]  }
  0x10   :  { %s17889_s19 = sld [smem:[%s20351_s0 + %s17778_s15]]   ;;  %s17783_s15 = smov 15  }
  0x11   :  { %s17894_s24 = sld [smem:[%s20351_s0 + %s17779_s20]]  }
  0x12   :  { %s17899_s30 = sld [smem:[%s20351_s0 + %s17780_s26]]  }
  0x13   :  { %20406 = sst [smem:[#allocation57_spill]] %s17874_s3 }
  0x14   :  { %20407 = sst [smem:[#allocation58_spill]] %s17879_s8 }
  0x15   :  { %20408 = sst [smem:[#allocation59_spill]] %s17884_s14 }
  0x16   :  { %s17904_s6 = sld [smem:[%s20351_s0 + %s17781_s1]]  }
  0x17   :  { %20409 = sst [smem:[#allocation60_spill]] %s17894_s24 }
  0x18   :  { %s17909_s12 = sld [smem:[%s20351_s0 + %s17782_s7]]   ;;  %s17786_s7 = smov 18  }
  0x19   :  { %s17914_s20 = sld [smem:[%s20351_s0 + %s17783_s15]]   ;;  %s17787_s15 = smov 19  }
  0x1a   :  { %s17919_s27 = sld [smem:[%s20351_s0 + %s17784_s22]]   ;;  %s17788_s22 = smov 20  }
  0x1b   :  { %s17924_s4 = sld [smem:[%s20351_s0 + %s17785_s28]]   ;;  %s17789_s28 = smov 21  }
  0x1c   :  { %20410 = sst [smem:[#allocation61_spill]] %s17904_s6 }
  0x1d   :  { %s17929_s17 = sld [smem:[%s20351_s0 + %s17786_s7]]   ;;  %s17790_s7 = smov 22  }
  0x1e   :  { %20411 = sst [smem:[#allocation62_spill]] %s17909_s12 }
  0x1f   :  { %20412 = sst [smem:[#allocation63_spill]] %s17914_s20 }
  0x20   :  { %s17934_s12 = sld [smem:[%s20351_s0 + %s17787_s15]]   ;;  %s17791_s15 = smov 23  }
  0x21   :  { %20413 = sst [smem:[#allocation64_spill]] %s17924_s4 }
  0x22   :  { %s17939_s14 = sld [smem:[%s20351_s0 + %s17788_s22]]   ;;  %s17792_s22 = smov 24  }
  0x23   :  { %20414 = sst [smem:[#allocation65_spill]] %s17929_s17 }
  0x24   :  { %s17944_s5 = sld [smem:[%s20351_s0 + %s17789_s28]]   ;;  %s17793_s28 = smov 25  }
  0x25   :  { %s17949_s13 = sld [smem:[%s20351_s0 + %s17790_s7]]   ;;  %s17794_s7 = smov 26  }
  0x26   :  { %20415 = sst [smem:[#allocation66_spill]] %s17934_s12 }
  0x27   :  { %s17954_s9 = sld [smem:[%s20351_s0 + %s17791_s15]]   ;;  %s17795_s15 = smov 27  }
  0x28   :  { %20416 = sst [smem:[#allocation67_spill]] %s17939_s14 }
  0x29   :  { %s17959_s25 = sld [smem:[%s20351_s0 + %s17792_s22]]   ;;  %s17796_s22 = smov 28  }
  0x2a   :  { %20417 = sst [smem:[#allocation68_spill]] %s17944_s5 }
  0x2b   :  { %20418 = sst [smem:[#allocation69_spill]] %s17949_s13 }
  0x2c   :  { %s17964_s5 = sld [smem:[%s20351_s0 + %s17793_s28]]   ;;  %s17797_s28 = smov 29  }
  0x2d   :  { %20419 = sst [smem:[#allocation70_spill]] %s17954_s9 }
  0x2e   :  { %s17969_s12 = sld [smem:[%s20351_s0 + %s17794_s7]]   ;;  %s17798_s7 = smov 30  }
  0x2f   :  { %s17974_s9 = sld [smem:[%s20351_s0 + %s17795_s15]]   ;;  %s17799_s15 = smov 31  }
  0x30   :  { %s17979_s4 = sld [smem:[%s20351_s0 + %s17796_s22]]  }
  0x31   :  { %s17989_s20 = sld [smem:[%s20351_s0 + %s17798_s7]]  }
  0x32   :  { %20420 = sst [smem:[#allocation71_spill]] %s17964_s5 }
  0x33   :  { %s17984_s5 = sld [smem:[%s20351_s0 + %s17797_s28]]  }
  0x34   :  { %20421 = sst [smem:[#allocation72_spill]] %s17969_s12 }
  0x35   :  { %20422 = sst [smem:[#allocation73_spill]] %s17974_s9 }
  0x36   :  { %20423 = sst [smem:[#allocation74_spill]] %s17979_s4 }
  0x37   :  { %s17994_s9 = sld [smem:[%s20351_s0 + %s17799_s15]]  }
  0x38   :  { %68 = vsyncpa [#allocation3], 0 }
  0x39   :  { %69 = vsyncpa [#allocation5], 0 }
  0x3a   :  { %70 = vsyncpa [#allocation8], 0 }
  0x3b   :  { %71 = vsyncpa [#allocation11], 0 }
  0x3c   :  { %72 = vsyncpa [#allocation14], 0 }
  0x3d   :  { %73 = vsyncpa [#allocation17], 0 }
  0x3e   :  { %74 = vsyncpa [#allocation20], 0 }
  0x3f   :  { %75 = vsyncpa [#allocation23], 0 }
  0x40   :  { %76 = vsyncpa [#allocation26], 0 }
  0x41   :  { %77 = vsyncpa [#allocation29], 0 }
  0x42   :  { %78 = vsyncpa [#allocation32], 0 }
  0x43   :  { %79 = vsyncpa [#allocation35], 0 }
  0x44   :  { %80 = vsyncpa [#allocation38], 0  ;;  %s17996_s22 = smov 0  }
  0x45 LB: > { %s20424_s17 = sld [smem:[#allocation65_spill]]  ;;  %s18002_s0 = sadd.s32 4294967295, %s17767_s22   ;;  %s17767_s22 = sphi %s17996_s22, %s86_s22  }
  0x46   : > { %s20425_s14 = sld [smem:[#allocation67_spill]]  ;;  %p11604_p0 = scmp.ge.s32.totalorder %s17767_s22, 1 }
  0x47   : > { %s20426_s13 = sld [smem:[#allocation69_spill]]  ;;  %p788_p1 = scmp.lt.s32.totalorder %s17767_s22, 3 }
  0x48   : > { %s20427_s3 = sld [smem:[#allocation57_spill]] }
  0x49   : > { %s20428_s4 = sld [smem:[#allocation74_spill]]  ;;  %p18006_p2 = pnand %p11604_p0, %p788_p1 }
  0x4a   : > { %s20429_s12 = sld [smem:[#allocation72_spill]]  ;;  %p16628_p3 = scmp.eq.s32.totalorder (!%p18006_p2), %s18002_s0, 0 }
  0x4b   : > { %s20430_s6 = sld [smem:[#allocation61_spill]]  ;;  %792 = sbr.rel (%p18006_p2) target bundleno = 394 (0x18a), region = 12 }
  0x4c   : > { %s20431_s24 = sld [smem:[#allocation60_spill]]  ;;  %s814_s26 = sshll.u32 (!%p18006_p2), %s17869_s29, 4  ;;  %s815_s26 = int_to_ptr.hbm [resolvable:$true] %s814_s26 }
  0x4d   : > { %s20432_s8 = sld [smem:[#allocation58_spill]]  ;;  %s17800_s28 = smov (!%p18006_p2), [#allocation4]  }
  0x4e   : > { %s816_s1 = sshll.u32 (!%p18006_p2), %s17800_s28, 4  ;;  %s17037_s2 = sshra.s32 (!%p18006_p2), %s815_s26, 4  ;;  %s817_s1 = int_to_ptr.vmem [resolvable:$true] %s816_s1  ;;  %s17038_s2 = int_to_ptr.hbm [resolvable:$true] %s17037_s2 }
  0x4f   : > { %s17039_s7 = scalar_lea.hbm (!%p18006_p2), %s17038_s2, 8  ;;  %s17043_s10 = scalar_lea.hbm (!%p18006_p2), %s17869_s29, 8 }
  0x50   : > { %p17040_p4 = scmp.ne.s32.totalorder %s17038_s2, %s17039_s7  ;;  %p17044_p7 = scmp.lt.s32.totalorder %s17038_s2, %s17869_s29 }
  0x51   : > { %p17045_p8 = scmp.lt.s32.totalorder %s17043_s10, %s17039_s7 }
  0x52   : > { %p17041_p5 = pnand %p17040_p4, %p16628_p3 }
  0x53   : > { %p17046_p9 = por %p17045_p8, %p17044_p7 }
  0x54   : > { %p17042_p6 = pneg %p17041_p5 }
  0x56   : > { %p17047_p10 = pnand %p17046_p9, %p17042_p6 }
  0x58   : > { %17050 = shalt.err (!%p17047_p10)
}
  0x59   : > { %s20363_s11 = smov 64   ;;  %s20365_s15 = smov 4  }
  0x5a   : > { %16535 = dma.hbm_to_vmem [thread:$0]  (%p16628_p3), %s815_s26, 128, %s817_s1, [#allocation5], %s20363_s11, %s20363_s11, %s20365_s15  }
  0x5b   : > { %s842_s16 = sshll.u32 %s20432_s8, 4  ;;  %s17803_s18 = smov [#allocation7]   ;;  %s843_s16 = int_to_ptr.hbm [resolvable:$true] %s842_s16 }
  0x5c   : > { %s844_s28 = sshll.u32 %s17803_s18, 4  ;;  %s17065_s2 = sshra.s32 %s843_s16, 4  ;;  %s845_s28 = int_to_ptr.vmem [resolvable:$true] %s844_s28  ;;  %s17066_s2 = int_to_ptr.hbm [resolvable:$true] %s17065_s2 }
  0x5d   : > { %s17067_s7 = scalar_lea.hbm %s17066_s2, 64  ;;  %s17071_s10 = scalar_lea.hbm %s20432_s8, 64 }
  0x5e   : > { %p17068_p11 = scmp.ne.s32.totalorder %s17066_s2, %s17067_s7  ;;  %p17072_p0 = scmp.lt.s32.totalorder %s17066_s2, %s20432_s8 }
  0x5f   : > { %p17073_p1 = scmp.lt.s32.totalorder %s17071_s10, %s17067_s7 }
  0x60   : > { %p17069_p12 = pnand %p17068_p11, %p16628_p3 }
  0x61   : > { %p17074_p4 = por %p17073_p1, %p17072_p0 }
  0x62   : > { %p17070_p13 = pneg %p17069_p12 }
  0x64   : > { %p17075_p5 = pnand %p17074_p4, %p17070_p13 }
  0x66   : > { %17078 = shalt.err (!%p17075_p5)
}
  0x67   : > { %16539 = dma.hbm_to_vmem [thread:$0]  (%p16628_p3), %s843_s16, 1024, %s845_s28, [#allocation8], %s20363_s11, %s20363_s11, %s20365_s15  }
  0x68   : > { %s873_s26 = sshll.u32 %s20431_s24, 4  ;;  %s17804_s1 = smov [#allocation10]   ;;  %s874_s26 = int_to_ptr.hbm [resolvable:$true] %s873_s26 }
  0x69   : > { %s875_s18 = sshll.u32 %s17804_s1, 4  ;;  %s899_s2 = sshll.u32 %s20430_s6, 4  ;;  %s876_s18 = int_to_ptr.vmem [resolvable:$true] %s875_s18  ;;  %s18035_s2 = int_to_ptr.hbm [resolvable:$true] %s899_s2 }
  0x6a   : > { %s17093_s7 = sshra.s32 %s874_s26, 4  ;;  %s17099_s8 = scalar_lea.hbm %s20431_s24, 512  ;;  %s17094_s7 = int_to_ptr.hbm [resolvable:$true] %s17093_s7 }
  0x6b   : > { %s17095_s10 = scalar_lea.hbm %s17094_s7, 512  ;;  %p17100_p9 = scmp.lt.s32.totalorder %s17094_s7, %s20431_s24 }
  0x6c   : > { %p17096_p6 = scmp.ne.s32.totalorder %s17094_s7, %s17095_s10  ;;  %p17101_p10 = scmp.lt.s32.totalorder %s17099_s8, %s17095_s10 }
  0x6e   : > { %p17097_p7 = pnand %p17096_p6, %p16628_p3  ;;  %p17102_p11 = por %p17101_p10, %p17100_p9 }
  0x70   : > { %p17098_p8 = pneg %p17097_p7 }
  0x72   : > { %p17103_p12 = pnand %p17102_p11, %p17098_p8 }
  0x74   : > { %17106 = shalt.err (!%p17103_p12)
}
  0x75   : > { %s20368_s16 = smov 256   ;;  %s20370_s28 = smov 16  }
  0x76   : > { %16543 = dma.hbm_to_vmem [thread:$0]  (%p16628_p3), %s874_s26, 8192, %s876_s18, [#allocation11], %s20368_s16, %s20368_s16, %s20370_s28  }
  0x77   : > { %s17807_s1 = smov [#allocation13]   ;;  %s930_s8 = sshll.u32 %s17919_s27, 4  ;;  %s931_s8 = int_to_ptr.hbm [resolvable:$true] %s930_s8 }
  0x78   : > { %s901_s11 = sshll.u32 %s17807_s1, 4  ;;  %s17121_s7 = sshra.s32 %s18035_s2, 4  ;;  %s902_s11 = int_to_ptr.vmem [resolvable:$true] %s901_s11  ;;  %s17122_s7 = int_to_ptr.hbm [resolvable:$true] %s17121_s7 }
  0x79   : > { %s17123_s10 = scalar_lea.hbm %s17122_s7, 512  ;;  %s17127_s15 = scalar_lea.hbm %s20430_s6, 512 }
  0x7a   : > { %p17124_p13 = scmp.ne.s32.totalorder %s17122_s7, %s17123_s10  ;;  %p17128_p4 = scmp.lt.s32.totalorder %s17122_s7, %s20430_s6 }
  0x7b   : > { %p17129_p5 = scmp.lt.s32.totalorder %s17127_s15, %s17123_s10 }
  0x7c   : > { %p17125_p0 = pnand %p17124_p13, %p16628_p3 }
  0x7d   : > { %p17130_p6 = por %p17129_p5, %p17128_p4 }
  0x7e   : > { %p17126_p1 = pneg %p17125_p0 }
  0x80   : > { %p17131_p7 = pnand %p17130_p6, %p17126_p1 }
  0x82   : > { %17134 = shalt.err (!%p17131_p7)
}
  0x83   : > { %s20372_s24 = smov 128   ;;  %s20375_s26 = smov 8  }
  0x84   : > { %16547 = dma.hbm_to_vmem [thread:$0]  (%p16628_p3), %s18035_s2, 8192, %s902_s11, [#allocation14], %s20372_s24, %s20372_s24, %s20375_s26  }
  0x85   : > { %s17810_s18 = smov [#allocation16]   ;;  %s958_s15 = sshll.u32 %s20424_s17, 4  ;;  %s18059_s15 = int_to_ptr.hbm [resolvable:$true] %s958_s15 }
  0x86   : > { %s932_s1 = sshll.u32 %s17810_s18, 4  ;;  %s17149_s7 = sshra.s32 %s931_s8, 4  ;;  %s933_s1 = int_to_ptr.vmem [resolvable:$true] %s932_s1  ;;  %s17150_s7 = int_to_ptr.hbm [resolvable:$true] %s17149_s7 }
  0x87   : > { %s17151_s10 = scalar_lea.hbm %s17150_s7, 512  ;;  %s17155_s16 = scalar_lea.hbm %s17919_s27, 512 }
  0x88   : > { %p17152_p8 = scmp.ne.s32.totalorder %s17150_s7, %s17151_s10  ;;  %p17156_p11 = scmp.lt.s32.totalorder %s17150_s7, %s17919_s27 }
  0x89   : > { %p17157_p12 = scmp.lt.s32.totalorder %s17155_s16, %s17151_s10 }
  0x8a   : > { %p17153_p9 = pnand %p17152_p8, %p16628_p3 }
  0x8b   : > { %p17158_p13 = por %p17157_p12, %p17156_p11 }
  0x8c   : > { %p17154_p10 = pneg %p17153_p9 }
  0x8e   : > { %p17159_p0 = pnand %p17158_p13, %p17154_p10 }
  0x90   : > { %17162 = shalt.err (!%p17159_p0)
}
  0x91   : > { %16551 = dma.hbm_to_vmem [thread:$0]  (%p16628_p3), %s931_s8, 8192, %s933_s1, [#allocation17], %s20372_s24, %s20372_s24, %s20375_s26  }
  0x92   : > { %s986_s11 = sshll.u32 %s20425_s14, 4  ;;  %s17811_s2 = smov [#allocation19]   ;;  %s18071_s11 = int_to_ptr.hbm [resolvable:$true] %s986_s11 }
  0x93   : > { %s960_s18 = sshll.u32 %s17811_s2, 4  ;;  %s17177_s16 = sshra.s32 %s18059_s15, 4  ;;  %s961_s18 = int_to_ptr.vmem [resolvable:$true] %s960_s18  ;;  %s17178_s16 = int_to_ptr.hbm [resolvable:$true] %s17177_s16 }
  0x94   : > { %s17179_s7 = scalar_lea.hbm %s17178_s16, 64  ;;  %s17183_s10 = scalar_lea.hbm %s20424_s17, 64 }
  0x95   : > { %p17180_p1 = scmp.ne.s32.totalorder %s17178_s16, %s17179_s7  ;;  %p17184_p6 = scmp.lt.s32.totalorder %s17178_s16, %s20424_s17 }
  0x96   : > { %p17185_p7 = scmp.lt.s32.totalorder %s17183_s10, %s17179_s7 }
  0x97   : > { %p17181_p4 = pnand %p17180_p1, %p16628_p3 }
  0x98   : > { %p17186_p8 = por %p17185_p7, %p17184_p6 }
  0x99   : > { %p17182_p5 = pneg %p17181_p4 }
  0x9b   : > { %p17187_p9 = pnand %p17186_p8, %p17182_p5 }
  0x9d   : > { %17190 = shalt.err (!%p17187_p9)
}
  0x9e   : > { %s20434_s8 = smov 4   ;;  %s20435_s1 = smov 64  }
  0x9f   : > { %16555 = dma.hbm_to_vmem [thread:$0]  (%p16628_p3), %s18059_s15, 1024, %s961_s18, [#allocation20], %s20435_s1, %s20435_s1, %s20434_s8  }
  0xa0   : > { %s17812_s2 = smov [#allocation22]   ;;  %s1014_s24 = sshll.u32 %s20426_s13, 4  ;;  %s18085_s24 = int_to_ptr.hbm [resolvable:$true] %s1014_s24 }
  0xa1   : > { %s988_s28 = sshll.u32 %s17812_s2, 4  ;;  %s17205_s16 = sshra.s32 %s18071_s11, 4  ;;  %s989_s28 = int_to_ptr.vmem [resolvable:$true] %s988_s28  ;;  %s17206_s16 = int_to_ptr.hbm [resolvable:$true] %s17205_s16 }
  0xa2   : > { %s17207_s7 = scalar_lea.hbm %s17206_s16, 128  ;;  %s17211_s10 = scalar_lea.hbm %s20425_s14, 128 }
  0xa3   : > { %p17208_p10 = scmp.ne.s32.totalorder %s17206_s16, %s17207_s7  ;;  %p17212_p13 = scmp.lt.s32.totalorder %s17206_s16, %s20425_s14 }
  0xa4   : > { %p17213_p0 = scmp.lt.s32.totalorder %s17211_s10, %s17207_s7 }
  0xa5   : > { %p17209_p11 = pnand %p17208_p10, %p16628_p3 }
  0xa6   : > { %p17214_p1 = por %p17213_p0, %p17212_p13 }
  0xa7   : > { %p17210_p12 = pneg %p17209_p11 }
  0xa9   : > { %p17215_p4 = pnand %p17214_p1, %p17210_p12 }
  0xab   : > { %17218 = shalt.err (!%p17215_p4)
}
  0xac   : > { %16559 = dma.hbm_to_vmem [thread:$0]  (%p16628_p3), %s18071_s11, 2048, %s989_s28, [#allocation23], %s20435_s1, %s20435_s1, %s20434_s8  }
  0xad   : > { %s1042_s15 = sshll.u32 %s17959_s25, 4  ;;  %s17813_s18 = smov [#allocation25]   ;;  %s18099_s15 = int_to_ptr.hbm [resolvable:$true] %s1042_s15 }
  0xae   : > { %s1016_s2 = sshll.u32 %s17813_s18, 4  ;;  %s17233_s16 = sshra.s32 %s18085_s24, 4  ;;  %s1017_s2 = int_to_ptr.vmem [resolvable:$true] %s1016_s2  ;;  %s17234_s16 = int_to_ptr.hbm [resolvable:$true] %s17233_s16 }
  0xaf   : > { %s17235_s7 = scalar_lea.hbm %s17234_s16, 64  ;;  %s17239_s10 = scalar_lea.hbm %s20426_s13, 64 }
  0xb0   : > { %p17236_p5 = scmp.ne.s32.totalorder %s17234_s16, %s17235_s7  ;;  %p17240_p8 = scmp.lt.s32.totalorder %s17234_s16, %s20426_s13 }
  0xb1   : > { %p17241_p9 = scmp.lt.s32.totalorder %s17239_s10, %s17235_s7 }
  0xb2   : > { %p17237_p6 = pnand %p17236_p5, %p16628_p3 }
  0xb3   : > { %p17242_p10 = por %p17241_p9, %p17240_p8 }
  0xb4   : > { %p17238_p7 = pneg %p17237_p6 }
  0xb6   : > { %p17243_p11 = pnand %p17242_p10, %p17238_p7 }
  0xb8   : > { %17246 = shalt.err (!%p17243_p11)
}
  0xb9   : > { %16563 = dma.hbm_to_vmem [thread:$0]  (%p16628_p3), %s18085_s24, 1024, %s1017_s2, [#allocation26], %s20435_s1, %s20435_s1, %s20434_s8  }
  0xba   : > { %s17814_s28 = smov [#allocation28]   ;;  %s1070_s18 = sshll.u32 %s20429_s12, 4  ;;  %s18113_s18 = int_to_ptr.hbm [resolvable:$true] %s1070_s18 }
  0xbb   : > { %s1044_s11 = sshll.u32 %s17814_s28, 4  ;;  %s17261_s16 = sshra.s32 %s18099_s15, 4  ;;  %s1045_s11 = int_to_ptr.vmem [resolvable:$true] %s1044_s11  ;;  %s17262_s16 = int_to_ptr.hbm [resolvable:$true] %s17261_s16 }
  0xbc   : > { %s17263_s7 = scalar_lea.hbm %s17262_s16, 256  ;;  %s17267_s10 = scalar_lea.hbm %s17959_s25, 256 }
  0xbd   : > { %p17264_p12 = scmp.ne.s32.totalorder %s17262_s16, %s17263_s7  ;;  %p17268_p1 = scmp.lt.s32.totalorder %s17262_s16, %s17959_s25 }
  0xbe   : > { %p17269_p4 = scmp.lt.s32.totalorder %s17267_s10, %s17263_s7 }
  0xbf   : > { %p17265_p13 = pnand %p17264_p12, %p16628_p3 }
  0xc0   : > { %p17270_p5 = por %p17269_p4, %p17268_p1 }
  0xc1   : > { %p17266_p0 = pneg %p17265_p13 }
  0xc3   : > { %p17271_p6 = pnand %p17270_p5, %p17266_p0 }
  0xc5   : > { %17274 = shalt.err (!%p17271_p6)
}
  0xc6   : > { %s20436_s24 = smov 128   ;;  %s1098_s2 = sshll.u32 %s20428_s4, 4  ;;  %s18127_s2 = int_to_ptr.hbm [resolvable:$true] %s1098_s2 }
  0xc7   : > { %16567 = dma.hbm_to_vmem [thread:$0]  (%p16628_p3), %s18099_s15, 4096, %s1045_s11, [#allocation29], %s20436_s24, %s20436_s24, %s20375_s26  }
  0xc8   : > { %s17815_s28 = smov [#allocation31]   ;;  %s17289_s16 = sshra.s32 %s18113_s18, 4  ;;  %s17290_s16 = int_to_ptr.hbm [resolvable:$true] %s17289_s16 }
  0xc9   : > { %s1072_s6 = sshll.u32 %s17815_s28, 4  ;;  %s17291_s7 = scalar_lea.hbm %s17290_s16, 256  ;;  %s1073_s6 = int_to_ptr.vmem [resolvable:$true] %s1072_s6 }
  0xca   : > { %p17292_p7 = scmp.ne.s32.totalorder %s17290_s16, %s17291_s7  ;;  %s17295_s10 = scalar_lea.hbm %s20429_s12, 256 }
  0xcb   : > { %p17296_p10 = scmp.lt.s32.totalorder %s17290_s16, %s20429_s12  ;;  %p17297_p11 = scmp.lt.s32.totalorder %s17295_s10, %s17291_s7 }
  0xcc   : > { %p17293_p8 = pnand %p17292_p7, %p16628_p3 }
  0xcd   : > { %p17298_p12 = por %p17297_p11, %p17296_p10 }
  0xce   : > { %p17294_p9 = pneg %p17293_p8 }
  0xd0   : > { %p17299_p13 = pnand %p17298_p12, %p17294_p9 }
  0xd2   : > { %17302 = shalt.err (!%p17299_p13)
}
  0xd3   : > { %16571 = dma.hbm_to_vmem [thread:$0]  (%p16628_p3), %s18113_s18, 4096, %s1073_s6, [#allocation32], %s20436_s24, %s20436_s24, %s20375_s26  }
  0xd4   : > { %s17816_s15 = smov [#allocation34]   ;;  %s800_s28 = sshll.u32 %s17859_s21, 4  ;;  %s801_s28 = int_to_ptr.hbm [resolvable:$true] %s800_s28 }
  0xd5   : > { %s1100_s11 = sshll.u32 %s17816_s15, 4  ;;  %s17317_s16 = sshra.s32 %s18127_s2, 4  ;;  %s1101_s11 = int_to_ptr.vmem [resolvable:$true] %s1100_s11  ;;  %s17318_s16 = int_to_ptr.hbm [resolvable:$true] %s17317_s16 }
  0xd6   : > { %s17319_s7 = scalar_lea.hbm %s17318_s16, 1024  ;;  %s17323_s10 = scalar_lea.hbm %s20428_s4, 1024 }
  0xd7   : > { %p17320_p0 = scmp.ne.s32.totalorder %s17318_s16, %s17319_s7  ;;  %p17324_p5 = scmp.lt.s32.totalorder %s17318_s16, %s20428_s4 }
  0xd8   : > { %p17325_p6 = scmp.lt.s32.totalorder %s17323_s10, %s17319_s7 }
  0xd9   : > { %p17321_p1 = pnand %p17320_p0, %p16628_p3 }
  0xda   : > { %p17326_p7 = por %p17325_p6, %p17324_p5 }
  0xdb   : > { %p17322_p4 = pneg %p17321_p1 }
  0xdd   : > { %p17327_p8 = pnand %p17326_p7, %p17322_p4 }
  0xdf   : > { %17330 = shalt.err (!%p17327_p8)
}
  0xe0   : > { %s20437_s6 = smov 16   ;;  %s20438_s18 = smov 256  }
  0xe1   : > { %16575 = dma.hbm_to_vmem [thread:$0]  (%p16628_p3), %s18127_s2, 16384, %s1101_s11, [#allocation35], %s20438_s18, %s20438_s18, %s20437_s6  }
  0xe2   : > { %s17817_s15 = smov [#allocation2]   ;;  %s828_s12 = sshll.u32 %s20427_s3, 4  ;;  %s18153_s12 = int_to_ptr.hbm [resolvable:$true] %s828_s12 }
  0xe3   : > { %s802_s26 = sshll.u32 %s17817_s15, 4  ;;  %s17345_s16 = sshra.s32 %s801_s28, 4  ;;  %s803_s26 = int_to_ptr.vmem [resolvable:$true] %s802_s26  ;;  %s17346_s16 = int_to_ptr.hbm [resolvable:$true] %s17345_s16 }
  0xe4   : > { %s17347_s7 = scalar_lea.hbm %s17346_s16, 54  ;;  %s17351_s10 = scalar_lea.hbm %s17859_s21, 54 }
  0xe5   : > { %p17348_p9 = scmp.ne.s32.totalorder %s17346_s16, %s17347_s7  ;;  %p17352_p12 = scmp.lt.s32.totalorder %s17346_s16, %s17859_s21 }
  0xe6   : > { %p17353_p13 = scmp.lt.s32.totalorder %s17351_s10, %s17347_s7 }
  0xe7   : > { %p17349_p10 = pnand %p17348_p9, %p16628_p3 }
  0xe8   : > { %p17354_p0 = por %p17353_p13, %p17352_p12 }
  0xe9   : > { %p17350_p11 = pneg %p17349_p10 }
  0xeb   : > { %p17355_p1 = pnand %p17354_p0, %p17350_p11 }
  0xed   : > { %17358 = shalt.err (!%p17355_p1)
}
  0xee   : > { %16533 = dma.hbm_to_vmem [thread:$0]  (%p16628_p3), %s801_s28, 864, %s803_s26, [#allocation3]  }
  0xef   : > { %s859_s2 = sshll.u32 %s17889_s19, 4  ;;  %s17818_s11 = smov [#allocation6]   ;;  %s18162_s2 = int_to_ptr.hbm [resolvable:$true] %s859_s2 }
  0xf0   : > { %s830_s15 = sshll.u32 %s17818_s11, 4  ;;  %s17373_s4 = sshra.s32 %s18153_s12, 4  ;;  %s831_s15 = int_to_ptr.vmem [resolvable:$true] %s830_s15  ;;  %s17374_s4 = int_to_ptr.hbm [resolvable:$true] %s17373_s4 }
  0xf1   : > { %s17375_s16 = scalar_lea.hbm %s17374_s4, 32  ;;  %s17379_s7 = scalar_lea.hbm %s20427_s3, 32 }
  0xf2   : > { %p17376_p4 = scmp.ne.s32.totalorder %s17374_s4, %s17375_s16  ;;  %p17380_p7 = scmp.lt.s32.totalorder %s17374_s4, %s20427_s3 }
  0xf3   : > { %p17381_p8 = scmp.lt.s32.totalorder %s17379_s7, %s17375_s16 }
  0xf4   : > { %p17377_p5 = pnand %p17376_p4, %p16628_p3 }
  0xf5   : > { %p17382_p9 = por %p17381_p8, %p17380_p7 }
  0xf6   : > { %p17378_p6 = pneg %p17377_p5 }
  0xf8   : > { %p17383_p10 = pnand %p17382_p9, %p17378_p6 }
  0xfa   : > { %17386 = shalt.err (!%p17383_p10)
}
  0xfb   : > { %16537 = dma.hbm_to_vmem [thread:$0]  (%p16628_p3), %s18153_s12, 512, %s831_s15, [#allocation5], %s20435_s1, %s20435_s1, %s20434_s8  }
  0xfc   : > { %s17819_s26 = smov [#allocation9]   ;;  %s888_s10 = sshll.u32 %s17899_s30, 4  ;;  %s18176_s10 = int_to_ptr.hbm [resolvable:$true] %s888_s10 }
  0xfd   : > { %s861_s28 = sshll.u32 %s17819_s26, 4  ;;  %s17401_s4 = sshra.s32 %s18162_s2, 4  ;;  %s862_s28 = int_to_ptr.vmem [resolvable:$true] %s861_s28  ;;  %s17402_s4 = int_to_ptr.hbm [resolvable:$true] %s17401_s4 }
  0xfe   : > { %s17403_s11 = scalar_lea.hbm %s17402_s4, 1024  ;;  %s17407_s16 = scalar_lea.hbm %s17889_s19, 1024 }
  0xff   : > { %p17404_p11 = scmp.ne.s32.totalorder %s17402_s4, %s17403_s11  ;;  %p17408_p0 = scmp.lt.s32.totalorder %s17402_s4, %s17889_s19 }
 0x100   : > { %p17409_p1 = scmp.lt.s32.totalorder %s17407_s16, %s17403_s11 }
 0x101   : > { %p17405_p12 = pnand %p17404_p11, %p16628_p3 }
 0x102   : > { %p17410_p4 = por %p17409_p1, %p17408_p0 }
 0x103   : > { %p17406_p13 = pneg %p17405_p12 }
 0x105   : > { %p17411_p5 = pnand %p17410_p4, %p17406_p13 }
 0x107   : > { %17414 = shalt.err (!%p17411_p5)
}
 0x108   : > { %s20439_s12 = sld [smem:[#allocation63_spill]]  ;;  %s17820_s7 = smov [#allocation12]  }
 0x109   : > { %16541 = dma.hbm_to_vmem [thread:$0]  (%p16628_p3), %s18162_s2, 16384, %s862_s28, [#allocation8], %s20438_s18, %s20438_s18, %s20437_s6  }
 0x10a   : > { %s890_s26 = sshll.u32 %s17820_s7, 4  ;;  %s17429_s4 = sshra.s32 %s18176_s10, 4  ;;  %s891_s26 = int_to_ptr.vmem [resolvable:$true] %s890_s26  ;;  %s17430_s4 = int_to_ptr.hbm [resolvable:$true] %s17429_s4 }
 0x10b   : > { %s17431_s11 = scalar_lea.hbm %s17430_s4, 16  ;;  %s17435_s16 = scalar_lea.hbm %s17899_s30, 16 }
 0x10c   : > { %p17432_p6 = scmp.ne.s32.totalorder %s17430_s4, %s17431_s11  ;;  %p17436_p9 = scmp.lt.s32.totalorder %s17430_s4, %s17899_s30 }
 0x10d   : > { %p17437_p10 = scmp.lt.s32.totalorder %s17435_s16, %s17431_s11 }
 0x10e   : > { %s916_s15 = sshll.u32 %s20439_s12, 4  ;;  %p17433_p7 = pnand %p17432_p6, %p16628_p3  ;;  %s18190_s15 = int_to_ptr.hbm [resolvable:$true] %s916_s15 }
 0x10f   : > { %p17438_p11 = por %p17437_p10, %p17436_p9 }
 0x110   : > { %p17434_p8 = pneg %p17433_p7 }
 0x112   : > { %p17439_p12 = pnand %p17438_p11, %p17434_p8 }
 0x114   : > { %17442 = shalt.err (!%p17439_p12)
}
 0x115   : > { %s20440_s2 = sld [smem:[#allocation64_spill]]  ;;  %s17821_s28 = smov [#allocation15]  }
 0x116   : > { %16545 = dma.hbm_to_vmem [thread:$0]  (%p16628_p3), %s18176_s10, 256, %s891_s26, [#allocation11]  }
 0x117   : > { %s918_s7 = sshll.u32 %s17821_s28, 4  ;;  %s17457_s4 = sshra.s32 %s18190_s15, 4  ;;  %s919_s7 = int_to_ptr.vmem [resolvable:$true] %s918_s7  ;;  %s17458_s4 = int_to_ptr.hbm [resolvable:$true] %s17457_s4 }
 0x118   : > { %s17459_s11 = scalar_lea.hbm %s17458_s4, 256  ;;  %s17463_s16 = scalar_lea.hbm %s20439_s12, 256 }
 0x119   : > { %p17460_p13 = scmp.ne.s32.totalorder %s17458_s4, %s17459_s11  ;;  %p17464_p4 = scmp.lt.s32.totalorder %s17458_s4, %s20439_s12 }
 0x11a   : > { %p17465_p5 = scmp.lt.s32.totalorder %s17463_s16, %s17459_s11 }
 0x11b   : > { %s944_s3 = sshll.u32 %s20440_s2, 4  ;;  %p17461_p0 = pnand %p17460_p13, %p16628_p3  ;;  %s18201_s3 = int_to_ptr.hbm [resolvable:$true] %s944_s3 }
 0x11c   : > { %p17466_p6 = por %p17465_p5, %p17464_p4 }
 0x11d   : > { %p17462_p1 = pneg %p17461_p0 }
 0x11f   : > { %p17467_p7 = pnand %p17466_p6, %p17462_p1 }
 0x121   : > { %17470 = shalt.err (!%p17467_p7)
}
 0x122   : > { %s20441_s10 = smov 8   ;;  %s20442_s26 = sld [smem:[#allocation66_spill]] }
 0x123   : > { %16549 = dma.hbm_to_vmem [thread:$0]  (%p16628_p3), %s18190_s15, 4096, %s919_s7, [#allocation14], %s20436_s24, %s20436_s24, %s20441_s10  }
 0x124   : > { %s17822_s13 = smov [#allocation18]   ;;  %s17485_s4 = sshra.s32 %s18201_s3, 4  ;;  %s17486_s4 = int_to_ptr.hbm [resolvable:$true] %s17485_s4 }
 0x125   : > { %s946_s14 = sshll.u32 %s17822_s13, 4  ;;  %s17487_s11 = scalar_lea.hbm %s17486_s4, 128  ;;  %s947_s14 = int_to_ptr.vmem [resolvable:$true] %s946_s14 }
 0x126   : > { %p17488_p8 = scmp.ne.s32.totalorder %s17486_s4, %s17487_s11  ;;  %s17491_s16 = scalar_lea.hbm %s20440_s2, 128 }
 0x127   : > { %p17492_p11 = scmp.lt.s32.totalorder %s17486_s4, %s20440_s2  ;;  %p17493_p12 = scmp.lt.s32.totalorder %s17491_s16, %s17487_s11 }
 0x128   : > { %s972_s28 = sshll.u32 %s20442_s26, 4  ;;  %p17489_p9 = pnand %p17488_p8, %p16628_p3  ;;  %s18215_s28 = int_to_ptr.hbm [resolvable:$true] %s972_s28 }
 0x129   : > { %p17494_p13 = por %p17493_p12, %p17492_p11 }
 0x12a   : > { %p17490_p10 = pneg %p17489_p9 }
 0x12c   : > { %p17495_p0 = pnand %p17494_p13, %p17490_p10 }
 0x12e   : > { %17498 = shalt.err (!%p17495_p0)
}
 0x12f   : > { %s20443_s13 = sld [smem:[#allocation68_spill]]  ;;  %s17823_s15 = smov [#allocation21]  }
 0x130   : > { %16553 = dma.hbm_to_vmem [thread:$0]  (%p16628_p3), %s18201_s3, 2048, %s947_s14, [#allocation17], %s20435_s1, %s20435_s1, %s20434_s8  }
 0x131   : > { %s974_s7 = sshll.u32 %s17823_s15, 4  ;;  %s17513_s4 = sshra.s32 %s18215_s28, 4  ;;  %s975_s7 = int_to_ptr.vmem [resolvable:$true] %s974_s7  ;;  %s17514_s4 = int_to_ptr.hbm [resolvable:$true] %s17513_s4 }
 0x132   : > { %s17515_s11 = scalar_lea.hbm %s17514_s4, 128  ;;  %s17519_s16 = scalar_lea.hbm %s20442_s26, 128 }
 0x133   : > { %p17516_p1 = scmp.ne.s32.totalorder %s17514_s4, %s17515_s11  ;;  %p17520_p6 = scmp.lt.s32.totalorder %s17514_s4, %s20442_s26 }
 0x134   : > { %p17521_p7 = scmp.lt.s32.totalorder %s17519_s16, %s17515_s11 }
 0x135   : > { %s1000_s12 = sshll.u32 %s20443_s13, 4  ;;  %p17517_p4 = pnand %p17516_p1, %p16628_p3  ;;  %s18229_s12 = int_to_ptr.hbm [resolvable:$true] %s1000_s12 }
 0x136   : > { %p17522_p8 = por %p17521_p7, %p17520_p6 }
 0x137   : > { %p17518_p5 = pneg %p17517_p4 }
 0x139   : > { %p17523_p9 = pnand %p17522_p8, %p17518_p5 }
 0x13b   : > { %17526 = shalt.err (!%p17523_p9)
}
 0x13c   : > { %s20444_s3 = sld [smem:[#allocation70_spill]]  ;;  %s17824_s15 = smov [#allocation24]  }
 0x13d   : > { %16557 = dma.hbm_to_vmem [thread:$0]  (%p16628_p3), %s18215_s28, 2048, %s975_s7, [#allocation20], %s20435_s1, %s20435_s1, %s20434_s8  }
 0x13e   : > { %s1002_s2 = sshll.u32 %s17824_s15, 4  ;;  %s17541_s4 = sshra.s32 %s18229_s12, 4  ;;  %s1003_s2 = int_to_ptr.vmem [resolvable:$true] %s1002_s2  ;;  %s17542_s4 = int_to_ptr.hbm [resolvable:$true] %s17541_s4 }
 0x13f   : > { %s17543_s11 = scalar_lea.hbm %s17542_s4, 64  ;;  %s17547_s16 = scalar_lea.hbm %s20443_s13, 64 }
 0x140   : > { %p17544_p10 = scmp.ne.s32.totalorder %s17542_s4, %s17543_s11  ;;  %p17548_p13 = scmp.lt.s32.totalorder %s17542_s4, %s20443_s13 }
 0x141   : > { %p17549_p0 = scmp.lt.s32.totalorder %s17547_s16, %s17543_s11 }
 0x142   : > { %s1028_s14 = sshll.u32 %s20444_s3, 4  ;;  %p17545_p11 = pnand %p17544_p10, %p16628_p3  ;;  %s18243_s14 = int_to_ptr.hbm [resolvable:$true] %s1028_s14 }
 0x143   : > { %p17550_p1 = por %p17549_p0, %p17548_p13 }
 0x144   : > { %p17546_p12 = pneg %p17545_p11 }
 0x146   : > { %p17551_p4 = pnand %p17550_p1, %p17546_p12 }
 0x148   : > { %17554 = shalt.err (!%p17551_p4)
}
 0x149   : > { %s20445_s28 = sld [smem:[#allocation71_spill]]  ;;  %s17825_s7 = smov [#allocation27]  }
 0x14a   : > { %16561 = dma.hbm_to_vmem [thread:$0]  (%p16628_p3), %s18229_s12, 1024, %s1003_s2, [#allocation23], %s20435_s1, %s20435_s1, %s20434_s8  }
 0x14b   : > { %s1030_s15 = sshll.u32 %s17825_s7, 4  ;;  %s17569_s4 = sshra.s32 %s18243_s14, 4  ;;  %s1031_s15 = int_to_ptr.vmem [resolvable:$true] %s1030_s15  ;;  %s17570_s4 = int_to_ptr.hbm [resolvable:$true] %s17569_s4 }
 0x14c   : > { %s17571_s11 = scalar_lea.hbm %s17570_s4, 128  ;;  %s17575_s16 = scalar_lea.hbm %s20444_s3, 128 }
 0x14d   : > { %p17572_p5 = scmp.ne.s32.totalorder %s17570_s4, %s17571_s11  ;;  %p17576_p8 = scmp.lt.s32.totalorder %s17570_s4, %s20444_s3 }
 0x14e   : > { %p17577_p9 = scmp.lt.s32.totalorder %s17575_s16, %s17571_s11 }
 0x14f   : > { %s1056_s17 = sshll.u32 %s20445_s28, 4  ;;  %p17573_p6 = pnand %p17572_p5, %p16628_p3  ;;  %s18257_s17 = int_to_ptr.hbm [resolvable:$true] %s1056_s17 }
 0x150   : > { %p17578_p10 = por %p17577_p9, %p17576_p8 }
 0x151   : > { %p17574_p7 = pneg %p17573_p6 }
 0x153   : > { %p17579_p11 = pnand %p17578_p10, %p17574_p7 }
 0x155   : > { %17582 = shalt.err (!%p17579_p11)
}
 0x156   : > { %s20446_s12 = sld [smem:[#allocation73_spill]]  ;;  %s17826_s7 = smov [#allocation30]  }
 0x157   : > { %16565 = dma.hbm_to_vmem [thread:$0]  (%p16628_p3), %s18243_s14, 2048, %s1031_s15, [#allocation26], %s20435_s1, %s20435_s1, %s20434_s8  }
 0x158   : > { %s1058_s13 = sshll.u32 %s17826_s7, 4  ;;  %s17597_s4 = sshra.s32 %s18257_s17, 4  ;;  %s1059_s13 = int_to_ptr.vmem [resolvable:$true] %s1058_s13  ;;  %s17598_s4 = int_to_ptr.hbm [resolvable:$true] %s17597_s4 }
 0x159   : > { %s17599_s11 = scalar_lea.hbm %s17598_s4, 256  ;;  %s17603_s16 = scalar_lea.hbm %s20445_s28, 256 }
 0x15a   : > { %p17600_p12 = scmp.ne.s32.totalorder %s17598_s4, %s17599_s11  ;;  %p17604_p1 = scmp.lt.s32.totalorder %s17598_s4, %s20445_s28 }
 0x15b   : > { %p17605_p4 = scmp.lt.s32.totalorder %s17603_s16, %s17599_s11 }
 0x15c   : > { %s1084_s2 = sshll.u32 %s20446_s12, 4  ;;  %p17601_p13 = pnand %p17600_p12, %p16628_p3  ;;  %s18271_s2 = int_to_ptr.hbm [resolvable:$true] %s1084_s2 }
 0x15d   : > { %p17606_p5 = por %p17605_p4, %p17604_p1 }
 0x15e   : > { %p17602_p0 = pneg %p17601_p13 }
 0x160   : > { %p17607_p6 = pnand %p17606_p5, %p17602_p0 }
 0x162   : > { %17610 = shalt.err (!%p17607_p6)
}
 0x163   : > { %16569 = dma.hbm_to_vmem [thread:$0]  (%p16628_p3), %s18257_s17, 4096, %s1059_s13, [#allocation29], %s20436_s24, %s20436_s24, %s20441_s10  }
 0x164   : > { %s17827_s14 = smov [#allocation33]   ;;  %s1112_s7 = sshll.u32 %s17984_s5, 4  ;;  %s18285_s7 = int_to_ptr.hbm [resolvable:$true] %s1112_s7 }
 0x165   : > { %s1086_s15 = sshll.u32 %s17827_s14, 4  ;;  %s17625_s4 = sshra.s32 %s18271_s2, 4  ;;  %s1087_s15 = int_to_ptr.vmem [resolvable:$true] %s1086_s15  ;;  %s17626_s4 = int_to_ptr.hbm [resolvable:$true] %s17625_s4 }
 0x166   : > { %s17627_s11 = scalar_lea.hbm %s17626_s4, 1024  ;;  %s17631_s16 = scalar_lea.hbm %s20446_s12, 1024 }
 0x167   : > { %p17628_p7 = scmp.ne.s32.totalorder %s17626_s4, %s17627_s11  ;;  %p17632_p10 = scmp.lt.s32.totalorder %s17626_s4, %s20446_s12 }
 0x168   : > { %p17633_p11 = scmp.lt.s32.totalorder %s17631_s16, %s17627_s11 }
 0x169   : > { %p17629_p8 = pnand %p17628_p7, %p16628_p3 }
 0x16a   : > { %p17634_p12 = por %p17633_p11, %p17632_p10 }
 0x16b   : > { %p17630_p9 = pneg %p17629_p8 }
 0x16d   : > { %p17635_p13 = pnand %p17634_p12, %p17630_p9 }
 0x16f   : > { %17638 = shalt.err (!%p17635_p13)
}
 0x170   : > { %16573 = dma.hbm_to_vmem [thread:$0]  (%p16628_p3), %s18271_s2, 16384, %s1087_s15, [#allocation32], %s20438_s18, %s20438_s18, %s20437_s6  }
 0x171   : > { %s1126_s17 = sshll.u32 %s17989_s20, 4  ;;  %s17828_s24 = smov [#allocation36]   ;;  %s18299_s17 = int_to_ptr.hbm [resolvable:$true] %s1126_s17 }
 0x172   : > { %s1114_s10 = sshll.u32 %s17828_s24, 4  ;;  %s17653_s13 = sshra.s32 %s18285_s7, 4  ;;  %s1115_s10 = int_to_ptr.vmem [resolvable:$true] %s1114_s10  ;;  %s17654_s13 = int_to_ptr.hbm [resolvable:$true] %s17653_s13 }
 0x173   : > { %s17655_s14 = scalar_lea.hbm %s17654_s13, 512  ;;  %s17659_s4 = scalar_lea.hbm %s17984_s5, 512 }
 0x174   : > { %p17656_p0 = scmp.ne.s32.totalorder %s17654_s13, %s17655_s14  ;;  %p17660_p5 = scmp.lt.s32.totalorder %s17654_s13, %s17984_s5 }
 0x175   : > { %p17661_p6 = scmp.lt.s32.totalorder %s17659_s4, %s17655_s14 }
 0x176   : > { %p17657_p1 = pnand %p17656_p0, %p16628_p3 }
 0x177   : > { %p17662_p7 = por %p17661_p6, %p17660_p5 }
 0x178   : > { %p17658_p4 = pneg %p17657_p1 }
 0x17a   : > { %p17663_p8 = pnand %p17662_p7, %p17658_p4 }
 0x17c   : > { %17666 = shalt.err (!%p17663_p8)
}
 0x17d   : > { %16577 = dma.hbm_to_vmem [thread:$0]  (%p16628_p3), %s18285_s7, 8192, %s1115_s10, [#allocation35], %s20438_s18, %s20438_s18, %s20437_s6  }
 0x17e   : > { %s17829_s2 = smov [#allocation37]   ;;  %s17681_s11 = sshra.s32 %s18299_s17, 4  ;;  %s17682_s11 = int_to_ptr.hbm [resolvable:$true] %s17681_s11 }
 0x17f   : > { %s1128_s15 = sshll.u32 %s17829_s2, 4  ;;  %s17683_s16 = scalar_lea.hbm %s17682_s11, 512  ;;  %s1129_s15 = int_to_ptr.vmem [resolvable:$true] %s1128_s15 }
 0x180   : > { %p17684_p9 = scmp.ne.s32.totalorder %s17682_s11, %s17683_s16  ;;  %s17687_s24 = scalar_lea.hbm %s17989_s20, 512 }
 0x181   : > { %p17688_p12 = scmp.lt.s32.totalorder %s17682_s11, %s17989_s20  ;;  %p17689_p13 = scmp.lt.s32.totalorder %s17687_s24, %s17683_s16 }
 0x182   : > { %p17685_p10 = pnand %p17684_p9, %p16628_p3 }
 0x183   : > { %p17690_p0 = por %p17689_p13, %p17688_p12 }
 0x184   : > { %p17686_p11 = pneg %p17685_p10 }
 0x186   : > { %p17691_p1 = pnand %p17690_p0, %p17686_p11 }
 0x188   : > { %17694 = shalt.err (!%p17691_p1)
}
 0x189   : > { %16579 = dma.hbm_to_vmem [thread:$0]  (%p16628_p3), %s18299_s17, 8192, %s1129_s15, [#allocation38], %s20435_s1, %s20435_s1, %s20434_s8  }
 0x18a PF: > { %1180 = sbr.rel (%p18006_p2) target bundleno = 3453 (0xd7d), region = 144 }
 0x18f   : > { %p16652_p4 = scmp.eq.s32.totalorder %s18002_s0, 0 }
 0x191   : > { %17714 = dma.done.wait (%p16652_p4), [#allocation3], 864  }
 0x192   : > { %17716 = vsyncadd (%p16652_p4), [#allocation3], 4294966432 }
 0x193   : > { %17718 = dma.done.wait (%p16652_p4), [#allocation5], 640  }
 0x194   : > { %17720 = vsyncadd (%p16652_p4), [#allocation5], 4294966656 }
 0x195   : > { %17722 = dma.done.wait (%p16652_p4), [#allocation8], 17408  }
 0x196   : > { %17724 = vsyncadd (%p16652_p4), [#allocation8], 4294949888 }
 0x197   : > { %17726 = dma.done.wait (%p16652_p4), [#allocation11], 8448  }
 0x198   : > { %17728 = vsyncadd (%p16652_p4), [#allocation11], 4294958848 }
 0x199   : > { %17730 = dma.done.wait (%p16652_p4), [#allocation14], 12288  }
 0x19a   : > { %17732 = vsyncadd (%p16652_p4), [#allocation14], 4294955008 }
 0x19b   : > { %17734 = dma.done.wait (%p16652_p4), [#allocation17], 10240  }
 0x19c   : > { %17736 = vsyncadd (%p16652_p4), [#allocation17], 4294957056 }
 0x19d   : > { %17738 = dma.done.wait (%p16652_p4), [#allocation20], 3072  }
 0x19e   : > { %17740 = vsyncadd (%p16652_p4), [#allocation20], 4294964224 }
 0x19f   : > { %17742 = dma.done.wait (%p16652_p4), [#allocation23], 3072  }
 0x1a0   : > { %17744 = vsyncadd (%p16652_p4), [#allocation23], 4294964224 }
 0x1a1   : > { %17746 = dma.done.wait (%p16652_p4), [#allocation26], 3072  }
 0x1a2   : > { %17748 = vsyncadd (%p16652_p4), [#allocation26], 4294964224 }
 0x1a3   : > { %17750 = dma.done.wait (%p16652_p4), [#allocation29], 8192  }
 0x1a4   : > { %17752 = vsyncadd (%p16652_p4), [#allocation29], 4294959104 }
 0x1a5   : > { %17754 = dma.done.wait (%p16652_p4), [#allocation32], 20480  }
 0x1a6   : > { %17756 = vsyncadd (%p16652_p4), [#allocation32], 4294946816 }
 0x1a7   : > { %17758 = dma.done.wait (%p16652_p4), [#allocation35], 24576  }
 0x1a8   : > { %17760 = vsyncadd (%p16652_p4), [#allocation35], 4294942720 }
 0x1a9   : > { %17762 = dma.done.wait (%p16652_p4), [#allocation38], 8192  }
 0x1aa   : > { %17764 = vsyncadd (%p16652_p4), [#allocation38], 4294959104  ;;  %s20447_s23 = sld [smem:[#allocation56_spill]]  ;;  %s11655_s1 = sshll.u32 %s18002_s0, 1  ;;  %v16468_v1 = vld [vmem:[#allocation4] sm:$0xff]   ;;  %vm1487_vm0 = vcmask 130048  }
 0x1ab   : > { %s20448_s8 = sld [smem:[#allocation53_spill]]  ;;  %p1392_p2 = scmp.lt.s32.totalorder %s11655_s1, 3  ;;  %v16470_v3 = vunpack.c.h.bf16 %v16468_v1  ;;  %v16469_v5 = vunpack.c.l.bf16 %v16468_v1  ;;  %vm1449_vm1 = vcmask 523264   ;;  %v16524_v19 = vld [vmem:[#allocation6 + $0x18] sm:$0xff]   ;;  %v16523_v22 = vld [vmem:[#allocation6 + $0x10] sm:$0xff]   ;;  %v16522_v25 = vld [vmem:[#allocation6 + $0x8] sm:$0xff]  }
 0x1ac   : > { %s20449_s0 = sld [smem:[#allocation54_spill]]  ;;  %v16486_v20 = vunpack.c.h.bf16 %v16524_v19  ;;  %v16485_v21 = vunpack.c.l.bf16 %v16524_v19  ;;  %v16482_v23 = vunpack.c.h.bf16 %v16523_v22  ;;  %v16481_v24 = vunpack.c.l.bf16 %v16523_v22  ;;  %v16472_v28 = vld [vmem:[#allocation6] sm:$0xff]   ;;  %v16527_v19 = vld [vmem:[#allocation7 + $0x18] sm:$0xff]   ;;  %v16526_v22 = vld [vmem:[#allocation7 + $0x10] sm:$0xff]  }
 0x1ad   : > { %s20608_s1 = smov (!%p1392_p2, %s11655_s1), 3  ;;  %1508 = vmatpush.msra.mxu1 %v16470_v3  ;;  %v16478_v26 = vunpack.c.h.bf16 %v16522_v25  ;;  %v16477_v27 = vunpack.c.l.bf16 %v16522_v25  ;;  %v16474_v29 = vunpack.c.h.bf16 %v16472_v28  ;;  %v16473_v30 = vunpack.c.l.bf16 %v16472_v28  ;;  %v16747_v31 = vld [vmem:[#allocation2 + $0x1] ss:$0 sm:$0xff]  ;;  %v16748_v42 = vld [vmem:[#allocation2] ss:$0 sm:$0xff]  ;;  %v16525_v25 = vld [vmem:[#allocation7 + $0x8] sm:$0xff]  }
 0x1ae   : > { %s18379_s6 = sshll.u32 %s20608_s1, 3  ;;  %1591 = vmatpush.msra.mxu2 %v16486_v20  ;;  %v16493_v28 = vunpack.c.l.bf16 %v16525_v25  ;;  %s20450_s17 = sld [smem:[#allocation52_spill]]  ;;  %vm1893_vm10 = vcmask 64512  }
 0x1af   : > { %1509 = vmatpush.msra.mxu1 %v16469_v5  ;;  %s20451_s10 = sld [smem:[#allocation59_spill]]  ;;  %s1419_s15 = scalar_lea.vmem %s17994_s9, %s18379_s6 }
 0x1b0   : > { %v16521_v0 = vld [vmem:[%s20447_s23 + $0x18] sm:$0xff]   ;;  %v16520_v6 = vld [vmem:[%s20447_s23 + $0x10] sm:$0xff]   ;;  %v16519_v9 = vld [vmem:[%s20447_s23 + $0x8] sm:$0xff]   ;;  %1592 = vmatpush.msra.mxu2 %v16485_v21  ;;  %s20510_s14 = sld [smem:[#allocation62_spill]] }
 0x1b1   : > { %s1401_s18 = scalar_lea.vmem %s20448_s8, %s18379_s6  ;;  %v16466_v2 = vunpack.c.h.bf16 %v16521_v0  ;;  %v16465_v4 = vunpack.c.l.bf16 %v16521_v0  ;;  %v16462_v8 = vunpack.c.h.bf16 %v16520_v6  ;;  %v16461_v10 = vunpack.c.l.bf16 %v16520_v6  ;;  %v16452_v11 = vld [vmem:[%s20447_s23] sm:$0xff]   ;;  %1719 = vmatpush.msrb.mxu1 %v16486_v20  ;;  %s20590_s4 = sld [smem:[#allocation55_spill]] }
 0x1b2   : > { %v1423_v7 = vld [vmem:[%s1401_s18] sm:$0xff]  ;;  %v16458_v12 = vunpack.c.h.bf16 %v16519_v9  ;;  %v16457_v13 = vunpack.c.l.bf16 %v16519_v9  ;;  %v1424_v14 = vld [vmem:[%s1401_s18 + $0x8] sm:$0xff]  ;;  %v16454_v15 = vunpack.c.h.bf16 %v16452_v11  ;;  %s1407_s7 = scalar_lea.vmem %s20449_s0, %s18379_s6  ;;  %v16453_v16 = vunpack.c.l.bf16 %v16452_v11  ;;  %1593 = vmatpush.msra.mxu2 %v16482_v23 }
 0x1b3   : > { %1464 = vmatpush.msra.mxu3 %v16466_v2  ;;  %11667 = vmatmul.msk.f32.vlgmr.msra.gmra.mxu1 %vm1487_vm0, %v1423_v7  ;;  %v1425_v17 = vld [vmem:[%s1407_s7] sm:$0xff]  ;;  %v1426_v18 = vld [vmem:[%s1407_s7 + $0x8] sm:$0xff]  ;;  %v16531_v7 = vld [vmem:[#allocation7 + $0x38] sm:$0xff]   ;;  %v16502_v20 = vunpack.c.h.bf16 %v16527_v19 }
 0x1b4   : > { %1720 = vmatpush.msrb.mxu1 %v16485_v21  ;;  %1594 = vmatpush.msra.mxu2 %v16481_v24  ;;  %v16517_v9 = vunpack.c.l.bf16 %v16531_v7  ;;  %v16501_v21 = vunpack.c.l.bf16 %v16527_v19  ;;  %s18410_s13 = scalar_lea.vmem %s20450_s17, %s18379_s6 }
 0x1b5   : > { %1465 = vmatpush.msra.mxu3 %v16465_v4 }
 0x1b6   : > { %1721 = vmatpush.msrb.mxu1 %v16482_v23  ;;  %1595 = vmatpush.msra.mxu2 %v16478_v26  ;;  %v16498_v23 = vunpack.c.h.bf16 %v16526_v22 }
 0x1b7   : > { %1466 = vmatpush.msra.mxu3 %v16462_v8  ;;  %v16518_v8 = vunpack.c.h.bf16 %v16531_v7  ;;  %s20226_s2 = scalar_lea.vmem %s20590_s4, %s18379_s6 }
 0x1b8   : > { %1722 = vmatpush.msrb.mxu1 %v16481_v24  ;;  %1596 = vmatpush.msra.mxu2 %v16477_v27  ;;  %v16497_v24 = vunpack.c.l.bf16 %v16526_v22 }
 0x1b9   : > { %1467 = vmatpush.msra.mxu3 %v16461_v10  ;;  %1774 = vmatpush.msra.mxu0 %v16518_v8  ;;  %v16530_v10 = vld [vmem:[#allocation7 + $0x30] sm:$0xff]  }
 0x1ba   : > { %1723 = vmatpush.msrb.mxu1 %v16478_v26  ;;  %1597 = vmatpush.msra.mxu2 %v16474_v29  ;;  %v16514_v11 = vunpack.c.h.bf16 %v16530_v10  ;;  %v16494_v26 = vunpack.c.h.bf16 %v16525_v25 }
 0x1bb   : > { %1468 = vmatpush.msra.mxu3 %v16458_v12  ;;  %11668 = vmatmul.msk.f32.gmra.mxu1 %vm1487_vm0, %v1424_v14  ;;  %v16513_v12 = vunpack.c.l.bf16 %v16530_v10 }
 0x1bc   : > { %1724 = vmatpush.msrb.mxu1 %v16477_v27  ;;  %1598 = vmatpush.msra.mxu2 %v16473_v30  ;;  %v16749_v27 = vld [vmem:[#allocation2 + $0x2] ss:$0 sm:$0xff] }
 0x1bd   : > { %1469 = vmatpush.msra.mxu3 %v16457_v13  ;;  %1775 = vmatpush.msra.mxu0 %v16517_v9  ;;  %v16529_v13 = vld [vmem:[#allocation7 + $0x28] sm:$0xff]  }
 0x1be   : > { %1725 = vmatpush.msrb.mxu1 %v16474_v29  ;;  %v16510_v14 = vunpack.c.h.bf16 %v16529_v13  ;;  %v16488_v29 = vld [vmem:[#allocation7] sm:$0xff]  }
 0x1bf   : > { %1470 = vmatpush.msra.mxu3 %v16454_v15  ;;  %1776 = vmatpush.msra.mxu0 %v16514_v11  ;;  %v16509_v15 = vunpack.c.l.bf16 %v16529_v13 }
 0x1c0   : > { %1726 = vmatpush.msrb.mxu1 %v16473_v30 }
 0x1c1   : > { %1471 = vmatpush.msra.mxu3 %v16453_v16  ;;  %1777 = vmatpush.msra.mxu0 %v16513_v12  ;;  %v16528_v16 = vld [vmem:[#allocation7 + $0x20] sm:$0xff]  }
 0x1c2   : > { %11665 = vmatmul.msk.f32.vlgmr.msra.gmra.mxu3 %vm1449_vm1, %v1425_v17  ;;  %v16506_v17 = vunpack.c.h.bf16 %v16528_v16 }
 0x1c3   : > { %1682 = vmatpush.msrb.mxu3 %v16518_v8  ;;  %1778 = vmatpush.msra.mxu0 %v16510_v14 }
 0x1c5   : > { %1683 = vmatpush.msrb.mxu3 %v16517_v9  ;;  %1779 = vmatpush.msra.mxu0 %v16509_v15 }
 0x1c7   : > { %1684 = vmatpush.msrb.mxu3 %v16514_v11  ;;  %1780 = vmatpush.msra.mxu0 %v16506_v17 }
 0x1c9   : > { %1685 = vmatpush.msrb.mxu3 %v16513_v12 }
 0x1ca   : > { %11666 = vmatmul.msk.f32.gmra.mxu3 %vm1449_vm1, %v1426_v18  ;;  %v16505_v18 = vunpack.c.l.bf16 %v16528_v16 }
 0x1cb   : > { %1686 = vmatpush.msrb.mxu3 %v16510_v14 }
 0x1cc   : > { %1781 = vmatpush.msra.mxu0 %v16505_v18 }
 0x1cd   : > { %1687 = vmatpush.msrb.mxu3 %v16509_v15 }
 0x1ce   : > { %1782 = vmatpush.msra.mxu0 %v16502_v20 }
 0x1cf   : > { %1688 = vmatpush.msrb.mxu3 %v16506_v17 }
 0x1d0   : > { %1783 = vmatpush.msra.mxu0 %v16501_v21 }
 0x1d1   : > { %1689 = vmatpush.msrb.mxu3 %v16505_v18 }
 0x1d2   : > { %1784 = vmatpush.msra.mxu0 %v16498_v23 }
 0x1d3   : > { %1690 = vmatpush.msrb.mxu3 %v16502_v20 }
 0x1d4   : > { %1785 = vmatpush.msra.mxu0 %v16497_v24 }
 0x1d5   : > { %1691 = vmatpush.msrb.mxu3 %v16501_v21 }
 0x1d6   : > { %1786 = vmatpush.msra.mxu0 %v16494_v26 }
 0x1d7   : > { %1692 = vmatpush.msrb.mxu3 %v16498_v23 }
 0x1d8   : > { %1787 = vmatpush.msra.mxu0 %v16493_v28 }
 0x1d9   : > { %1693 = vmatpush.msrb.mxu3 %v16497_v24 }
 0x1db   : > { %1694 = vmatpush.msrb.mxu3 %v16494_v26 }
 0x1dd   : > { %1695 = vmatpush.msrb.mxu3 %v16493_v28 }
 0x230   : > { %v1511_v32 = vpop.f32.mrf.mxu1 }
 0x231   : > { %v1512_v33 = vadd.f32 %v16747_v31, %v1511_v32 }
 0x233   : > { %v1517_v34 = vsub.f32 0.0, %v1512_v33 }
 0x235   : > { %v1519_v35 = vmul.f32 1.442695, %v1517_v34 }
 0x237   : > { %16759 = vpow2.f32 %v1519_v35 }
 0x238   : > { %v1514_v36 = vpop.f32.mrf.mxu1 }
 0x239   : > { %v1515_v37 = vadd.f32 %v16747_v31, %v1514_v36  ;;  %v16490_v31 = vunpack.c.h.bf16 %v16488_v29 }
 0x23b   : > { %v1518_v38 = vsub.f32 0.0, %v1515_v37  ;;  %1696 = vmatpush.msrb.mxu3 %v16490_v31  ;;  %1788 = vmatpush.msra.mxu0 %v16490_v31 }
 0x23d   : > { %v16760_v39 = vpop.eup %16759  ;;  %v1521_v40 = vmul.f32 1.442695, %v1518_v38 }
 0x23e   : > { %v1523_v41 = vadd.f32 1.0, %v16760_v39 }
 0x23f   : > { %16761 = vpow2.f32 %v1521_v40 }
 0x240   : > { %16763 = vrcp.f32 %v1523_v41  ;;  %v1536_v50 = vand.u32 2147483648, %v1523_v41  ;;  %v1534_v53 = vand.u32 2147483647, %v1523_v41  ;;  %vm1530_vm3 = vweird.f32 %v1523_v41 }
 0x242   : > { %v1537_v57 = vor.u32 1.1754944e-38, %v1536_v50  ;;  %vm1535_vm5 = vcmp.eq.f32.partialorder %v1534_v53, 8.507059e+37 }
 0x245   : > { %v1473_v43 = vpop.f32.mrf.mxu3  ;;  %v16762_v45 = vpop.eup %16761 }
 0x246   : > { %v1474_v44 = vadd.f32 %v16748_v42, %v1473_v43  ;;  %v16764_v46 = vpop.eup %16763  ;;  %v1524_v47 = vadd.f32 1.0, %v16762_v45 }
 0x247   : > { %v1526_v48 = vmul.f32 %v16764_v46, %v1523_v41  ;;  %vm1531_vm2 = vweird.f32 %v16764_v46 }
 0x248   : > { %11669 = vmatmul.msk.f32.vlgmr.msra.gmra.mxu2 %vm1449_vm1, %v1474_v44  ;;  %16765 = vrcp.f32 %v1524_v47  ;;  %vm1532_vm4 = vmor %vm1530_vm3, %vm1531_vm2  ;;  %v1551_v63 = vand.u32 2147483648, %v1524_v47  ;;  %v1549_v1 = vand.u32 2147483647, %v1524_v47  ;;  %vm1545_vm7 = vweird.f32 %v1524_v47 }
 0x249   : > { %v1527_v49 = vsub.f32 1.0, %v1526_v48 }
 0x24a   : > { %v1552_v3 = vor.u32 1.1754944e-38, %v1551_v63  ;;  %vm1550_vm9 = vcmp.eq.f32.partialorder %v1549_v1, 8.507059e+37 }
 0x24b   : > { %v1528_v52 = vmul.f32 %v16764_v46, %v1527_v49 }
 0x24d   : > { %v1476_v51 = vpop.f32.mrf.mxu3  ;;  %v1529_v55 = vadd.f32 %v16764_v46, %v1528_v52 }
 0x24e   : > { %v1477_v54 = vadd.f32 %v16748_v42, %v1476_v51  ;;  %v16766_v56 = vpop.eup %16765  ;;  %v1877_v51 = vld [vmem:[%s20451_s10] sm:$0xff] }
 0x24f   : > { %v1533_v58 = vsel %vm1532_vm4, %v16764_v46, %v1529_v55  ;;  %v1541_v59 = vmul.f32 %v16766_v56, %v1524_v47  ;;  %vm1546_vm6 = vweird.f32 %v16766_v56  ;;  %v1880_v55 = vunpack.c.h.bf16 %v1877_v51 }
 0x250   : > { %11670 = vmatmul.msk.f32.gmra.mxu2 %vm1449_vm1, %v1477_v54  ;;  %v1538_v60 = vsel %vm1535_vm5, %v1537_v57, %v1533_v58  ;;  %vm1547_vm8 = vmor %vm1545_vm7, %vm1546_vm6  ;;  %v1879_v54 = vunpack.c.l.bf16 %v1877_v51  ;;  %v15562_v51 = vld [vmem:[#allocation10 + $0x1f4] sm:$0xf0] }
 0x251   : > { %v1555_v61 = vmul.f32 %v1538_v60, %v1512_v33  ;;  %v1542_v62 = vsub.f32 1.0, %v1541_v59  ;;  %v16489_v33 = vunpack.c.l.bf16 %v16488_v29  ;;  %1938 = vmatpush.msra.mxu1 %v1880_v55 }
 0x252   : > { %1915 = vmatpush.msrb.mxu2 %v1879_v54  ;;  %v15560_v54 = vld [vmem:[#allocation10 + $0x1ec] sm:$0xf] }
 0x253   : > { %v1543_v0 = vmul.f32 %v16766_v56, %v1542_v62  ;;  %11671 = vmatmul.msk.f32.vlgmr.msrb.gmra.mxu1 %vm1449_vm1, %v1555_v61  ;;  %1697 = vmatpush.msrb.mxu3 %v16489_v33 }
 0x254   : > { %1789 = vmatpush.msra.mxu0 %v16489_v33 }
 0x255   : > { %v1544_v2 = vadd.f32 %v16766_v56, %v1543_v0 }
 0x257   : > { %v1548_v4 = vsel %vm1547_vm8, %v16766_v56, %v1544_v2  ;;  %v18415_v56 = vld [vmem:[%s18410_s13] sm:$0xff] }
 0x258   : > { %v1553_v5 = vsel %vm1550_vm9, %v1552_v3, %v1548_v4  ;;  %11673 = vmatmul.msk.f32.vlgmr.msrb.gmra.mxu2 %vm1893_vm10, %v18415_v56 }
 0x259   : > { %v1556_v6 = vmul.f32 %v1553_v5, %v1515_v37  ;;  %v18422_v5 = vld [vmem:[%s18410_s13 + $0x8] sm:$0xff] }
 0x25b   : > { %11672 = vmatmul.msk.f32.gmra.mxu1 %vm1449_vm1, %v1556_v6 }
 0x260   : > { %11674 = vmatmul.msk.f32.gmra.mxu2 %vm1893_vm10, %v18422_v5 }
 0x263   : > { %11675 = vmatmul.msk.f32.vlgmr.msra.gmra.mxu1 %vm1893_vm10, %v18415_v56 }
 0x26b   : > { %11676 = vmatmul.msk.f32.gmra.mxu1 %vm1893_vm10, %v18422_v5 }
 0x2cb   : > { %v1600_v30 = vpop.f32.mrf.mxu2 }
 0x2cc   : > { %v18397_v32 = vadd.f32 %v16749_v27, %v1600_v30 }
 0x2ce   : > { %v1606_v34 = vsub.f32 0.0, %v18397_v32 }
 0x2d0   : > { %v1608_v35 = vmul.f32 1.442695, %v1606_v34  ;;  %v1728_v37 = vpop.f32.mrf.mxu1 }
 0x2d1   : > { %v18402_v39 = vadd.f32 %v16749_v27, %v1728_v37 }
 0x2d2   : > { %16767 = vpow2.f32 %v1608_v35 }
 0x2d3   : > { %v1603_v36 = vpop.f32.mrf.mxu2  ;;  %v1734_v41 = vsub.f32 0.0, %v18402_v39 }
 0x2d4   : > { %v18400_v38 = vadd.f32 %v16749_v27, %v1603_v36 }
 0x2d5   : > { %v1736_v44 = vmul.f32 1.442695, %v1734_v41 }
 0x2d6   : > { %v1607_v40 = vsub.f32 0.0, %v18400_v38 }
 0x2d8   : > { %v16768_v42 = vpop.eup %16767  ;;  %v1610_v43 = vmul.f32 1.442695, %v1607_v40  ;;  %v1731_v46 = vpop.f32.mrf.mxu1 }
 0x2d9   : > { %v1612_v45 = vadd.f32 1.0, %v16768_v42  ;;  %v18406_v47 = vadd.f32 %v16749_v27, %v1731_v46  ;;  %v1878_v42 = vld [vmem:[%s20451_s10 + $0x8] sm:$0xff]  ;;  %v15559_v46 = vld [vmem:[#allocation10 + $0x1e4] sm:$0xf] }
 0x2da   : > { %16769 = vpow2.f32 %v1610_v43  ;;  %v1881_v43 = vunpack.c.l.bf16 %v1878_v42 }
 0x2db   : > { %16771 = vrcp.f32 %v1612_v45  ;;  %v1735_v48 = vsub.f32 0.0, %v18406_v47  ;;  %v1625_v59 = vand.u32 2147483648, %v1612_v45  ;;  %vm1619_vm11 = vweird.f32 %v1612_v45 }
 0x2dc   : > { %16773 = vpow2.f32 %v1736_v44  ;;  %v1623_v62 = vand.u32 2147483647, %v1612_v45  ;;  %1961 = vmatpush.msra.mxu2 %v1881_v43  ;;  %v1882_v44 = vunpack.c.h.bf16 %v1878_v42  ;;  %v15541_v42 = vld [vmem:[#allocation10 + $0x14c] sm:$0xf0]  ;;  %v15539_v43 = vld [vmem:[#allocation10 + $0x144] sm:$0xf] }
 0x2dd   : > { %v1738_v50 = vmul.f32 1.442695, %v1735_v48  ;;  %v1626_v0 = vor.u32 1.1754944e-38, %v1625_v59  ;;  %11677 = vmatmul.msk.f32.vlgmr.msra.gmra.mxu2 %vm1893_vm10, %v18415_v56  ;;  %v15555_v59 = vld [vmem:[#allocation10 + $0x1c4] sm:$0xf] }
 0x2de   : > { %vm1624_vm14 = vcmp.eq.f32.partialorder %v1623_v62, 8.507059e+37  ;;  %1984 = vmatpush.msra.mxu3 %v1882_v44  ;;  %v11787_v62 = vld [vmem:[#allocation10 + $0x1c8] sm:$0xf] }
 0x2df   : > { %16775 = vpow2.f32 %v1738_v50  ;;  %v11803_v50 = vld [vmem:[#allocation10 + $0x1e8] sm:$0xf] }
 0x2e0   : > { %v16770_v49 = vpop.eup %16769 }
 0x2e1   : > { %v16772_v52 = vpop.eup %16771  ;;  %v1613_v53 = vadd.f32 1.0, %v16770_v49  ;;  %v11797_v49 = vld [vmem:[#allocation10 + $0x1f0] sm:$0xf0] }
 0x2e2   : > { %v16774_v57 = vpop.eup %16773  ;;  %v1615_v58 = vmul.f32 %v16772_v52, %v1612_v45  ;;  %vm1620_vm12 = vweird.f32 %v16772_v52  ;;  %v11795_v45 = vld [vmem:[#allocation10 + $0x1e0] sm:$0xf] }
 0x2e3   : > { %16777 = vrcp.f32 %v1613_v53  ;;  %v1740_v60 = vadd.f32 1.0, %v16774_v57  ;;  %vm1621_vm13 = vmor %vm1619_vm11, %vm1620_vm12  ;;  %vm1634_vm15 = vweird.f32 %v1613_v53  ;;  %v1638_v10 = vand.u32 2147483647, %v1613_v53  ;;  %v11779_v57 = vld [vmem:[#allocation10 + $0x1c0] sm:$0xf] }
 0x2e4   : > { %v1616_v61 = vsub.f32 1.0, %v1615_v58  ;;  %v1640_v11 = vand.u32 2147483648, %v1613_v53  ;;  %v15557_v58 = vld [vmem:[#allocation10 + $0x1cc] sm:$0xf0] }
 0x2e5   : > { %16779 = vrcp.f32 %v1740_v60  ;;  %v16776_v1 = vpop.eup %16775  ;;  %vm1639_vm2 = vcmp.eq.f32.partialorder %v1638_v10, 8.507059e+37  ;;  %v1753_v18 = vand.u32 2147483648, %v1740_v60  ;;  %v1751_v21 = vand.u32 2147483647, %v1740_v60  ;;  %11678 = vmatmul.msk.f32.gmra.mxu2 %vm1893_vm10, %v18422_v5  ;;  %v11771_v10 = vld [vmem:[#allocation10 + $0x1a8] sm:$0xf] }
 0x2e6   : > { %v1617_v63 = vmul.f32 %v16772_v52, %v1616_v61  ;;  %v1741_v4 = vadd.f32 1.0, %v16776_v1  ;;  %v1641_v17 = vor.u32 1.1754944e-38, %v1640_v11  ;;  %vm1747_vm4 = vweird.f32 %v1740_v60  ;;  %v11781_v61 = vld [vmem:[#allocation10 + $0x1d0] sm:$0xf0]  ;;  %v15554_v11 = vld [vmem:[#allocation10 + $0x1b4] sm:$0xf0] }
 0x2e7   : > { %v1754_v27 = vor.u32 1.1754944e-38, %v1753_v18  ;;  %vm1752_vm6 = vcmp.eq.f32.partialorder %v1751_v21, 8.507059e+37  ;;  %v15549_v18 = vld [vmem:[#allocation10 + $0x18c] sm:$0xf0]  ;;  %v11749_v21 = vld [vmem:[#allocation10 + $0x190] sm:$0xf0] }
 0x2e8   : > { %v1618_v2 = vadd.f32 %v16772_v52, %v1617_v63  ;;  %16781 = vrcp.f32 %v1741_v4  ;;  %v1766_v35 = vand.u32 2147483647, %v1741_v4  ;;  %vm1762_vm8 = vweird.f32 %v1741_v4  ;;  %v15558_v63 = vld [vmem:[#allocation10 + $0x1d4] sm:$0xf0] }
 0x2e9   : > { %v16778_v3 = vpop.eup %16777  ;;  %v11788_v1 = vor.u32 %v15558_v63, %v11787_v62  ;;  %v15536_v63 = vld [vmem:[#allocation10 + $0x12c] sm:$0xf] }
 0x2ea   : > { %v1622_v6 = vsel %vm1621_vm13, %v16772_v52, %v1618_v2  ;;  %v1630_v7 = vmul.f32 %v16778_v3, %v1613_v53  ;;  %vm1635_vm0 = vweird.f32 %v16778_v3  ;;  %vm1767_vm11 = vcmp.eq.f32.partialorder %v1766_v35, 8.507059e+37  ;;  %v15556_v2 = vld [vmem:[#allocation10 + $0x1cc] sm:$0xf] }
 0x2eb   : > { %v16780_v8 = vpop.eup %16779  ;;  %v1627_v9 = vsel %vm1624_vm14, %v1626_v0, %v1622_v6  ;;  %vm1636_vm1 = vmor %vm1634_vm15, %vm1635_vm0  ;;  %v11800_v52 = vor.u32 %v15559_v46, %v11797_v49  ;;  %v11804_v53 = vor.u32 %v15562_v51, %v11803_v50  ;;  %v11784_v0 = vor.u32 %v15555_v59, %v11781_v61  ;;  %v15553_v6 = vld [vmem:[#allocation10 + $0x1ac] sm:$0xf0]  ;;  %v15542_v46 = vld [vmem:[#allocation10 + $0x154] sm:$0xf0] }
 0x2ec   : > { %v1644_v12 = vmul.f32 %v1627_v9, %v18397_v32  ;;  %v1631_v13 = vsub.f32 1.0, %v1630_v7  ;;  %v1743_v14 = vmul.f32 %v16780_v8, %v1740_v60  ;;  %vm1748_vm3 = vweird.f32 %v16780_v8  ;;  %v15551_v7 = vld [vmem:[#allocation10 + $0x1a4] sm:$0xf]  ;;  %v11765_v9 = vld [vmem:[#allocation10 + $0x1b0] sm:$0xf0] }
 0x2ed   : > { %vm1749_vm5 = vmor %vm1747_vm4, %vm1748_vm3  ;;  %v1768_v32 = vand.u32 2147483648, %v1741_v4  ;;  %2392 = vmatpush.bf16.msrb.mxu0 %v11800_v52  ;;  %2406 = vmatpush.bf16.msrb.mxu2 %v11804_v53  ;;  %v11780_v60 = vor.u32 %v15557_v58, %v11779_v57  ;;  %v15540_v50 = vld [vmem:[#allocation10 + $0x14c] sm:$0xf]  ;;  %v11725_v51 = vld [vmem:[#allocation10 + $0x158] sm:$0xf0] }
 0x2ee   : > { %1698 = vmatmul.f32.vlgmr.msrb.gmra.mxu3 %v1644_v12  ;;  %v1632_v15 = vmul.f32 %v16778_v3, %v1631_v13  ;;  %v1744_v16 = vsub.f32 1.0, %v1743_v14  ;;  %v16782_v22 = vpop.eup %16781  ;;  %v11768_v12 = vor.u32 %v15551_v7, %v11765_v9  ;;  %v11772_v13 = vor.u32 %v15554_v11, %v11771_v10  ;;  %v15552_v14 = vld [vmem:[#allocation10 + $0x1ac] sm:$0xf]  ;;  %v11699_v53 = vld [vmem:[#allocation10 + $0x120] sm:$0xf] }
 0x2ef   : > { %v1758_v25 = vmul.f32 %v16782_v22, %v1741_v4  ;;  %vm1763_vm7 = vweird.f32 %v16782_v22  ;;  %v1769_v37 = vor.u32 1.1754944e-38, %v1768_v32  ;;  %v11733_v32 = vld [vmem:[#allocation10 + $0x170] sm:$0xf0]  ;;  %v11728_v52 = vor.u32 %v15540_v50, %v11725_v51  ;;  %v11707_v58 = vld [vmem:[#allocation10 + $0x128] sm:$0xf] }
 0x2f0   : > { %v1633_v19 = vadd.f32 %v16778_v3, %v1632_v15  ;;  %v1745_v20 = vmul.f32 %v16780_v8, %v1744_v16  ;;  %vm1764_vm9 = vmor %vm1762_vm8, %vm1763_vm7  ;;  %v11773_v15 = vld [vmem:[#allocation10 + $0x1b8] sm:$0xf0]  ;;  %v11701_v57 = vld [vmem:[#allocation10 + $0x130] sm:$0xf0] }
 0x2f1   : > { %v1759_v30 = vsub.f32 1.0, %v1758_v25  ;;  %2393 = vmatpush.bf16.msrb.mxu0 %v11784_v0  ;;  %2407 = vmatpush.bf16.msrb.mxu2 %v11788_v1  ;;  %v11776_v16 = vor.u32 %v15552_v14, %v11773_v15  ;;  %v15538_v59 = vld [vmem:[#allocation10 + $0x134] sm:$0xf0]  ;;  %v11709_v0 = vld [vmem:[#allocation10 + $0x138] sm:$0xf0] }
 0x2f2   : > { %v1637_v23 = vsel %vm1636_vm1, %v16778_v3, %v1633_v19  ;;  %v1746_v24 = vadd.f32 %v16780_v8, %v1745_v20  ;;  %v11789_v3 = vld [vmem:[#allocation10 + $0x1d8] sm:$0xf0]  ;;  %v15547_v19 = vld [vmem:[#allocation10 + $0x184] sm:$0xf]  ;;  %v11708_v62 = vor.u32 %v15538_v59, %v11707_v58  ;;  %v11712_v1 = vor.u32 %v15536_v63, %v11709_v0  ;;  %v11685_v7 = vld [vmem:[#allocation10 + $0x110] sm:$0xf0] }
 0x2f3   : > { %v1642_v26 = vsel %vm1639_vm2, %v1641_v17, %v1637_v23  ;;  %v1760_v34 = vmul.f32 %v16782_v22, %v1759_v30  ;;  %v11792_v4 = vor.u32 %v15556_v2, %v11789_v3  ;;  %v11747_v17 = vld [vmem:[#allocation10 + $0x180] sm:$0xf]  ;;  %v15550_v23 = vld [vmem:[#allocation10 + $0x194] sm:$0xf0]  ;;  %v15543_v30 = vld [vmem:[#allocation10 + $0x164] sm:$0xf] }
 0x2f4   : > { %v1645_v28 = vmul.f32 %v1642_v26, %v18400_v38  ;;  %v1750_v29 = vsel %vm1749_vm5, %v16780_v8, %v1746_v24  ;;  %v11748_v20 = vor.u32 %v15549_v18, %v11747_v17  ;;  %v11752_v24 = vor.u32 %v15547_v19, %v11749_v21  ;;  %v15548_v26 = vld [vmem:[#allocation10 + $0x18c] sm:$0xf]  ;;  %v11683_v2 = vld [vmem:[#allocation10 + $0x100] sm:$0xf]  ;;  %v15533_v3 = vld [vmem:[#allocation10 + $0x10c] sm:$0xf0] }
 0x2f5   : > { %v1755_v31 = vsel %vm1752_vm6, %v1754_v27, %v1750_v29  ;;  %v1761_v36 = vadd.f32 %v16782_v22, %v1760_v34  ;;  %2394 = vmatpush.bf16.msrb.mxu0 %v11768_v12  ;;  %2408 = vmatpush.bf16.msrb.mxu2 %v11772_v13  ;;  %v11757_v27 = vld [vmem:[#allocation10 + $0x198] sm:$0xf0]  ;;  %v15545_v29 = vld [vmem:[#allocation10 + $0x16c] sm:$0xf0]  ;;  %v15546_v34 = vld [vmem:[#allocation10 + $0x174] sm:$0xf0]  ;;  %v11736_v35 = vor.u32 %v15543_v30, %v11733_v32 }
 0x2f6   : > { %1701 = vmatmul.f32.gmra.mxu3 %v1645_v28  ;;  %v1772_v33 = vmul.f32 %v1755_v31, %v18402_v39  ;;  %v15561_v39 = vld [vmem:[#allocation10 + $0x1ec] sm:$0xf0]  ;;  %v11760_v28 = vor.u32 %v15548_v26, %v11757_v27  ;;  %v15534_v9 = vld [vmem:[#allocation10 + $0x114] sm:$0xf0]  ;;  %v15532_v13 = vld [vmem:[#allocation10 + $0x10c] sm:$0xf] }
 0x2f7   : > { %v1765_v40 = vsel %vm1764_vm9, %v16782_v22, %v1761_v36  ;;  %v11796_v48 = vor.u32 %v15561_v39, %v11795_v45  ;;  %v11755_v22 = vld [vmem:[#allocation10 + $0x188] sm:$0xf]  ;;  %v11717_v45 = vld [vmem:[#allocation10 + $0x150] sm:$0xf0]  ;;  %v11693_v14 = vld [vmem:[#allocation10 + $0x118] sm:$0xf0] }
 0x2f8   : > { %1790 = vmatmul.f32.vlgmr.msra.gmra.mxu0 %v1772_v33  ;;  %v1770_v38 = vsel %vm1767_vm11, %v1769_v37, %v1765_v40  ;;  %v11756_v25 = vor.u32 %v15550_v23, %v11755_v22  ;;  %v11739_v33 = vld [vmem:[#allocation10 + $0x168] sm:$0xf]  ;;  %v15544_v37 = vld [vmem:[#allocation10 + $0x16c] sm:$0xf]  ;;  %v11741_v40 = vld [vmem:[#allocation10 + $0x178] sm:$0xf0] }
 0x2f9   : > { %v1773_v41 = vmul.f32 %v1770_v38, %v18406_v47  ;;  %v11805_v47 = vld [vmem:[#allocation10 + $0x1f8] sm:$0xf0]  ;;  %2378 = vmatpush.bf16.msrb.mxu1 %v11796_v48  ;;  %2395 = vmatpush.bf16.msrb.mxu0 %v11752_v24  ;;  %v11740_v36 = vor.u32 %v15546_v34, %v11739_v33  ;;  %v11744_v38 = vor.u32 %v15544_v37, %v11741_v40  ;;  %v11723_v39 = vld [vmem:[#allocation10 + $0x148] sm:$0xf]  ;;  %v11923_v15 = vld [vmem:[#allocation10 + $0xe0] sm:$0xf] }
 0x2fa   : > { %v11808_v55 = vor.u32 %v15560_v54, %v11805_v47  ;;  %2409 = vmatpush.bf16.msrb.mxu2 %v11756_v25  ;;  %v11720_v48 = vor.u32 %v15539_v43, %v11717_v45  ;;  %v11724_v49 = vor.u32 %v15542_v46, %v11723_v39  ;;  %v15537_v54 = vld [vmem:[#allocation10 + $0x12c] sm:$0xf0]  ;;  %v15535_v47 = vld [vmem:[#allocation10 + $0x124] sm:$0xf]  ;;  %v11925_v19 = vld [vmem:[#allocation10 + $0xf0] sm:$0xf0] }
 0x2fb   : > { %v11704_v61 = vor.u32 %v15535_v47, %v11701_v57  ;;  %v15529_v17 = vld [vmem:[#allocation10 + $0xec] sm:$0xf0]  ;;  %v15527_v18 = vld [vmem:[#allocation10 + $0xe4] sm:$0xf]  ;;  %v11931_v23 = vld [vmem:[#allocation10 + $0xe8] sm:$0xf] }
 0x2fc   : > { %2420 = vmatpush.bf16.msrb.mxu3 %v11808_v55  ;;  %v11700_v55 = vor.u32 %v15537_v54, %v11699_v53  ;;  %v11924_v21 = vor.u32 %v15529_v17, %v11923_v15  ;;  %v11928_v22 = vor.u32 %v15527_v18, %v11925_v19  ;;  %v15530_v24 = vld [vmem:[#allocation10 + $0xf4] sm:$0xf0]  ;;  %v15528_v27 = vld [vmem:[#allocation10 + $0xec] sm:$0xf]  ;;  %v15525_v32 = vld [vmem:[#allocation10 + $0xcc] sm:$0xf0] }
 0x2fd   : > { %2379 = vmatpush.bf16.msrb.mxu1 %v11780_v60  ;;  %2396 = vmatpush.bf16.msrb.mxu0 %v11736_v35  ;;  %v18442_v60 = vld [vmem:[#allocation2 + $0x3] ss:$0 sm:$0xff]  ;;  %v11932_v26 = vor.u32 %v15530_v24, %v11931_v23  ;;  %v11909_v35 = vld [vmem:[#allocation10 + $0xd0] sm:$0xf0]  ;;  %v15526_v37 = vld [vmem:[#allocation10 + $0xd4] sm:$0xf0] }
 0x2fe   : > { %11679 = vmatmul.msk.f32.vlgmr.msra.gmra.mxu3 %vm1893_vm10, %v18415_v56  ;;  %v11763_v56 = vld [vmem:[#allocation10 + $0x1a0] sm:$0xf]  ;;  %2410 = vmatpush.bf16.msrb.mxu2 %v11740_v36  ;;  %v15523_v33 = vld [vmem:[#allocation10 + $0xc4] sm:$0xf]  ;;  %v11915_v36 = vld [vmem:[#allocation10 + $0xc8] sm:$0xf] }
 0x2ff   : > { %v11764_v8 = vor.u32 %v15553_v6, %v11763_v56  ;;  %v11684_v6 = vor.u32 %v15533_v3, %v11683_v2  ;;  %v11917_v43 = vld [vmem:[#allocation10 + $0xd8] sm:$0xf0]  ;;  %v11891_v39 = vld [vmem:[#allocation10 + $0xa0] sm:$0xf]  ;;  %v15521_v46 = vld [vmem:[#allocation10 + $0xac] sm:$0xf0] }
 0x300   : > { %1793 = vmatmul.f32.gmra.mxu0 %v1773_v41  ;;  %2421 = vmatpush.bf16.msrb.mxu3 %v11792_v4  ;;  %v11715_v41 = vld [vmem:[#allocation10 + $0x140] sm:$0xf]  ;;  %v15531_v4 = vld [vmem:[#allocation10 + $0x104] sm:$0xf]  ;;  %v11892_v51 = vor.u32 %v15521_v46, %v11891_v39  ;;  %v11899_v53 = vld [vmem:[#allocation10 + $0xa8] sm:$0xf] }
 0x301   : > { %2380 = vmatpush.bf16.msrb.mxu1 %v11764_v8  ;;  %v11716_v44 = vor.u32 %v15541_v42, %v11715_v41  ;;  %2397 = vmatpush.bf16.msrb.mxu0 %v11720_v48  ;;  %v11691_v8 = vld [vmem:[#allocation10 + $0x108] sm:$0xf]  ;;  %v11688_v11 = vor.u32 %v15531_v4, %v11685_v7  ;;  %v11916_v41 = vor.u32 %v15526_v37, %v11915_v36  ;;  %v15524_v42 = vld [vmem:[#allocation10 + $0xcc] sm:$0xf]  ;;  %v15519_v48 = vld [vmem:[#allocation10 + $0xa4] sm:$0xf] }
 0x302   : > { %2411 = vmatpush.bf16.msrb.mxu2 %v11724_v49  ;;  %v11692_v12 = vor.u32 %v15534_v9, %v11691_v8  ;;  %v11920_v45 = vor.u32 %v15524_v42, %v11917_v43  ;;  %v15522_v47 = vld [vmem:[#allocation10 + $0xb4] sm:$0xf0]  ;;  %v11901_v57 = vld [vmem:[#allocation10 + $0xb8] sm:$0xf0]  ;;  %v11875_v63 = vld [vmem:[#allocation10 + $0x80] sm:$0xf] }
 0x303   : > { %v11900_v59 = vor.u32 %v15522_v47, %v11899_v53  ;;  %v15517_v0 = vld [vmem:[#allocation10 + $0x8c] sm:$0xf0]  ;;  %v15518_v8 = vld [vmem:[#allocation10 + $0x94] sm:$0xf0]  ;;  %v15516_v9 = vld [vmem:[#allocation10 + $0x8c] sm:$0xf] }
 0x304   : > { %2422 = vmatpush.bf16.msrb.mxu3 %v11776_v16  ;;  %v11696_v16 = vor.u32 %v15532_v13, %v11693_v14  ;;  %v11876_v4 = vor.u32 %v15517_v0, %v11875_v63  ;;  %v11885_v13 = vld [vmem:[#allocation10 + $0x98] sm:$0xf0]  ;;  %v11859_v14 = vld [vmem:[#allocation10 + $0x60] sm:$0xf]  ;;  %v15513_v17 = vld [vmem:[#allocation10 + $0x6c] sm:$0xf0] }
 0x305   : > { %2381 = vmatpush.bf16.msrb.mxu1 %v11748_v20  ;;  %2398 = vmatpush.bf16.msrb.mxu0 %v11704_v61  ;;  %v15511_v18 = vld [vmem:[#allocation10 + $0x64] sm:$0xf]  ;;  %v11867_v23 = vld [vmem:[#allocation10 + $0x68] sm:$0xf]  ;;  %v15514_v24 = vld [vmem:[#allocation10 + $0x74] sm:$0xf0] }
 0x306   : > { %11680 = vmatmul.msk.f32.gmra.mxu3 %vm1893_vm10, %v18422_v5  ;;  %v11731_v5 = vld [vmem:[#allocation10 + $0x160] sm:$0xf]  ;;  %2412 = vmatpush.bf16.msrb.mxu2 %v11708_v62  ;;  %v11845_v36 = vld [vmem:[#allocation10 + $0x50] sm:$0xf0]  ;;  %v11853_v42 = vld [vmem:[#allocation10 + $0x58] sm:$0xf0] }
 0x307   : > { %v11732_v31 = vor.u32 %v15545_v29, %v11731_v5  ;;  %v11907_v5 = vld [vmem:[#allocation10 + $0xc0] sm:$0xf]  ;;  %v15503_v53 = vld [vmem:[#allocation10 + $0x24] sm:$0xf]  ;;  %v11829_v47 = vld [vmem:[#allocation10 + $0x30] sm:$0xf0] }
 0x308   : > { %2423 = vmatpush.bf16.msrb.mxu3 %v11760_v28  ;;  %v11933_v28 = vld [vmem:[#allocation10 + $0xf8] sm:$0xf0]  ;;  %v11908_v34 = vor.u32 %v15525_v32, %v11907_v5  ;;  %v15507_v32 = vld [vmem:[#allocation10 + $0x44] sm:$0xf]  ;;  %v11827_v46 = vld [vmem:[#allocation10 + $0x20] sm:$0xf] }
 0x309   : > { %2382 = vmatpush.bf16.msrb.mxu1 %v11732_v31  ;;  %2399 = vmatpush.bf16.msrb.mxu0 %v11688_v11  ;;  %v11936_v31 = vor.u32 %v15528_v27, %v11933_v28  ;;  %v11868_v28 = vor.u32 %v15514_v24, %v11867_v23  ;;  %v11848_v37 = vor.u32 %v15507_v32, %v11845_v36  ;;  %v11837_v63 = vld [vmem:[#allocation10 + $0x38] sm:$0xf0]  ;;  %v11811_v0 = vld [vmem:[#allocation10] sm:$0xf] }
 0x30a   : > { %2413 = vmatpush.bf16.msrb.mxu2 %v11692_v12 }
 0x30c   : > { %2424 = vmatpush.bf16.msrb.mxu3 %v11744_v38  ;;  %v11912_v38 = vor.u32 %v15523_v33, %v11909_v35 }
 0x30d   : > { %2383 = vmatpush.bf16.msrb.mxu1 %v11716_v44  ;;  %2608 = vmatpush.bf16.msra.mxu0 %v11928_v22 }
 0x30e   : > { %2622 = vmatpush.bf16.msra.mxu2 %v11932_v26  ;;  %v11869_v26 = vld [vmem:[#allocation10 + $0x78] sm:$0xf0] }
 0x310   : > { %2425 = vmatpush.bf16.msrb.mxu3 %v11728_v52  ;;  %v11893_v52 = vld [vmem:[#allocation10 + $0xb0] sm:$0xf0] }
 0x311   : > { %2384 = vmatpush.bf16.msrb.mxu1 %v11700_v55  ;;  %2609 = vmatpush.bf16.msra.mxu0 %v11912_v38  ;;  %v11896_v54 = vor.u32 %v15519_v48, %v11893_v52  ;;  %v15520_v55 = vld [vmem:[#allocation10 + $0xac] sm:$0xf]  ;;  %v15510_v38 = vld [vmem:[#allocation10 + $0x54] sm:$0xf0]  ;;  %v15505_v48 = vld [vmem:[#allocation10 + $0x2c] sm:$0xf0] }
 0x312   : > { %2623 = vmatpush.bf16.msra.mxu2 %v11916_v41  ;;  %v11904_v61 = vor.u32 %v15520_v55, %v11901_v57  ;;  %v15508_v41 = vld [vmem:[#allocation10 + $0x4c] sm:$0xf]  ;;  %v11828_v52 = vor.u32 %v15505_v48, %v11827_v46  ;;  %v11835_v55 = vld [vmem:[#allocation10 + $0x28] sm:$0xf]  ;;  %v15506_v57 = vld [vmem:[#allocation10 + $0x34] sm:$0xf0] }
 0x313   : > { %v11856_v39 = vor.u32 %v15508_v41, %v11853_v42 }
 0x314   : > { %2426 = vmatpush.bf16.msrb.mxu3 %v11712_v1  ;;  %v15515_v1 = vld [vmem:[#allocation10 + $0x84] sm:$0xf] }
 0x315   : > { %2385 = vmatpush.bf16.msrb.mxu1 %v11684_v6  ;;  %2610 = vmatpush.bf16.msra.mxu0 %v11896_v54  ;;  %v11883_v6 = vld [vmem:[#allocation10 + $0x88] sm:$0xf] }
 0x316   : > { %2624 = vmatpush.bf16.msra.mxu2 %v11900_v59  ;;  %v11884_v12 = vor.u32 %v15518_v8, %v11883_v6  ;;  %v11813_v6 = vld [vmem:[#allocation10 + $0x10] sm:$0xf0]  ;;  %v15502_v8 = vld [vmem:[#allocation10 + $0x14] sm:$0xf0] }
 0x318   : > { %2427 = vmatpush.bf16.msrb.mxu3 %v11696_v16  ;;  %v11888_v16 = vor.u32 %v15516_v9, %v11885_v13  ;;  %v15500_v13 = vld [vmem:[#allocation10 + $0xc] sm:$0xf] }
 0x319   : > { %2594 = vmatpush.bf16.msra.mxu1 %v11924_v21  ;;  %v11861_v21 = vld [vmem:[#allocation10 + $0x70] sm:$0xf0] }
 0x31a   : > { %2625 = vmatpush.bf16.msra.mxu2 %v11884_v12  ;;  %v11864_v22 = vor.u32 %v15511_v18, %v11861_v21 }
 0x31c   : > { %2636 = vmatpush.bf16.msra.mxu3 %v11936_v31  ;;  %v15509_v31 = vld [vmem:[#allocation10 + $0x4c] sm:$0xf0] }
 0x31d   : > { %2595 = vmatpush.bf16.msra.mxu1 %v11908_v34 }
 0x31e   : > { %2626 = vmatpush.bf16.msra.mxu2 %v11868_v28 }
 0x320   : > { %2637 = vmatpush.bf16.msra.mxu3 %v11920_v45 }
 0x321   : > { %2596 = vmatpush.bf16.msra.mxu1 %v11892_v51 }
 0x324   : > { %2638 = vmatpush.bf16.msra.mxu3 %v11904_v61  ;;  %v11832_v61 = vor.u32 %v15503_v53, %v11829_v47 }
 0x325   : > { %2597 = vmatpush.bf16.msra.mxu1 %v11876_v4  ;;  %v15499_v4 = vld [vmem:[#allocation10 + $0x4] sm:$0xf] }
 0x328   : > { %2639 = vmatpush.bf16.msra.mxu3 %v11888_v16 }
 0x371   : > { %v1699_v56 = vpop.f32.mrf.mxu3 }
 0x372   : > { %v18445_v10 = vadd.f32 %v18442_v60, %v1699_v56  ;;  %v11877_v56 = vld [vmem:[#allocation10 + $0x90] sm:$0xf0] }
 0x373   : > { %v11880_v7 = vor.u32 %v15515_v1, %v11877_v56 }
 0x374   : > { %v1797_v20 = vsub.f32 0.0, %v18445_v10 }
 0x375   : > { %v1791_v25 = vpop.f32.mrf.mxu0  ;;  %2611 = vmatpush.bf16.msra.mxu0 %v11880_v7  ;;  %v11819_v7 = vld [vmem:[#allocation10 + $0x8] sm:$0xf] }
 0x376   : > { %v1799_v29 = vmul.f32 1.442695, %v1797_v20  ;;  %v18449_v30 = vadd.f32 %v18442_v60, %v1791_v25  ;;  %v11860_v20 = vor.u32 %v15513_v17, %v11859_v14  ;;  %v15512_v25 = vld [vmem:[#allocation10 + $0x6c] sm:$0xf]  ;;  %v11820_v12 = vor.u32 %v15502_v8, %v11819_v7  ;;  %v11821_v14 = vld [vmem:[#allocation10 + $0x18] sm:$0xf0] }
 0x377   : > { %v11872_v5 = vor.u32 %v15512_v25, %v11869_v26  ;;  %v15589_v7 = vld [vmem:[#allocation9 + $0xcc] sm:$0xf0] }
 0x378   : > { %v1837_v40 = vsub.f32 0.0, %v18449_v30  ;;  %2598 = vmatpush.bf16.msra.mxu1 %v11860_v20 }
 0x379   : > { %v1702_v44 = vpop.f32.mrf.mxu3  ;;  %2612 = vmatpush.bf16.msra.mxu0 %v11864_v22  ;;  %2640 = vmatpush.bf16.msra.mxu3 %v11872_v5 }
 0x37a   : > { %v1839_v49 = vmul.f32 1.442695, %v1837_v40  ;;  %v18453_v50 = vadd.f32 %v18442_v60, %v1702_v44  ;;  %v11851_v40 = vld [vmem:[#allocation10 + $0x48] sm:$0xf] }
 0x37b   : > { %v11852_v45 = vor.u32 %v15510_v38, %v11851_v40 }
 0x37c   : > { %16783 = vpow2.f32 %v1839_v49  ;;  %v1798_v58 = vsub.f32 0.0, %v18453_v50 }
 0x37d   : > { %v1794_v62 = vpop.f32.mrf.mxu0  ;;  %2613 = vmatpush.bf16.msra.mxu0 %v11848_v37  ;;  %2627 = vmatpush.bf16.msra.mxu2 %v11852_v45 }
 0x37e   : > { %v1801_v2 = vmul.f32 1.442695, %v1798_v58  ;;  %v18457_v3 = vadd.f32 %v18442_v60, %v1794_v62  ;;  %2641 = vmatpush.bf16.msra.mxu3 %v11856_v39  ;;  %v15504_v58 = vld [vmem:[#allocation10 + $0x2c] sm:$0xf]  ;;  %v11836_v62 = vor.u32 %v15506_v57, %v11835_v55 }
 0x37f   : > { %v11840_v1 = vor.u32 %v15504_v58, %v11837_v63  ;;  %v18518_v58 = vld [vmem:[#allocation2 + $0x4] sm:$0xf]  ;;  %v15593_v63 = vld [vmem:[#allocation9 + $0xec] sm:$0xf0] }
 0x380   : > { %16785 = vpow2.f32 %v1801_v2  ;;  %v1838_v11 = vsub.f32 0.0, %v18457_v3  ;;  %v15501_v2 = vld [vmem:[#allocation10 + $0xc] sm:$0xf0] }
 0x381   : > { %16787 = vpow2.f32 %v1799_v29  ;;  %v11843_v29 = vld [vmem:[#allocation10 + $0x40] sm:$0xf]  ;;  %2614 = vmatpush.bf16.msra.mxu0 %v11832_v61  ;;  %2628 = vmatpush.bf16.msra.mxu2 %v11836_v62  ;;  %v11812_v9 = vor.u32 %v15501_v2, %v11811_v0 }
 0x382   : > { %v16784_v15 = vpop.eup %16783  ;;  %v1841_v60 = vmul.f32 1.442695, %v1838_v11  ;;  %v11844_v35 = vor.u32 %v15509_v31, %v11843_v29  ;;  %2642 = vmatpush.bf16.msra.mxu3 %v11840_v1  ;;  %v11816_v11 = vor.u32 %v15499_v4, %v11813_v6  ;;  %v12179_v2 = vld [vmem:[#allocation9 + $0x1e0] sm:$0xf]  ;;  %v15625_v4 = vld [vmem:[#allocation9 + $0x1ec] sm:$0xf0] }
 0x383   : > { %v18460_v19 = vadd.f32 1.0, %v16784_v15  ;;  %v12035_v6 = vld [vmem:[#allocation9 + $0xc0] sm:$0xf] }
 0x384   : > { %16789 = vpow2.f32 %v1841_v60  ;;  %2599 = vmatpush.bf16.msra.mxu1 %v11844_v35  ;;  %v11824_v60 = vor.u32 %v15500_v13, %v11821_v14  ;;  %v15621_v13 = vld [vmem:[#allocation9 + $0x1cc] sm:$0xf0] }
 0x385   : > { %16791 = vrcp.f32 %v18460_v19  ;;  %2615 = vmatpush.bf16.msra.mxu0 %v11816_v11  ;;  %2629 = vmatpush.bf16.msra.mxu2 %v11820_v12  ;;  %v1856_v21 = vand.u32 2147483648, %v18460_v19  ;;  %vm1850_vm13 = vweird.f32 %v18460_v19  ;;  %v1854_v22 = vand.u32 2147483647, %v18460_v19 }
 0x386   : > { %v16786_v27 = vpop.eup %16785  ;;  %2643 = vmatpush.bf16.msra.mxu3 %v11824_v60  ;;  %v12036_v12 = vor.u32 %v15589_v7, %v12035_v6  ;;  %v15657_v60 = vld [vmem:[#allocation9 + $0x2ec] sm:$0xf0]  ;;  %v12387_v7 = vld [vmem:[#allocation9 + $0x380] sm:$0xf] }
 0x387   : > { %v16788_v33 = vpop.eup %16787  ;;  %v18463_v34 = vadd.f32 1.0, %v16786_v27  ;;  %v1857_v29 = vor.u32 1.1754944e-38, %v1856_v21  ;;  %vm1855_vm0 = vcmp.eq.f32.partialorder %v1854_v22, 8.507059e+37  ;;  %v15645_v6 = vld [vmem:[#allocation9 + $0x28c] sm:$0xf0] }
 0x388   : > { %v18465_v44 = vadd.f32 1.0, %v16788_v33  ;;  %2600 = vmatpush.bf16.msra.mxu1 %v11828_v52 }
 0x389   : > { %16793 = vrcp.f32 %v18463_v34  ;;  %v1831_v39 = vand.u32 2147483648, %v18463_v34  ;;  %vm1825_vm6 = vweird.f32 %v18463_v34 }
 0x38a   : > { %v16790_v43 = vpop.eup %16789  ;;  %v1816_v46 = vand.u32 2147483648, %v18465_v44  ;;  %vm1810_vm8 = vweird.f32 %v18465_v44  ;;  %v1814_v48 = vand.u32 2147483647, %v18465_v44 }
 0x38b   : > { %v18467_v49 = vpop.eup %16791  ;;  %v18469_v51 = vadd.f32 1.0, %v16790_v43 }
 0x38c   : > { %v1846_v54 = vmul.f32 %v18467_v49, %v18460_v19  ;;  %2601 = vmatpush.bf16.msra.mxu1 %v11812_v9  ;;  %vm1851_vm12 = vweird.f32 %v18467_v49  ;;  %v1817_v53 = vor.u32 1.1754944e-38, %v1816_v46  ;;  %v12163_v9 = vld [vmem:[#allocation9 + $0x1c0] sm:$0xf]  ;;  %v15581_v46 = vld [vmem:[#allocation9 + $0x8c] sm:$0xf0] }
 0x38d   : > { %16795 = vrcp.f32 %v18469_v51  ;;  %vm1852_vm14 = vmor %vm1850_vm13, %vm1851_vm12  ;;  %v1871_v26 = vand.u32 2147483648, %v18469_v51  ;;  %v1869_v5 = vand.u32 2147483647, %v18469_v51  ;;  %vm1865_vm1 = vweird.f32 %v18469_v51 }
 0x38e   : > { %16797 = vrcp.f32 %v18465_v44  ;;  %v1847_v59 = vsub.f32 1.0, %v1846_v54  ;;  %vm1815_vm12 = vcmp.eq.f32.partialorder %v1814_v48, 8.507059e+37  ;;  %v12164_v14 = vor.u32 %v15621_v13, %v12163_v9  ;;  %v15573_v13 = vld [vmem:[#allocation9 + $0x4c] sm:$0xf0] }
 0x38f   : > { %v18477_v15 = vpop.eup %16793  ;;  %v1872_v33 = vor.u32 1.1754944e-38, %v1871_v26  ;;  %vm1870_vm3 = vcmp.eq.f32.partialorder %v1869_v5, 8.507059e+37  ;;  %v15617_v26 = vld [vmem:[#allocation9 + $0x1ac] sm:$0xf0] }
 0x390   : > { %v1848_v56 = vmul.f32 %v18467_v49, %v1847_v59  ;;  %v1821_v23 = vmul.f32 %v18477_v15, %v18463_v34  ;;  %vm1826_vm4 = vweird.f32 %v18477_v15  ;;  %v1885_v59 = vperm.slane %v18518_v58, 0  ;;  %v15653_v5 = vld [vmem:[#allocation9 + $0x2cc] sm:$0xf0] }
 0x391   : > { %vm1827_vm7 = vmor %vm1825_vm6, %vm1826_vm4 }
 0x392   : > { %v1849_v18 = vadd.f32 %v18467_v49, %v1848_v56  ;;  %v1822_v31 = vsub.f32 1.0, %v1821_v23  ;;  %v12180_v56 = vor.u32 %v15625_v4, %v12179_v2  ;;  %v15585_v23 = vld [vmem:[#allocation9 + $0xac] sm:$0xf0] }
 0x393   : > { %v16796_v16 = vpop.eup %16795  ;;  %v15609_v2 = vld [vmem:[#allocation9 + $0x16c] sm:$0xf0] }
 0x394   : > { %v16798_v17 = vpop.eup %16797  ;;  %v1861_v20 = vmul.f32 %v16796_v16, %v18469_v51  ;;  %v1853_v27 = vsel %vm1852_vm14, %v18467_v49, %v1849_v18  ;;  %vm1866_vm15 = vweird.f32 %v16796_v16  ;;  %v1823_v38 = vmul.f32 %v18477_v15, %v1822_v31 }
 0x395   : > { %v1806_v25 = vmul.f32 %v16798_v17, %v18465_v44  ;;  %v1858_v19 = vsel %vm1855_vm0, %v1857_v29, %v1853_v27  ;;  %vm1867_vm2 = vmor %vm1865_vm1, %vm1866_vm15  ;;  %vm1811_vm5 = vweird.f32 %v16798_v17  ;;  %v1832_v51 = vor.u32 1.1754944e-38, %v1831_v39  ;;  %v1917_v44 = vpop.f32.mrf.mxu2 }
 0x396   : > { %v1862_v24 = vsub.f32 1.0, %v1861_v20  ;;  %v1875_v40 = vmul.f32 %v1858_v19, %v18449_v30  ;;  %v1824_v45 = vadd.f32 %v18477_v15, %v1823_v38  ;;  %vm1812_vm9 = vmor %vm1810_vm8, %vm1811_vm5  ;;  %v18521_v61 = vadd.f32 %v1917_v44, %v1885_v59  ;;  %v12019_v20 = vld [vmem:[#allocation9 + $0xa0] sm:$0xf] }
 0x397   : > { %v1807_v35 = vsub.f32 1.0, %v1806_v25  ;;  %v12020_v25 = vor.u32 %v15585_v23, %v12019_v20  ;;  %v1887_v29 = vperm.slane %v18518_v58, 2  ;;  %v1886_v31 = vperm.slane %v18518_v58, 1  ;;  %v12099_v20 = vld [vmem:[#allocation9 + $0x140] sm:$0xf] }
 0x398   : > { %v1863_v28 = vmul.f32 %v16796_v16, %v1862_v24  ;;  %v1828_v49 = vsel %vm1827_vm7, %v18477_v15, %v1824_v45  ;;  %v1992_v0 = vsub.f32 0.0, %v18521_v61  ;;  %v12307_v15 = vld [vmem:[#allocation9 + $0x2e0] sm:$0xf]  ;;  %v1888_v45 = vperm.slane %v18518_v58, 3 }
 0x399   : > { %v1808_v42 = vmul.f32 %v16798_v17, %v1807_v35  ;;  %v12308_v21 = vor.u32 %v15657_v60, %v12307_v15  ;;  %v12147_v24 = vld [vmem:[#allocation9 + $0x1a0] sm:$0xf] }
 0x39a   : > { %v1864_v32 = vadd.f32 %v16796_v16, %v1863_v28  ;;  %v2000_v11 = vmul.f32 1.442695, %v1992_v0  ;;  %v12148_v27 = vor.u32 %v15617_v26, %v12147_v24  ;;  %v12291_v28 = vld [vmem:[#allocation9 + $0x2c0] sm:$0xf]  ;;  %v15577_v0 = vld [vmem:[#allocation9 + $0x6c] sm:$0xf0] }
 0x39b   : > { %v1809_v30 = vadd.f32 %v16798_v17, %v1808_v42  ;;  %v15685_v42 = vld [vmem:[#allocation9 + $0x3cc] sm:$0xf0]  ;;  %v12371_v26 = vld [vmem:[#allocation9 + $0x360] sm:$0xf] }
 0x39c   : > { %v1868_v36 = vsel %vm1867_vm2, %v16796_v16, %v1864_v32  ;;  %v12435_v16 = vld [vmem:[#allocation9 + $0x3e0] sm:$0xf]  ;;  %16799 = vpow2.f32 %v2000_v11  ;;  %v12292_v32 = vor.u32 %v15653_v5, %v12291_v28  ;;  %v15677_v11 = vld [vmem:[#allocation9 + $0x38c] sm:$0xf0] }
 0x39d   : > { %v1873_v37 = vsel %vm1870_vm3, %v1872_v33, %v1868_v36  ;;  %v1813_v52 = vsel %vm1812_vm9, %v16798_v17, %v1809_v30  ;;  %v15689_v17 = vld [vmem:[#allocation9 + $0x3ec] sm:$0xf0]  ;;  %v1940_v33 = vpop.f32.mrf.mxu1  ;;  %v1986_v30 = vpop.f32.mrf.mxu3  ;;  %v12388_v23 = vor.u32 %v15677_v11, %v12387_v7  ;;  %v12181_v7 = vld [vmem:[#allocation9 + $0x1f0] sm:$0xf0] }
 0x39e   : > { %v1876_v41 = vmul.f32 %v1873_v37, %v18457_v3  ;;  %v1829_v3 = vand.u32 2147483647, %v18463_v34  ;;  %v1818_v47 = vsel %vm1815_vm12, %v1817_v53, %v1813_v52  ;;  %v12436_v22 = vor.u32 %v15689_v17, %v12435_v16  ;;  %v12131_v53 = vld [vmem:[#allocation9 + $0x180] sm:$0xf] }
 0x39f   : > { %v1835_v34 = vmul.f32 %v1818_v47, %v18445_v10  ;;  %v12051_v10 = vld [vmem:[#allocation9 + $0xe0] sm:$0xf]  ;;  %v18533_v37 = vadd.f32 %v1940_v33, %v1886_v31 }
 0x3a0   : > { %v18495_v43 = vpack.c.bf16 %v1876_v41, %v1875_v40  ;;  %vm1830_vm11 = vcmp.eq.f32.partialorder %v1829_v3, 8.507059e+37  ;;  %v12052_v1 = vor.u32 %v15593_v63, %v12051_v10  ;;  %v12419_v41 = vld [vmem:[#allocation9 + $0x3c0] sm:$0xf] }
 0x3a1   : > { %v1833_v54 = vsel %vm1830_vm11, %v1832_v51, %v1828_v49  ;;  %v12003_v3 = vld [vmem:[#allocation9 + $0x80] sm:$0xf]  ;;  %v1993_v51 = vsub.f32 0.0, %v18533_v37  ;;  %v12420_v52 = vor.u32 %v15685_v42, %v12419_v41 }
 0x3a2   : > { %2386 = vmatmul.bf16.vlgmr.msrb.gmra.mxu1 %v18495_v43  ;;  %2400 = vmatmul.bf16.vlgmr.msrb.gmra.mxu0 %v18495_v43  ;;  %v1836_v55 = vmul.f32 %v1833_v54, %v18453_v50  ;;  %v1920_v50 = vpop.f32.mrf.mxu2  ;;  %v16800_v35 = vpop.eup %16799  ;;  %v15613_v54 = vld [vmem:[#allocation9 + $0x18c] sm:$0xf0]  ;;  %v12275_v47 = vld [vmem:[#allocation9 + $0x2a0] sm:$0xf]  ;;  %v12004_v44 = vor.u32 %v15581_v46, %v12003_v3 }
 0x3a3   : > { %2414 = vmatmul.bf16.vlgmr.msrb.gmra.mxu2 %v18495_v43  ;;  %2428 = vmatmul.bf16.vlgmr.msrb.gmra.mxu3 %v18495_v43  ;;  %v18523_v62 = vadd.f32 %v1920_v50, %v1885_v59  ;;  %v18535_v38 = vadd.f32 1.0, %v16800_v35  ;;  %v12403_v59 = vld [vmem:[#allocation9 + $0x3a0] sm:$0xf]  ;;  %v15681_v50 = vld [vmem:[#allocation9 + $0x3ac] sm:$0xf0]  ;;  %v12132_v4 = vor.u32 %v15613_v54, %v12131_v53 }
 0x3a4   : > { %v18512_v57 = vpack.c.bf16 %v1836_v55, %v1835_v34  ;;  %3458 = vmatpush.bf16.msrb.mxu1 %v12052_v1  ;;  %3472 = vmatpush.bf16.msrb.mxu0 %v12180_v56  ;;  %v15649_v55 = vld [vmem:[#allocation9 + $0x2ac] sm:$0xf0]  ;;  %v18545_v34 = vadd.f32 %v1986_v30, %v1888_v45  ;;  %v11987_v10 = vld [vmem:[#allocation9 + $0x60] sm:$0xf]  ;;  %v12404_v9 = vor.u32 %v15681_v50, %v12403_v59 }
 0x3a5   : > { %v1996_v8 = vsub.f32 0.0, %v18523_v62  ;;  %3486 = vmatpush.bf16.msrb.mxu2 %v12308_v21  ;;  %3500 = vmatpush.bf16.msrb.mxu3 %v12436_v22  ;;  %v2033_v39 = vand.u32 2147483647, %v18535_v38  ;;  %v1943_v63 = vpop.f32.mrf.mxu1  ;;  %v12115_v1 = vld [vmem:[#allocation9 + $0x160] sm:$0xf]  ;;  %v11988_v16 = vor.u32 %v15577_v0, %v11987_v10  ;;  %v1989_v41 = vpop.f32.mrf.mxu3  ;;  %vm2029_vm13 = vweird.f32 %v18535_v38 }
 0x3a6   : > { %v12259_v56 = vld [vmem:[#allocation9 + $0x280] sm:$0xf]  ;;  %v18548_v60 = vadd.f32 %v1943_v63, %v1886_v31  ;;  %v12116_v17 = vor.u32 %v15609_v2, %v12115_v1  ;;  %v15605_v21 = vld [vmem:[#allocation9 + $0x14c] sm:$0xf0]  ;;  %v18562_v59 = vadd.f32 %v1989_v41, %v1888_v45  ;;  %v15591_v10 = vld [vmem:[#allocation9 + $0xe4] sm:$0xf] }
 0x3a7   : > { %v2008_v18 = vmul.f32 1.442695, %v1996_v8  ;;  %v12276_v8 = vor.u32 %v15649_v55, %v12275_v47  ;;  %v12243_v22 = vld [vmem:[#allocation9 + $0x260] sm:$0xf]  ;;  %v15601_v46 = vld [vmem:[#allocation9 + $0x12c] sm:$0xf0] }
 0x3a8   : > { %3459 = vmatpush.bf16.msrb.mxu1 %v12036_v12  ;;  %3473 = vmatpush.bf16.msrb.mxu0 %v12164_v14  ;;  %v11971_v12 = vld [vmem:[#allocation9 + $0x40] sm:$0xf]  ;;  %v1995_v14 = vsub.f32 0.0, %v18545_v34  ;;  %v1997_v35 = vsub.f32 0.0, %v18548_v60  ;;  %v15669_v53 = vld [vmem:[#allocation9 + $0x34c] sm:$0xf0] }
 0x3a9   : > { %16801 = vpow2.f32 %v2008_v18  ;;  %3487 = vmatpush.bf16.msrb.mxu2 %v12292_v32  ;;  %3501 = vmatpush.bf16.msrb.mxu3 %v12420_v52  ;;  %v12260_v18 = vor.u32 %v15645_v6, %v12259_v56  ;;  %v11972_v24 = vor.u32 %v15573_v13, %v11971_v12  ;;  %v11955_v31 = vld [vmem:[#allocation9 + $0x20] sm:$0xf]  ;;  %v15569_v32 = vld [vmem:[#allocation9 + $0x2c] sm:$0xf0]  ;;  %v12053_v63 = vld [vmem:[#allocation9 + $0xf0] sm:$0xf0] }
 0x3aa   : > { %v1963_v19 = vpop.f32.mrf.mxu2  ;;  %v18554_v33 = vmul.f32 1.442695, %v1995_v14  ;;  %16803 = vrcp.f32 %v18535_v38  ;;  %v12083_v3 = vld [vmem:[#allocation9 + $0x120] sm:$0xf]  ;;  %v15637_v52 = vld [vmem:[#allocation9 + $0x24c] sm:$0xf0]  ;;  %v12056_v45 = vor.u32 %v15591_v10, %v12053_v63 }
 0x3ab   : > { %v18531_v36 = vadd.f32 %v1963_v19, %v1887_v29  ;;  %v2002_v19 = vmul.f32 1.442695, %v1993_v51  ;;  %v12355_v51 = vld [vmem:[#allocation9 + $0x340] sm:$0xf]  ;;  %v15565_v55 = vld [vmem:[#allocation9 + $0xc] sm:$0xf0]  ;;  %v12084_v50 = vor.u32 %v15601_v46, %v12083_v3 }
 0x3ac   : > { %3460 = vmatpush.bf16.msrb.mxu1 %v12020_v25  ;;  %3474 = vmatpush.bf16.msrb.mxu0 %v12148_v27  ;;  %v15641_v25 = vld [vmem:[#allocation9 + $0x26c] sm:$0xf0]  ;;  %v11939_v47 = vld [vmem:[#allocation9] sm:$0xf]  ;;  %v12356_v1 = vor.u32 %v15669_v53, %v12355_v51  ;;  %v15623_v56 = vld [vmem:[#allocation9 + $0x1e4] sm:$0xf] }
 0x3ad   : > { %v1994_v49 = vsub.f32 0.0, %v18531_v36  ;;  %3488 = vmatpush.bf16.msrb.mxu2 %v12276_v8  ;;  %3502 = vmatpush.bf16.msrb.mxu3 %v12404_v9  ;;  %v15673_v27 = vld [vmem:[#allocation9 + $0x36c] sm:$0xf0]  ;;  %v12244_v42 = vor.u32 %v15641_v25, %v12243_v22  ;;  %v12067_v2 = vld [vmem:[#allocation9 + $0x100] sm:$0xf]  ;;  %v11940_v6 = vor.u32 %v15565_v55, %v11939_v47  ;;  %v2035_v14 = vand.u32 2147483648, %v18535_v38 }
 0x3ae   : > { %v12372_v30 = vor.u32 %v15673_v27, %v12371_v26  ;;  %v12211_v8 = vld [vmem:[#allocation9 + $0x220] sm:$0xf]  ;;  %v15633_v9 = vld [vmem:[#allocation9 + $0x22c] sm:$0xf0]  ;;  %v15687_v41 = vld [vmem:[#allocation9 + $0x3e4] sm:$0xf] }
 0x3af   : > { %v16802_v40 = vpop.eup %16801  ;;  %v2004_v28 = vmul.f32 1.442695, %v1994_v49  ;;  %v11956_v49 = vor.u32 %v15569_v32, %v11955_v31  ;;  %v12339_v12 = vld [vmem:[#allocation9 + $0x320] sm:$0xf]  ;;  %v15665_v13 = vld [vmem:[#allocation9 + $0x32c] sm:$0xf0]  ;;  %v12212_v22 = vor.u32 %v15633_v9, %v12211_v8 }
 0x3b0   : > { %v18539_v48 = vadd.f32 1.0, %v16802_v40  ;;  %3461 = vmatpush.bf16.msrb.mxu1 %v12004_v44  ;;  %3475 = vmatpush.bf16.msrb.mxu0 %v12132_v4  ;;  %v12100_v40 = vor.u32 %v15605_v21, %v12099_v20  ;;  %v2010_v44 = vmul.f32 1.442695, %v1997_v35  ;;  %v15597_v4 = vld [vmem:[#allocation9 + $0x10c] sm:$0xf0]  ;;  %v18564_v11 = vpop.eup %16803  ;;  %v12184_v21 = vor.u32 %v15623_v56, %v12181_v7 }
 0x3b1   : > { %3489 = vmatpush.bf16.msrb.mxu2 %v12260_v18  ;;  %3503 = vmatpush.bf16.msrb.mxu3 %v12388_v23  ;;  %v12037_v18 = vld [vmem:[#allocation9 + $0xd0] sm:$0xf0]  ;;  %v15619_v23 = vld [vmem:[#allocation9 + $0x1c4] sm:$0xf]  ;;  %v12195_v25 = vld [vmem:[#allocation9 + $0x200] sm:$0xf]  ;;  %v2025_v26 = vmul.f32 %v18564_v11, %v18535_v38  ;;  %v12340_v27 = vor.u32 %v15665_v13, %v12339_v12  ;;  %vm2030_vm14 = vweird.f32 %v18564_v11 }
 0x3b2   : > { %2602 = vmatmul.bf16.vlgmr.msra.gmra.mxu1 %v18512_v57  ;;  %2616 = vmatmul.bf16.vlgmr.msra.gmra.mxu0 %v18512_v57  ;;  %v1966_v15 = vpop.f32.mrf.mxu2  ;;  %16805 = vrcp.f32 %v18539_v48  ;;  %v12323_v31 = vld [vmem:[#allocation9 + $0x300] sm:$0xf]  ;;  %v15661_v32 = vld [vmem:[#allocation9 + $0x30c] sm:$0xf0]  ;;  %v15655_v35 = vld [vmem:[#allocation9 + $0x2e4] sm:$0xf]  ;;  %vm2089_vm0 = vweird.f32 %v18539_v48 }
 0x3b3   : > { %2630 = vmatmul.bf16.vlgmr.msra.gmra.mxu2 %v18512_v57  ;;  %2644 = vmatmul.bf16.vlgmr.msra.gmra.mxu3 %v18512_v57  ;;  %v18552_v5 = vadd.f32 %v1966_v15, %v1887_v29  ;;  %v12227_v29 = vld [vmem:[#allocation9 + $0x240] sm:$0xf]  ;;  %16807 = vpow2.f32 %v2004_v28  ;;  %v1999_v15 = vsub.f32 0.0, %v18562_v59  ;;  %v15629_v28 = vld [vmem:[#allocation9 + $0x20c] sm:$0xf0]  ;;  %v18577_v47 = vor.u32 1.1754944e-38, %v2035_v14  ;;  %vm18602_vm2 = vmor %vm2029_vm13, %vm2030_vm14 }
 0x3b4   : > { %3462 = vmatpush.bf16.msrb.mxu1 %v11988_v16  ;;  %3476 = vmatpush.bf16.msrb.mxu0 %v12116_v17  ;;  %v12228_v0 = vor.u32 %v15637_v52, %v12227_v29  ;;  %16809 = vpow2.f32 %v2002_v19  ;;  %v12068_v16 = vor.u32 %v15597_v4, %v12067_v2  ;;  %v15587_v17 = vld [vmem:[#allocation9 + $0xc4] sm:$0xf]  ;;  %v12021_v46 = vld [vmem:[#allocation9 + $0xb0] sm:$0xf0]  ;;  %v12196_v51 = vor.u32 %v15629_v28, %v12195_v25 }
 0x3b5   : > { %v1998_v54 = vsub.f32 0.0, %v18552_v5  ;;  %3490 = vmatpush.bf16.msrb.mxu2 %v12244_v42  ;;  %3504 = vmatpush.bf16.msrb.mxu3 %v12372_v30  ;;  %16811 = vpow2.f32 %v2010_v44  ;;  %v12040_v19 = vor.u32 %v15587_v17, %v12037_v18  ;;  %v12437_v30 = vld [vmem:[#allocation9 + $0x3f0] sm:$0xf0]  ;;  %v15583_v3 = vld [vmem:[#allocation9 + $0xa4] sm:$0xf]  ;;  %v12324_v55 = vor.u32 %v15661_v32, %v12323_v31 }
 0x3b6   : > { %16813 = vpow2.f32 %v18554_v33  ;;  %v12149_v10 = vld [vmem:[#allocation9 + $0x1b0] sm:$0xf0]  ;;  %v15651_v2 = vld [vmem:[#allocation9 + $0x2c4] sm:$0xf]  ;;  %vm18591_vm15 = vcmp.eq.f32.partialorder %v2033_v39, 8.507059e+37 }
 0x3b7   : > { %v2012_v58 = vmul.f32 1.442695, %v1998_v54  ;;  %v2026_v54 = vsub.f32 1.0, %v2025_v26  ;;  %v12293_v33 = vld [vmem:[#allocation9 + $0x2d0] sm:$0xf0] }
 0x3b8   : > { %3463 = vmatpush.bf16.msrb.mxu1 %v11972_v24  ;;  %3477 = vmatpush.bf16.msrb.mxu0 %v12100_v40  ;;  %v18568_v20 = vpop.eup %16805  ;;  %v12165_v24 = vld [vmem:[#allocation9 + $0x1d0] sm:$0xf0]  ;;  %v15683_v4 = vld [vmem:[#allocation9 + $0x3c4] sm:$0xf] }
 0x3b9   : > { %3491 = vmatpush.bf16.msrb.mxu2 %v12228_v0  ;;  %3505 = vmatpush.bf16.msrb.mxu3 %v12356_v1  ;;  %v12309_v40 = vld [vmem:[#allocation9 + $0x2f0] sm:$0xf0]  ;;  %v18574_v42 = vmul.f32 %v18568_v20, %v18539_v48  ;;  %v16808_v29 = vpop.eup %16807  ;;  %v12168_v52 = vor.u32 %v15619_v23, %v12165_v24  ;;  %v12440_v0 = vor.u32 %v15687_v41, %v12437_v30  ;;  %16815 = vpow2.f32 %v2012_v58  ;;  %v15611_v14 = vld [vmem:[#allocation9 + $0x184] sm:$0xf] }
 0x3ba   : > { %v16810_v53 = vpop.eup %16809  ;;  %v12312_v44 = vor.u32 %v15655_v35, %v12309_v40  ;;  %v12024_v1 = vor.u32 %v15583_v3, %v12021_v46  ;;  %v12421_v56 = vld [vmem:[#allocation9 + $0x3d0] sm:$0xf0]  ;;  %v18580_v9 = vadd.f32 1.0, %v16808_v29  ;;  %v12296_v58 = vor.u32 %v15651_v2, %v12293_v33  ;;  %v15647_v23 = vld [vmem:[#allocation9 + $0x2a4] sm:$0xf] }
 0x3bb   : > { %v16812_v63 = vpop.eup %16811  ;;  %v12005_v7 = vld [vmem:[#allocation9 + $0x90] sm:$0xf0]  ;;  %v2086_v8 = vsub.f32 1.0, %v18574_v42  ;;  %v18583_v12 = vadd.f32 1.0, %v16810_v53  ;;  %v2027_v17 = vmul.f32 %v18564_v11, %v2026_v54  ;;  %v15679_v25 = vld [vmem:[#allocation9 + $0x3a4] sm:$0xf]  ;;  %vm2090_vm1 = vweird.f32 %v18568_v20 }
 0x3bc   : > { %3464 = vmatpush.bf16.msrb.mxu1 %v11956_v49  ;;  %3478 = vmatpush.bf16.msrb.mxu0 %v12084_v50  ;;  %v2014_v49 = vmul.f32 1.442695, %v1999_v15  ;;  %v15615_v50 = vld [vmem:[#allocation9 + $0x1a4] sm:$0xf]  ;;  %v18585_v13 = vadd.f32 1.0, %v16812_v63  ;;  %vm18621_vm3 = vmor %vm2089_vm0, %vm2090_vm1  ;;  %vm2059_vm5 = vweird.f32 %v18580_v9 }
 0x3bd   : > { %3492 = vmatpush.bf16.msrb.mxu2 %v12212_v22  ;;  %3506 = vmatpush.bf16.msrb.mxu3 %v12340_v27  ;;  %v12133_v15 = vld [vmem:[#allocation9 + $0x190] sm:$0xf0]  ;;  %v15575_v27 = vld [vmem:[#allocation9 + $0x64] sm:$0xf]  ;;  %v2028_v3 = vadd.f32 %v18564_v11, %v2027_v17  ;;  %vm2044_vm6 = vweird.f32 %v18583_v12 }
 0x3be   : > { %16817 = vpow2.f32 %v2014_v49  ;;  %v12277_v24 = vld [vmem:[#allocation9 + $0x2b0] sm:$0xf0]  ;;  %v12136_v39 = vor.u32 %v15611_v14, %v12133_v15  ;;  %v15607_v41 = vld [vmem:[#allocation9 + $0x164] sm:$0xf]  ;;  %vm2104_vm12 = vweird.f32 %v18585_v13 }
 0x3bf   : > { %v12405_v26 = vld [vmem:[#allocation9 + $0x3b0] sm:$0xf0]  ;;  %16819 = vrcp.f32 %v18580_v9  ;;  %v12280_v40 = vor.u32 %v15647_v23, %v12277_v24  ;;  %v15643_v29 = vld [vmem:[#allocation9 + $0x284] sm:$0xf] }
 0x3c0   : > { %3465 = vmatpush.bf16.msrb.mxu1 %v11940_v6  ;;  %3479 = vmatpush.bf16.msrb.mxu0 %v12068_v16  ;;  %v15579_v6 = vld [vmem:[#allocation9 + $0x84] sm:$0xf]  ;;  %v16814_v16 = vpop.eup %16813  ;;  %v11989_v28 = vld [vmem:[#allocation9 + $0x70] sm:$0xf0]  ;;  %16821 = vrcp.f32 %v18583_v12  ;;  %v12408_v38 = vor.u32 %v15679_v25, %v12405_v26 }
 0x3c1   : > { %3493 = vmatpush.bf16.msrb.mxu2 %v12196_v51  ;;  %3507 = vmatpush.bf16.msrb.mxu3 %v12324_v55  ;;  %v12008_v22 = vor.u32 %v15579_v6, %v12005_v7  ;;  %v16816_v31 = vpop.eup %16815  ;;  %v18608_v35 = vadd.f32 1.0, %v16814_v16  ;;  %v12117_v42 = vld [vmem:[#allocation9 + $0x170] sm:$0xf0]  ;;  %16823 = vrcp.f32 %v18585_v13  ;;  %v11992_v46 = vor.u32 %v15575_v27, %v11989_v28  ;;  %v15571_v53 = vld [vmem:[#allocation9 + $0x44] sm:$0xf] }
 0x3c2   : > { %v12261_v49 = vld [vmem:[#allocation9 + $0x290] sm:$0xf0]  ;;  %v2093_v55 = vand.u32 2147483647, %v18539_v48  ;;  %v15603_v33 = vld [vmem:[#allocation9 + $0x144] sm:$0xf]  ;;  %v2032_v6 = vsel %vm18602_vm2, %v18564_v11, %v2028_v3 }
 0x3c3   : > { %v12389_v51 = vld [vmem:[#allocation9 + $0x390] sm:$0xf0]  ;;  %16825 = vrcp.f32 %v18608_v35  ;;  %v12264_v2 = vor.u32 %v15643_v29, %v12261_v49  ;;  %v2037_v26 = vsel %vm18591_vm15, %v18577_v47, %v2032_v6  ;;  %v15667_v47 = vld [vmem:[#allocation9 + $0x344] sm:$0xf]  ;;  %v2065_v49 = vand.u32 2147483648, %v18580_v9 }
 0x3c4   : > { %3514 = vmatpush.bf16.msra.mxu1 %v12056_v45  ;;  %3528 = vmatpush.bf16.msra.mxu0 %v12184_v21  ;;  %v12152_v45 = vor.u32 %v15615_v50, %v12149_v10  ;;  %v12424_v21 = vor.u32 %v15683_v4, %v12421_v56  ;;  %v16818_v30 = vpop.eup %16817  ;;  %v11973_v54 = vld [vmem:[#allocation9 + $0x50] sm:$0xf0]  ;;  %v18614_v50 = vadd.f32 1.0, %v16816_v31  ;;  %v12120_v10 = vor.u32 %v15607_v41, %v12117_v42  ;;  %v15635_v41 = vld [vmem:[#allocation9 + $0x244] sm:$0xf] }
 0x3c5   : > { %3542 = vmatpush.bf16.msra.mxu2 %v12312_v44  ;;  %3556 = vmatpush.bf16.msra.mxu3 %v12440_v0  ;;  %v2095_v44 = vand.u32 2147483648, %v18539_v48  ;;  %v12101_v4 = vld [vmem:[#allocation9 + $0x150] sm:$0xf0]  ;;  %v18628_v56 = vpop.eup %16819  ;;  %v11976_v7 = vor.u32 %v15571_v53, %v11973_v54  ;;  %vm18641_vm4 = vcmp.eq.f32.partialorder %v2093_v55, 8.507059e+37  ;;  %v2063_v53 = vand.u32 2147483647, %v18580_v9 }
 0x3c6   : > { %v18633_v14 = vpop.eup %16821  ;;  %v12373_v17 = vld [vmem:[#allocation9 + $0x370] sm:$0xf0]  ;;  %16827 = vrcp.f32 %v18614_v50  ;;  %v12104_v25 = vor.u32 %v15603_v33, %v12101_v4  ;;  %v2055_v32 = vmul.f32 %v18628_v56, %v18580_v9  ;;  %v15595_v55 = vld [vmem:[#allocation9 + $0x104] sm:$0xf]  ;;  %vm2074_vm7 = vweird.f32 %v18608_v35 }
 0x3c7   : > { %v18639_v23 = vpop.eup %16823  ;;  %v2096_v24 = vor.u32 1.1754944e-38, %v2095_v44  ;;  %v12085_v31 = vld [vmem:[#allocation9 + $0x130] sm:$0xf0]  ;;  %v15631_v6 = vld [vmem:[#allocation9 + $0x224] sm:$0xf]  ;;  %vm2060_vm8 = vweird.f32 %v18628_v56  ;;  %vm18701_vm9 = vcmp.eq.f32.partialorder %v2063_v53, 8.507059e+37  ;;  %vm2045_vm11 = vweird.f32 %v18633_v14 }
 0x3c8   : > { %3515 = vmatpush.bf16.msra.mxu1 %v12040_v19  ;;  %3529 = vmatpush.bf16.msra.mxu0 %v12168_v52  ;;  %v2087_v19 = vmul.f32 %v18568_v20, %v2086_v8  ;;  %v15675_v52 = vld [vmem:[#allocation9 + $0x384] sm:$0xf]  ;;  %v12229_v18 = vld [vmem:[#allocation9 + $0x250] sm:$0xf0]  ;;  %vm2105_vm13 = vweird.f32 %v18639_v23  ;;  %vm18716_vm14 = vmor %vm2059_vm5, %vm2060_vm8  ;;  %vm2119_vm2 = vweird.f32 %v18614_v50 }
 0x3c9   : > { %3543 = vmatpush.bf16.msra.mxu2 %v12296_v58  ;;  %3557 = vmatpush.bf16.msra.mxu3 %v12424_v21  ;;  %v12392_v48 = vor.u32 %v15675_v52, %v12389_v51  ;;  %v15639_v8 = vld [vmem:[#allocation9 + $0x264] sm:$0xf]  ;;  %v18655_v42 = vpop.eup %16825  ;;  %v12357_v3 = vld [vmem:[#allocation9 + $0x350] sm:$0xf0]  ;;  %v18665_v51 = vmul.f32 %v2037_v26, %v18521_v61  ;;  %v12232_v54 = vor.u32 %v15635_v41, %v12229_v18  ;;  %vm18730_vm15 = vmor %vm2044_vm6, %vm2045_vm11 }
 0x3ca   : > { %v2088_v63 = vadd.f32 %v18568_v20, %v2087_v19  ;;  %v15671_v58 = vld [vmem:[#allocation9 + $0x364] sm:$0xf]  ;;  %v12069_v44 = vld [vmem:[#allocation9 + $0x110] sm:$0xf0]  ;;  %v2070_v0 = vmul.f32 %v18655_v42, %v18608_v35  ;;  %v12360_v61 = vor.u32 %v15667_v47, %v12357_v3  ;;  %v2078_v47 = vand.u32 2147483647, %v18608_v35 }
 0x3cb   : > { %v15567_v21 = vld [vmem:[#allocation9 + $0x24] sm:$0xf]  ;;  %v12376_v19 = vor.u32 %v15671_v58, %v12373_v17  ;;  %v12341_v11 = vld [vmem:[#allocation9 + $0x330] sm:$0xf0]  ;;  %v12072_v26 = vor.u32 %v15595_v55, %v12069_v44  ;;  %vm2075_vm1 = vweird.f32 %v18655_v42 }
 0x3cc   : > { %3516 = vmatpush.bf16.msra.mxu1 %v12024_v1  ;;  %3530 = vmatpush.bf16.msra.mxu0 %v12152_v45  ;;  %v18626_v1 = vadd.f32 1.0, %v16818_v30  ;;  %v12245_v45 = vld [vmem:[#allocation9 + $0x270] sm:$0xf0]  ;;  %v2092_v27 = vsel %vm18621_vm3, %v18568_v20, %v2088_v63  ;;  %v2040_v20 = vmul.f32 %v18633_v14, %v18583_v12  ;;  %v2100_v30 = vmul.f32 %v18639_v23, %v18585_v13  ;;  %vm18747_vm3 = vmor %vm2104_vm12, %vm2105_vm13 }
 0x3cd   : > { %3544 = vmatpush.bf16.msra.mxu2 %v12280_v40  ;;  %3558 = vmatpush.bf16.msra.mxu3 %v12408_v38  ;;  %v12248_v28 = vor.u32 %v15639_v8, %v12245_v45  ;;  %v15563_v38 = vld [vmem:[#allocation9 + $0x4] sm:$0xf]  ;;  %v2097_v29 = vsel %vm18641_vm4, %v2096_v24, %v2092_v27  ;;  %v2056_v63 = vsub.f32 1.0, %v2055_v32  ;;  %v18686_v24 = vor.u32 1.1754944e-38, %v2065_v49  ;;  %v12197_v41 = vld [vmem:[#allocation9 + $0x210] sm:$0xf0]  ;;  %vm18772_vm6 = vmor %vm2074_vm7, %vm2075_vm1 }
 0x3ce   : > { %16829 = vrcp.f32 %v18626_v1  ;;  %v18679_v8 = vmul.f32 %v2097_v29, %v18523_v62  ;;  %v2041_v45 = vsub.f32 1.0, %v2040_v20  ;;  %v2101_v58 = vsub.f32 1.0, %v2100_v30  ;;  %v15659_v30 = vld [vmem:[#allocation9 + $0x304] sm:$0xf]  ;;  %v12325_v3 = vld [vmem:[#allocation9 + $0x310] sm:$0xf0] }
 0x3cf   : > { %v2050_v62 = vand.u32 2147483648, %v18583_v12  ;;  %v2108_v29 = vand.u32 2147483647, %v18585_v13  ;;  %vm2134_vm5 = vweird.f32 %v18626_v1  ;;  %vm18785_vm7 = vcmp.eq.f32.partialorder %v2078_v47, 8.507059e+37  ;;  %v12443_v47 = vld [vmem:[#allocation9 + $0x3e8] sm:$0xf] }
 0x3d0   : > { %3517 = vmatpush.bf16.msra.mxu1 %v12008_v22  ;;  %3531 = vmatpush.bf16.msra.mxu0 %v12136_v39  ;;  %v11957_v22 = vld [vmem:[#allocation9 + $0x30] sm:$0xf0]  ;;  %v15599_v39 = vld [vmem:[#allocation9 + $0x124] sm:$0xf]  ;;  %v2042_v18 = vmul.f32 %v18633_v14, %v2041_v45  ;;  %v2102_v20 = vmul.f32 %v18639_v23, %v2101_v58 }
 0x3d1   : > { %3545 = vmatpush.bf16.msra.mxu2 %v12264_v2  ;;  %3559 = vmatpush.bf16.msra.mxu3 %v12392_v48  ;;  %v11960_v40 = vor.u32 %v15567_v21, %v11957_v22  ;;  %v12088_v52 = vor.u32 %v15599_v39, %v12085_v31  ;;  %v12213_v48 = vld [vmem:[#allocation9 + $0x230] sm:$0xf0]  ;;  %v15663_v22 = vld [vmem:[#allocation9 + $0x324] sm:$0xf]  ;;  %v2057_v39 = vmul.f32 %v18628_v56, %v2056_v63  ;;  %v2071_v31 = vsub.f32 1.0, %v2070_v0 }
 0x3d2   : > { %v2051_v45 = vor.u32 1.1754944e-38, %v2050_v62  ;;  %v2103_v58 = vadd.f32 %v18639_v23, %v2102_v20  ;;  %vm18752_vm4 = vcmp.eq.f32.partialorder %v2108_v29, 8.507059e+37 }
 0x3d3   : > { %v2058_v53 = vadd.f32 %v18628_v56, %v2057_v39  ;;  %v2072_v44 = vmul.f32 %v18655_v42, %v2071_v31  ;;  %v18757_v39 = vld [vmem:[#allocation2 + $0xc] sm:$0xf] }
 0x3d4   : > { %3518 = vmatpush.bf16.msra.mxu1 %v11992_v46  ;;  %3532 = vmatpush.bf16.msra.mxu0 %v12120_v10  ;;  %v11941_v46 = vld [vmem:[#allocation9 + $0x10] sm:$0xf0]  ;;  %v18668_v10 = vpop.eup %16827 }
 0x3d5   : > { %3546 = vmatpush.bf16.msra.mxu2 %v12248_v28  ;;  %3560 = vmatpush.bf16.msra.mxu3 %v12376_v19  ;;  %v11944_v4 = vor.u32 %v15563_v38, %v11941_v46  ;;  %v2115_v27 = vmul.f32 %v18668_v10, %v18614_v50  ;;  %v12216_v28 = vor.u32 %v15631_v6, %v12213_v48  ;;  %v2080_v46 = vand.u32 2147483648, %v18608_v35 }
 0x3d6   : > { %v12344_v19 = vor.u32 %v15663_v22, %v12341_v11  ;;  %v2043_v6 = vadd.f32 %v18633_v14, %v2042_v18  ;;  %v2073_v31 = vadd.f32 %v18655_v42, %v2072_v44  ;;  %vm2120_vm8 = vweird.f32 %v18668_v10 }
 0x3d7   : > { %v2116_v49 = vsub.f32 1.0, %v2115_v27  ;;  %v2653_v35 = vperm.slane %v18757_v39, 1  ;;  %vm18798_vm12 = vmor %vm2119_vm2, %vm2120_vm8  ;;  %v2654_v27 = vperm.slane %v18757_v39, 2 }
 0x3d8   : > { %3519 = vmatpush.bf16.msra.mxu1 %v11976_v7  ;;  %3533 = vmatpush.bf16.msra.mxu0 %v12104_v25  ;;  %v18676_v7 = vpop.eup %16829  ;;  %v2048_v25 = vand.u32 2147483647, %v18583_v12  ;;  %v2125_v12 = vand.u32 2147483648, %v18614_v50 }
 0x3d9   : > { %3547 = vmatpush.bf16.msra.mxu2 %v12232_v54  ;;  %v2130_v32 = vmul.f32 %v18676_v7, %v18626_v1  ;;  %3561 = vmatpush.bf16.msra.mxu3 %v12360_v61  ;;  %v2117_v62 = vmul.f32 %v18668_v10, %v2116_v49  ;;  %vm2135_vm11 = vweird.f32 %v18676_v7  ;;  %v2140_v49 = vand.u32 2147483648, %v18626_v1 }
 0x3da   : > { %vm18734_vm0 = vcmp.eq.f32.partialorder %v2048_v25, 8.507059e+37  ;;  %v2126_v55 = vor.u32 1.1754944e-38, %v2125_v12  ;;  %v12187_v25 = vld [vmem:[#allocation9 + $0x1e8] sm:$0xf] }
 0x3db   : > { %v2131_v63 = vsub.f32 1.0, %v2130_v32  ;;  %v2118_v29 = vadd.f32 %v18668_v10, %v2117_v62 }
 0x3dc   : > { %3520 = vmatpush.bf16.msra.mxu1 %v11960_v40  ;;  %3534 = vmatpush.bf16.msra.mxu0 %v12088_v52  ;;  %v15627_v40 = vld [vmem:[#allocation9 + $0x204] sm:$0xf]  ;;  %v2110_v52 = vand.u32 2147483648, %v18585_v13  ;;  %v2062_v13 = vsel %vm18716_vm14, %v18628_v56, %v2058_v53  ;;  %v2107_v56 = vsel %vm18747_vm3, %v18639_v23, %v2103_v58  ;;  %vm18816_vm14 = vmor %vm2134_vm5, %vm2135_vm11  ;;  %v2141_v58 = vor.u32 1.1754944e-38, %v2140_v49 }
 0x3dd   : > { %3548 = vmatpush.bf16.msra.mxu2 %v12216_v28  ;;  %v12200_v54 = vor.u32 %v15627_v40, %v12197_v41  ;;  %3562 = vmatpush.bf16.msra.mxu3 %v12344_v19  ;;  %v2132_v32 = vmul.f32 %v18676_v7, %v2131_v63  ;;  %v2138_v19 = vand.u32 2147483647, %v18626_v1  ;;  %v2047_v40 = vsel %vm18730_vm15, %v18633_v14, %v2043_v6  ;;  %v12043_v41 = vld [vmem:[#allocation9 + $0xc8] sm:$0xf] }
 0x3de   : > { %v2111_v28 = vor.u32 1.1754944e-38, %v2110_v52  ;;  %v2652_v14 = vperm.slane %v18757_v39, 0  ;;  %v2052_v23 = vsel %vm18734_vm0, %v2051_v45, %v2047_v40  ;;  %v2067_v53 = vsel %vm18701_vm9, %v18686_v24, %v2062_v13 }
 0x3df   : > { %vm18820_vm15 = vcmp.eq.f32.partialorder %v2138_v19, 8.507059e+37  ;;  %v2145_v48 = vmul.f32 %v2052_v23, %v18533_v37  ;;  %v2122_v45 = vsel %vm18798_vm12, %v18668_v10, %v2118_v29  ;;  %v15626_v37 = vld [vmem:[#allocation9 + $0x1f4] sm:$0xf0]  ;;  %v2655_v10 = vperm.slane %v18757_v39, 3 }
 0x3e0   : > { %3521 = vmatpush.bf16.msra.mxu1 %v11944_v4  ;;  %3535 = vmatpush.bf16.msra.mxu0 %v12072_v26  ;;  %v12328_v4 = vor.u32 %v15659_v30, %v12325_v3  ;;  %v2123_v26 = vand.u32 2147483647, %v18614_v50  ;;  %v2081_v3 = vor.u32 1.1754944e-38, %v2080_v46  ;;  %v2133_v46 = vadd.f32 %v18676_v7, %v2132_v32 }
 0x3e1   : > { %3549 = vmatpush.bf16.msra.mxu2 %v12200_v54  ;;  %v2112_v50 = vsel %vm18752_vm4, %v2111_v28, %v2107_v56  ;;  %v15590_v56 = vld [vmem:[#allocation9 + $0xd4] sm:$0xf0] }
 0x3e2   : > { %3563 = vmatpush.bf16.msra.mxu3 %v12328_v4  ;;  %vm18802_vm13 = vcmp.eq.f32.partialorder %v2123_v26, 8.507059e+37  ;;  %v2137_v26 = vsel %vm18816_vm14, %v18676_v7, %v2133_v46 }
 0x3e3   : > { %v2127_v7 = vsel %vm18802_vm13, %v2126_v55, %v2122_v45  ;;  %v2142_v19 = vsel %vm18820_vm15, %v2141_v58, %v2137_v26  ;;  %v12155_v55 = vld [vmem:[#allocation9 + $0x1a8] sm:$0xf]  ;;  %v15686_v58 = vld [vmem:[#allocation9 + $0x3d4] sm:$0xf0] }
 0x3e4   : > { %v2150_v23 = vmul.f32 %v2127_v7, %v18552_v5  ;;  %v15618_v5 = vld [vmem:[#allocation9 + $0x1b4] sm:$0xf0]  ;;  %v12427_v45 = vld [vmem:[#allocation9 + $0x3c8] sm:$0xf] }
 0x3e5   : > { %v12139_v26 = vld [vmem:[#allocation9 + $0x188] sm:$0xf] }
 0x41f   : > { %v18635_v15 = vpop.f32.mrf.mxu1  ;;  %v18637_v16 = vpop.f32.mrf.mxu0 }
 0x426   : > { %v18672_v2 = vpop.f32.mrf.mxu2  ;;  %v18674_v33 = vpop.f32.mrf.mxu3 }
 0x427   : > { %v18682_v17 = vpop.f32.mrf.mxu1  ;;  %v18684_v21 = vpop.f32.mrf.mxu0 }
 0x42e   : > { %v18721_v0 = vpop.f32.mrf.mxu2  ;;  %v18723_v61 = vpop.f32.mrf.mxu3 }
 0x42f   : > { %v2603_v22 = vpop.f32.mrf.mxu1  ;;  %v2617_v11 = vpop.f32.mrf.mxu0 }
 0x430   : > { %v2604_v18 = vadd.f32 %v2603_v22, %v18635_v15  ;;  %v2618_v20 = vadd.f32 %v2617_v11, %v18637_v16  ;;  %v2077_v15 = vsel %vm18772_vm6, %v18655_v42, %v2073_v31  ;;  %v12059_v22 = vld [vmem:[#allocation9 + $0xe8] sm:$0xf]  ;;  %v2149_v11 = vmul.f32 %v2112_v50, %v18548_v60  ;;  %v15658_v16 = vld [vmem:[#allocation9 + $0x2f4] sm:$0xf0] }
 0x431   : > { %v2082_v1 = vsel %vm18785_vm7, %v2081_v3, %v2077_v15  ;;  %v12315_v15 = vld [vmem:[#allocation9 + $0x2e8] sm:$0xf] }
 0x432   : > { %v2660_v38 = vadd.f32 %v2652_v14, %v2604_v18  ;;  %v2661_v24 = vadd.f32 %v2653_v35, %v2618_v20  ;;  %v2147_v39 = vmul.f32 %v2082_v1, %v18545_v34  ;;  %v12171_v20 = vld [vmem:[#allocation9 + $0x1c8] sm:$0xf]  ;;  %v12044_v34 = vor.u32 %v15590_v56, %v12043_v41  ;;  %v15678_v56 = vld [vmem:[#allocation9 + $0x394] sm:$0xf0] }
 0x433   : > { %v12156_v1 = vor.u32 %v15618_v5, %v12155_v55  ;;  %v12395_v41 = vld [vmem:[#allocation9 + $0x388] sm:$0xf]  ;;  %v15670_v5 = vld [vmem:[#allocation9 + $0x354] sm:$0xf0] }
 0x434   : > { %v2668_v13 = vadd.f32 %v2660_v38, %v18665_v51  ;;  %v2669_v60 = vadd.f32 %v2661_v24, %v2145_v48  ;;  %v12299_v24 = vld [vmem:[#allocation9 + $0x2c8] sm:$0xf] }
 0x435   : > { %v12363_v55 = vld [vmem:[#allocation9 + $0x348] sm:$0xf] }
 0x436   : > { %v2631_v52 = vpop.f32.mrf.mxu2  ;;  %v2645_v54 = vpop.f32.mrf.mxu3 }
 0x437   : > { %v2605_v63 = vpop.f32.mrf.mxu1  ;;  %v2619_v4 = vpop.f32.mrf.mxu0  ;;  %v2632_v62 = vadd.f32 %v2631_v52, %v18672_v2  ;;  %v2646_v28 = vadd.f32 %v2645_v54, %v18674_v33  ;;  %v12188_v2 = vor.u32 %v15626_v37, %v12187_v25  ;;  %v2146_v33 = vmul.f32 %v2067_v53, %v18531_v36  ;;  %v12027_v53 = vld [vmem:[#allocation9 + $0xa8] sm:$0xf] }
 0x438   : > { %v2606_v6 = vadd.f32 %v2605_v63, %v18682_v17  ;;  %v2620_v9 = vadd.f32 %v2619_v4, %v18684_v21  ;;  %v15594_v21 = vld [vmem:[#allocation9 + $0xf4] sm:$0xf0]  ;;  %v2151_v36 = vmul.f32 %v2142_v19, %v18562_v59  ;;  %v12316_v63 = vor.u32 %v15658_v16, %v12315_v15  ;;  %v12283_v25 = vld [vmem:[#allocation9 + $0x2a8] sm:$0xf] }
 0x439   : > { %v12060_v40 = vor.u32 %v15594_v21, %v12059_v22  ;;  %v2662_v30 = vadd.f32 %v2654_v27, %v2632_v62  ;;  %v2663_v3 = vadd.f32 %v2655_v10, %v2646_v28  ;;  %v12011_v22 = vld [vmem:[#allocation9 + $0x88] sm:$0xf]  ;;  %v12428_v21 = vor.u32 %v15686_v58, %v12427_v45  ;;  %v15624_v45 = vld [vmem:[#allocation9 + $0x1ec] sm:$0xf]  ;;  %v12189_v58 = vld [vmem:[#allocation9 + $0x1f8] sm:$0xf0] }
 0x43a   : > { %v2664_v17 = vadd.f32 %v2652_v14, %v2606_v6  ;;  %v2665_v12 = vadd.f32 %v2653_v35, %v2620_v9  ;;  %v15622_v35 = vld [vmem:[#allocation9 + $0x1d4] sm:$0xf0]  ;;  %v12411_v28 = vld [vmem:[#allocation9 + $0x3a8] sm:$0xf] }
 0x43b   : > { %v12172_v54 = vor.u32 %v15622_v35, %v12171_v20  ;;  %v2670_v50 = vadd.f32 %v2662_v30, %v2146_v33  ;;  %v2671_v59 = vadd.f32 %v2663_v3, %v2147_v39  ;;  %v15654_v6 = vld [vmem:[#allocation9 + $0x2d4] sm:$0xf0]  ;;  %v12107_v20 = vld [vmem:[#allocation9 + $0x148] sm:$0xf]  ;;  %v12396_v3 = vor.u32 %v15678_v56, %v12395_v41  ;;  %v15688_v41 = vld [vmem:[#allocation9 + $0x3ec] sm:$0xf] }
 0x43c   : > { %v2672_v31 = vadd.f32 %v2664_v17, %v18679_v8  ;;  %v2673_v32 = vadd.f32 %v2665_v12, %v2149_v11  ;;  %v15582_v11 = vld [vmem:[#allocation9 + $0x94] sm:$0xf0]  ;;  %v12300_v12 = vor.u32 %v15654_v6, %v12299_v24  ;;  %v11963_v16 = vld [vmem:[#allocation9 + $0x28] sm:$0xf]  ;;  %v12061_v24 = vld [vmem:[#allocation9 + $0xf8] sm:$0xf0] }
 0x43d   : > { %v15614_v17 = vld [vmem:[#allocation9 + $0x194] sm:$0xf0]  ;;  %v12012_v37 = vor.u32 %v15582_v11, %v12011_v22  ;;  %v12219_v22 = vld [vmem:[#allocation9 + $0x228] sm:$0xf]  ;;  %v12445_v56 = vld [vmem:[#allocation9 + $0x3f8] sm:$0xf0] }
 0x43e   : > { %v2633_v18 = vpop.f32.mrf.mxu2  ;;  %v2647_v51 = vpop.f32.mrf.mxu3  ;;  %v18848_v14 = vpack.c.bf16 %v2672_v31, %v2668_v13  ;;  %v18850_v8 = vpack.c.bf16 %v2673_v32, %v2669_v60  ;;  %v12140_v62 = vor.u32 %v15614_v17, %v12139_v26  ;;  %v11995_v13 = vld [vmem:[#allocation9 + $0x68] sm:$0xf]  ;;  %v15578_v60 = vld [vmem:[#allocation9 + $0x74] sm:$0xf0] }
 0x43f   : > { %v2634_v29 = vadd.f32 %v2633_v18, %v18721_v0  ;;  %v2648_v49 = vadd.f32 %v2647_v51, %v18723_v61  ;;  %v15690_v0 = vld [vmem:[#allocation9 + $0x3f4] sm:$0xf0]  ;;  %v12123_v31 = vld [vmem:[#allocation9 + $0x168] sm:$0xf]  ;;  %v11996_v33 = vor.u32 %v15578_v60, %v11995_v13  ;;  %v12173_v60 = vld [vmem:[#allocation9 + $0x1d8] sm:$0xf0] }
 0x440   : > { %3466 = vmatmul.bf16.vlgmr.msrb.gmra.mxu1 %v18848_v14  ;;  %3480 = vmatmul.bf16.vlgmr.msrb.gmra.mxu0 %v18850_v8  ;;  %v15586_v61 = vld [vmem:[#allocation9 + $0xb4] sm:$0xf0]  ;;  %v12444_v4 = vor.u32 %v15690_v0, %v12443_v47  ;;  %v11979_v18 = vld [vmem:[#allocation9 + $0x48] sm:$0xf] }
 0x441   : > { %v2666_v46 = vadd.f32 %v2654_v27, %v2634_v29  ;;  %v2667_v52 = vadd.f32 %v2655_v10, %v2648_v49  ;;  %3570 = vmatpush.bf16.msrb.mxu1 %v12060_v40  ;;  %3584 = vmatpush.bf16.msrb.mxu0 %v12188_v2  ;;  %v12028_v38 = vor.u32 %v15586_v61, %v12027_v53  ;;  %v15650_v27 = vld [vmem:[#allocation9 + $0x2b4] sm:$0xf0]  ;;  %v12267_v40 = vld [vmem:[#allocation9 + $0x288] sm:$0xf] }
 0x442   : > { %v15682_v10 = vld [vmem:[#allocation9 + $0x3b4] sm:$0xf0]  ;;  %v12284_v7 = vor.u32 %v15650_v27, %v12283_v25  ;;  %v12251_v29 = vld [vmem:[#allocation9 + $0x268] sm:$0xf]  ;;  %v12045_v27 = vld [vmem:[#allocation9 + $0xd8] sm:$0xf0] }
 0x443   : > { %v2674_v42 = vadd.f32 %v2666_v46, %v2150_v23  ;;  %v2675_v44 = vadd.f32 %v2667_v52, %v2151_v36  ;;  %v15610_v32 = vld [vmem:[#allocation9 + $0x174] sm:$0xf0]  ;;  %v12412_v19 = vor.u32 %v15682_v10, %v12411_v28  ;;  %v12379_v23 = vld [vmem:[#allocation9 + $0x368] sm:$0xf]  ;;  %v15620_v28 = vld [vmem:[#allocation9 + $0x1cc] sm:$0xf] }
 0x444   : > { %v15646_v2 = vld [vmem:[#allocation9 + $0x294] sm:$0xf0]  ;;  %v12124_v39 = vor.u32 %v15610_v32, %v12123_v31  ;;  %v12091_v46 = vld [vmem:[#allocation9 + $0x128] sm:$0xf] }
 0x445   : > { %3571 = vmatpush.bf16.msrb.mxu1 %v12044_v34  ;;  %3585 = vmatpush.bf16.msrb.mxu0 %v12172_v54  ;;  %v18858_v9 = vpack.c.bf16 %v2674_v42, %v2670_v50  ;;  %v18860_v48 = vpack.c.bf16 %v2675_v44, %v2671_v59  ;;  %v15574_v51 = vld [vmem:[#allocation9 + $0x54] sm:$0xf0]  ;;  %v12268_v30 = vor.u32 %v15646_v2, %v12267_v40  ;;  %v12235_v53 = vld [vmem:[#allocation9 + $0x248] sm:$0xf]  ;;  %v15656_v40 = vld [vmem:[#allocation9 + $0x2ec] sm:$0xf] }
 0x446   : > { %v15606_v35 = vld [vmem:[#allocation9 + $0x154] sm:$0xf0]  ;;  %v11980_v34 = vor.u32 %v15574_v51, %v11979_v18  ;;  %v11947_v42 = vld [vmem:[#allocation9 + $0x8] sm:$0xf]  ;;  %v12317_v2 = vld [vmem:[#allocation9 + $0x2f8] sm:$0xf0] }
 0x447   : > { %3494 = vmatmul.bf16.vlgmr.msrb.gmra.mxu2 %v18858_v9  ;;  %3508 = vmatmul.bf16.vlgmr.msrb.gmra.mxu3 %v18860_v48  ;;  %v15642_v49 = vld [vmem:[#allocation9 + $0x274] sm:$0xf0]  ;;  %v12108_v15 = vor.u32 %v15606_v35, %v12107_v20  ;;  %v12347_v26 = vld [vmem:[#allocation9 + $0x328] sm:$0xf]  ;;  %v15584_v18 = vld [vmem:[#allocation9 + $0xac] sm:$0xf] }
 0x448   : > { %3598 = vmatpush.bf16.msrb.mxu2 %v12316_v63  ;;  %3612 = vmatpush.bf16.msrb.mxu3 %v12444_v4  ;;  %v15674_v36 = vld [vmem:[#allocation9 + $0x374] sm:$0xf0]  ;;  %v12252_v54 = vor.u32 %v15642_v49, %v12251_v29  ;;  %v12075_v63 = vld [vmem:[#allocation9 + $0x108] sm:$0xf]  ;;  %v12029_v35 = vld [vmem:[#allocation9 + $0xb8] sm:$0xf0]  ;;  %v12320_v29 = vor.u32 %v15656_v40, %v12317_v2  ;;  %v12448_v49 = vor.u32 %v15688_v41, %v12445_v56 }
 0x449   : > { %3572 = vmatpush.bf16.msrb.mxu1 %v12028_v38  ;;  %3586 = vmatpush.bf16.msrb.mxu0 %v12156_v1  ;;  %v15570_v47 = vld [vmem:[#allocation9 + $0x34] sm:$0xf0]  ;;  %v12380_v0 = vor.u32 %v15674_v36, %v12379_v23  ;;  %v15592_v38 = vld [vmem:[#allocation9 + $0xec] sm:$0xf]  ;;  %v12364_v1 = vor.u32 %v15670_v5, %v12363_v55  ;;  %v12203_v31 = vld [vmem:[#allocation9 + $0x208] sm:$0xf] }
 0x44a   : > { %v15602_v52 = vld [vmem:[#allocation9 + $0x134] sm:$0xf0]  ;;  %v11964_v50 = vor.u32 %v15570_v47, %v11963_v16  ;;  %v12064_v25 = vor.u32 %v15592_v38, %v12061_v24  ;;  %v15652_v23 = vld [vmem:[#allocation9 + $0x2cc] sm:$0xf]  ;;  %v12301_v36 = vld [vmem:[#allocation9 + $0x2d8] sm:$0xf0]  ;;  %v12032_v16 = vor.u32 %v15584_v18, %v12029_v35 }
 0x44b   : > { %v15638_v61 = vld [vmem:[#allocation9 + $0x254] sm:$0xf0]  ;;  %v12092_v59 = vor.u32 %v15602_v52, %v12091_v46  ;;  %v15580_v46 = vld [vmem:[#allocation9 + $0x8c] sm:$0xf]  ;;  %v12013_v52 = vld [vmem:[#allocation9 + $0x98] sm:$0xf0] }
 0x44c   : > { %3599 = vmatpush.bf16.msrb.mxu2 %v12300_v12  ;;  %3613 = vmatpush.bf16.msrb.mxu3 %v12428_v21  ;;  %v15566_v44 = vld [vmem:[#allocation9 + $0x14] sm:$0xf0]  ;;  %v12236_v6 = vor.u32 %v15638_v61, %v12235_v53  ;;  %v12304_v53 = vor.u32 %v15652_v23, %v12301_v36  ;;  %v15648_v55 = vld [vmem:[#allocation9 + $0x2ac] sm:$0xf]  ;;  %v12285_v5 = vld [vmem:[#allocation9 + $0x2b8] sm:$0xf0] }
 0x44d   : > { %3573 = vmatpush.bf16.msrb.mxu1 %v12012_v37  ;;  %3587 = vmatpush.bf16.msrb.mxu0 %v12140_v62  ;;  %v15598_v4 = vld [vmem:[#allocation9 + $0x114] sm:$0xf0]  ;;  %v11948_v12 = vor.u32 %v15566_v44, %v11947_v42  ;;  %v12192_v37 = vor.u32 %v15624_v45, %v12189_v58  ;;  %v15588_v62 = vld [vmem:[#allocation9 + $0xcc] sm:$0xf]  ;;  %v12016_v42 = vor.u32 %v15580_v46, %v12013_v52  ;;  %v12125_v24 = vld [vmem:[#allocation9 + $0x178] sm:$0xf0] }
 0x44e   : > { %v15634_v11 = vld [vmem:[#allocation9 + $0x234] sm:$0xf0]  ;;  %v12076_v21 = vor.u32 %v15598_v4, %v12075_v63  ;;  %v15576_v63 = vld [vmem:[#allocation9 + $0x6c] sm:$0xf]  ;;  %v11997_v4 = vld [vmem:[#allocation9 + $0x78] sm:$0xf0] }
 0x44f   : > { %v15666_v17 = vld [vmem:[#allocation9 + $0x334] sm:$0xf0]  ;;  %v12220_v10 = vor.u32 %v15634_v11, %v12219_v22  ;;  %v15608_v38 = vld [vmem:[#allocation9 + $0x16c] sm:$0xf]  ;;  %v12269_v58 = vld [vmem:[#allocation9 + $0x298] sm:$0xf0] }
 0x450   : > { %3600 = vmatpush.bf16.msrb.mxu2 %v12284_v7  ;;  %3614 = vmatpush.bf16.msrb.mxu3 %v12412_v19  ;;  %v12348_v13 = vor.u32 %v15666_v17, %v12347_v26  ;;  %v15630_v32 = vld [vmem:[#allocation9 + $0x214] sm:$0xf0]  ;;  %v12331_v7 = vld [vmem:[#allocation9 + $0x308] sm:$0xf]  ;;  %v15644_v45 = vld [vmem:[#allocation9 + $0x28c] sm:$0xf]  ;;  %v12000_v26 = vor.u32 %v15576_v63, %v11997_v4  ;;  %v12128_v17 = vor.u32 %v15608_v38, %v12125_v24 }
 0x451   : > { %3522 = vmatmul.bf16.vlgmr.msra.gmra.mxu1 %v18848_v14  ;;  %3536 = vmatmul.bf16.vlgmr.msra.gmra.mxu0 %v18850_v8  ;;  %v15662_v19 = vld [vmem:[#allocation9 + $0x314] sm:$0xf0]  ;;  %v12204_v51 = vor.u32 %v15630_v32, %v12203_v31  ;;  %v15676_v22 = vld [vmem:[#allocation9 + $0x38c] sm:$0xf]  ;;  %v12397_v11 = vld [vmem:[#allocation9 + $0x398] sm:$0xf0] }
 0x452   : > { %3574 = vmatpush.bf16.msrb.mxu1 %v11996_v33  ;;  %3588 = vmatpush.bf16.msrb.mxu0 %v12124_v39  ;;  %v12048_v33 = vor.u32 %v15588_v62, %v12045_v27  ;;  %v12176_v39 = vor.u32 %v15620_v28, %v12173_v60  ;;  %v12332_v20 = vor.u32 %v15662_v19, %v12331_v7  ;;  %v15640_v28 = vld [vmem:[#allocation9 + $0x26c] sm:$0xf]  ;;  %v12381_v60 = vld [vmem:[#allocation9 + $0x378] sm:$0xf0] }
 0x453   : > { %v12272_v62 = vor.u32 %v15644_v45, %v12269_v58  ;;  %v12400_v27 = vor.u32 %v15676_v22, %v12397_v11  ;;  %v15568_v7 = vld [vmem:[#allocation9 + $0x2c] sm:$0xf]  ;;  %v11965_v19 = vld [vmem:[#allocation9 + $0x38] sm:$0xf0]  ;;  %v12579_v58 = vld [vmem:[#allocation13 + $0xf0] sm:$0xf] }
 0x454   : > { %3601 = vmatpush.bf16.msrb.mxu2 %v12268_v30  ;;  %3615 = vmatpush.bf16.msrb.mxu3 %v12396_v3  ;;  %v15616_v30 = vld [vmem:[#allocation9 + $0x1ac] sm:$0xf]  ;;  %v12157_v3 = vld [vmem:[#allocation9 + $0x1b8] sm:$0xf0]  ;;  %v15722_v22 = vld [vmem:[#allocation13 + $0xf4] sm:$0xf0] }
 0x455   : > { %v12160_v47 = vor.u32 %v15616_v30, %v12157_v3  ;;  %v15600_v40 = vld [vmem:[#allocation9 + $0x12c] sm:$0xf]  ;;  %v12093_v2 = vld [vmem:[#allocation9 + $0x138] sm:$0xf0]  ;;  %v12580_v11 = vor.u32 %v15722_v22, %v12579_v58 }
 0x456   : > { %3575 = vmatpush.bf16.msrb.mxu1 %v11980_v34  ;;  %3589 = vmatpush.bf16.msrb.mxu0 %v12108_v15  ;;  %v15684_v34 = vld [vmem:[#allocation9 + $0x3cc] sm:$0xf]  ;;  %v12429_v15 = vld [vmem:[#allocation9 + $0x3d8] sm:$0xf0]  ;;  %v12096_v35 = vor.u32 %v15600_v40, %v12093_v2 }
 0x457   : > { %3550 = vmatmul.bf16.vlgmr.msra.gmra.mxu2 %v18858_v9  ;;  %3564 = vmatmul.bf16.vlgmr.msra.gmra.mxu3 %v18860_v48  ;;  %v12432_v61 = vor.u32 %v15684_v34, %v12429_v15  ;;  %v15668_v18 = vld [vmem:[#allocation9 + $0x34c] sm:$0xf]  ;;  %v11949_v3 = vld [vmem:[#allocation9 + $0x18] sm:$0xf0]  ;;  %v3842_v15 = vld [vmem:[#allocation12] sm:$0xff] }
 0x458   : > { %3602 = vmatpush.bf16.msrb.mxu2 %v12252_v54  ;;  %3616 = vmatpush.bf16.msrb.mxu3 %v12380_v0  ;;  %v15612_v54 = vld [vmem:[#allocation9 + $0x18c] sm:$0xf]  ;;  %v12141_v0 = vld [vmem:[#allocation9 + $0x198] sm:$0xf0] }
 0x459   : > { %v12144_v44 = vor.u32 %v15612_v54, %v12141_v0  ;;  %v15564_v30 = vld [vmem:[#allocation9 + $0xc] sm:$0xf]  ;;  %v12349_v46 = vld [vmem:[#allocation9 + $0x338] sm:$0xf0]  ;;  %v3844_v0 = vunpack.c.l.bf16 %v3842_v15 }
 0x45a   : > { %3576 = vmatpush.bf16.msrb.mxu1 %v11964_v50  ;;  %3590 = vmatpush.bf16.msrb.mxu0 %v12092_v59  ;;  %v15680_v50 = vld [vmem:[#allocation9 + $0x3ac] sm:$0xf]  ;;  %v12413_v59 = vld [vmem:[#allocation9 + $0x3b8] sm:$0xf0]  ;;  %v11952_v52 = vor.u32 %v15564_v30, %v11949_v3  ;;  %v12643_v30 = vld [vmem:[#allocation13 + $0x170] sm:$0xf] }
 0x45b   : > { %v15632_v34 = vld [vmem:[#allocation9 + $0x22c] sm:$0xf]  ;;  %v15738_v3 = vld [vmem:[#allocation13 + $0x174] sm:$0xf0] }
 0x45c   : > { %3603 = vmatpush.bf16.msrb.mxu2 %v12236_v6  ;;  %3617 = vmatpush.bf16.msrb.mxu3 %v12364_v1  ;;  %v12288_v6 = vor.u32 %v15648_v55, %v12285_v5  ;;  %v12416_v1 = vor.u32 %v15680_v50, %v12413_v59  ;;  %v15628_v5 = vld [vmem:[#allocation9 + $0x20c] sm:$0xf]  ;;  %v12205_v50 = vld [vmem:[#allocation9 + $0x218] sm:$0xf0] }
 0x45d   : > { %v15660_v59 = vld [vmem:[#allocation9 + $0x30c] sm:$0xf]  ;;  %v12208_v63 = vor.u32 %v15628_v5, %v12205_v50 }
 0x45e   : > { %3577 = vmatpush.bf16.msrb.mxu1 %v11948_v12  ;;  %3591 = vmatpush.bf16.msrb.mxu0 %v12076_v21  ;;  %v15572_v12 = vld [vmem:[#allocation9 + $0x4c] sm:$0xf]  ;;  %v11981_v21 = vld [vmem:[#allocation9 + $0x58] sm:$0xf0] }
 0x45f   : > { %v11984_v31 = vor.u32 %v15572_v12, %v11981_v21  ;;  %v12507_v12 = vld [vmem:[#allocation13 + $0x60] sm:$0xf]  ;;  %v15704_v21 = vld [vmem:[#allocation13 + $0x64] sm:$0xf0] }
 0x460   : > { %3604 = vmatpush.bf16.msrb.mxu2 %v12220_v10  ;;  %3618 = vmatpush.bf16.msrb.mxu3 %v12348_v13  ;;  %v12253_v10 = vld [vmem:[#allocation9 + $0x278] sm:$0xf0]  ;;  %v15672_v13 = vld [vmem:[#allocation9 + $0x36c] sm:$0xf] }
 0x461   : > { %3578 = vmatmul.bf16.vlgmr.msrb.gmra.mxu1 %v18848_v14  ;;  %3592 = vmatmul.bf16.vlgmr.msrb.gmra.mxu0 %v18850_v8  ;;  %v12256_v41 = vor.u32 %v15640_v28, %v12253_v10  ;;  %v12384_v56 = vor.u32 %v15672_v13, %v12381_v60  ;;  %v12499_v13 = vld [vmem:[#allocation13 + $0x50] sm:$0xf]  ;;  %v15702_v60 = vld [vmem:[#allocation13 + $0x54] sm:$0xf0] }
 0x462   : > { %3626 = vmatpush.bf16.msra.mxu1 %v12064_v25  ;;  %3640 = vmatpush.bf16.msra.mxu0 %v12192_v37  ;;  %v15604_v25 = vld [vmem:[#allocation9 + $0x14c] sm:$0xf]  ;;  %v12109_v37 = vld [vmem:[#allocation9 + $0x158] sm:$0xf0] }
 0x463   : > { %v12112_v32 = vor.u32 %v15604_v25, %v12109_v37  ;;  %v12571_v25 = vld [vmem:[#allocation13 + $0xe0] sm:$0xf]  ;;  %v12508_v37 = vor.u32 %v15704_v21, %v12507_v12  ;;  %v12467_v21 = vld [vmem:[#allocation13 + $0x10] sm:$0xf] }
 0x464   : > { %3605 = vmatpush.bf16.msrb.mxu2 %v12204_v51  ;;  %3619 = vmatpush.bf16.msrb.mxu3 %v12332_v20  ;;  %v12365_v51 = vld [vmem:[#allocation9 + $0x358] sm:$0xf0]  ;;  %v11968_v20 = vor.u32 %v15568_v7, %v11965_v19  ;;  %v15718_v7 = vld [vmem:[#allocation13 + $0xd4] sm:$0xf0] }
 0x465   : > { %v12368_v36 = vor.u32 %v15668_v18, %v12365_v51  ;;  %v12555_v18 = vld [vmem:[#allocation13 + $0xc0] sm:$0xf] }
 0x466   : > { %3627 = vmatpush.bf16.msra.mxu1 %v12048_v33  ;;  %3641 = vmatpush.bf16.msra.mxu0 %v12176_v39  ;;  %v15636_v33 = vld [vmem:[#allocation9 + $0x24c] sm:$0xf]  ;;  %v12237_v39 = vld [vmem:[#allocation9 + $0x258] sm:$0xf0] }
 0x467   : > { %3606 = vmatmul.bf16.vlgmr.msrb.gmra.mxu2 %v18858_v9  ;;  %3620 = vmatmul.bf16.vlgmr.msrb.gmra.mxu3 %v18860_v48  ;;  %v12240_v23 = vor.u32 %v15636_v33, %v12237_v39  ;;  %v12491_v33 = vld [vmem:[#allocation13 + $0x40] sm:$0xf]  ;;  %v15700_v39 = vld [vmem:[#allocation13 + $0x44] sm:$0xf0] }
 0x468   : > { %3654 = vmatpush.bf16.msra.mxu2 %v12320_v29  ;;  %3668 = vmatpush.bf16.msra.mxu3 %v12448_v49  ;;  %v15596_v29 = vld [vmem:[#allocation9 + $0x10c] sm:$0xf]  ;;  %v12077_v49 = vld [vmem:[#allocation9 + $0x118] sm:$0xf0] }
 0x469   : > { %v12080_v54 = vor.u32 %v15596_v29, %v12077_v49 }
 0x46a   : > { %3628 = vmatpush.bf16.msra.mxu1 %v12032_v16  ;;  %3642 = vmatpush.bf16.msra.mxu0 %v12160_v47  ;;  %v12221_v16 = vld [vmem:[#allocation9 + $0x238] sm:$0xf0]  ;;  %v15664_v47 = vld [vmem:[#allocation9 + $0x32c] sm:$0xf] }
 0x46b   : > { %v12352_v55 = vor.u32 %v15664_v47, %v12349_v46  ;;  %v12547_v46 = vld [vmem:[#allocation13 + $0xb0] sm:$0xf] }
 0x46c   : > { %3655 = vmatpush.bf16.msra.mxu2 %v12304_v53  ;;  %3669 = vmatpush.bf16.msra.mxu3 %v12432_v61  ;;  %v3845_v53 = vunpack.c.h.bf16 %v3842_v15  ;;  %v12224_v61 = vor.u32 %v15632_v34, %v12221_v16  ;;  %v12483_v34 = vld [vmem:[#allocation13 + $0x30] sm:$0xf]  ;;  %v15698_v15 = vld [vmem:[#allocation13 + $0x34] sm:$0xf0] }
 0x46d   : > { %v12484_v47 = vor.u32 %v15698_v15, %v12483_v34 }
 0x46e   : > { %3629 = vmatpush.bf16.msra.mxu1 %v12016_v42  ;;  %3643 = vmatpush.bf16.msra.mxu0 %v12144_v44  ;;  %v12333_v42 = vld [vmem:[#allocation9 + $0x318] sm:$0xf0]  ;;  %v3843_v44 = vld [vmem:[#allocation12 + $0x8] sm:$0xff] }
 0x46f   : > { %v12336_v4 = vor.u32 %v15660_v59, %v12333_v42  ;;  %v3846_v38 = vunpack.c.l.bf16 %v3843_v44  ;;  %v3847_v24 = vunpack.c.h.bf16 %v3843_v44 }
 0x470   : > { %3656 = vmatpush.bf16.msra.mxu2 %v12288_v6  ;;  %3670 = vmatpush.bf16.msra.mxu3 %v12416_v1  ;;  %v17035_v6 = vld [vmem:[%s18410_s13] sm:$0xff] }
 0x471   : > { %v15706_v1 = vld [vmem:[#allocation13 + $0x74] sm:$0xf0] }
 0x472   : > { %3630 = vmatpush.bf16.msra.mxu1 %v12000_v26  ;;  %3644 = vmatpush.bf16.msra.mxu0 %v12128_v17 }
 0x474   : > { %3657 = vmatpush.bf16.msra.mxu2 %v12272_v62  ;;  %3671 = vmatpush.bf16.msra.mxu3 %v12400_v27  ;;  %v15720_v62 = vld [vmem:[#allocation13 + $0xe4] sm:$0xf0] }
 0x475   : > { %v12572_v27 = vor.u32 %v15720_v62, %v12571_v25  ;;  %v15694_v25 = vld [vmem:[#allocation13 + $0x14] sm:$0xf0] }
 0x476   : > { %3631 = vmatpush.bf16.msra.mxu1 %v11984_v31  ;;  %3645 = vmatpush.bf16.msra.mxu0 %v12112_v32  ;;  %v12563_v31 = vld [vmem:[#allocation13 + $0xd0] sm:$0xf]  ;;  %v12500_v32 = vor.u32 %v15702_v60, %v12499_v13  ;;  %v15710_v13 = vld [vmem:[#allocation13 + $0x94] sm:$0xf0] }
 0x477   : > { %v12564_v19 = vor.u32 %v15718_v7, %v12563_v31  ;;  %v15732_v7 = vld [vmem:[#allocation13 + $0x144] sm:$0xf0] }
 0x478   : > { %3658 = vmatpush.bf16.msra.mxu2 %v12256_v41  ;;  %3672 = vmatpush.bf16.msra.mxu3 %v12384_v56 }
 0x47a   : > { %3632 = vmatpush.bf16.msra.mxu1 %v11968_v20  ;;  %3646 = vmatpush.bf16.msra.mxu0 %v12096_v35  ;;  %v12492_v20 = vor.u32 %v15700_v39, %v12491_v33  ;;  %v15716_v35 = vld [vmem:[#allocation13 + $0xc4] sm:$0xf0]  ;;  %v12523_v39 = vld [vmem:[#allocation13 + $0x80] sm:$0xf] }
 0x47b   : > { %v12556_v49 = vor.u32 %v15716_v35, %v12555_v18  ;;  %v15708_v18 = vld [vmem:[#allocation13 + $0x84] sm:$0xf0] }
 0x47c   : > { %3659 = vmatpush.bf16.msra.mxu2 %v12240_v23  ;;  %3673 = vmatpush.bf16.msra.mxu3 %v12368_v36  ;;  %v12644_v23 = vor.u32 %v15738_v3, %v12643_v30  ;;  %v12524_v35 = vor.u32 %v15708_v18, %v12523_v39  ;;  %v12611_v30 = vld [vmem:[#allocation13 + $0x130] sm:$0xf]  ;;  %v15730_v3 = vld [vmem:[#allocation13 + $0x134] sm:$0xf0] }
 0x47e   : > { %3633 = vmatpush.bf16.msra.mxu1 %v11952_v52  ;;  %3647 = vmatpush.bf16.msra.mxu0 %v12080_v54  ;;  %v15714_v52 = vld [vmem:[#allocation13 + $0xb4] sm:$0xf0]  ;;  %v12635_v54 = vld [vmem:[#allocation13 + $0x160] sm:$0xf] }
 0x480   : > { %3660 = vmatpush.bf16.msra.mxu2 %v12224_v61  ;;  %3674 = vmatpush.bf16.msra.mxu3 %v12352_v55  ;;  %v12548_v61 = vor.u32 %v15714_v52, %v12547_v46  ;;  %v15736_v55 = vld [vmem:[#allocation13 + $0x164] sm:$0xf0]  ;;  %v12581_v52 = vld [vmem:[#allocation13 + $0xf8] sm:$0xf0] }
 0x481   : > { %3634 = vmatmul.bf16.vlgmr.msra.gmra.mxu1 %v18848_v14  ;;  %3648 = vmatmul.bf16.vlgmr.msra.gmra.mxu0 %v18850_v8  ;;  %v17036_v14 = vld [vmem:[%s18410_s13 + $0x8] sm:$0xff]  ;;  %v12636_v59 = vor.u32 %v15736_v55, %v12635_v54 }
 0x482   : > { %3873 = vmatpush.msrb.mxu1 %v3844_v0  ;;  %3896 = vmatpush.msrb.mxu0 %v3845_v53  ;;  %v12603_v55 = vld [vmem:[#allocation13 + $0x120] sm:$0xf] }
 0x484   : > { %3661 = vmatpush.bf16.msra.mxu2 %v12208_v63  ;;  %3675 = vmatpush.bf16.msra.mxu3 %v12336_v4 }
 0x485   : > { %4366 = vmatpush.bf16.msra.mxu0 %v12580_v11 }
 0x487   : > { %3662 = vmatmul.bf16.vlgmr.msra.gmra.mxu2 %v18858_v9  ;;  %3676 = vmatmul.bf16.vlgmr.msra.gmra.mxu3 %v18860_v48  ;;  %v18886_v9 = vld [vmem:[#allocation2 + $0x8] sm:$0xf]  ;;  %v12515_v48 = vld [vmem:[#allocation13 + $0x70] sm:$0xf] }
 0x488   : > { %3919 = vmatpush.msrb.mxu2 %v3846_v38  ;;  %3942 = vmatpush.msrb.mxu3 %v3847_v24  ;;  %v12516_v45 = vor.u32 %v15706_v1, %v12515_v48  ;;  %v2810_v26 = vperm.slane %v18886_v9, 0  ;;  %v2811_v53 = vperm.slane %v18886_v9, 1  ;;  %v12475_v24 = vld [vmem:[#allocation13 + $0x20] sm:$0xf]  ;;  %v15712_v48 = vld [vmem:[#allocation13 + $0xa4] sm:$0xf0] }
 0x489   : > { %4367 = vmatpush.bf16.msra.mxu0 %v12572_v27  ;;  %v12627_v1 = vld [vmem:[#allocation13 + $0x150] sm:$0xf] }
 0x48a   : > { %4352 = vmatpush.bf16.msra.mxu1 %v12516_v45  ;;  %4380 = vmatpush.bf16.msra.mxu2 %v12644_v23  ;;  %v15734_v45 = vld [vmem:[#allocation13 + $0x154] sm:$0xf0]  ;;  %v12517_v23 = vld [vmem:[#allocation13 + $0x78] sm:$0xf0] }
 0x48b   : > { %v12628_v11 = vor.u32 %v15734_v45, %v12627_v1  ;;  %v12573_v1 = vld [vmem:[#allocation13 + $0xe8] sm:$0xf0]  ;;  %v12699_v45 = vld [vmem:[#allocation13 + $0x1e0] sm:$0xf] }
 0x48d   : > { %4368 = vmatpush.bf16.msra.mxu0 %v12564_v19 }
 0x48e   : > { %4353 = vmatpush.bf16.msra.mxu1 %v12508_v37  ;;  %4381 = vmatpush.bf16.msra.mxu2 %v12636_v59 }
 0x491   : > { %12449 = vmatmul.msk.f32.vlgmr.msrb.gmra.mxu1 %vm1893_vm10, %v17035_v6  ;;  %12451 = vmatmul.msk.f32.vlgmr.msrb.gmra.mxu0 %vm1893_vm10, %v17035_v6 }
 0x492   : > { %4354 = vmatpush.bf16.msra.mxu1 %v12500_v32  ;;  %4369 = vmatpush.bf16.msra.mxu0 %v12556_v49  ;;  %v12619_v32 = vld [vmem:[#allocation13 + $0x140] sm:$0xf]  ;;  %v15705_v49 = vld [vmem:[#allocation13 + $0x74] sm:$0xf] }
 0x493   : > { %4382 = vmatpush.bf16.msra.mxu2 %v12628_v11  ;;  %v12520_v46 = vor.u32 %v15705_v49, %v12517_v23  ;;  %v15737_v49 = vld [vmem:[#allocation13 + $0x174] sm:$0xf] }
 0x496   : > { %4355 = vmatpush.bf16.msra.mxu1 %v12492_v20  ;;  %4370 = vmatpush.bf16.msra.mxu0 %v12548_v61  ;;  %v15754_v61 = vld [vmem:[#allocation13 + $0x1f4] sm:$0xf0] }
 0x497   : > { %12453 = vmatmul.msk.f32.vlgmr.msrb.gmra.mxu2 %vm1893_vm10, %v17035_v6  ;;  %12455 = vmatmul.msk.f32.vlgmr.msrb.gmra.mxu3 %vm1893_vm10, %v17035_v6  ;;  %v15696_v6 = vld [vmem:[#allocation13 + $0x24] sm:$0xf0] }
 0x499   : > { %12450 = vmatmul.msk.f32.gmra.mxu1 %vm1893_vm10, %v17036_v14  ;;  %12452 = vmatmul.msk.f32.gmra.mxu0 %vm1893_vm10, %v17036_v14 }
 0x49a   : > { %4356 = vmatpush.bf16.msra.mxu1 %v12484_v47  ;;  %v2812_v47 = vperm.slane %v18886_v9, 2 }
 0x49f   : > { %12454 = vmatmul.msk.f32.gmra.mxu2 %vm1893_vm10, %v17036_v14  ;;  %12456 = vmatmul.msk.f32.gmra.mxu3 %vm1893_vm10, %v17036_v14  ;;  %v12539_v14 = vld [vmem:[#allocation13 + $0xa0] sm:$0xf] }
 0x4a0   : > { %v12540_v22 = vor.u32 %v15712_v48, %v12539_v14 }
 0x4a2   : > { %4371 = vmatpush.bf16.msra.mxu0 %v12540_v22 }
 0x4bd   : > { %v3467_v8 = vpop.f32.mrf.mxu1  ;;  %v3481_v17 = vpop.f32.mrf.mxu0 }
 0x4be   : > { %v3468_v10 = vadd.f32 %v3467_v8, %v2810_v26  ;;  %v12476_v8 = vor.u32 %v15696_v6, %v12475_v24  ;;  %v15719_v6 = vld [vmem:[#allocation13 + $0xe4] sm:$0xf] }
 0x4bf   : > { %v12576_v11 = vor.u32 %v15719_v6, %v12573_v1  ;;  %v12549_v6 = vld [vmem:[#allocation13 + $0xb8] sm:$0xf0] }
 0x4c0   : > { %v3482_v40 = vadd.f32 %v3481_v17, %v3468_v10  ;;  %4357 = vmatpush.bf16.msra.mxu1 %v12476_v8  ;;  %v12531_v10 = vld [vmem:[#allocation13 + $0x90] sm:$0xf] }
 0x4c1   : > { %v12532_v31 = vor.u32 %v15710_v13, %v12531_v10  ;;  %v12501_v10 = vld [vmem:[#allocation13 + $0x58] sm:$0xf0]  ;;  %v15717_v13 = vld [vmem:[#allocation13 + $0xd4] sm:$0xf] }
 0x4c3   : > { %4372 = vmatpush.bf16.msra.mxu0 %v12532_v31 }
 0x4c5   : > { %v3469_v28 = vpop.f32.mrf.mxu1  ;;  %v3483_v56 = vpop.f32.mrf.mxu0 }
 0x4c6   : > { %v3470_v29 = vadd.f32 %v3469_v28, %v2810_v26  ;;  %v12468_v28 = vor.u32 %v15694_v25, %v12467_v21 }
 0x4c7   : > { %4373 = vmatpush.bf16.msra.mxu0 %v12524_v35  ;;  %v15699_v35 = vld [vmem:[#allocation13 + $0x44] sm:$0xf] }
 0x4c8   : > { %v3484_v0 = vadd.f32 %v3483_v56, %v3470_v29  ;;  %4358 = vmatpush.bf16.msra.mxu1 %v12468_v28  ;;  %v15692_v56 = vld [vmem:[#allocation13 + $0x4] sm:$0xf0]  ;;  %v12612_v29 = vor.u32 %v15730_v3, %v12611_v30  ;;  %v12493_v30 = vld [vmem:[#allocation13 + $0x48] sm:$0xf0]  ;;  %v15715_v3 = vld [vmem:[#allocation13 + $0xc4] sm:$0xf] }
 0x4ca   : > { %v3495_v2 = vpop.f32.mrf.mxu2  ;;  %v3509_v41 = vpop.f32.mrf.mxu3 }
 0x4cb   : > { %v3496_v51 = vadd.f32 %v3495_v2, %v3482_v40  ;;  %v12620_v2 = vor.u32 %v15732_v7, %v12619_v32 }
 0x4cd   : > { %v18889_v16 = vadd.f32 %v3509_v41, %v3496_v51  ;;  %v12459_v41 = vld [vmem:[#allocation13] sm:$0xf]  ;;  %4383 = vmatpush.bf16.msra.mxu2 %v12620_v2  ;;  %v15750_v2 = vld [vmem:[#allocation13 + $0x1d4] sm:$0xf0] }
 0x4ce   : > { %v3523_v36 = vpop.f32.mrf.mxu1  ;;  %v3537_v4 = vpop.f32.mrf.mxu0  ;;  %v12460_v33 = vor.u32 %v15692_v56, %v12459_v41  ;;  %v12587_v56 = vld [vmem:[#allocation13 + $0x100] sm:$0xf] }
 0x4cf   : > { %v3682_v44 = vsub.f32 0.0, %v18889_v16  ;;  %v3524_v63 = vadd.f32 %v3523_v36, %v2811_v53  ;;  %v15721_v36 = vld [vmem:[#allocation13 + $0xf4] sm:$0xf] }
 0x4d0   : > { %4359 = vmatpush.bf16.msra.mxu1 %v12460_v33  ;;  %v15724_v33 = vld [vmem:[#allocation13 + $0x104] sm:$0xf0] }
 0x4d1   : > { %v3690_v26 = vmul.f32 1.442695, %v3682_v44  ;;  %v3538_v17 = vadd.f32 %v3537_v4, %v3524_v63  ;;  %4384 = vmatpush.bf16.msra.mxu2 %v12612_v29  ;;  %v15728_v44 = vld [vmem:[#allocation13 + $0x124] sm:$0xf0]  ;;  %v15703_v63 = vld [vmem:[#allocation13 + $0x64] sm:$0xf] }
 0x4d2   : > { %v3497_v5 = vpop.f32.mrf.mxu2  ;;  %v3511_v50 = vpop.f32.mrf.mxu3  ;;  %v12509_v4 = vld [vmem:[#allocation13 + $0x68] sm:$0xf0]  ;;  %v12604_v48 = vor.u32 %v15728_v44, %v12603_v55 }
 0x4d3   : > { %v3498_v42 = vadd.f32 %v3497_v5, %v3484_v0  ;;  %16831 = vpow2.f32 %v3690_v26  ;;  %v12584_v0 = vor.u32 %v15721_v36, %v12581_v52  ;;  %v12512_v22 = vor.u32 %v15703_v63, %v12509_v4  ;;  %v15752_v26 = vld [vmem:[#allocation13 + $0x1e4] sm:$0xf0]  ;;  %v12557_v29 = vld [vmem:[#allocation13 + $0xc8] sm:$0xf0] }
 0x4d4   : > { %4408 = vmatpush.bf16.msrb.mxu1 %v12520_v46  ;;  %v12588_v52 = vor.u32 %v15724_v33, %v12587_v56  ;;  %v12667_v33 = vld [vmem:[#allocation13 + $0x1a0] sm:$0xf] }
 0x4d5   : > { %v18893_v38 = vadd.f32 %v3511_v50, %v3498_v42  ;;  %4422 = vmatpush.bf16.msrb.mxu0 %v12584_v0  ;;  %4385 = vmatpush.bf16.msra.mxu2 %v12604_v48  ;;  %v12560_v0 = vor.u32 %v15715_v3, %v12557_v29  ;;  %v12469_v3 = vld [vmem:[#allocation13 + $0x18] sm:$0xf0] }
 0x4d6   : > { %v3525_v12 = vpop.f32.mrf.mxu1  ;;  %v3539_v51 = vpop.f32.mrf.mxu0 }
 0x4d7   : > { %v3686_v58 = vsub.f32 0.0, %v18893_v38  ;;  %v3526_v19 = vadd.f32 %v3525_v12, %v2811_v53  ;;  %v12707_v53 = vld [vmem:[#allocation13 + $0x1f0] sm:$0xf] }
 0x4d8   : > { %v12708_v8 = vor.u32 %v15754_v61, %v12707_v53  ;;  %4409 = vmatpush.bf16.msrb.mxu1 %v12512_v22  ;;  %v12683_v53 = vld [vmem:[#allocation13 + $0x1c0] sm:$0xf]  ;;  %v15748_v61 = vld [vmem:[#allocation13 + $0x1c4] sm:$0xf0]  ;;  %v12637_v22 = vld [vmem:[#allocation13 + $0x168] sm:$0xf0] }
 0x4d9   : > { %v3698_v37 = vmul.f32 1.442695, %v3686_v58  ;;  %v3540_v34 = vadd.f32 %v3539_v51, %v3526_v19  ;;  %v16832_v5 = vpop.eup %16831  ;;  %4423 = vmatpush.bf16.msrb.mxu0 %v12576_v11  ;;  %v12691_v19 = vld [vmem:[#allocation13 + $0x1d0] sm:$0xf]  ;;  %v12684_v63 = vor.u32 %v15748_v61, %v12683_v53 }
 0x4da   : > { %v3551_v62 = vpop.f32.mrf.mxu2  ;;  %v3565_v27 = vpop.f32.mrf.mxu3  ;;  %v18902_v58 = vadd.f32 1.0, %v16832_v5  ;;  %4394 = vmatpush.bf16.msra.mxu3 %v12708_v8  ;;  %v12659_v53 = vld [vmem:[#allocation13 + $0x190] sm:$0xf] }
 0x4db   : > { %v3552_v60 = vadd.f32 %v3551_v62, %v3538_v17  ;;  %16833 = vpow2.f32 %v3698_v37  ;;  %v12595_v17 = vld [vmem:[#allocation13 + $0x110] sm:$0xf]  ;;  %v12700_v37 = vor.u32 %v15752_v26, %v12699_v45  ;;  %v15726_v62 = vld [vmem:[#allocation13 + $0x114] sm:$0xf0]  ;;  %v15735_v45 = vld [vmem:[#allocation13 + $0x164] sm:$0xf] }
 0x4dc   : > { %v12596_v28 = vor.u32 %v15726_v62, %v12595_v17  ;;  %v12640_v26 = vor.u32 %v15735_v45, %v12637_v22  ;;  %v15746_v17 = vld [vmem:[#allocation13 + $0x1b4] sm:$0xf0]  ;;  %v15707_v45 = vld [vmem:[#allocation13 + $0x84] sm:$0xf]  ;;  %v12525_v22 = vld [vmem:[#allocation13 + $0x88] sm:$0xf0]  ;;  %vm3719_vm9 = vweird.f32 %v18902_v58 }
 0x4dd   : > { %v18896_v40 = vadd.f32 %v3565_v27, %v3552_v60  ;;  %v15701_v27 = vld [vmem:[#allocation13 + $0x54] sm:$0xf]  ;;  %v12565_v60 = vld [vmem:[#allocation13 + $0xd8] sm:$0xf0] }
 0x4de   : > { %v3579_v50 = vpop.f32.mrf.mxu1  ;;  %v3593_v31 = vpop.f32.mrf.mxu0  ;;  %v12504_v7 = vor.u32 %v15701_v27, %v12501_v10  ;;  %v12568_v41 = vor.u32 %v15717_v13, %v12565_v60  ;;  %4395 = vmatpush.bf16.msra.mxu3 %v12700_v37  ;;  %4386 = vmatpush.bf16.msra.mxu2 %v12596_v28  ;;  %v15695_v28 = vld [vmem:[#allocation13 + $0x24] sm:$0xf]  ;;  %v12477_v10 = vld [vmem:[#allocation13 + $0x28] sm:$0xf0] }
 0x4df   : > { %v3683_v20 = vsub.f32 0.0, %v18896_v40  ;;  %v3580_v21 = vadd.f32 %v3579_v50, %v2812_v47  ;;  %v15697_v50 = vld [vmem:[#allocation13 + $0x34] sm:$0xf]  ;;  %v15711_v60 = vld [vmem:[#allocation13 + $0xa4] sm:$0xf]  ;;  %v12480_v56 = vor.u32 %v15695_v28, %v12477_v10  ;;  %v12528_v28 = vor.u32 %v15707_v45, %v12525_v22 }
 0x4e0   : > { %4410 = vmatpush.bf16.msrb.mxu1 %v12504_v7  ;;  %4424 = vmatpush.bf16.msrb.mxu0 %v12568_v41  ;;  %v12629_v7 = vld [vmem:[#allocation13 + $0x158] sm:$0xf0] }
 0x4e1   : > { %v3692_v15 = vmul.f32 1.442695, %v3683_v20  ;;  %v16834_v24 = vpop.eup %16833  ;;  %v3594_v18 = vadd.f32 %v3593_v31, %v3580_v21  ;;  %v12692_v20 = vor.u32 %v15750_v2, %v12691_v19  ;;  %v12541_v31 = vld [vmem:[#allocation13 + $0xa8] sm:$0xf0]  ;;  %v12613_v10 = vld [vmem:[#allocation13 + $0x138] sm:$0xf0] }
 0x4e2   : > { %v3553_v54 = vpop.f32.mrf.mxu2  ;;  %v3567_v42 = vpop.f32.mrf.mxu3  ;;  %v18904_v12 = vadd.f32 1.0, %v16834_v24  ;;  %4387 = vmatpush.bf16.msra.mxu2 %v12588_v52  ;;  %v15713_v24 = vld [vmem:[#allocation13 + $0xb4] sm:$0xf]  ;;  %v15731_v52 = vld [vmem:[#allocation13 + $0x144] sm:$0xf] }
 0x4e3   : > { %v3554_v59 = vadd.f32 %v3553_v54, %v3540_v34  ;;  %16835 = vpow2.f32 %v3692_v15  ;;  %v12645_v15 = vld [vmem:[#allocation13 + $0x178] sm:$0xf0]  ;;  %v12496_v54 = vor.u32 %v15699_v35, %v12493_v30  ;;  %4396 = vmatpush.bf16.msra.mxu3 %v12692_v20  ;;  %v12552_v1 = vor.u32 %v15713_v24, %v12549_v6  ;;  %v15693_v30 = vld [vmem:[#allocation13 + $0x14] sm:$0xf] }
 0x4e4   : > { %16837 = vrcp.f32 %v18902_v58  ;;  %v12648_v5 = vor.u32 %v15737_v49, %v12645_v15  ;;  %4425 = vmatpush.bf16.msrb.mxu0 %v12560_v0  ;;  %v12544_v20 = vor.u32 %v15711_v60, %v12541_v31  ;;  %v12533_v15 = vld [vmem:[#allocation13 + $0x98] sm:$0xf0]  ;;  %v12621_v0 = vld [vmem:[#allocation13 + $0x148] sm:$0xf0]  ;;  %v3725_v60 = vand.u32 2147483648, %v18902_v58 }
 0x4e5   : > { %v18900_v14 = vadd.f32 %v3567_v42, %v3554_v59  ;;  %v12485_v59 = vld [vmem:[#allocation13 + $0x38] sm:$0xf0]  ;;  %4411 = vmatpush.bf16.msrb.mxu1 %v12496_v54  ;;  %v2813_v31 = vperm.slane %v18886_v9, 3  ;;  %vm3779_vm3 = vweird.f32 %v18904_v12 }
 0x4e6   : > { %v3581_v23 = vpop.f32.mrf.mxu1  ;;  %v12488_v4 = vor.u32 %v15697_v50, %v12485_v59  ;;  %4436 = vmatpush.bf16.msrb.mxu2 %v12648_v5  ;;  %v3595_v37 = vpop.f32.mrf.mxu0  ;;  %v12624_v59 = vor.u32 %v15731_v52, %v12621_v0 }
 0x4e7   : > { %v3687_v25 = vsub.f32 0.0, %v18900_v14  ;;  %v3582_v44 = vadd.f32 %v3581_v23, %v2812_v47  ;;  %v12675_v47 = vld [vmem:[#allocation13 + $0x1b0] sm:$0xf]  ;;  %4397 = vmatpush.bf16.msra.mxu3 %v12684_v63  ;;  %v15691_v63 = vld [vmem:[#allocation13 + $0x4] sm:$0xf] }
 0x4e8   : > { %4426 = vmatpush.bf16.msrb.mxu0 %v12552_v1  ;;  %v12676_v41 = vor.u32 %v15746_v17, %v12675_v47  ;;  %v12461_v1 = vld [vmem:[#allocation13 + $0x8] sm:$0xf0] }
 0x4e9   : > { %v3700_v32 = vmul.f32 1.442695, %v3687_v25  ;;  %v16836_v39 = vpop.eup %16835  ;;  %v3596_v13 = vadd.f32 %v3595_v37, %v3582_v44  ;;  %4412 = vmatpush.bf16.msrb.mxu1 %v12488_v4  ;;  %v15742_v44 = vld [vmem:[#allocation13 + $0x194] sm:$0xf0]  ;;  %v15729_v37 = vld [vmem:[#allocation13 + $0x134] sm:$0xf] }
 0x4ea   : > { %v3607_v51 = vpop.f32.mrf.mxu2  ;;  %v3621_v34 = vpop.f32.mrf.mxu3  ;;  %v18911_v46 = vadd.f32 1.0, %v16836_v39  ;;  %4437 = vmatpush.bf16.msrb.mxu2 %v12640_v26  ;;  %v15744_v39 = vld [vmem:[#allocation13 + $0x1a4] sm:$0xf0] }
 0x4eb   : > { %16839 = vpow2.f32 %v3700_v32  ;;  %v3608_v36 = vadd.f32 %v3607_v51, %v3594_v18  ;;  %v18915_v42 = vpop.eup %16837  ;;  %v15733_v32 = vld [vmem:[#allocation13 + $0x154] sm:$0xf]  ;;  %4398 = vmatpush.bf16.msra.mxu3 %v12676_v41  ;;  %v12668_v23 = vor.u32 %v15744_v39, %v12667_v33  ;;  %v3783_v41 = vand.u32 2147483647, %v18904_v12 }
 0x4ec   : > { %16841 = vrcp.f32 %v18904_v12  ;;  %v3715_v25 = vmul.f32 %v18915_v42, %v18902_v58  ;;  %v12632_v35 = vor.u32 %v15733_v32, %v12629_v7  ;;  %4427 = vmatpush.bf16.msrb.mxu0 %v12544_v20  ;;  %vm3720_vm10 = vweird.f32 %v18915_v42  ;;  %v15740_v32 = vld [vmem:[#allocation13 + $0x184] sm:$0xf0]  ;;  %v15727_v20 = vld [vmem:[#allocation13 + $0x124] sm:$0xf] }
 0x4ed   : > { %v18913_v55 = vadd.f32 %v3621_v34, %v3608_v36  ;;  %16843 = vrcp.f32 %v18911_v46  ;;  %4413 = vmatpush.bf16.msrb.mxu1 %v12480_v56  ;;  %v12472_v36 = vor.u32 %v15693_v30, %v12469_v3  ;;  %v15709_v34 = vld [vmem:[#allocation13 + $0x94] sm:$0xf]  ;;  %vm18957_vm0 = vmor %vm3719_vm9, %vm3720_vm10  ;;  %vm18980_vm4 = vcmp.eq.f32.partialorder %v3783_v41, 8.507059e+37  ;;  %v12685_v30 = vld [vmem:[#allocation13 + $0x1c8] sm:$0xf0] }
 0x4ee   : > { %v3716_v18 = vsub.f32 1.0, %v3715_v25  ;;  %4438 = vmatpush.bf16.msrb.mxu2 %v12632_v35  ;;  %v12536_v54 = vor.u32 %v15709_v34, %v12533_v15  ;;  %v12660_v25 = vor.u32 %v15742_v44, %v12659_v53  ;;  %v12605_v35 = vld [vmem:[#allocation13 + $0x128] sm:$0xf0]  ;;  %v15751_v53 = vld [vmem:[#allocation13 + $0x1e4] sm:$0xf]  ;;  %vm3734_vm11 = vweird.f32 %v18911_v46 }
 0x4ef   : > { %v3684_v48 = vsub.f32 0.0, %v18913_v55  ;;  %4399 = vmatpush.bf16.msra.mxu3 %v12668_v23  ;;  %v3785_v23 = vand.u32 2147483648, %v18904_v12  ;;  %v12608_v34 = vor.u32 %v15727_v20, %v12605_v35 }
 0x4f0   : > { %v3717_v24 = vmul.f32 %v18915_v42, %v3716_v18  ;;  %4428 = vmatpush.bf16.msrb.mxu0 %v12536_v54  ;;  %v15753_v18 = vld [vmem:[#allocation13 + $0x1f4] sm:$0xf] }
 0x4f1   : > { %v16840_v8 = vpop.eup %16839  ;;  %v3694_v62 = vmul.f32 1.442695, %v3684_v48  ;;  %4414 = vmatpush.bf16.msrb.mxu1 %v12472_v36 }
 0x4f2   : > { %v18921_v11 = vadd.f32 1.0, %v16840_v8  ;;  %v18923_v21 = vpop.eup %16841  ;;  %v3609_v27 = vpop.f32.mrf.mxu2  ;;  %4439 = vmatpush.bf16.msrb.mxu2 %v12624_v59  ;;  %v3718_v7 = vadd.f32 %v18915_v42, %v3717_v24  ;;  %v3726_v59 = vor.u32 1.1754944e-38, %v3725_v60  ;;  %v15723_v60 = vld [vmem:[#allocation13 + $0x104] sm:$0xf] }
 0x4f3   : > { %v3775_v19 = vmul.f32 %v18923_v21, %v18904_v12  ;;  %v3610_v2 = vadd.f32 %v3609_v27, %v3596_v13  ;;  %v3623_v51 = vpop.f32.mrf.mxu3  ;;  %v18930_v29 = vpop.eup %16843  ;;  %v12464_v27 = vor.u32 %v15691_v63, %v12461_v1  ;;  %v12651_v13 = vld [vmem:[#allocation13 + $0x180] sm:$0xf]  ;;  %4400 = vmatpush.bf16.msra.mxu3 %v12660_v25  ;;  %vm3780_vm2 = vweird.f32 %v18923_v21  ;;  %v15725_v63 = vld [vmem:[#allocation13 + $0x114] sm:$0xf] }
 0x4f4   : > { %16845 = vrcp.f32 %v18921_v11  ;;  %v3730_v6 = vmul.f32 %v18930_v29, %v18911_v46  ;;  %v12652_v39 = vor.u32 %v15740_v32, %v12651_v13  ;;  %4429 = vmatpush.bf16.msrb.mxu0 %v12528_v28  ;;  %vm18989_vm5 = vmor %vm3779_vm3, %vm3780_vm2  ;;  %v15749_v25 = vld [vmem:[#allocation13 + $0x1d4] sm:$0xf]  ;;  %vm3735_vm6 = vweird.f32 %v18930_v29  ;;  %v12589_v32 = vld [vmem:[#allocation13 + $0x108] sm:$0xf0] }
 0x4f5   : > { %16847 = vpow2.f32 %v3694_v62  ;;  %v18932_v49 = vadd.f32 %v3623_v51, %v3610_v2  ;;  %v3776_v5 = vsub.f32 1.0, %v3775_v19  ;;  %v3723_v62 = vand.u32 2147483647, %v18902_v58  ;;  %4415 = vmatpush.bf16.msrb.mxu1 %v12464_v27  ;;  %v12709_v51 = vld [vmem:[#allocation13 + $0x1f8] sm:$0xf0]  ;;  %vm19020_vm7 = vmor %vm3734_vm11, %vm3735_vm6 }
 0x4f6   : > { %v12616_v2 = vor.u32 %v15729_v37, %v12613_v10  ;;  %v3731_v56 = vsub.f32 1.0, %v3730_v6  ;;  %v12712_v36 = vor.u32 %v15753_v18, %v12709_v51  ;;  %v3722_v58 = vsel %vm18957_vm0, %v18915_v42, %v3718_v7  ;;  %v12693_v37 = vld [vmem:[#allocation13 + $0x1d8] sm:$0xf0]  ;;  %v19014_v18 = vld [vmem:[#allocation2 + $0x10] sm:$0xf] }
 0x4f7   : > { %v3688_v50 = vsub.f32 0.0, %v18932_v49  ;;  %v3777_v19 = vmul.f32 %v18923_v21, %v3776_v5  ;;  %vm18961_vm1 = vcmp.eq.f32.partialorder %v3723_v62, 8.507059e+37  ;;  %v12701_v5 = vld [vmem:[#allocation13 + $0x1e8] sm:$0xf0]  ;;  %4401 = vmatpush.bf16.msra.mxu3 %v12652_v39  ;;  %v3740_v27 = vand.u32 2147483648, %v18911_v46 }
 0x4f8   : > { %4440 = vmatpush.bf16.msrb.mxu2 %v12616_v2  ;;  %v3732_v44 = vmul.f32 %v18930_v29, %v3731_v56  ;;  %v12704_v1 = vor.u32 %v15751_v53, %v12701_v5  ;;  %v3727_v12 = vsel %vm18961_vm1, %v3726_v59, %v3722_v58  ;;  %v12696_v41 = vor.u32 %v15749_v25, %v12693_v37 }
 0x4f9   : > { %v3702_v17 = vmul.f32 1.442695, %v3688_v50  ;;  %v3778_v15 = vadd.f32 %v18923_v21, %v3777_v19  ;;  %v19008_v56 = vmul.f32 %v3727_v12, %v18889_v16  ;;  %vm3794_vm12 = vweird.f32 %v18921_v11  ;;  %v19059_v12 = vld [vmem:[#allocation15 + $0xf4] sm:$0xf0] }
 0x4fa   : > { %v18934_v61 = vpop.eup %16845  ;;  %v3733_v7 = vadd.f32 %v18930_v29, %v3732_v44  ;;  %v3798_v16 = vand.u32 2147483647, %v18921_v11  ;;  %v3851_v44 = vperm.slane %v19014_v18, 1 }
 0x4fb   : > { %v16848_v4 = vpop.eup %16847  ;;  %v3790_v26 = vmul.f32 %v18934_v61, %v18921_v11  ;;  %4450 = vmatpush.bf16.msrb.mxu3 %v12712_v36  ;;  %v3782_v62 = vsel %vm18989_vm5, %v18923_v21, %v3778_v15  ;;  %vm3795_vm8 = vweird.f32 %v18934_v61  ;;  %v3741_v36 = vor.u32 1.1754944e-38, %v3740_v27 }
 0x4fc   : > { %v18944_v47 = vadd.f32 1.0, %v16848_v4  ;;  %v12597_v4 = vld [vmem:[#allocation13 + $0x118] sm:$0xf0]  ;;  %4441 = vmatpush.bf16.msrb.mxu2 %v12608_v34  ;;  %v3737_v3 = vsel %vm19020_vm7, %v18930_v29, %v3733_v7  ;;  %vm19037_vm14 = vmor %vm3794_vm12, %vm3795_vm8  ;;  %v3850_v29 = vperm.slane %v19014_v18, 0  ;;  %vm3799_vm15 = vcmp.eq.f32.partialorder %v3798_v16, 8.507059e+37 }
 0x4fd   : > { %v3791_v33 = vsub.f32 1.0, %v3790_v26  ;;  %v12600_v45 = vor.u32 %v15725_v63, %v12597_v4  ;;  %v3786_v26 = vor.u32 1.1754944e-38, %v3785_v23  ;;  %v12677_v63 = vld [vmem:[#allocation13 + $0x1b8] sm:$0xf0] }
 0x4fe   : > { %v3635_v8 = vpop.f32.mrf.mxu1  ;;  %v18940_v48 = vpop.f32.mrf.mxu0  ;;  %16849 = vrcp.f32 %v18944_v47  ;;  %vm3749_vm10 = vweird.f32 %v18944_v47  ;;  %v3755_v27 = vand.u32 2147483648, %v18944_v47 }
 0x4ff   : > { %16851 = vpow2.f32 %v3702_v17  ;;  %v3636_v52 = vadd.f32 %v3635_v8, %v2813_v31  ;;  %v3792_v42 = vmul.f32 %v18934_v61, %v3791_v33  ;;  %v3738_v8 = vand.u32 2147483647, %v18911_v46  ;;  %4451 = vmatpush.bf16.msrb.mxu3 %v12704_v1 }
 0x500   : > { %4442 = vmatpush.bf16.msrb.mxu2 %v12600_v45  ;;  %v3800_v33 = vand.u32 2147483648, %v18921_v11  ;;  %v3787_v51 = vsel %vm18980_vm4, %v3786_v26, %v3782_v62 }
 0x501   : > { %v3650_v28 = vadd.f32 %v18940_v48, %v3636_v52  ;;  %v3793_v19 = vadd.f32 %v18934_v61, %v3792_v42  ;;  %v12592_v48 = vor.u32 %v15723_v60, %v12589_v32  ;;  %vm19031_vm13 = vcmp.eq.f32.partialorder %v3738_v8, 8.507059e+37  ;;  %v15745_v42 = vld [vmem:[#allocation13 + $0x1b4] sm:$0xf] }
 0x502   : > { %v3838_v53 = vmul.f32 %v3787_v51, %v18893_v38  ;;  %v3801_v5 = vor.u32 1.1754944e-38, %v3800_v33  ;;  %v3753_v38 = vand.u32 2147483647, %v18944_v47  ;;  %v12680_v37 = vor.u32 %v15745_v42, %v12677_v63  ;;  %v15785_v33 = vld [vmem:[#allocation15 + $0xf4] sm:$0xf] }
 0x503   : > { %v3797_v58 = vsel %vm19037_vm14, %v18934_v61, %v3793_v19  ;;  %4452 = vmatpush.bf16.msrb.mxu3 %v12696_v41  ;;  %v3742_v61 = vsel %vm19031_vm13, %v3741_v36, %v3737_v3  ;;  %v12661_v3 = vld [vmem:[#allocation13 + $0x198] sm:$0xf0]  ;;  %v15783_v42 = vld [vmem:[#allocation15 + $0xe4] sm:$0xf]  ;;  %v12765_v63 = vld [vmem:[#allocation15 + $0xe8] sm:$0xf0] }
 0x504   : > { %v18975_v50 = vpop.eup %16849  ;;  %4443 = vmatpush.bf16.msrb.mxu2 %v12592_v48  ;;  %v3802_v8 = vsel %vm3799_vm15, %v3801_v5, %v3797_v58  ;;  %v3835_v62 = vmul.f32 %v3742_v61, %v18896_v40  ;;  %v15784_v5 = vld [vmem:[#allocation15 + $0xe4] sm:$0xf0]  ;;  %vm3754_vm4 = vcmp.eq.f32.partialorder %v3753_v38, 8.507059e+37 }
 0x505   : > { %v16852_v24 = vpop.eup %16851  ;;  %v3745_v2 = vmul.f32 %v18975_v50, %v18944_v47  ;;  %v3839_v60 = vmul.f32 %v3802_v8, %v18900_v14  ;;  %vm3750_vm9 = vweird.f32 %v18975_v50  ;;  %v12653_v8 = vld [vmem:[#allocation13 + $0x188] sm:$0xf0]  ;;  %v12747_v47 = vld [vmem:[#allocation15 + $0xc0] sm:$0xf] }
 0x506   : > { %v3637_v54 = vpop.f32.mrf.mxu1  ;;  %v18973_v0 = vpop.f32.mrf.mxu0  ;;  %v18993_v17 = vadd.f32 1.0, %v16852_v24  ;;  %vm19082_vm2 = vmor %vm3749_vm10, %vm3750_vm9 }
 0x507   : > { %v3638_v39 = vadd.f32 %v3637_v54, %v2813_v31  ;;  %v15747_v31 = vld [vmem:[#allocation13 + $0x1c4] sm:$0xf]  ;;  %v3746_v11 = vsub.f32 1.0, %v3745_v2 }
 0x508   : > { %16853 = vrcp.f32 %v18993_v17  ;;  %v12688_v52 = vor.u32 %v15747_v31, %v12685_v30  ;;  %v15741_v30 = vld [vmem:[#allocation13 + $0x194] sm:$0xf]  ;;  %vm3809_vm1 = vweird.f32 %v18993_v17  ;;  %v3815_v36 = vand.u32 2147483648, %v18993_v17 }
 0x509   : > { %v3652_v59 = vadd.f32 %v18973_v0, %v3638_v39  ;;  %v3747_v1 = vmul.f32 %v18975_v50, %v3746_v11  ;;  %v19057_v0 = vld [vmem:[#allocation15 + $0xf0] sm:$0xf]  ;;  %v12773_v39 = vld [vmem:[#allocation15 + $0xf8] sm:$0xf0]  ;;  %v12664_v61 = vor.u32 %v15741_v30, %v12661_v3  ;;  %v15778_v3 = vld [vmem:[#allocation15 + $0xb4] sm:$0xf0] }
 0x50a   : > { %v3663_v10 = vpop.f32.mrf.mxu2  ;;  %v3677_v13 = vpop.f32.mrf.mxu3  ;;  %4453 = vmatpush.bf16.msrb.mxu3 %v12688_v52  ;;  %v12776_v58 = vor.u32 %v15785_v33, %v12773_v39  ;;  %v15779_v39 = vld [vmem:[#allocation15 + $0xc4] sm:$0xf] }
 0x50b   : > { %v3664_v21 = vadd.f32 %v3663_v10, %v3650_v28  ;;  %v15743_v10 = vld [vmem:[#allocation13 + $0x1a4] sm:$0xf]  ;;  %v3748_v51 = vadd.f32 %v18975_v50, %v3747_v1  ;;  %v3756_v1 = vor.u32 1.1754944e-38, %v3755_v27 }
 0x50d   : > { %v19026_v46 = vadd.f32 %v3677_v13, %v3664_v21  ;;  %v12669_v13 = vld [vmem:[#allocation13 + $0x1a8] sm:$0xf0]  ;;  %v12772_v21 = vor.u32 %v19059_v12, %v19057_v0  ;;  %v15782_v12 = vld [vmem:[#allocation15 + $0xd4] sm:$0xf0] }
 0x50e   : > { %v3875_v35 = vpop.f32.mrf.mxu1  ;;  %v3898_v9 = vpop.f32.mrf.mxu0  ;;  %4454 = vmatpush.bf16.msrb.mxu3 %v12680_v37  ;;  %v12672_v20 = vor.u32 %v15743_v10, %v12669_v13  ;;  %v12757_v37 = vld [vmem:[#allocation15 + $0xd8] sm:$0xf0] }
 0x50f   : > { %v3685_v15 = vsub.f32 0.0, %v19026_v46  ;;  %v19046_v54 = vpop.eup %16853  ;;  %v3876_v26 = vadd.f32 %v3875_v35, %v3850_v29  ;;  %v3899_v7 = vadd.f32 %v3898_v9, %v3851_v44 }
 0x510   : > { %v3805_v4 = vmul.f32 %v19046_v54, %v18993_v17  ;;  %vm3810_vm0 = vweird.f32 %v19046_v54 }
 0x511   : > { %v3696_v24 = vmul.f32 1.442695, %v3685_v15  ;;  %v3950_v14 = vadd.f32 %v3876_v26, %v19008_v56  ;;  %v3951_v34 = vadd.f32 %v3899_v7, %v3835_v62  ;;  %v12763_v15 = vld [vmem:[#allocation15 + $0xe0] sm:$0xf]  ;;  %vm19093_vm3 = vmor %vm3809_vm1, %vm3810_vm0  ;;  %v15776_v56 = vld [vmem:[#allocation15 + $0xa4] sm:$0xf0] }
 0x512   : > { %v3665_v6 = vpop.f32.mrf.mxu2  ;;  %v3806_v22 = vsub.f32 1.0, %v3805_v4  ;;  %v3679_v25 = vpop.f32.mrf.mxu3  ;;  %4455 = vmatpush.bf16.msrb.mxu3 %v12672_v20  ;;  %v12764_v0 = vor.u32 %v15784_v5, %v12763_v15  ;;  %v12731_v15 = vld [vmem:[#allocation15 + $0xa0] sm:$0xf] }
 0x513   : > { %v3666_v45 = vadd.f32 %v3665_v6, %v3652_v59  ;;  %16855 = vpow2.f32 %v3696_v24  ;;  %v3852_v24 = vperm.slane %v19014_v18, 2  ;;  %v15739_v6 = vld [vmem:[#allocation13 + $0x184] sm:$0xf] }
 0x514   : > { %v3807_v32 = vmul.f32 %v19046_v54, %v3806_v22  ;;  %v12656_v62 = vor.u32 %v15739_v6, %v12653_v8  ;;  %v12819_v8 = vld [vmem:[#allocation15 + $0x50] sm:$0xf] }
 0x515   : > { %v19064_v28 = vadd.f32 %v3679_v25, %v3666_v45  ;;  %v3816_v45 = vor.u32 1.1754944e-38, %v3815_v36  ;;  %v15781_v25 = vld [vmem:[#allocation15 + $0xd4] sm:$0xf]  ;;  %v12741_v36 = vld [vmem:[#allocation15 + $0xb8] sm:$0xf0] }
 0x516   : > { %v3878_v19 = vpop.f32.mrf.mxu1  ;;  %v3901_v2 = vpop.f32.mrf.mxu0  ;;  %v3808_v16 = vadd.f32 %v19046_v54, %v3807_v32  ;;  %4456 = vmatpush.bf16.msrb.mxu3 %v12664_v61  ;;  %v15775_v61 = vld [vmem:[#allocation15 + $0xa4] sm:$0xf] }
 0x517   : > { %v3689_v40 = vsub.f32 0.0, %v19064_v28  ;;  %v3879_v41 = vadd.f32 %v3878_v19, %v3850_v29  ;;  %v3902_v48 = vadd.f32 %v3901_v2, %v3851_v44  ;;  %v3813_v29 = vand.u32 2147483647, %v18993_v17 }
 0x518   : > { %v3752_v17 = vsel %vm19082_vm2, %v18975_v50, %v3748_v51  ;;  %v3812_v4 = vsel %vm19093_vm3, %v19046_v54, %v3808_v16  ;;  %v12768_v50 = vor.u32 %v15783_v42, %v12765_v63  ;;  %v12755_v54 = vld [vmem:[#allocation15 + $0xd0] sm:$0xf]  ;;  %v12749_v51 = vld [vmem:[#allocation15 + $0xc8] sm:$0xf0] }
 0x519   : > { %v3704_v35 = vmul.f32 1.442695, %v3689_v40  ;;  %v3954_v9 = vadd.f32 %v3879_v41, %v3838_v53  ;;  %v3955_v31 = vadd.f32 %v3902_v48, %v3839_v60  ;;  %v16856_v23 = vpop.eup %16855  ;;  %vm3814_vm5 = vcmp.eq.f32.partialorder %v3813_v29, 8.507059e+37  ;;  %v15780_v40 = vld [vmem:[#allocation15 + $0xc4] sm:$0xf0] }
 0x51a   : > { %v3921_v11 = vpop.f32.mrf.mxu2  ;;  %v19087_v52 = vadd.f32 1.0, %v16856_v23  ;;  %v3757_v22 = vsel %vm3754_vm4, %v3756_v1, %v3752_v17  ;;  %v3817_v26 = vsel %vm3814_vm5, %v3816_v45, %v3812_v4  ;;  %v12756_v32 = vor.u32 %v15782_v12, %v12755_v54  ;;  %v12835_v41 = vld [vmem:[#allocation15 + $0x70] sm:$0xf]  ;;  %v15770_v48 = vld [vmem:[#allocation15 + $0x74] sm:$0xf0]  ;;  %4457 = vmatpush.bf16.msrb.mxu3 %v12656_v62 }
 0x51b   : > { %16857 = vpow2.f32 %v3704_v35  ;;  %v19089_v53 = vpack.c.bf16 %v3954_v9, %v3950_v14  ;;  %v19097_v44 = vpack.c.bf16 %v3955_v31, %v3951_v34  ;;  %v3922_v10 = vadd.f32 %v3921_v11, %v3852_v24  ;;  %v3944_v35 = vpop.f32.mrf.mxu3  ;;  %v12739_v9 = vld [vmem:[#allocation15 + $0xb0] sm:$0xf]  ;;  %v15777_v23 = vld [vmem:[#allocation15 + $0xb4] sm:$0xf]  ;;  %v12827_v11 = vld [vmem:[#allocation15 + $0x60] sm:$0xf] }
 0x51c   : > { %16859 = vrcp.f32 %v19087_v52  ;;  %v3836_v7 = vmul.f32 %v3757_v22, %v18913_v55  ;;  %v3840_v19 = vmul.f32 %v3817_v26, %v18932_v49  ;;  %v12748_v55 = vor.u32 %v15780_v40, %v12747_v47  ;;  %v12733_v17 = vld [vmem:[#allocation15 + $0xa8] sm:$0xf0]  ;;  %v15766_v1 = vld [vmem:[#allocation15 + $0x54] sm:$0xf0]  ;;  %v15773_v26 = vld [vmem:[#allocation15 + $0x94] sm:$0xf] }
 0x51d   : > { %20500 = vst [vmem:[#allocation75_spill] sm:$0xff] %v19089_v53  ;;  %4360 = vmatmul.bf16.vlgmr.msra.gmra.mxu1 %v19089_v53  ;;  %4374 = vmatmul.bf16.vlgmr.msra.gmra.mxu0 %v19097_v44  ;;  %v12836_v49 = vor.u32 %v15770_v48, %v12835_v41  ;;  %v12752_v30 = vor.u32 %v15779_v39, %v12749_v51  ;;  %v3770_v59 = vand.u32 2147483648, %v19087_v52  ;;  %vm3764_vm8 = vweird.f32 %v19087_v52  ;;  %v15774_v22 = vld [vmem:[#allocation15 + $0x94] sm:$0xf0]  ;;  %v15764_v47 = vld [vmem:[#allocation15 + $0x44] sm:$0xf0] }
 0x51e   : > { %20503 = vst [vmem:[#allocation76_spill] sm:$0xff] %v19097_v44  ;;  %4656 = vmatpush.bf16.msra.mxu1 %v12772_v21  ;;  %4670 = vmatpush.bf16.msra.mxu0 %v12776_v58  ;;  %v12760_v21 = vor.u32 %v15781_v25, %v12757_v37  ;;  %v3952_v14 = vadd.f32 %v3922_v10, %v3836_v7  ;;  %v15768_v58 = vld [vmem:[#allocation15 + $0x64] sm:$0xf0]  ;;  %v3768_v4 = vand.u32 2147483647, %v19087_v52 }
 0x51f   : > { %v12740_v42 = vor.u32 %v15778_v3, %v12739_v9  ;;  %v12744_v63 = vor.u32 %v15777_v23, %v12741_v36  ;;  %v12828_v6 = vor.u32 %v15768_v58, %v12827_v11  ;;  %v12732_v12 = vor.u32 %v15776_v56, %v12731_v15  ;;  %v12725_v10 = vld [vmem:[#allocation15 + $0x98] sm:$0xf0]  ;;  %v12715_v39 = vld [vmem:[#allocation15 + $0x80] sm:$0xf]  ;;  %v15772_v51 = vld [vmem:[#allocation15 + $0x84] sm:$0xf0] }
 0x520   : > { %v3771_v25 = vor.u32 1.1754944e-38, %v3770_v59  ;;  %v12736_v62 = vor.u32 %v15775_v61, %v12733_v17  ;;  %vm3769_vm7 = vcmp.eq.f32.partialorder %v3768_v4, 8.507059e+37  ;;  %v12728_v48 = vor.u32 %v15773_v26, %v12725_v10  ;;  %v12803_v9 = vld [vmem:[#allocation15 + $0x30] sm:$0xf]  ;;  %v15769_v36 = vld [vmem:[#allocation15 + $0x74] sm:$0xf] }
 0x521   : > { %v16858_v27 = vpop.eup %16857  ;;  %v12716_v3 = vor.u32 %v15772_v51, %v12715_v39  ;;  %v12795_v15 = vld [vmem:[#allocation15 + $0x20] sm:$0xf]  ;;  %v15760_v56 = vld [vmem:[#allocation15 + $0x24] sm:$0xf0]  ;;  %v15767_v59 = vld [vmem:[#allocation15 + $0x64] sm:$0xf] }
 0x522   : > { %v19111_v13 = vadd.f32 1.0, %v16858_v27  ;;  %v3924_v60 = vpop.f32.mrf.mxu2  ;;  %4657 = vmatpush.bf16.msra.mxu1 %v12764_v0  ;;  %v19113_v38 = vpop.eup %16859  ;;  %4671 = vmatpush.bf16.msra.mxu0 %v12768_v50  ;;  %v12723_v0 = vld [vmem:[#allocation15 + $0x90] sm:$0xf]  ;;  %v12820_v27 = vor.u32 %v15766_v1, %v12819_v8  ;;  %v15758_v61 = vld [vmem:[#allocation15 + $0x14] sm:$0xf0] }
 0x523   : > { %v3925_v2 = vadd.f32 %v3924_v60, %v3852_v24  ;;  %v3760_v33 = vmul.f32 %v19113_v38, %v19087_v52  ;;  %vm3765_vm6 = vweird.f32 %v19113_v38  ;;  %v3853_v52 = vperm.slane %v19014_v18, 3  ;;  %v12811_v60 = vld [vmem:[#allocation15 + $0x40] sm:$0xf]  ;;  %v3947_v7 = vpop.f32.mrf.mxu3  ;;  %v15765_v4 = vld [vmem:[#allocation15 + $0x54] sm:$0xf] }
 0x524   : > { %16861 = vrcp.f32 %v19111_v13  ;;  %vm19135_vm11 = vmor %vm3764_vm8, %vm3765_vm6  ;;  %v3830_v37 = vand.u32 2147483648, %v19111_v13  ;;  %v3828_v18 = vand.u32 2147483647, %v19111_v13  ;;  %vm3824_vm13 = vweird.f32 %v19111_v13  ;;  %v12779_v8 = vld [vmem:[#allocation15] sm:$0xf] }
 0x525   : > { %v3956_v20 = vadd.f32 %v3925_v2, %v3840_v19  ;;  %v3761_v16 = vsub.f32 1.0, %v3760_v33  ;;  %v12724_v2 = vor.u32 %v15774_v22, %v12723_v0  ;;  %v3945_v41 = vadd.f32 %v3944_v35, %v3853_v52  ;;  %v15762_v35 = vld [vmem:[#allocation15 + $0x34] sm:$0xf0]  ;;  %v15756_v1 = vld [vmem:[#allocation15 + $0x4] sm:$0xf0] }
 0x526   : > { %4658 = vmatpush.bf16.msra.mxu1 %v12756_v32  ;;  %4672 = vmatpush.bf16.msra.mxu0 %v12760_v21  ;;  %v3831_v40 = vor.u32 1.1754944e-38, %v3830_v37  ;;  %v12812_v33 = vor.u32 %v15764_v47, %v12811_v60  ;;  %vm3829_vm15 = vcmp.eq.f32.partialorder %v3828_v18, 8.507059e+37  ;;  %v12804_v58 = vor.u32 %v15762_v35, %v12803_v9  ;;  %v15763_v0 = vld [vmem:[#allocation15 + $0x44] sm:$0xf]  ;;  %v12805_v22 = vld [vmem:[#allocation15 + $0x38] sm:$0xf0] }
 0x527   : > { %v19120_v31 = vpack.c.bf16 %v3956_v20, %v3952_v14  ;;  %v3762_v34 = vmul.f32 %v19113_v38, %v3761_v16  ;;  %v15771_v16 = vld [vmem:[#allocation15 + $0x84] sm:$0xf]  ;;  %v12797_v37 = vld [vmem:[#allocation15 + $0x28] sm:$0xf0]  ;;  %v12789_v10 = vld [vmem:[#allocation15 + $0x18] sm:$0xf0] }
 0x528   : > { %v12781_v18 = vld [vmem:[#allocation15 + $0x8] sm:$0xf0]  ;;  %v15800_v51 = vld [vmem:[%s20510_s14 + $0x64] sm:$0xf0]  ;;  %v15795_v35 = vld [vmem:[%s20510_s14 + $0x44] sm:$0xf] }
 0x529   : > { %20504 = vst [vmem:[#allocation77_spill] sm:$0xff] %v19120_v31  ;;  %4388 = vmatmul.bf16.vlgmr.msra.gmra.mxu2 %v19120_v31  ;;  %v3763_v5 = vadd.f32 %v19113_v38, %v3762_v34  ;;  %v15802_v21 = vld [vmem:[%s20510_s14 + $0x74] sm:$0xf0] }
 0x52a   : > { %v19125_v29 = vpop.eup %16861  ;;  %4659 = vmatpush.bf16.msra.mxu1 %v12748_v55  ;;  %4764 = vmatpush.bf16.msra.mxu2 %v12836_v49  ;;  %v12717_v55 = vld [vmem:[#allocation15 + $0x88] sm:$0xf0] }
 0x52b   : > { %v3820_v24 = vmul.f32 %v19125_v29, %v19111_v13  ;;  %4673 = vmatpush.bf16.msra.mxu0 %v12752_v30  ;;  %v3767_v50 = vsel %vm19135_vm11, %v19113_v38, %v3763_v5  ;;  %vm3825_vm12 = vweird.f32 %v19125_v29  ;;  %v3948_v13 = vadd.f32 %v3947_v7, %v3853_v52  ;;  %v12901_v7 = vld [vmem:[%s20510_s14 + $0x78] sm:$0xf0] }
 0x52c   : > { %v3772_v38 = vsel %vm3769_vm7, %v3771_v25, %v3767_v50  ;;  %vm19151_vm14 = vmor %vm3824_vm13, %vm3825_vm12  ;;  %v12720_v23 = vor.u32 %v15771_v16, %v12717_v55  ;;  %v12813_v50 = vld [vmem:[#allocation15 + $0x48] sm:$0xf0]  ;;  %v15759_v25 = vld [vmem:[#allocation15 + $0x24] sm:$0xf] }
 0x52d   : > { %v3821_v54 = vsub.f32 1.0, %v3820_v24  ;;  %4416 = vmatmul.bf16.vlgmr.msrb.gmra.mxu1 %v19089_v53  ;;  %4430 = vmatmul.bf16.vlgmr.msrb.gmra.mxu0 %v19097_v44  ;;  %v3837_v14 = vmul.f32 %v3772_v38, %v19026_v46  ;;  %v12837_v46 = vld [vmem:[#allocation15 + $0x78] sm:$0xf0]  ;;  %v12816_v52 = vor.u32 %v15763_v0, %v12813_v50  ;;  %v15801_v38 = vld [vmem:[%s20510_s14 + $0x74] sm:$0xf] }
 0x52e   : > { %4660 = vmatpush.bf16.msra.mxu1 %v12740_v42  ;;  %4765 = vmatpush.bf16.msra.mxu2 %v12828_v6  ;;  %v12840_v5 = vor.u32 %v15769_v36, %v12837_v46  ;;  %v12796_v42 = vor.u32 %v15760_v56, %v12795_v15  ;;  %v12821_v24 = vld [vmem:[#allocation15 + $0x58] sm:$0xf0]  ;;  %v12883_v55 = vld [vmem:[%s20510_s14 + $0x50] sm:$0xf]  ;;  %v12965_v56 = vld [vmem:[%s20510_s14 + $0xf8] sm:$0xf0] }
 0x52f   : > { %v3822_v32 = vmul.f32 %v19125_v29, %v3821_v54  ;;  %4674 = vmatpush.bf16.msra.mxu0 %v12744_v63  ;;  %v3953_v34 = vadd.f32 %v3945_v41, %v3837_v14  ;;  %v12787_v63 = vld [vmem:[#allocation15 + $0x10] sm:$0xf]  ;;  %v12824_v45 = vor.u32 %v15765_v4, %v12821_v24  ;;  %v12780_v54 = vor.u32 %v15756_v1, %v12779_v8  ;;  %v15799_v41 = vld [vmem:[%s20510_s14 + $0x64] sm:$0xf]  ;;  %v15796_v36 = vld [vmem:[%s20510_s14 + $0x44] sm:$0xf0] }
 0x530   : > { %v12788_v6 = vor.u32 %v15758_v61, %v12787_v63  ;;  %v12963_v63 = vld [vmem:[%s20510_s14 + $0xf0] sm:$0xf]  ;;  %v15818_v61 = vld [vmem:[%s20510_s14 + $0xf4] sm:$0xf0]  ;;  %v15791_v4 = vld [vmem:[%s20510_s14 + $0x24] sm:$0xf] }
 0x531   : > { %v3823_v19 = vadd.f32 %v19125_v29, %v3822_v32  ;;  %v15755_v32 = vld [vmem:[#allocation15 + $0x4] sm:$0xf]  ;;  %v12861_v24 = vld [vmem:[%s20510_s14 + $0x28] sm:$0xf0]  ;;  %v15792_v0 = vld [vmem:[%s20510_s14 + $0x24] sm:$0xf0] }
 0x532   : > { %4661 = vmatpush.bf16.msra.mxu1 %v12732_v12  ;;  %4766 = vmatpush.bf16.msra.mxu2 %v12820_v27  ;;  %v15761_v12 = vld [vmem:[#allocation15 + $0x34] sm:$0xf]  ;;  %v12784_v47 = vor.u32 %v15755_v32, %v12781_v18  ;;  %v12864_v8 = vor.u32 %v15791_v4, %v12861_v24  ;;  %v12957_v1 = vld [vmem:[%s20510_s14 + $0xe8] sm:$0xf0]  ;;  %v19207_v32 = vld [vmem:[#allocation2 + $0x14] sm:$0x3] }
 0x533   : > { %v3827_v20 = vsel %vm19151_vm14, %v19125_v29, %v3823_v19  ;;  %4675 = vmatpush.bf16.msra.mxu0 %v12736_v62  ;;  %v12808_v26 = vor.u32 %v15761_v12, %v12805_v22  ;;  %v12800_v62 = vor.u32 %v15759_v25, %v12797_v37  ;;  %v15757_v27 = vld [vmem:[#allocation15 + $0x14] sm:$0xf]  ;;  %v12904_v19 = vor.u32 %v15801_v38, %v12901_v7  ;;  %v15816_v12 = vld [vmem:[%s20510_s14 + $0xe4] sm:$0xf0]  ;;  %v12853_v25 = vld [vmem:[%s20510_s14 + $0x18] sm:$0xf0] }
 0x534   : > { %v3832_v49 = vsel %vm3829_vm15, %v3831_v40, %v3827_v20  ;;  %v12792_v60 = vor.u32 %v15757_v27, %v12789_v10  ;;  %v15797_v20 = vld [vmem:[%s20510_s14 + $0x54] sm:$0xf]  ;;  %v12949_v27 = vld [vmem:[%s20510_s14 + $0xd8] sm:$0xf0]  ;;  %v12851_v10 = vld [vmem:[%s20510_s14 + $0x10] sm:$0xf] }
 0x535   : > { %v3841_v30 = vmul.f32 %v3832_v49, %v19064_v28  ;;  %v12829_v28 = vld [vmem:[#allocation15 + $0x68] sm:$0xf0]  ;;  %v15813_v37 = vld [vmem:[%s20510_s14 + $0xd4] sm:$0xf]  ;;  %v12947_v38 = vld [vmem:[%s20510_s14 + $0xd0] sm:$0xf] }
 0x536   : > { %4662 = vmatpush.bf16.msra.mxu1 %v12724_v2  ;;  %4767 = vmatpush.bf16.msra.mxu2 %v12812_v33  ;;  %v12832_v17 = vor.u32 %v15767_v59, %v12829_v28  ;;  %v12899_v2 = vld [vmem:[%s20510_s14 + $0x70] sm:$0xf]  ;;  %v12891_v33 = vld [vmem:[%s20510_s14 + $0x60] sm:$0xf]  ;;  %v15798_v49 = vld [vmem:[%s20510_s14 + $0x54] sm:$0xf0]  ;;  %v12952_v18 = vor.u32 %v15813_v37, %v12949_v27 }
 0x537   : > { %v3957_v11 = vadd.f32 %v3948_v13, %v3841_v30  ;;  %4676 = vmatpush.bf16.msra.mxu0 %v12728_v48  ;;  %v12900_v40 = vor.u32 %v15802_v21, %v12899_v2  ;;  %v12893_v48 = vld [vmem:[%s20510_s14 + $0x68] sm:$0xf0]  ;;  %v12892_v14 = vor.u32 %v15800_v51, %v12891_v33  ;;  %v12885_v13 = vld [vmem:[%s20510_s14 + $0x58] sm:$0xf0]  ;;  %v12884_v9 = vor.u32 %v15798_v49, %v12883_v55  ;;  %v15794_v59 = vld [vmem:[%s20510_s14 + $0x34] sm:$0xf0] }
 0x538   : > { %v12896_v39 = vor.u32 %v15799_v41, %v12893_v48  ;;  %v12888_v16 = vor.u32 %v15797_v20, %v12885_v13  ;;  %v12877_v30 = vld [vmem:[%s20510_s14 + $0x48] sm:$0xf0]  ;;  %v15814_v7 = vld [vmem:[%s20510_s14 + $0xd4] sm:$0xf0]  ;;  %v4028_v48 = vperm.slane %v19207_v32, 0 }
 0x539   : > { %v19160_v29 = vpack.c.bf16 %v3957_v11, %v3953_v34  ;;  %4444 = vmatmul.bf16.vlgmr.msrb.gmra.mxu2 %v19120_v31  ;;  %v15793_v34 = vld [vmem:[%s20510_s14 + $0x34] sm:$0xf]  ;;  %v12869_v11 = vld [vmem:[%s20510_s14 + $0x38] sm:$0xf0]  ;;  %v12845_v41 = vld [vmem:[%s20510_s14 + $0x8] sm:$0xf0] }
 0x53a   : > { %4663 = vmatpush.bf16.msra.mxu1 %v12716_v3  ;;  %4768 = vmatpush.bf16.msra.mxu2 %v12804_v58  ;;  %v12880_v3 = vor.u32 %v15795_v35, %v12877_v30  ;;  %v15817_v58 = vld [vmem:[%s20510_s14 + $0xf4] sm:$0xf]  ;;  %v12872_v15 = vor.u32 %v15793_v34, %v12869_v11  ;;  %v12941_v51 = vld [vmem:[%s20510_s14 + $0xc8] sm:$0xf0]  ;;  %v12843_v20 = vld [vmem:[%s20510_s14] sm:$0xf] }
 0x53b   : > { %20509 = vst [vmem:[#allocation78_spill] sm:$0xff] %v19160_v29  ;;  %4677 = vmatpush.bf16.msra.mxu0 %v12720_v23  ;;  %4402 = vmatmul.bf16.vlgmr.msra.gmra.mxu3 %v19160_v29  ;;  %v12875_v23 = vld [vmem:[%s20510_s14 + $0x40] sm:$0xf]  ;;  %v12968_v28 = vor.u32 %v15817_v58, %v12965_v56  ;;  %v15788_v13 = vld [vmem:[%s20510_s14 + $0x4] sm:$0xf0] }
 0x53c   : > { %4778 = vmatpush.bf16.msra.mxu3 %v12840_v5  ;;  %v12876_v46 = vor.u32 %v15796_v36, %v12875_v23  ;;  %v12867_v5 = vld [vmem:[%s20510_s14 + $0x30] sm:$0xf]  ;;  %v12844_v55 = vor.u32 %v15788_v13, %v12843_v20  ;;  %v15812_v49 = vld [vmem:[%s20510_s14 + $0xc4] sm:$0xf0]  ;;  %v13027_v23 = vld [vmem:[#allocation16 + $0x70] sm:$0xf] }
 0x53d   : > { %4664 = vmatmul.bf16.vlgmr.msra.gmra.mxu1 %v18495_v43  ;;  %v15866_v35 = vld [vmem:[#allocation16 + $0x174] sm:$0xf0]  ;;  %v12933_v11 = vld [vmem:[%s20510_s14 + $0xb8] sm:$0xf0]  ;;  %v12931_v58 = vld [vmem:[%s20510_s14 + $0xb0] sm:$0xf] }
 0x53e   : > { %4678 = vmatmul.bf16.vlgmr.msra.gmra.mxu0 %v18495_v43  ;;  %4769 = vmatpush.bf16.msra.mxu2 %v12796_v42  ;;  %v12868_v42 = vor.u32 %v15794_v59, %v12867_v5  ;;  %v15834_v36 = vld [vmem:[#allocation16 + $0x74] sm:$0xf0]  ;;  %v13147_v59 = vld [vmem:[#allocation16 + $0x160] sm:$0xf]  ;;  %v15805_v27 = vld [vmem:[%s20510_s14 + $0x94] sm:$0xf] }
 0x53f   : > { %5006 = vmatpush.bf16.msrb.mxu1 %v12900_v40  ;;  %v15787_v40 = vld [vmem:[%s20510_s14 + $0x4] sm:$0xf]  ;;  %v13028_v34 = vor.u32 %v15834_v36, %v13027_v23  ;;  %v13219_v36 = vld [vmem:[#allocation16 + $0x1f0] sm:$0xf] }
 0x540   : > { %4779 = vmatpush.bf16.msra.mxu3 %v12832_v17  ;;  %v12964_v17 = vor.u32 %v15818_v61, %v12963_v63  ;;  %v12848_v33 = vor.u32 %v15787_v40, %v12845_v41  ;;  %v15807_v24 = vld [vmem:[%s20510_s14 + $0xa4] sm:$0xf]  ;;  %v13003_v40 = vld [vmem:[#allocation16 + $0x40] sm:$0xf]  ;;  %v15828_v41 = vld [vmem:[#allocation16 + $0x44] sm:$0xf0] }
 0x541   : > { %v15803_v13 = vld [vmem:[%s20510_s14 + $0x84] sm:$0xf] }
 0x542   : > { %4770 = vmatpush.bf16.msra.mxu2 %v12788_v6  ;;  %v15815_v6 = vld [vmem:[%s20510_s14 + $0xe4] sm:$0xf]  ;;  %5020 = vmatpush.bf16.msrb.mxu0 %v12964_v17  ;;  %v15832_v17 = vld [vmem:[#allocation16 + $0x64] sm:$0xf0] }
 0x543   : > { %5007 = vmatpush.bf16.msrb.mxu1 %v12892_v14  ;;  %v12960_v50 = vor.u32 %v15815_v6, %v12957_v1  ;;  %v12925_v6 = vld [vmem:[%s20510_s14 + $0xa8] sm:$0xf0]  ;;  %v15858_v23 = vld [vmem:[#allocation16 + $0x134] sm:$0xf0] }
 0x544   : > { %4780 = vmatpush.bf16.msra.mxu3 %v12824_v45  ;;  %v12859_v45 = vld [vmem:[%s20510_s14 + $0x20] sm:$0xf]  ;;  %v12928_v1 = vor.u32 %v15807_v24, %v12925_v6  ;;  %v13115_v24 = vld [vmem:[#allocation16 + $0x120] sm:$0xf]  ;;  %v15856_v6 = vld [vmem:[#allocation16 + $0x124] sm:$0xf0] }
 0x546   : > { %4771 = vmatpush.bf16.msra.mxu2 %v12780_v54  ;;  %v12860_v54 = vor.u32 %v15792_v0, %v12859_v45  ;;  %v12923_v45 = vld [vmem:[%s20510_s14 + $0xa0] sm:$0xf]  ;;  %v15808_v0 = vld [vmem:[%s20510_s14 + $0xa4] sm:$0xf0] }
 0x547   : > { %5008 = vmatpush.bf16.msrb.mxu1 %v12884_v9  ;;  %v13155_v9 = vld [vmem:[#allocation16 + $0x170] sm:$0xf] }
 0x548   : > { %4781 = vmatpush.bf16.msra.mxu3 %v12816_v52  ;;  %v12955_v52 = vld [vmem:[%s20510_s14 + $0xe0] sm:$0xf] }
 0x549   : > { %4772 = vmatmul.bf16.vlgmr.msra.gmra.mxu2 %v18512_v57  ;;  %v12956_v22 = vor.u32 %v15816_v12, %v12955_v52  ;;  %v12924_v12 = vor.u32 %v15808_v0, %v12923_v45  ;;  %v15880_v45 = vld [vmem:[#allocation16 + $0x1e4] sm:$0xf0]  ;;  %v12987_v0 = vld [vmem:[#allocation16 + $0x20] sm:$0xf] }
 0x54a   : > { %5034 = vmatpush.bf16.msrb.mxu2 %v12904_v19  ;;  %v12948_v19 = vor.u32 %v15814_v7, %v12947_v38  ;;  %v15806_v38 = vld [vmem:[%s20510_s14 + $0x94] sm:$0xf0]  ;;  %v13131_v7 = vld [vmem:[#allocation16 + $0x140] sm:$0xf] }
 0x54b   : > { %4458 = vmatmul.bf16.vlgmr.msrb.gmra.mxu3 %v19160_v29  ;;  %5009 = vmatpush.bf16.msrb.mxu1 %v12876_v46  ;;  %v15809_v46 = vld [vmem:[%s20510_s14 + $0xb4] sm:$0xf] }
 0x54c   : > { %4782 = vmatpush.bf16.msra.mxu3 %v12808_v26  ;;  %v15789_v26 = vld [vmem:[%s20510_s14 + $0x14] sm:$0xf]  ;;  %5021 = vmatpush.bf16.msrb.mxu0 %v12956_v22  ;;  %v12936_v5 = vor.u32 %v15809_v46, %v12933_v11  ;;  %v15862_v22 = vld [vmem:[#allocation16 + $0x154] sm:$0xf0] }
 0x54d   : > { %v15882_v46 = vld [vmem:[#allocation16 + $0x1f4] sm:$0xf0] }
 0x54e   : > { %5035 = vmatpush.bf16.msrb.mxu2 %v12896_v39  ;;  %v15811_v39 = vld [vmem:[%s20510_s14 + $0xc4] sm:$0xf] }
 0x54f   : > { %5010 = vmatpush.bf16.msrb.mxu1 %v12868_v42  ;;  %v12944_v14 = vor.u32 %v15811_v39, %v12941_v51  ;;  %v13019_v42 = vld [vmem:[#allocation16 + $0x60] sm:$0xf]  ;;  %v13004_v51 = vor.u32 %v15828_v41, %v13003_v40 }
 0x550   : > { %4783 = vmatpush.bf16.msra.mxu3 %v12800_v62  ;;  %v12856_v62 = vor.u32 %v15789_v26, %v12853_v25  ;;  %5022 = vmatpush.bf16.msrb.mxu0 %v12948_v19  ;;  %v13020_v4 = vor.u32 %v15832_v17, %v13019_v42  ;;  %v13011_v26 = vld [vmem:[#allocation16 + $0x50] sm:$0xf]  ;;  %v15830_v25 = vld [vmem:[#allocation16 + $0x54] sm:$0xf0] }
 0x551   : > { %v13091_v42 = vld [vmem:[#allocation16 + $0xf0] sm:$0xf] }
 0x552   : > { %5036 = vmatpush.bf16.msrb.mxu2 %v12888_v16  ;;  %v12939_v16 = vld [vmem:[%s20510_s14 + $0xc0] sm:$0xf] }
 0x553   : > { %5011 = vmatpush.bf16.msrb.mxu1 %v12860_v54  ;;  %v12940_v30 = vor.u32 %v15812_v49, %v12939_v16  ;;  %v12909_v16 = vld [vmem:[%s20510_s14 + $0x88] sm:$0xf0] }
 0x554   : > { %4784 = vmatpush.bf16.msra.mxu3 %v12792_v60  ;;  %v15790_v60 = vld [vmem:[%s20510_s14 + $0x14] sm:$0xf0] }
 0x555   : > { %5023 = vmatpush.bf16.msrb.mxu0 %v12940_v30  ;;  %v15804_v30 = vld [vmem:[%s20510_s14 + $0x84] sm:$0xf0] }
 0x556   : > { %5037 = vmatpush.bf16.msrb.mxu2 %v12880_v3  ;;  %v13156_v3 = vor.u32 %v15866_v35, %v13155_v9  ;;  %v12912_v9 = vor.u32 %v15803_v13, %v12909_v16  ;;  %v12907_v35 = vld [vmem:[%s20510_s14 + $0x80] sm:$0xf] }
 0x558   : > { %4785 = vmatpush.bf16.msra.mxu3 %v12784_v47  ;;  %v12852_v47 = vor.u32 %v15790_v60, %v12851_v10  ;;  %v12917_v10 = vld [vmem:[%s20510_s14 + $0x98] sm:$0xf0] }
 0x55a   : > { %5038 = vmatpush.bf16.msrb.mxu2 %v12872_v15  ;;  %5012 = vmatpush.bf16.msrb.mxu1 %v12852_v47  ;;  %v15810_v15 = vld [vmem:[%s20510_s14 + $0xb4] sm:$0xf0]  ;;  %v12915_v47 = vld [vmem:[%s20510_s14 + $0x90] sm:$0xf] }
 0x55b   : > { %4786 = vmatmul.bf16.vlgmr.msra.gmra.mxu3 %v18512_v57  ;;  %v12932_v63 = vor.u32 %v15810_v15, %v12931_v58  ;;  %v12916_v19 = vor.u32 %v15806_v38, %v12915_v47  ;;  %v13220_v58 = vor.u32 %v15882_v46, %v13219_v36  ;;  %v12995_v15 = vld [vmem:[#allocation16 + $0x30] sm:$0xf]  ;;  %v15876_v36 = vld [vmem:[#allocation16 + $0x1c4] sm:$0xf0] }
 0x55c   : > { %5048 = vmatpush.bf16.msrb.mxu3 %v12968_v28  ;;  %v15864_v28 = vld [vmem:[#allocation16 + $0x164] sm:$0xf0]  ;;  %v13203_v47 = vld [vmem:[#allocation16 + $0x1d0] sm:$0xf] }
 0x55d   : > { %v13148_v61 = vor.u32 %v15864_v28, %v13147_v59  ;;  %5024 = vmatpush.bf16.msrb.mxu0 %v12932_v63  ;;  %v15850_v63 = vld [vmem:[#allocation16 + $0xf4] sm:$0xf0] }
 0x55e   : > { %5039 = vmatpush.bf16.msrb.mxu2 %v12864_v8  ;;  %5013 = vmatpush.bf16.msrb.mxu1 %v12844_v55 }
 0x560   : > { %5049 = vmatpush.bf16.msrb.mxu3 %v12960_v50  ;;  %v13139_v50 = vld [vmem:[#allocation16 + $0x150] sm:$0xf] }
 0x561   : > { %v13140_v37 = vor.u32 %v15862_v22, %v13139_v50  ;;  %5025 = vmatpush.bf16.msrb.mxu0 %v12924_v12  ;;  %v15824_v12 = vld [vmem:[#allocation16 + $0x24] sm:$0xf0]  ;;  %v13083_v22 = vld [vmem:[#allocation16 + $0xe0] sm:$0xf] }
 0x562   : > { %5040 = vmatpush.bf16.msrb.mxu2 %v12856_v62  ;;  %5532 = vmatpush.bf16.msra.mxu1 %v13028_v34  ;;  %v13012_v62 = vor.u32 %v15830_v25, %v13011_v26  ;;  %v15848_v26 = vld [vmem:[#allocation16 + $0xe4] sm:$0xf0] }
 0x564   : > { %5050 = vmatpush.bf16.msrb.mxu3 %v12952_v18  ;;  %v12920_v18 = vor.u32 %v15805_v27, %v12917_v10 }
 0x565   : > { %5026 = vmatpush.bf16.msrb.mxu0 %v12916_v19  ;;  %v12979_v19 = vld [vmem:[#allocation16 + $0x10] sm:$0xf] }
 0x566   : > { %5041 = vmatpush.bf16.msrb.mxu2 %v12848_v33  ;;  %5533 = vmatpush.bf16.msra.mxu1 %v13020_v4  ;;  %v13092_v4 = vor.u32 %v15850_v63, %v13091_v42 }
 0x568   : > { %5051 = vmatpush.bf16.msrb.mxu3 %v12944_v14 }
 0x56a   : > { %5560 = vmatpush.bf16.msra.mxu2 %v13156_v3  ;;  %5534 = vmatpush.bf16.msra.mxu1 %v13012_v62  ;;  %v13123_v3 = vld [vmem:[#allocation16 + $0x130] sm:$0xf]  ;;  %v13084_v62 = vor.u32 %v15848_v26, %v13083_v22  ;;  %v15872_v22 = vld [vmem:[#allocation16 + $0x1a4] sm:$0xf0] }
 0x56b   : > { %v13124_v11 = vor.u32 %v15858_v23, %v13123_v3  ;;  %v13195_v23 = vld [vmem:[#allocation16 + $0x1c0] sm:$0xf] }
 0x56c   : > { %5052 = vmatpush.bf16.msrb.mxu3 %v12936_v5 }
 0x56e   : > { %5561 = vmatpush.bf16.msra.mxu2 %v13148_v61  ;;  %5535 = vmatpush.bf16.msra.mxu1 %v13004_v51  ;;  %v15846_v51 = vld [vmem:[#allocation16 + $0xd4] sm:$0xf0] }
 0x570   : > { %5053 = vmatpush.bf16.msrb.mxu3 %v12928_v1  ;;  %v13211_v1 = vld [vmem:[#allocation16 + $0x1e0] sm:$0xf] }
 0x572   : > { %5562 = vmatpush.bf16.msra.mxu2 %v13140_v37  ;;  %v12988_v37 = vor.u32 %v15824_v12, %v12987_v0  ;;  %v13179_v12 = vld [vmem:[#allocation16 + $0x1a0] sm:$0xf] }
 0x574   : > { %5054 = vmatpush.bf16.msrb.mxu3 %v12920_v18  ;;  %v15854_v18 = vld [vmem:[#allocation16 + $0x114] sm:$0xf0] }
 0x578   : > { %5055 = vmatpush.bf16.msrb.mxu3 %v12912_v9  ;;  %v15852_v9 = vld [vmem:[#allocation16 + $0x104] sm:$0xf0] }
 0x57c   : > { %5574 = vmatpush.bf16.msra.mxu3 %v13220_v58  ;;  %v15820_v58 = vld [vmem:[#allocation16 + $0x4] sm:$0xf0] }
 0x59a   : > { %v4361_v2 = vpop.f32.mrf.mxu1  ;;  %v4375_v56 = vpop.f32.mrf.mxu0 }
 0x59b   : > { %v4362_v8 = vadd.f32 %v4361_v2, %v4028_v48  ;;  %v15860_v2 = vld [vmem:[#allocation16 + $0x144] sm:$0xf0] }
 0x59c   : > { %v13132_v39 = vor.u32 %v15860_v2, %v13131_v7  ;;  %v15878_v7 = vld [vmem:[#allocation16 + $0x1d4] sm:$0xf0] }
 0x59d   : > { %v4376_v60 = vadd.f32 %v4375_v56, %v4362_v8  ;;  %v15826_v56 = vld [vmem:[#allocation16 + $0x34] sm:$0xf0]  ;;  %v13116_v8 = vor.u32 %v15856_v6, %v13115_v24  ;;  %v13204_v41 = vor.u32 %v15878_v7, %v13203_v47  ;;  %v13059_v24 = vld [vmem:[#allocation16 + $0xb0] sm:$0xf] }
 0x59e   : > { %5563 = vmatpush.bf16.msra.mxu2 %v13132_v39  ;;  %v12996_v28 = vor.u32 %v15826_v56, %v12995_v15  ;;  %v15822_v2 = vld [vmem:[#allocation16 + $0x14] sm:$0xf0]  ;;  %v13075_v39 = vld [vmem:[#allocation16 + $0xd0] sm:$0xf]  ;;  %v13067_v15 = vld [vmem:[#allocation16 + $0xc0] sm:$0xf] }
 0x5a0   : > { %5536 = vmatpush.bf16.msra.mxu1 %v12996_v28 }
 0x5a2   : > { %v4363_v54 = vpop.f32.mrf.mxu1  ;;  %v4377_v14 = vpop.f32.mrf.mxu0  ;;  %5564 = vmatpush.bf16.msra.mxu2 %v13124_v11  ;;  %v12971_v11 = vld [vmem:[#allocation16] sm:$0xf] }
 0x5a3   : > { %v4364_v55 = vadd.f32 %v4363_v54, %v4028_v48  ;;  %v4029_v48 = vperm.slane %v19207_v32, 1  ;;  %v13212_v54 = vor.u32 %v15880_v45, %v13211_v1  ;;  %v12972_v63 = vor.u32 %v15820_v58, %v12971_v11  ;;  %v15842_v1 = vld [vmem:[#allocation16 + $0xb4] sm:$0xf0] }
 0x5a4   : > { %5537 = vmatpush.bf16.msra.mxu1 %v12988_v37  ;;  %v13051_v37 = vld [vmem:[#allocation16 + $0xa0] sm:$0xf] }
 0x5a5   : > { %v4378_v61 = vadd.f32 %v4377_v14, %v4364_v55  ;;  %5575 = vmatpush.bf16.msra.mxu3 %v13212_v54  ;;  %v13076_v14 = vor.u32 %v15846_v51, %v13075_v39  ;;  %v13099_v55 = vld [vmem:[#allocation16 + $0x100] sm:$0xf]  ;;  %v13043_v39 = vld [vmem:[#allocation16 + $0x90] sm:$0xf]  ;;  %v15838_v51 = vld [vmem:[#allocation16 + $0x94] sm:$0xf0] }
 0x5a6   : > { %5565 = vmatpush.bf16.msra.mxu2 %v13116_v8 }
 0x5a9   : > { %5576 = vmatpush.bf16.msra.mxu3 %v13204_v41 }
 0x5aa   : > { %v4417_v5 = vpop.f32.mrf.mxu1 }
 0x5ab   : > { %v4418_v27 = vadd.f32 %v4417_v5, %v4029_v48  ;;  %v15844_v5 = vld [vmem:[#allocation16 + $0xc4] sm:$0xf0] }
 0x5ac   : > { %v19211_v21 = vpop.f32.mrf.mxu2 }
 0x5ad   : > { %v4390_v33 = vadd.f32 %v19211_v21, %v4376_v60  ;;  %v12908_v21 = vor.u32 %v15804_v30, %v12907_v35  ;;  %v13107_v60 = vld [vmem:[#allocation16 + $0x110] sm:$0xf] }
 0x5ae   : > { %v13108_v38 = vor.u32 %v15854_v18, %v13107_v60 }
 0x5af   : > { %5027 = vmatpush.bf16.msrb.mxu0 %v12908_v21  ;;  %v13100_v21 = vor.u32 %v15852_v9, %v13099_v55 }
 0x5b0   : > { %5566 = vmatpush.bf16.msra.mxu2 %v13108_v38 }
 0x5b2   : > { %v4419_v35 = vpop.f32.mrf.mxu1 }
 0x5b3   : > { %5546 = vmatpush.bf16.msra.mxu0 %v13092_v4  ;;  %v4420_v28 = vadd.f32 %v4419_v35, %v4029_v48  ;;  %v15874_v4 = vld [vmem:[#allocation16 + $0x1b4] sm:$0xf0]  ;;  %v13060_v48 = vor.u32 %v15842_v1, %v13059_v24 }
 0x5b4   : > { %v19232_v52 = vpop.f32.mrf.mxu2  ;;  %5567 = vmatpush.bf16.msra.mxu2 %v13100_v21  ;;  %v13163_v21 = vld [vmem:[#allocation16 + $0x180] sm:$0xf] }
 0x5b5   : > { %v4392_v50 = vadd.f32 %v19232_v52, %v4378_v61  ;;  %v4431_v52 = vpop.f32.mrf.mxu0  ;;  %v13068_v61 = vor.u32 %v15844_v5, %v13067_v15 }
 0x5b6   : > { %v4432_v13 = vadd.f32 %v4431_v52, %v4418_v27  ;;  %v13180_v52 = vor.u32 %v15872_v22, %v13179_v12 }
 0x5b7   : > { %5547 = vmatpush.bf16.msra.mxu0 %v13084_v62  ;;  %v15840_v62 = vld [vmem:[#allocation16 + $0xa4] sm:$0xf0] }
 0x5b8   : > { %v13052_v7 = vor.u32 %v15840_v62, %v13051_v37  ;;  %v15865_v62 = vld [vmem:[#allocation16 + $0x174] sm:$0xf] }
 0x5ba   : > { %v4665_v38 = vpop.f32.mrf.mxu1 }
 0x5bb   : > { %5548 = vmatpush.bf16.msra.mxu0 %v13076_v14  ;;  %v13044_v14 = vor.u32 %v15838_v51, %v13043_v39  ;;  %v15863_v39 = vld [vmem:[#allocation16 + $0x164] sm:$0xf] }
 0x5bc   : > { %v4445_v59 = vpop.f32.mrf.mxu2 }
 0x5bd   : > { %v4446_v46 = vadd.f32 %v4445_v59, %v4432_v13  ;;  %v13187_v59 = vld [vmem:[#allocation16 + $0x1b0] sm:$0xf]  ;;  %v4433_v6 = vpop.f32.mrf.mxu0 }
 0x5be   : > { %v4403_v20 = vpop.f32.mrf.mxu3  ;;  %v13188_v8 = vor.u32 %v15874_v4, %v13187_v59  ;;  %v4434_v0 = vadd.f32 %v4433_v6, %v4420_v28 }
 0x5bf   : > { %v19243_v49 = vadd.f32 %v4403_v20, %v4390_v33  ;;  %v12980_v33 = vor.u32 %v15822_v2, %v12979_v19  ;;  %5549 = vmatpush.bf16.msra.mxu0 %v13068_v61  ;;  %v13171_v19 = vld [vmem:[#allocation16 + $0x190] sm:$0xf]  ;;  %v15870_v2 = vld [vmem:[#allocation16 + $0x194] sm:$0xf0] }
 0x5c1   : > { %v4464_v34 = vsub.f32 0.0, %v19243_v49  ;;  %5538 = vmatpush.bf16.msra.mxu1 %v12980_v33  ;;  %v13172_v33 = vor.u32 %v15870_v2, %v13171_v19 }
 0x5c2   : > { %v4667_v24 = vpop.f32.mrf.mxu1 }
 0x5c3   : > { %v4468_v17 = vmul.f32 1.442695, %v4464_v34  ;;  %v13196_v34 = vor.u32 %v15876_v36, %v13195_v23  ;;  %5550 = vmatpush.bf16.msra.mxu0 %v13060_v48  ;;  %v15868_v36 = vld [vmem:[#allocation16 + $0x184] sm:$0xf0] }
 0x5c4   : > { %v4447_v3 = vpop.f32.mrf.mxu2 }
 0x5c5   : > { %16863 = vpow2.f32 %v4468_v17  ;;  %5577 = vmatpush.bf16.msra.mxu3 %v13196_v34  ;;  %5539 = vmatpush.bf16.msra.mxu1 %v12972_v63  ;;  %v15836_v34 = vld [vmem:[#allocation16 + $0x84] sm:$0xf0]  ;;  %v13164_v63 = vor.u32 %v15868_v36, %v13163_v21  ;;  %v4679_v19 = vpop.f32.mrf.mxu0 }
 0x5c6   : > { %v4405_v25 = vpop.f32.mrf.mxu3 }
 0x5c7   : > { %v19252_v10 = vadd.f32 %v4405_v25, %v4392_v50  ;;  %v4448_v25 = vadd.f32 %v4447_v3, %v4434_v0  ;;  %5551 = vmatpush.bf16.msra.mxu0 %v13052_v7  ;;  %v13029_v7 = vld [vmem:[#allocation16 + $0x78] sm:$0xf0] }
 0x5c9   : > { %v4466_v40 = vsub.f32 0.0, %v19252_v10  ;;  %5578 = vmatpush.bf16.msra.mxu3 %v13188_v8 }
 0x5cb   : > { %v16864_v20 = vpop.eup %16863  ;;  %v4472_v16 = vmul.f32 1.442695, %v4466_v40  ;;  %5552 = vmatpush.bf16.msra.mxu0 %v13044_v14 }
 0x5cc   : > { %v19255_v30 = vadd.f32 1.0, %v16864_v20  ;;  %v4773_v27 = vpop.f32.mrf.mxu2 }
 0x5cd   : > { %16865 = vpow2.f32 %v4472_v16  ;;  %5579 = vmatpush.bf16.msra.mxu3 %v13180_v52 }
 0x5ce   : > { %16867 = vrcp.f32 %v19255_v30  ;;  %v4459_v56 = vpop.f32.mrf.mxu3  ;;  %v4489_v9 = vand.u32 2147483647, %v19255_v30  ;;  %v4491_v35 = vand.u32 2147483648, %v19255_v30  ;;  %vm4485_vm9 = vweird.f32 %v19255_v30 }
 0x5cf   : > { %v19260_v42 = vadd.f32 %v4459_v56, %v4446_v46  ;;  %v13035_v46 = vld [vmem:[#allocation16 + $0x80] sm:$0xf]  ;;  %v19283_v56 = vld [vmem:[#allocation2 + $0x18] sm:$0x3] }
 0x5d0   : > { %v13036_v61 = vor.u32 %v15836_v34, %v13035_v46  ;;  %vm4490_vm1 = vcmp.eq.f32.partialorder %v4489_v9, 8.507059e+37  ;;  %v4794_v6 = vperm.slane %v19283_v56, 0  ;;  %v15861_v46 = vld [vmem:[#allocation16 + $0x154] sm:$0xf]  ;;  %v13141_v34 = vld [vmem:[#allocation16 + $0x158] sm:$0xf0] }
 0x5d1   : > { %v4465_v17 = vsub.f32 0.0, %v19260_v42  ;;  %5580 = vmatpush.bf16.msra.mxu3 %v13172_v33 }
 0x5d2   : > { %5553 = vmatpush.bf16.msra.mxu0 %v13036_v61 }
 0x5d3   : > { %v16866_v45 = vpop.eup %16865  ;;  %v4470_v32 = vmul.f32 1.442695, %v4465_v17 }
 0x5d4   : > { %v16868_v50 = vpop.eup %16867  ;;  %v19263_v54 = vadd.f32 1.0, %v16866_v45  ;;  %v4775_v28 = vpop.f32.mrf.mxu2  ;;  %v4774_v45 = vadd.f32 %v4773_v27, %v4665_v38  ;;  %v15833_v38 = vld [vmem:[#allocation16 + $0x74] sm:$0xf] }
 0x5d5   : > { %v4481_v26 = vmul.f32 %v16868_v50, %v19255_v30  ;;  %16869 = vpow2.f32 %v4470_v32  ;;  %vm4486_vm10 = vweird.f32 %v16868_v50  ;;  %v4492_v30 = vor.u32 1.1754944e-38, %v4491_v35  ;;  %5581 = vmatpush.bf16.msra.mxu3 %v13164_v63 }
 0x5d6   : > { %16871 = vrcp.f32 %v19263_v54  ;;  %v4461_v60 = vpop.f32.mrf.mxu3  ;;  %vm19276_vm0 = vmor %vm4485_vm9, %vm4486_vm10  ;;  %v4521_v5 = vand.u32 2147483648, %v19263_v54  ;;  %v4519_v17 = vand.u32 2147483647, %v19263_v54  ;;  %vm4515_vm3 = vweird.f32 %v19263_v54 }
 0x5d7   : > { %v4482_v18 = vsub.f32 1.0, %v4481_v26  ;;  %v19267_v47 = vadd.f32 %v4461_v60, %v4448_v25  ;;  %v4776_v0 = vadd.f32 %v4775_v28, %v4667_v24  ;;  %v13157_v60 = vld [vmem:[#allocation16 + $0x178] sm:$0xf0]  ;;  %v4798_v27 = vadd.f32 %v4794_v6, %v4774_v45 }
 0x5d8   : > { %v4522_v48 = vor.u32 1.1754944e-38, %v4521_v5  ;;  %vm4520_vm5 = vcmp.eq.f32.partialorder %v4519_v17, 8.507059e+37  ;;  %v13032_v33 = vor.u32 %v15833_v38, %v13029_v7  ;;  %v13144_v24 = vor.u32 %v15861_v46, %v13141_v34  ;;  %v13221_v38 = vld [vmem:[#allocation16 + $0x1f8] sm:$0xf0]  ;;  %v15825_v7 = vld [vmem:[#allocation16 + $0x34] sm:$0xf] }
 0x5d9   : > { %v4483_v40 = vmul.f32 %v16868_v50, %v4482_v18  ;;  %v4467_v41 = vsub.f32 0.0, %v19267_v47  ;;  %v4800_v52 = vadd.f32 %v4794_v6, %v4776_v0  ;;  %v13109_v46 = vld [vmem:[#allocation16 + $0x118] sm:$0xf0] }
 0x5db   : > { %v16870_v20 = vpop.eup %16869  ;;  %v4484_v13 = vadd.f32 %v16868_v50, %v4483_v40  ;;  %v4474_v16 = vmul.f32 1.442695, %v4467_v41  ;;  %v13160_v41 = vor.u32 %v15865_v62, %v13157_v60 }
 0x5dc   : > { %v16872_v55 = vpop.eup %16871  ;;  %v19272_v3 = vadd.f32 1.0, %v16870_v20  ;;  %v13149_v20 = vld [vmem:[#allocation16 + $0x168] sm:$0xf0] }
 0x5dd   : > { %v4511_v23 = vmul.f32 %v16872_v55, %v19263_v54  ;;  %16873 = vpow2.f32 %v4474_v16  ;;  %v4488_v58 = vsel %vm19276_vm0, %v16868_v50, %v4484_v13  ;;  %vm4516_vm2 = vweird.f32 %v16872_v55  ;;  %v15831_v13 = vld [vmem:[#allocation16 + $0x64] sm:$0xf]  ;;  %v13021_v16 = vld [vmem:[#allocation16 + $0x68] sm:$0xf0] }
 0x5de   : > { %16875 = vrcp.f32 %v19272_v3  ;;  %v4493_v4 = vsel %vm4490_vm1, %v4492_v30, %v4488_v58  ;;  %vm4517_vm4 = vmor %vm4515_vm3, %vm4516_vm2  ;;  %v4787_v37 = vpop.f32.mrf.mxu3  ;;  %vm4500_vm8 = vweird.f32 %v19272_v3  ;;  %v4504_v9 = vand.u32 2147483647, %v19272_v3 }
 0x5df   : > { %v4512_v15 = vsub.f32 1.0, %v4511_v23  ;;  %v4540_v12 = vmul.f32 %v4493_v4, %v19243_v49  ;;  %v13152_v23 = vor.u32 %v15863_v39, %v13149_v20  ;;  %v13024_v36 = vor.u32 %v15831_v13, %v13021_v16  ;;  %v15879_v13 = vld [vmem:[#allocation16 + $0x1e4] sm:$0xf]  ;;  %v13213_v16 = vld [vmem:[#allocation16 + $0x1e8] sm:$0xf0] }
 0x5e0   : > { %vm4505_vm7 = vcmp.eq.f32.partialorder %v4504_v9, 8.507059e+37  ;;  %v4795_v4 = vperm.slane %v19283_v56, 1  ;;  %v4788_v45 = vadd.f32 %v4787_v37, %v4679_v19  ;;  %v15847_v9 = vld [vmem:[#allocation16 + $0xe4] sm:$0xf] }
 0x5e1   : > { %v4513_v59 = vmul.f32 %v16872_v55, %v4512_v15  ;;  %v4802_v2 = vadd.f32 %v4798_v27, %v4540_v12  ;;  %v15829_v15 = vld [vmem:[#allocation16 + $0x54] sm:$0xf]  ;;  %v13005_v12 = vld [vmem:[#allocation16 + $0x48] sm:$0xf0] }
 0x5e2   : > { %v15857_v27 = vld [vmem:[#allocation16 + $0x134] sm:$0xf] }
 0x5e3   : > { %v16874_v8 = vpop.eup %16873  ;;  %v4514_v1 = vadd.f32 %v16872_v55, %v4513_v59  ;;  %v4681_v59 = vpop.f32.mrf.mxu0 }
 0x5e4   : > { %v16876_v32 = vpop.eup %16875  ;;  %v19289_v50 = vadd.f32 1.0, %v16874_v8  ;;  %v15859_v8 = vld [vmem:[#allocation16 + $0x144] sm:$0xf] }
 0x5e5   : > { %v4518_v22 = vsel %vm4517_vm4, %v16872_v55, %v4514_v1  ;;  %v4496_v26 = vmul.f32 %v16876_v32, %v19272_v3  ;;  %vm4501_vm6 = vweird.f32 %v16876_v32 }
 0x5e6   : > { %v4523_v25 = vsel %vm4520_vm5, %v4522_v48, %v4518_v22  ;;  %16877 = vrcp.f32 %v19289_v50  ;;  %vm19299_vm11 = vmor %vm4500_vm8, %vm4501_vm6  ;;  %v4536_v5 = vand.u32 2147483648, %v19289_v50  ;;  %v4789_v28 = vpop.f32.mrf.mxu3  ;;  %v4534_v61 = vand.u32 2147483647, %v19289_v50  ;;  %v15827_v48 = vld [vmem:[#allocation16 + $0x44] sm:$0xf] }
 0x5e7   : > { %v4542_v54 = vmul.f32 %v4523_v25, %v19252_v10  ;;  %v4497_v18 = vsub.f32 1.0, %v4496_v26  ;;  %v4506_v10 = vand.u32 2147483648, %v19272_v3  ;;  %v13013_v3 = vld [vmem:[#allocation16 + $0x58] sm:$0xf0]  ;;  %vm4530_vm13 = vweird.f32 %v19289_v50 }
 0x5e8   : > { %v13016_v6 = vor.u32 %v15829_v15, %v13013_v3  ;;  %v4790_v0 = vadd.f32 %v4789_v28, %v4681_v59  ;;  %v4537_v22 = vor.u32 1.1754944e-38, %v4536_v5  ;;  %vm4535_vm15 = vcmp.eq.f32.partialorder %v4534_v61, 8.507059e+37  ;;  %v13205_v15 = vld [vmem:[#allocation16 + $0x1d8] sm:$0xf0]  ;;  %v15821_v3 = vld [vmem:[#allocation16 + $0x14] sm:$0xf] }
 0x5e9   : > { %v4498_v49 = vmul.f32 %v16876_v32, %v4497_v18  ;;  %v4804_v40 = vadd.f32 %v4800_v52, %v4542_v54  ;;  %v4507_v30 = vor.u32 1.1754944e-38, %v4506_v10  ;;  %v13008_v60 = vor.u32 %v15827_v48, %v13005_v12  ;;  %v13125_v18 = vld [vmem:[#allocation16 + $0x138] sm:$0xf0]  ;;  %v15881_v52 = vld [vmem:[#allocation16 + $0x1f4] sm:$0xf] }
 0x5ea   : > { %v4801_v37 = vadd.f32 %v4795_v4, %v4790_v0  ;;  %v13224_v39 = vor.u32 %v15881_v52, %v13221_v38  ;;  %v12989_v10 = vld [vmem:[#allocation16 + $0x28] sm:$0xf0]  ;;  %v15845_v5 = vld [vmem:[#allocation16 + $0xd4] sm:$0xf]  ;;  %v13077_v28 = vld [vmem:[#allocation16 + $0xd8] sm:$0xf0] }
 0x5eb   : > { %v4499_v51 = vadd.f32 %v16876_v32, %v4498_v49  ;;  %v4838_v14 = vpack.c.bf16 %v4804_v40, %v4802_v2  ;;  %v12997_v49 = vld [vmem:[#allocation16 + $0x38] sm:$0xf0]  ;;  %v15851_v59 = vld [vmem:[#allocation16 + $0x104] sm:$0xf]  ;;  %v15913_v52 = vld [vmem:[#allocation21 + $0x70] sm:$0xff] }
 0x5ec   : > { %v16878_v55 = vpop.eup %16877  ;;  %v13093_v40 = vld [vmem:[#allocation16 + $0xf8] sm:$0xf0]  ;;  %v15843_v0 = vld [vmem:[#allocation16 + $0xc4] sm:$0xf] }
 0x5ed   : > { %v4526_v35 = vmul.f32 %v16878_v55, %v19289_v50  ;;  %5014 = vmatmul.bf16.vlgmr.msrb.gmra.mxu1 %v4838_v14  ;;  %5042 = vmatmul.bf16.vlgmr.msrb.gmra.mxu2 %v4838_v14  ;;  %v4503_v11 = vsel %vm19299_vm11, %v16876_v32, %v4499_v51  ;;  %vm4531_vm12 = vweird.f32 %v16878_v55  ;;  %v13133_v32 = vld [vmem:[#allocation16 + $0x148] sm:$0xf0]  ;;  %v4799_v50 = vadd.f32 %v4795_v4, %v4788_v45  ;;  %v15855_v51 = vld [vmem:[#allocation16 + $0x124] sm:$0xf] }
 0x5ee   : > { %5616 = vmatpush.bf16.msrb.mxu2 %v13160_v41  ;;  %5588 = vmatpush.bf16.msrb.mxu1 %v13032_v33  ;;  %v4508_v17 = vsel %vm4505_vm7, %v4507_v30, %v4503_v11  ;;  %vm4532_vm14 = vmor %vm4530_vm13, %vm4531_vm12  ;;  %v13136_v62 = vor.u32 %v15859_v8, %v13133_v32  ;;  %v13128_v33 = vor.u32 %v15857_v27, %v13125_v18  ;;  %v13117_v14 = vld [vmem:[#allocation16 + $0x128] sm:$0xf0]  ;;  %v12981_v30 = vld [vmem:[#allocation16 + $0x18] sm:$0xf0] }
 0x5ef   : > { %v4527_v58 = vsub.f32 1.0, %v4526_v35  ;;  %v4541_v26 = vmul.f32 %v4508_v17, %v19260_v42  ;;  %v15849_v42 = vld [vmem:[#allocation16 + $0xf4] sm:$0xf]  ;;  %v13085_v35 = vld [vmem:[#allocation16 + $0xe8] sm:$0xf0]  ;;  %v13120_v21 = vor.u32 %v15855_v51, %v13117_v14  ;;  %v12984_v4 = vor.u32 %v15821_v3, %v12981_v30  ;;  %v15899_v30 = vld [vmem:[#allocation21] sm:$0xff] }
 0x5f0   : > { %v13096_v20 = vor.u32 %v15849_v42, %v13093_v40  ;;  %v13088_v11 = vor.u32 %v15847_v9, %v13085_v35  ;;  %v13101_v17 = vld [vmem:[#allocation16 + $0x108] sm:$0xf0]  ;;  %v15871_v27 = vld [vmem:[#allocation16 + $0x1a4] sm:$0xf]  ;;  %v13173_v42 = vld [vmem:[#allocation16 + $0x198] sm:$0xf0] }
 0x5f1   : > { %v4528_v63 = vmul.f32 %v16878_v55, %v4527_v58  ;;  %v4803_v19 = vadd.f32 %v4799_v50, %v4541_v26  ;;  %v15877_v58 = vld [vmem:[#allocation16 + $0x1d4] sm:$0xf]  ;;  %v13197_v8 = vld [vmem:[#allocation16 + $0x1c8] sm:$0xf0]  ;;  %v13104_v48 = vor.u32 %v15851_v59, %v13101_v17  ;;  %v15839_v38 = vld [vmem:[#allocation16 + $0xa4] sm:$0xf] }
 0x5f2   : > { %5617 = vmatpush.bf16.msrb.mxu2 %v13152_v23  ;;  %5589 = vmatpush.bf16.msrb.mxu1 %v13024_v36  ;;  %v13216_v23 = vor.u32 %v15879_v13, %v13213_v16  ;;  %v15853_v36 = vld [vmem:[#allocation16 + $0x114] sm:$0xf]  ;;  %v13208_v61 = vor.u32 %v15877_v58, %v13205_v15  ;;  %v12973_v45 = vld [vmem:[#allocation16 + $0x8] sm:$0xf0]  ;;  %v15867_v14 = vld [vmem:[#allocation16 + $0x184] sm:$0xf] }
 0x5f3   : > { %v4529_v1 = vadd.f32 %v16878_v55, %v4528_v63  ;;  %v13112_v63 = vor.u32 %v15853_v36, %v13109_v46  ;;  %v13069_v32 = vld [vmem:[#allocation16 + $0xc8] sm:$0xf0]  ;;  %v15835_v13 = vld [vmem:[#allocation16 + $0x84] sm:$0xf]  ;;  %v15906_v9 = vld [vmem:[#allocation21 + $0x38] sm:$0xff] }
 0x5f4   : > { %v13072_v26 = vor.u32 %v15843_v0, %v13069_v32  ;;  %v13181_v18 = vld [vmem:[#allocation16 + $0x1a8] sm:$0xf0]  ;;  %v15910_v35 = vld [vmem:[#allocation21 + $0x58] sm:$0xff]  ;;  %v15901_v15 = vld [vmem:[#allocation21 + $0x10] sm:$0xff] }
 0x5f5   : > { %v4533_v25 = vsel %vm4532_vm14, %v16878_v55, %v4529_v1  ;;  %v15823_v55 = vld [vmem:[#allocation16 + $0x24] sm:$0xf]  ;;  %v15912_v40 = vld [vmem:[#allocation21 + $0x68] sm:$0xff]  ;;  %v15902_v58 = vld [vmem:[#allocation21 + $0x18] sm:$0xff] }
 0x5f6   : > { %v4538_v56 = vsel %vm4535_vm15, %v4537_v22, %v4533_v25  ;;  %5618 = vmatpush.bf16.msrb.mxu2 %v13144_v24  ;;  %5590 = vmatpush.bf16.msrb.mxu1 %v13016_v6  ;;  %v12992_v34 = vor.u32 %v15823_v55, %v12989_v10  ;;  %v13080_v24 = vor.u32 %v15845_v5, %v13077_v28  ;;  %v15875_v6 = vld [vmem:[#allocation16 + $0x1c4] sm:$0xf]  ;;  %v15873_v25 = vld [vmem:[#allocation16 + $0x1b4] sm:$0xf]  ;;  %v13037_v16 = vld [vmem:[#allocation16 + $0x88] sm:$0xf0] }
 0x5f7   : > { %v4543_v54 = vmul.f32 %v4538_v56, %v19267_v47  ;;  %v13000_v47 = vor.u32 %v15825_v7, %v12997_v49  ;;  %v15819_v1 = vld [vmem:[#allocation16 + $0x4] sm:$0xf]  ;;  %v13200_v12 = vor.u32 %v15875_v6, %v13197_v8  ;;  %v13189_v56 = vld [vmem:[#allocation16 + $0x1b8] sm:$0xf0]  ;;  %v13053_v7 = vld [vmem:[#allocation16 + $0xa8] sm:$0xf0]  ;;  %v13040_v10 = vor.u32 %v15835_v13, %v13037_v16 }
 0x5f8   : > { %v12976_v22 = vor.u32 %v15819_v1, %v12973_v45  ;;  %v13192_v50 = vor.u32 %v15873_v25, %v13189_v56  ;;  %v15869_v49 = vld [vmem:[#allocation16 + $0x194] sm:$0xf]  ;;  %v15904_v36 = vld [vmem:[#allocation21 + $0x28] sm:$0xff]  ;;  %v15898_v5 = vld [vmem:[#allocation18 + $0x78] sm:$0xff] }
 0x5f9   : > { %v4805_v2 = vadd.f32 %v4801_v37, %v4543_v54  ;;  %v13061_v54 = vld [vmem:[#allocation16 + $0xb8] sm:$0xf0]  ;;  %v15908_v46 = vld [vmem:[#allocation21 + $0x48] sm:$0xff]  ;;  %v15897_v28 = vld [vmem:[#allocation18 + $0x70] sm:$0xff] }
 0x5fa   : > { %5619 = vmatpush.bf16.msrb.mxu2 %v13136_v62  ;;  %5591 = vmatpush.bf16.msrb.mxu1 %v13008_v60  ;;  %v15914_v62 = vld [vmem:[#allocation21 + $0x78] sm:$0xff]  ;;  %v15841_v60 = vld [vmem:[#allocation16 + $0xb4] sm:$0xf]  ;;  %v15900_v3 = vld [vmem:[#allocation21 + $0x8] sm:$0xff] }
 0x5fb   : > { %v4839_v41 = vpack.c.bf16 %v4805_v2, %v4803_v19  ;;  %v13064_v37 = vor.u32 %v15841_v60, %v13061_v54  ;;  %v13184_v19 = vor.u32 %v15871_v27, %v13181_v18  ;;  %v13056_v2 = vor.u32 %v15839_v38, %v13053_v7  ;;  %v15894_v59 = vld [vmem:[#allocation18 + $0x58] sm:$0xff]  ;;  %v15889_v6 = vld [vmem:[#allocation18 + $0x30] sm:$0xff]  ;;  %v15892_v8 = vld [vmem:[#allocation18 + $0x48] sm:$0xff] }
 0x5fc   : > { %v15938_v1 = vld [vmem:[#allocation22 + $0x78] sm:$0xff]  ;;  %v4840_v45 = vld [vmem:[#allocation2 + $0x16] sm:$0x3]  ;;  %v15891_v32 = vld [vmem:[#allocation18 + $0x40] sm:$0xff] }
 0x5fd   : > { %5028 = vmatmul.bf16.vlgmr.msrb.gmra.mxu0 %v4839_v41  ;;  %5056 = vmatmul.bf16.vlgmr.msrb.gmra.mxu3 %v4839_v41  ;;  %v15837_v41 = vld [vmem:[#allocation16 + $0x94] sm:$0xf]  ;;  %v15888_v0 = vld [vmem:[#allocation18 + $0x28] sm:$0xff]  ;;  %v15887_v56 = vld [vmem:[#allocation18 + $0x20] sm:$0xff] }
 0x5fe   : > { %5540 = vmatmul.bf16.vlgmr.msra.gmra.mxu1 %v19089_v53  ;;  %5568 = vmatmul.bf16.vlgmr.msra.gmra.mxu2 %v19120_v31  ;;  %v15937_v25 = vld [vmem:[#allocation22 + $0x70] sm:$0xff]  ;;  %v15936_v54 = vld [vmem:[#allocation22 + $0x68] sm:$0xff]  ;;  %v15886_v18 = vld [vmem:[#allocation18 + $0x18] sm:$0xff] }
 0x5ff   : > { %5620 = vmatpush.bf16.msrb.mxu2 %v13128_v33  ;;  %5630 = vmatpush.bf16.msrb.mxu3 %v13224_v39  ;;  %v13045_v33 = vld [vmem:[#allocation16 + $0x98] sm:$0xf0]  ;;  %v13176_v39 = vor.u32 %v15869_v49, %v13173_v42  ;;  %v15935_v7 = vld [vmem:[#allocation22 + $0x60] sm:$0xff]  ;;  %v15884_v16 = vld [vmem:[#allocation18 + $0x8] sm:$0xff] }
 0x600   : > { %5592 = vmatpush.bf16.msrb.mxu1 %v13000_v47  ;;  %5602 = vmatpush.bf16.msrb.mxu0 %v13096_v20  ;;  %v13048_v51 = vor.u32 %v15837_v41, %v13045_v33  ;;  %v13165_v47 = vld [vmem:[#allocation16 + $0x188] sm:$0xf0]  ;;  %v15911_v20 = vld [vmem:[#allocation21 + $0x60] sm:$0xff] }
 0x601   : > { %v13168_v55 = vor.u32 %v15867_v14, %v13165_v47  ;;  %v15927_v33 = vld [vmem:[#allocation22 + $0x20] sm:$0xff]  ;;  %v15934_v14 = vld [vmem:[#allocation22 + $0x58] sm:$0xff] }
 0x603   : > { %5621 = vmatpush.bf16.msrb.mxu2 %v13120_v21  ;;  %5631 = vmatpush.bf16.msrb.mxu3 %v13216_v23  ;;  %v15905_v21 = vld [vmem:[#allocation21 + $0x30] sm:$0xff] }
 0x604   : > { %5593 = vmatpush.bf16.msrb.mxu1 %v12992_v34  ;;  %5603 = vmatpush.bf16.msrb.mxu0 %v13088_v11  ;;  %v15909_v23 = vld [vmem:[#allocation21 + $0x50] sm:$0xff]  ;;  %v15903_v34 = vld [vmem:[#allocation21 + $0x20] sm:$0xff] }
 0x605   : > { %v15907_v11 = vld [vmem:[#allocation21 + $0x40] sm:$0xff] }
 0x607   : > { %5622 = vmatpush.bf16.msrb.mxu2 %v13112_v63  ;;  %5632 = vmatpush.bf16.msrb.mxu3 %v13208_v61  ;;  %v15896_v63 = vld [vmem:[#allocation18 + $0x68] sm:$0xff]  ;;  %v15895_v61 = vld [vmem:[#allocation18 + $0x60] sm:$0xff] }
 0x608   : > { %5594 = vmatpush.bf16.msrb.mxu1 %v12984_v4  ;;  %5604 = vmatpush.bf16.msrb.mxu0 %v13080_v24  ;;  %v15890_v4 = vld [vmem:[#allocation18 + $0x38] sm:$0xff]  ;;  %v15893_v24 = vld [vmem:[#allocation18 + $0x50] sm:$0xff] }
 0x60b   : > { %5623 = vmatpush.bf16.msrb.mxu2 %v13104_v48  ;;  %5633 = vmatpush.bf16.msrb.mxu3 %v13200_v12  ;;  %v15930_v48 = vld [vmem:[#allocation22 + $0x38] sm:$0xff]  ;;  %v4842_v12 = vperm.slane %v4840_v45, 0 }
 0x60c   : > { %5595 = vmatpush.bf16.msrb.mxu1 %v12976_v22  ;;  %5605 = vmatpush.bf16.msrb.mxu0 %v13072_v26 }
 0x60d   : > { %5554 = vmatmul.bf16.vlgmr.msra.gmra.mxu0 %v19097_v44  ;;  %5582 = vmatmul.bf16.vlgmr.msra.gmra.mxu3 %v19160_v29 }
 0x60e   : > { %5624 = vmatmul.bf16.vlgmr.msrb.gmra.mxu2 %v19120_v31  ;;  %v16329_v31 = vld [vmem:[#allocation34 + $0x22c] sm:$0xf0] }
 0x60f   : > { %5930 = vmatpush.bf16.msra.mxu2 %v15914_v62  ;;  %5596 = vmatmul.bf16.vlgmr.msrb.gmra.mxu1 %v19089_v53  ;;  %v15929_v62 = vld [vmem:[#allocation22 + $0x30] sm:$0xff]  ;;  %v20020_v53 = vld [vmem:[#allocation34 + $0x184] sm:$0xf] }
 0x610   : > { %5634 = vmatpush.bf16.msrb.mxu3 %v13192_v50  ;;  %5606 = vmatpush.bf16.msrb.mxu0 %v13064_v37  ;;  %v4843_v37 = vperm.slane %v4840_v45, 1 }
 0x611   : > { %5782 = vmatpush.bf16.msra.mxu1 %v15890_v4  ;;  %v15931_v4 = vld [vmem:[#allocation22 + $0x40] sm:$0xff] }
 0x613   : > { %5931 = vmatpush.bf16.msra.mxu2 %v15913_v52  ;;  %v15928_v52 = vld [vmem:[#allocation22 + $0x28] sm:$0xff] }
 0x614   : > { %5635 = vmatpush.bf16.msrb.mxu3 %v13184_v19  ;;  %5607 = vmatpush.bf16.msrb.mxu0 %v13056_v2 }
 0x615   : > { %5783 = vmatpush.bf16.msra.mxu1 %v15889_v6 }
 0x617   : > { %5932 = vmatpush.bf16.msra.mxu2 %v15912_v40  ;;  %v15885_v40 = vld [vmem:[#allocation18 + $0x10] sm:$0xff] }
 0x618   : > { %5636 = vmatpush.bf16.msrb.mxu3 %v13176_v39  ;;  %5608 = vmatpush.bf16.msrb.mxu0 %v13048_v51 }
 0x619   : > { %5784 = vmatpush.bf16.msra.mxu1 %v15888_v0  ;;  %v5206_v0 = vld [vmem:[#allocation2 + $0x1a] sm:$0x3] }
 0x61b   : > { %5933 = vmatpush.bf16.msra.mxu2 %v15911_v20 }
 0x61c   : > { %5637 = vmatpush.bf16.msrb.mxu3 %v13168_v55  ;;  %5609 = vmatpush.bf16.msrb.mxu0 %v13040_v10  ;;  %v15926_v55 = vld [vmem:[#allocation22 + $0x18] sm:$0xff] }
 0x61d   : > { %5785 = vmatpush.bf16.msra.mxu1 %v15887_v56  ;;  %v5208_v56 = vperm.slane %v5206_v0, 0 }
 0x61f   : > { %5934 = vmatpush.bf16.msra.mxu2 %v15910_v35  ;;  %5638 = vmatmul.bf16.vlgmr.msrb.gmra.mxu3 %v19160_v29  ;;  %v15933_v35 = vld [vmem:[#allocation22 + $0x50] sm:$0xff]  ;;  %v15003_v29 = vld [vmem:[#allocation34 + $0x220] sm:$0xf] }
 0x620   : > { %5992 = vmatpush.bf16.msra.mxu3 %v15906_v9  ;;  %5610 = vmatmul.bf16.vlgmr.msrb.gmra.mxu0 %v19097_v44 }
 0x621   : > { %5796 = vmatpush.bf16.msra.mxu0 %v15898_v5  ;;  %5786 = vmatpush.bf16.msra.mxu1 %v15886_v18  ;;  %v15932_v5 = vld [vmem:[#allocation22 + $0x48] sm:$0xff] }
 0x623   : > { %5935 = vmatpush.bf16.msra.mxu2 %v15909_v23 }
 0x624   : > { %5993 = vmatpush.bf16.msra.mxu3 %v15905_v21 }
 0x625   : > { %5797 = vmatpush.bf16.msra.mxu0 %v15897_v28  ;;  %5787 = vmatpush.bf16.msra.mxu1 %v15885_v40 }
 0x627   : > { %5936 = vmatpush.bf16.msra.mxu2 %v15908_v46  ;;  %v15883_v46 = vld [vmem:[#allocation18] sm:$0xff] }
 0x628   : > { %5994 = vmatpush.bf16.msra.mxu3 %v15904_v36 }
 0x629   : > { %5798 = vmatpush.bf16.msra.mxu0 %v15896_v63  ;;  %5788 = vmatpush.bf16.msra.mxu1 %v15884_v16 }
 0x62b   : > { %5937 = vmatpush.bf16.msra.mxu2 %v15907_v11 }
 0x62c   : > { %5995 = vmatpush.bf16.msra.mxu3 %v15903_v34 }
 0x62d   : > { %5799 = vmatpush.bf16.msra.mxu0 %v15895_v61  ;;  %5789 = vmatpush.bf16.msra.mxu1 %v15883_v46  ;;  %v15924_v61 = vld [vmem:[#allocation22 + $0x8] sm:$0xff] }
 0x62e   : > { %5938 = vmatmul.bf16.vlgmr.msra.gmra.mxu2 %v18495_v43 }
 0x62f   : > { %6283 = vmatpush.bf16.msrb.mxu2 %v15938_v1  ;;  %v15923_v1 = vld [vmem:[#allocation22] sm:$0xff] }
 0x630   : > { %5996 = vmatpush.bf16.msra.mxu3 %v15902_v58  ;;  %v15925_v58 = vld [vmem:[#allocation22 + $0x10] sm:$0xff] }
 0x631   : > { %5800 = vmatpush.bf16.msra.mxu0 %v15894_v59 }
 0x633   : > { %6284 = vmatpush.bf16.msrb.mxu2 %v15937_v25 }
 0x634   : > { %5997 = vmatpush.bf16.msra.mxu3 %v15901_v15 }
 0x635   : > { %5801 = vmatpush.bf16.msra.mxu0 %v15893_v24 }
 0x637   : > { %6285 = vmatpush.bf16.msrb.mxu2 %v15936_v54 }
 0x638   : > { %5998 = vmatpush.bf16.msra.mxu3 %v15900_v3 }
 0x639   : > { %5802 = vmatpush.bf16.msra.mxu0 %v15892_v8 }
 0x63b   : > { %6286 = vmatpush.bf16.msrb.mxu2 %v15935_v7 }
 0x63c   : > { %5999 = vmatpush.bf16.msra.mxu3 %v15899_v30 }
 0x63d   : > { %5803 = vmatpush.bf16.msra.mxu0 %v15891_v32 }
 0x63f   : > { %6000 = vmatmul.bf16.vlgmr.msra.gmra.mxu3 %v18512_v57  ;;  %6287 = vmatpush.bf16.msrb.mxu2 %v15934_v14 }
 0x641   : > { %6269 = vmatpush.bf16.msrb.mxu0 %v15930_v48 }
 0x643   : > { %6288 = vmatpush.bf16.msrb.mxu2 %v15933_v35 }
 0x645   : > { %6270 = vmatpush.bf16.msrb.mxu0 %v15929_v62 }
 0x647   : > { %6289 = vmatpush.bf16.msrb.mxu2 %v15932_v5 }
 0x649   : > { %6271 = vmatpush.bf16.msrb.mxu0 %v15928_v52 }
 0x64b   : > { %6290 = vmatpush.bf16.msrb.mxu2 %v15931_v4 }
 0x64d   : > { %6272 = vmatpush.bf16.msrb.mxu0 %v15927_v33 }
 0x651   : > { %6273 = vmatpush.bf16.msrb.mxu0 %v15926_v55 }
 0x655   : > { %6274 = vmatpush.bf16.msrb.mxu0 %v15925_v58 }
 0x659   : > { %6275 = vmatpush.bf16.msrb.mxu0 %v15924_v61  ;;  %v15916_v61 = vld [vmem:[#allocation19 + $0x8] sm:$0xff] }
 0x65d   : > { %6276 = vmatpush.bf16.msrb.mxu0 %v15923_v1 }
 0x66a   : > { %v5015_v17 = vpop.f32.mrf.mxu1 }
 0x66b   : > { %v5016_v60 = vadd.f32 %v5015_v17, %v4842_v12 }
 0x670   : > { %v5043_v22 = vpop.f32.mrf.mxu2 }
 0x671   : > { %v5044_v19 = vadd.f32 %v5043_v22, %v4843_v37 }
 0x672   : > { %v5017_v26 = vpop.f32.mrf.mxu1 }
 0x673   : > { %v5018_v39 = vadd.f32 %v5017_v26, %v4842_v12 }
 0x678   : > { %v5045_v2 = vpop.f32.mrf.mxu2 }
 0x679   : > { %v5046_v23 = vadd.f32 %v5045_v2, %v4843_v37 }
 0x67a   : > { %v5029_v50 = vpop.f32.mrf.mxu0 }
 0x67b   : > { %v19322_v27 = vadd.f32 %v5029_v50, %v5016_v60  ;;  %v19325_v42 = vpop.f32.mrf.mxu1 }
 0x67d   : > { %v5062_v38 = vsub.f32 0.0, %v19322_v27 }
 0x67f   : > { %v5066_v49 = vmul.f32 1.442695, %v5062_v38  ;;  %v5209_v38 = vperm.slane %v5206_v0, 1 }
 0x680   : > { %v5057_v41 = vpop.f32.mrf.mxu3 }
 0x681   : > { %16879 = vpow2.f32 %v5066_v49  ;;  %v19327_v51 = vadd.f32 %v5057_v41, %v5044_v19  ;;  %v19333_v15 = vpop.f32.mrf.mxu2  ;;  %v5542_v19 = vadd.f32 %v19325_v42, %v5208_v56 }
 0x682   : > { %v5031_v47 = vpop.f32.mrf.mxu0 }
 0x683   : > { %v5063_v20 = vsub.f32 0.0, %v19327_v51  ;;  %v19330_v13 = vadd.f32 %v5031_v47, %v5018_v39  ;;  %v5543_v3 = vpop.f32.mrf.mxu1 }
 0x684   : > { %v5544_v40 = vadd.f32 %v5543_v3, %v5208_v56 }
 0x685   : > { %v5068_v10 = vmul.f32 1.442695, %v5063_v20  ;;  %v5064_v9 = vsub.f32 0.0, %v19330_v13 }
 0x687   : > { %v16880_v21 = vpop.eup %16879  ;;  %16881 = vpow2.f32 %v5068_v10  ;;  %v5070_v36 = vmul.f32 1.442695, %v5064_v9 }
 0x688   : > { %v5074_v34 = vadd.f32 1.0, %v16880_v21  ;;  %v5059_v11 = vpop.f32.mrf.mxu3 }
 0x689   : > { %16883 = vpow2.f32 %v5070_v36  ;;  %v19335_v30 = vadd.f32 %v5059_v11, %v5046_v23  ;;  %v5571_v26 = vpop.f32.mrf.mxu2 }
 0x68a   : > { %16885 = vrcp.f32 %v5074_v34  ;;  %v5555_v28 = vpop.f32.mrf.mxu0  ;;  %v5087_v50 = vand.u32 2147483647, %v5074_v34  ;;  %v5089_v18 = vand.u32 2147483648, %v5074_v34  ;;  %vm5083_vm9 = vweird.f32 %v5074_v34 }
 0x68b   : > { %v5065_v63 = vsub.f32 0.0, %v19335_v30  ;;  %v5556_v14 = vadd.f32 %v5555_v28, %v5542_v19 }
 0x68c   : > { %v5597_v25 = vpop.f32.mrf.mxu1  ;;  %vm19351_vm0 = vcmp.eq.f32.partialorder %v5087_v50, 8.507059e+37  ;;  %v5090_v20 = vor.u32 1.1754944e-38, %v5089_v18 }
 0x68d   : > { %v16882_v59 = vpop.eup %16881  ;;  %v5072_v17 = vmul.f32 1.442695, %v5065_v63  ;;  %v5598_v21 = vadd.f32 %v5597_v25, %v5209_v38  ;;  %v5570_v28 = vadd.f32 %v19333_v15, %v5556_v14 }
 0x68e   : > { %v19338_v24 = vadd.f32 1.0, %v16882_v59 }
 0x68f   : > { %v16884_v6 = vpop.eup %16883  ;;  %16887 = vpow2.f32 %v5072_v17 }
 0x690   : > { %v16886_v8 = vpop.eup %16885  ;;  %16889 = vrcp.f32 %v19338_v24  ;;  %v5076_v32 = vadd.f32 1.0, %v16884_v6  ;;  %v19341_v48 = vpop.f32.mrf.mxu3  ;;  %v5102_v16 = vand.u32 2147483647, %v19338_v24  ;;  %v5104_v55 = vand.u32 2147483648, %v19338_v24 }
 0x691   : > { %v5079_v45 = vmul.f32 %v16886_v8, %v5074_v34  ;;  %vm5084_vm10 = vweird.f32 %v16886_v8  ;;  %v5625_v34 = vpop.f32.mrf.mxu2  ;;  %vm5098_vm3 = vweird.f32 %v19338_v24  ;;  %v5584_v18 = vadd.f32 %v19341_v48, %v5570_v28 }
 0x692   : > { %v5557_v12 = vpop.f32.mrf.mxu0  ;;  %16891 = vrcp.f32 %v5076_v32  ;;  %vm19355_vm1 = vmor %vm5083_vm9, %vm5084_vm10  ;;  %v5117_v35 = vand.u32 2147483647, %v5076_v32  ;;  %v5119_v46 = vand.u32 2147483648, %v5076_v32  ;;  %vm19370_vm5 = vcmp.eq.f32.partialorder %v5102_v16, 8.507059e+37 }
 0x693   : > { %v5080_v22 = vsub.f32 1.0, %v5079_v45  ;;  %v5558_v11 = vadd.f32 %v5557_v12, %v5544_v40  ;;  %v5105_v59 = vor.u32 1.1754944e-38, %v5104_v55  ;;  %vm5113_vm8 = vweird.f32 %v5076_v32 }
 0x694   : > { %v5599_v58 = vpop.f32.mrf.mxu1  ;;  %vm5118_vm11 = vcmp.eq.f32.partialorder %v5117_v35, 8.507059e+37  ;;  %v15950_v35 = vld [vmem:[#allocation27 + $0x18] sm:$0xff] }
 0x695   : > { %v16888_v62 = vpop.eup %16887  ;;  %v5081_v60 = vmul.f32 %v16886_v8, %v5080_v22  ;;  %v5572_v45 = vadd.f32 %v5571_v26, %v5558_v11  ;;  %v15920_v11 = vld [vmem:[#allocation19 + $0x28] sm:$0xff] }
 0x696   : > { %v19343_v54 = vpop.eup %16889  ;;  %v19345_v37 = vadd.f32 1.0, %v16888_v62 }
 0x697   : > { %v5094_v52 = vmul.f32 %v19343_v54, %v19338_v24  ;;  %v5082_v7 = vadd.f32 %v16886_v8, %v5081_v60  ;;  %vm5099_vm2 = vweird.f32 %v19343_v54  ;;  %v5600_v24 = vadd.f32 %v5599_v58, %v5209_v38  ;;  %v15919_v58 = vld [vmem:[#allocation19 + $0x20] sm:$0xff] }
 0x698   : > { %16893 = vrcp.f32 %v19345_v37  ;;  %v16892_v2 = vpop.eup %16891  ;;  %v5585_v41 = vpop.f32.mrf.mxu3  ;;  %vm19375_vm6 = vmor %vm5098_vm3, %vm5099_vm2  ;;  %v5134_v25 = vand.u32 2147483648, %v19345_v37  ;;  %vm5128_vm13 = vweird.f32 %v19345_v37 }
 0x699   : > { %v5095_v49 = vsub.f32 1.0, %v5094_v52  ;;  %v5109_v39 = vmul.f32 %v16892_v2, %v5076_v32  ;;  %v5086_v10 = vsel %vm19355_vm1, %v16886_v8, %v5082_v7  ;;  %vm5114_vm4 = vweird.f32 %v16892_v2 }
 0x69a   : > { %v5091_v63 = vsel %vm19351_vm0, %v5090_v20, %v5086_v10  ;;  %vm5115_vm7 = vmor %vm5113_vm8, %vm5114_vm4  ;;  %v5120_v8 = vor.u32 1.1754944e-38, %v5119_v46  ;;  %v5132_v32 = vand.u32 2147483647, %v19345_v37  ;;  %v5586_v26 = vadd.f32 %v5585_v41, %v5572_v45  ;;  %v15953_v10 = vld [vmem:[#allocation27 + $0x30] sm:$0xff]  ;;  %v15922_v46 = vld [vmem:[#allocation19 + $0x38] sm:$0xff] }
 0x69b   : > { %v5096_v42 = vmul.f32 %v19343_v54, %v5095_v49  ;;  %v5110_v9 = vsub.f32 1.0, %v5109_v39  ;;  %v5138_v12 = vmul.f32 %v5091_v63, %v19322_v27  ;;  %v5135_v7 = vor.u32 1.1754944e-38, %v5134_v25  ;;  %6083 = vmatpush.bf16.msrb.mxu1 %v15922_v46  ;;  %v16752_v63 = vld [vmem:[#allocation2 + $0x1c] ss:$0 sm:$0xff] }
 0x69c   : > { %vm5133_vm15 = vcmp.eq.f32.partialorder %v5132_v32, 8.507059e+37 }
 0x69d   : > { %v5611_v23 = vpop.f32.mrf.mxu0  ;;  %v5097_v36 = vadd.f32 %v19343_v54, %v5096_v42  ;;  %v5111_v5 = vmul.f32 %v16892_v2, %v5110_v9  ;;  %v19390_v19 = vadd.f32 %v5584_v18, %v5138_v12  ;;  %v15951_v9 = vld [vmem:[#allocation27 + $0x20] sm:$0xff]  ;;  %v15957_v18 = vld [vmem:[#allocation27 + $0x50] sm:$0xff] }
 0x69e   : > { %v16894_v3 = vpop.eup %16893  ;;  %v5612_v56 = vadd.f32 %v5611_v23, %v5598_v21  ;;  %v15949_v21 = vld [vmem:[#allocation27 + $0x10] sm:$0xff]  ;;  %v15948_v23 = vld [vmem:[#allocation27 + $0x8] sm:$0xff] }
 0x69f   : > { %v5124_v17 = vmul.f32 %v16894_v3, %v19345_v37  ;;  %v5112_v6 = vadd.f32 %v16892_v2, %v5111_v5  ;;  %v5101_v15 = vsel %vm19375_vm6, %v19343_v54, %v5097_v36  ;;  %vm5129_vm12 = vweird.f32 %v16894_v3  ;;  %20523 = vst [vmem:[#allocation79_spill] sm:$0xff] %v19390_v19  ;;  %v15947_v36 = vld [vmem:[#allocation27] sm:$0xff]  ;;  %v15917_v5 = vld [vmem:[#allocation19 + $0x10] sm:$0xff] }
 0x6a0   : > { %v5106_v50 = vsel %vm19370_vm5, %v5105_v59, %v5101_v15  ;;  %vm5130_vm14 = vmor %vm5128_vm13, %vm5129_vm12  ;;  %v5626_v49 = vadd.f32 %v5625_v34, %v5612_v56  ;;  %v15921_v34 = vld [vmem:[#allocation19 + $0x30] sm:$0xff] }
 0x6a1   : > { %v5125_v1 = vsub.f32 1.0, %v5124_v17  ;;  %v5116_v22 = vsel %vm5115_vm7, %v16892_v2, %v5112_v6  ;;  %v5139_v40 = vmul.f32 %v5106_v50, %v19327_v51  ;;  %v15954_v51 = vld [vmem:[#allocation27 + $0x38] sm:$0xff]  ;;  %6084 = vmatpush.bf16.msrb.mxu1 %v15921_v34  ;;  %v15915_v17 = vld [vmem:[#allocation19] sm:$0xff] }
 0x6a2   : > { %v5639_v0 = vpop.f32.mrf.mxu3  ;;  %v5121_v62 = vsel %vm5118_vm11, %v5120_v8, %v5116_v22  ;;  %v15962_v6 = vld [vmem:[#allocation27 + $0x78] sm:$0xff]  ;;  %v15960_v22 = vld [vmem:[#allocation27 + $0x68] sm:$0xff] }
 0x6a3   : > { %v5126_v60 = vmul.f32 %v16894_v3, %v5125_v1  ;;  %v5140_v54 = vmul.f32 %v5121_v62, %v19330_v13  ;;  %v5627_v13 = vpop.f32.mrf.mxu2  ;;  %v5640_v41 = vadd.f32 %v5639_v0, %v5626_v49  ;;  %v15961_v1 = vld [vmem:[#allocation27 + $0x70] sm:$0xff]  ;;  %v15959_v62 = vld [vmem:[#allocation27 + $0x60] sm:$0xff] }
 0x6a5   : > { %v5613_v52 = vpop.f32.mrf.mxu0  ;;  %v5127_v38 = vadd.f32 %v16894_v3, %v5126_v60  ;;  %v19392_v2 = vadd.f32 %v5586_v26, %v5140_v54  ;;  %v19401_v42 = vadd.f32 %v5640_v41, %v5139_v40  ;;  %6085 = vmatpush.bf16.msrb.mxu1 %v15920_v11  ;;  %v15958_v54 = vld [vmem:[#allocation27 + $0x58] sm:$0xff]  ;;  %v16751_v11 = vld [vmem:[#allocation2 + $0x1e] ss:$0 sm:$0xff] }
 0x6a6   : > { %v5614_v27 = vadd.f32 %v5613_v52, %v5600_v24 }
 0x6a7   : > { %20524 = vst [vmem:[#allocation80_spill] sm:$0xff] %v19392_v2  ;;  %v5131_v33 = vsel %vm5130_vm14, %v16894_v3, %v5127_v38  ;;  %v19397_v48 = vpack.c.bf16 %v19392_v2, %v19390_v19  ;;  %v15918_v3 = vld [vmem:[#allocation19 + $0x18] sm:$0xff]  ;;  %v19804_v19 = vld [vmem:[#allocation34 + $0x40] sm:$0xf] }
 0x6a8   : > { %v5136_v39 = vsel %vm5133_vm15, %v5135_v7, %v5131_v33  ;;  %v5628_v37 = vadd.f32 %v5627_v13, %v5614_v27  ;;  %20525 = vst [vmem:[#allocation81_spill] sm:$0xff] %v19401_v42  ;;  %v15956_v27 = vld [vmem:[#allocation27 + $0x48] sm:$0xff]  ;;  %v15955_v13 = vld [vmem:[#allocation27 + $0x40] sm:$0xff] }
 0x6a9   : > { %v5141_v14 = vmul.f32 %v5136_v39, %v19335_v30  ;;  %5790 = vmatmul.bf16.vlgmr.msra.gmra.mxu1 %v19397_v48  ;;  %v15952_v30 = vld [vmem:[#allocation27 + $0x28] sm:$0xff] }
 0x6aa   : > { %v5641_v47 = vpop.f32.mrf.mxu3  ;;  %6086 = vmatpush.bf16.msrb.mxu1 %v15919_v58 }
 0x6ab   : > { %v5642_v20 = vadd.f32 %v5641_v47, %v5628_v37 }
 0x6ad   : > { %v19403_v16 = vadd.f32 %v5642_v20, %v5141_v14 }
 0x6ae   : > { %6087 = vmatpush.bf16.msrb.mxu1 %v15918_v3 }
 0x6af   : > { %20526 = vst [vmem:[#allocation82_spill] sm:$0xff] %v19403_v16  ;;  %v19407_v55 = vpack.c.bf16 %v19403_v16, %v19401_v42 }
 0x6b1   : > { %5804 = vmatmul.bf16.vlgmr.msra.gmra.mxu0 %v19407_v55  ;;  %6291 = vmatmul.bf16.vlgmr.msrb.gmra.mxu2 %v19407_v55  ;;  %v5939_v33 = vpop.f32.mrf.mxu2 }
 0x6b2   : > { %6564 = vmatpush.bf16.msra.mxu0 %v15954_v51  ;;  %6088 = vmatpush.bf16.msrb.mxu1 %v15917_v5 }
 0x6b6   : > { %6565 = vmatpush.bf16.msra.mxu0 %v15953_v10  ;;  %6089 = vmatpush.bf16.msrb.mxu1 %v15916_v61 }
 0x6ba   : > { %6566 = vmatpush.bf16.msra.mxu0 %v15952_v30  ;;  %6090 = vmatpush.bf16.msrb.mxu1 %v15915_v17 }
 0x6be   : > { %6567 = vmatpush.bf16.msra.mxu0 %v15951_v9  ;;  %6502 = vmatpush.bf16.msra.mxu1 %v15962_v6 }
 0x6c1   : > { %6277 = vmatmul.bf16.vlgmr.msrb.gmra.mxu0 %v19397_v48 }
 0x6c2   : > { %6568 = vmatpush.bf16.msra.mxu0 %v15950_v35  ;;  %6503 = vmatpush.bf16.msra.mxu1 %v15961_v1  ;;  %v6001_v49 = vpop.f32.mrf.mxu3  ;;  %v13699_v1 = vld [vmem:[#allocation28 + $0x70] sm:$0xf] }
 0x6c3   : > { %v6002_v34 = vadd.f32 %v6001_v49, %v5939_v33  ;;  %v13651_v33 = vld [vmem:[#allocation28 + $0x10] sm:$0xf] }
 0x6c6   : > { %6569 = vmatpush.bf16.msra.mxu0 %v15949_v21  ;;  %6504 = vmatpush.bf16.msra.mxu1 %v15960_v22  ;;  %v15984_v22 = vld [vmem:[#allocation28 + $0x64] sm:$0xf0] }
 0x6ca   : > { %6570 = vmatpush.bf16.msra.mxu0 %v15948_v23  ;;  %6505 = vmatpush.bf16.msra.mxu1 %v15959_v62  ;;  %v6003_v30 = vpop.f32.mrf.mxu3  ;;  %v15982_v62 = vld [vmem:[#allocation28 + $0x54] sm:$0xf0] }
 0x6ce   : > { %6571 = vmatpush.bf16.msra.mxu0 %v15947_v36  ;;  %6506 = vmatpush.bf16.msra.mxu1 %v15958_v54  ;;  %v5941_v36 = vpop.f32.mrf.mxu2  ;;  %v15946_v54 = vld [vmem:[#allocation24 + $0x38] sm:$0xff] }
 0x6cf   : > { %v6004_v58 = vadd.f32 %v6003_v30, %v5941_v36  ;;  %6368 = vmatpush.bf16.msrb.mxu3 %v15946_v54  ;;  %v13819_v36 = vld [vmem:[#allocation31 + $0x60] sm:$0xf] }
 0x6d1   : > { %6572 = vmatmul.bf16.vlgmr.msra.gmra.mxu0 %v18512_v57  ;;  %v6011_v17 = vadd.f32 %v16751_v11, %v6004_v58 }
 0x6d2   : > { %6507 = vmatpush.bf16.msra.mxu1 %v15957_v18  ;;  %v13667_v18 = vld [vmem:[#allocation28 + $0x30] sm:$0xf] }
 0x6d6   : > { %6508 = vmatpush.bf16.msra.mxu1 %v15956_v27  ;;  %v13659_v27 = vld [vmem:[#allocation28 + $0x20] sm:$0xf] }
 0x6da   : > { %6509 = vmatpush.bf16.msra.mxu1 %v15955_v13  ;;  %v15974_v13 = vld [vmem:[#allocation28 + $0x14] sm:$0xf0] }
 0x726   : > { %v5791_v28 = vpop.f32.mrf.mxu1 }
 0x727   : > { %v5792_v59 = vadd.f32 %v16752_v63, %v5791_v28 }
 0x72e   : > { %v5805_v4 = vpop.f32.mrf.mxu0  ;;  %v5793_v8 = vpop.f32.mrf.mxu1 }
 0x72f   : > { %v19413_v24 = vadd.f32 %v5805_v4, %v5792_v59  ;;  %v5794_v0 = vadd.f32 %v16752_v63, %v5793_v8  ;;  %v6010_v59 = vadd.f32 %v16751_v11, %v6002_v34  ;;  %v15941_v34 = vld [vmem:[#allocation24 + $0x10] sm:$0xff] }
 0x731   : > { %v5810_v15 = vsub.f32 0.0, %v19413_v24 }
 0x733   : > { %v5812_v45 = vmul.f32 1.442695, %v5810_v15 }
 0x735   : > { %16895 = vpow2.f32 %v5812_v45  ;;  %v15986_v45 = vld [vmem:[#allocation28 + $0x74] sm:$0xf0] }
 0x736   : > { %v5807_v12 = vpop.f32.mrf.mxu0 }
 0x737   : > { %v5808_v25 = vadd.f32 %v5807_v12, %v5794_v0  ;;  %v13700_v0 = vor.u32 %v15986_v45, %v13699_v1  ;;  %v13691_v12 = vld [vmem:[#allocation28 + $0x60] sm:$0xf] }
 0x739   : > { %v5811_v56 = vsub.f32 0.0, %v5808_v25  ;;  %6932 = vmatpush.bf16.msrb.mxu0 %v13700_v0 }
 0x73b   : > { %v16896_v60 = vpop.eup %16895  ;;  %v5814_v32 = vmul.f32 1.442695, %v5811_v56  ;;  %v13692_v56 = vor.u32 %v15984_v22, %v13691_v12  ;;  %v13795_v12 = vld [vmem:[#allocation31 + $0x30] sm:$0xf]  ;;  %v16010_v22 = vld [vmem:[#allocation31 + $0x34] sm:$0xf0] }
 0x73c   : > { %v5816_v50 = vadd.f32 1.0, %v16896_v60 }
 0x73d   : > { %16897 = vpow2.f32 %v5814_v32  ;;  %6933 = vmatpush.bf16.msrb.mxu0 %v13692_v56  ;;  %v13675_v32 = vld [vmem:[#allocation28 + $0x40] sm:$0xf] }
 0x73e   : > { %16899 = vrcp.f32 %v5816_v50  ;;  %v5829_v14 = vand.u32 2147483648, %v5816_v50  ;;  %vm5823_vm9 = vweird.f32 %v5816_v50  ;;  %v5827_v47 = vand.u32 2147483647, %v5816_v50  ;;  %v13787_v56 = vld [vmem:[#allocation31 + $0x20] sm:$0xf] }
 0x740   : > { %v5830_v9 = vor.u32 1.1754944e-38, %v5829_v14  ;;  %vm5828_vm1 = vcmp.eq.f32.partialorder %v5827_v47, 8.507059e+37  ;;  %v13643_v14 = vld [vmem:[#allocation28] sm:$0xf]  ;;  %v15972_v47 = vld [vmem:[#allocation28 + $0x4] sm:$0xf0] }
 0x743   : > { %v16898_v26 = vpop.eup %16897 }
 0x744   : > { %v16900_v52 = vpop.eup %16899  ;;  %v5817_v38 = vadd.f32 1.0, %v16898_v26  ;;  %v15978_v26 = vld [vmem:[#allocation28 + $0x34] sm:$0xf0] }
 0x745   : > { %v5819_v7 = vmul.f32 %v16900_v52, %v5816_v50  ;;  %vm5824_vm10 = vweird.f32 %v16900_v52 }
 0x746   : > { %16901 = vrcp.f32 %v5817_v38  ;;  %vm5825_vm0 = vmor %vm5823_vm9, %vm5824_vm10  ;;  %v5844_v35 = vand.u32 2147483648, %v5817_v38  ;;  %v5842_v23 = vand.u32 2147483647, %v5817_v38  ;;  %vm5838_vm3 = vweird.f32 %v5817_v38 }
 0x747   : > { %v5820_v40 = vsub.f32 1.0, %v5819_v7  ;;  %v15976_v7 = vld [vmem:[#allocation28 + $0x24] sm:$0xf0] }
 0x748   : > { %v5845_v5 = vor.u32 1.1754944e-38, %v5844_v35  ;;  %vm5843_vm5 = vcmp.eq.f32.partialorder %v5842_v23, 8.507059e+37  ;;  %v13660_v49 = vor.u32 %v15976_v7, %v13659_v27  ;;  %v13771_v27 = vld [vmem:[#allocation31] sm:$0xf]  ;;  %v16004_v7 = vld [vmem:[#allocation31 + $0x4] sm:$0xf0] }
 0x749   : > { %v5821_v39 = vmul.f32 %v16900_v52, %v5820_v40  ;;  %v15944_v40 = vld [vmem:[#allocation24 + $0x28] sm:$0xff] }
 0x74b   : > { %v5822_v41 = vadd.f32 %v16900_v52, %v5821_v39  ;;  %v13652_v39 = vor.u32 %v15974_v13, %v13651_v33  ;;  %v13772_v33 = vor.u32 %v16004_v7, %v13771_v27  ;;  %v15979_v27 = vld [vmem:[#allocation28 + $0x44] sm:$0xf]  ;;  %v13677_v7 = vld [vmem:[#allocation28 + $0x48] sm:$0xf0] }
 0x74c   : > { %v16902_v37 = vpop.eup %16901 }
 0x74d   : > { %v5834_v20 = vmul.f32 %v16902_v37, %v5817_v38  ;;  %v5826_v51 = vsel %vm5825_vm0, %v16900_v52, %v5822_v41  ;;  %vm5839_vm2 = vweird.f32 %v16902_v37  ;;  %v13668_v52 = vor.u32 %v15978_v26, %v13667_v18  ;;  %v15945_v38 = vld [vmem:[#allocation24 + $0x30] sm:$0xff]  ;;  %v15943_v41 = vld [vmem:[#allocation24 + $0x20] sm:$0xff] }
 0x74e   : > { %v5831_v46 = vsel %vm5828_vm1, %v5830_v9, %v5826_v51  ;;  %vm5840_vm4 = vmor %vm5838_vm3, %vm5839_vm2  ;;  %6369 = vmatpush.bf16.msrb.mxu3 %v15945_v38  ;;  %v13827_v51 = vld [vmem:[#allocation31 + $0x70] sm:$0xf]  ;;  %v15942_v9 = vld [vmem:[#allocation24 + $0x18] sm:$0xff]  ;;  %v6278_v38 = vpop.f32.mrf.mxu0 }
 0x74f   : > { %v5835_v10 = vsub.f32 1.0, %v5834_v20  ;;  %v5848_v28 = vmul.f32 %v5831_v46, %v19413_v24  ;;  %v13683_v24 = vld [vmem:[#allocation28 + $0x50] sm:$0xf]  ;;  %v13644_v20 = vor.u32 %v15972_v47, %v13643_v14  ;;  %v16016_v46 = vld [vmem:[#allocation31 + $0x64] sm:$0xf0] }
 0x750   : > { %v13684_v60 = vor.u32 %v15982_v62, %v13683_v24  ;;  %v13820_v11 = vor.u32 %v16016_v46, %v13819_v36  ;;  %v16008_v24 = vld [vmem:[#allocation31 + $0x24] sm:$0xf0]  ;;  %v13796_v62 = vor.u32 %v16010_v22, %v13795_v12  ;;  %v15967_v12 = vld [vmem:[#allocation25 + $0x20] sm:$0xff]  ;;  %v15966_v22 = vld [vmem:[#allocation25 + $0x18] sm:$0xff] }
 0x751   : > { %v5836_v21 = vmul.f32 %v16902_v37, %v5835_v10  ;;  %v6012_v6 = vadd.f32 %v6010_v59, %v5848_v28  ;;  %v16018_v10 = vld [vmem:[#allocation31 + $0x74] sm:$0xf0] }
 0x752   : > { %6934 = vmatpush.bf16.msrb.mxu0 %v13684_v60  ;;  %6370 = vmatpush.bf16.msrb.mxu3 %v15944_v40  ;;  %v13828_v35 = vor.u32 %v16018_v10, %v13827_v51  ;;  %v13788_v60 = vor.u32 %v16008_v24, %v13787_v56  ;;  %v16753_v51 = vld [vmem:[#allocation2 + $0x1f] ss:$0 sm:$0xff]  ;;  %v15964_v56 = vld [vmem:[#allocation25 + $0x8] sm:$0xff]  ;;  %v15963_v24 = vld [vmem:[#allocation25] sm:$0xff] }
 0x753   : > { %v5837_v3 = vadd.f32 %v16902_v37, %v5836_v21 }
 0x755   : > { %v5841_v63 = vsel %vm5840_vm4, %v16902_v37, %v5837_v3  ;;  %v16754_v37 = vld [vmem:[#allocation2 + $0x1d] ss:$0 sm:$0xff]  ;;  %v13811_v3 = vld [vmem:[#allocation31 + $0x50] sm:$0xf] }
 0x756   : > { %v5846_v61 = vsel %vm5843_vm5, %v5845_v5, %v5841_v63  ;;  %6371 = vmatpush.bf16.msrb.mxu3 %v15943_v41  ;;  %v16014_v5 = vld [vmem:[#allocation31 + $0x54] sm:$0xf0]  ;;  %v15940_v63 = vld [vmem:[#allocation24 + $0x8] sm:$0xff]  ;;  %v6292_v41 = vpop.f32.mrf.mxu2 }
 0x757   : > { %v5849_v4 = vmul.f32 %v5846_v61, %v5808_v25  ;;  %v15980_v25 = vld [vmem:[#allocation28 + $0x44] sm:$0xf0]  ;;  %v13812_v61 = vor.u32 %v16014_v5, %v13811_v3 }
 0x758   : > { %v13676_v50 = vor.u32 %v15980_v25, %v13675_v32  ;;  %v13779_v32 = vld [vmem:[#allocation31 + $0x10] sm:$0xf]  ;;  %v16006_v25 = vld [vmem:[#allocation31 + $0x14] sm:$0xf0] }
 0x759   : > { %v6013_v15 = vadd.f32 %v6011_v17, %v5849_v4  ;;  %v13803_v4 = vld [vmem:[#allocation31 + $0x40] sm:$0xf] }
 0x75a   : > { %6935 = vmatpush.bf16.msrb.mxu0 %v13676_v50  ;;  %6372 = vmatpush.bf16.msrb.mxu3 %v15942_v9  ;;  %v15969_v9 = vld [vmem:[#allocation25 + $0x30] sm:$0xff] }
 0x75b   : > { %v6030_v8 = vpack.c.bf16 %v6013_v15, %v6012_v6  ;;  %v16012_v6 = vld [vmem:[#allocation31 + $0x44] sm:$0xf0]  ;;  %v15939_v15 = vld [vmem:[#allocation24] sm:$0xff] }
 0x75d   : > { %6091 = vmatmul.bf16.vlgmr.msrb.gmra.mxu1 %v6030_v8  ;;  %v13804_v8 = vor.u32 %v16012_v6, %v13803_v4 }
 0x75e   : > { %6936 = vmatpush.bf16.msrb.mxu0 %v13668_v52  ;;  %6373 = vmatpush.bf16.msrb.mxu3 %v15941_v34  ;;  %v13780_v52 = vor.u32 %v16006_v25, %v13779_v32  ;;  %v15983_v25 = vld [vmem:[#allocation28 + $0x64] sm:$0xf] }
 0x762   : > { %6937 = vmatpush.bf16.msrb.mxu0 %v13660_v49  ;;  %6374 = vmatpush.bf16.msrb.mxu3 %v15940_v63 }
 0x766   : > { %6938 = vmatpush.bf16.msrb.mxu0 %v13652_v39  ;;  %6375 = vmatpush.bf16.msrb.mxu3 %v15939_v15 }
 0x76a   : > { %6939 = vmatpush.bf16.msrb.mxu0 %v13644_v20  ;;  %v15970_v20 = vld [vmem:[#allocation25 + $0x38] sm:$0xff] }
 0x76b   : > { %6655 = vmatpush.bf16.msra.mxu2 %v15970_v20  ;;  %v13661_v20 = vld [vmem:[#allocation28 + $0x28] sm:$0xf0] }
 0x76d   : > { %6510 = vmatmul.bf16.vlgmr.msra.gmra.mxu1 %v18495_v43 }
 0x76e   : > { %7270 = vmatpush.bf16.msra.mxu0 %v13828_v35  ;;  %v6280_v35 = vpop.f32.mrf.mxu0 }
 0x76f   : > { %v6281_v3 = vadd.f32 %v16753_v51, %v6280_v35  ;;  %6656 = vmatpush.bf16.msra.mxu2 %v15969_v9  ;;  %v15973_v9 = vld [vmem:[#allocation28 + $0x14] sm:$0xf]  ;;  %v13653_v35 = vld [vmem:[#allocation28 + $0x18] sm:$0xf0] }
 0x772   : > { %7271 = vmatpush.bf16.msra.mxu0 %v13820_v11 }
 0x776   : > { %7272 = vmatpush.bf16.msra.mxu0 %v13812_v61 }
 0x77a   : > { %7273 = vmatpush.bf16.msra.mxu0 %v13804_v8 }
 0x77e   : > { %7274 = vmatpush.bf16.msra.mxu0 %v13796_v62  ;;  %v15985_v62 = vld [vmem:[#allocation28 + $0x74] sm:$0xf] }
 0x782   : > { %7275 = vmatpush.bf16.msra.mxu0 %v13788_v60  ;;  %v13701_v60 = vld [vmem:[#allocation28 + $0x78] sm:$0xf0] }
 0x783   : > { %v13704_v32 = vor.u32 %v15985_v62, %v13701_v60 }
 0x786   : > { %7276 = vmatpush.bf16.msra.mxu0 %v13780_v52 }
 0x78a   : > { %7277 = vmatpush.bf16.msra.mxu0 %v13772_v33 }
 0x7da   : > { %v6092_v30 = vpop.f32.mrf.mxu1 }
 0x7db   : > { %v19418_v21 = vadd.f32 %v16754_v37, %v6092_v30 }
 0x7dd   : > { %v6097_v23 = vsub.f32 0.0, %v19418_v21 }
 0x7df   : > { %v6099_v58 = vmul.f32 1.442695, %v6097_v23 }
 0x7e1   : > { %16903 = vpow2.f32 %v6099_v58  ;;  %v6279_v58 = vadd.f32 %v16753_v51, %v6278_v38  ;;  %v16756_v38 = vld [vmem:[#allocation2 + $0x20] ss:$0 sm:$0xff] }
 0x7e2   : > { %v6094_v28 = vpop.f32.mrf.mxu1 }
 0x7e3   : > { %v19421_v59 = vadd.f32 %v16754_v37, %v6094_v28  ;;  %v6293_v6 = vadd.f32 %v6292_v41, %v6279_v58  ;;  %v15971_v58 = vld [vmem:[#allocation28 + $0x4] sm:$0xf] }
 0x7e5   : > { %v6098_v17 = vsub.f32 0.0, %v19421_v59 }
 0x7e7   : > { %v16904_v1 = vpop.eup %16903  ;;  %v6101_v45 = vmul.f32 1.442695, %v6098_v17  ;;  %v6294_v17 = vpop.f32.mrf.mxu2 }
 0x7e8   : > { %v6103_v0 = vadd.f32 1.0, %v16904_v1  ;;  %v6295_v15 = vadd.f32 %v6294_v17, %v6281_v3  ;;  %v13645_v3 = vld [vmem:[#allocation28 + $0x8] sm:$0xf0] }
 0x7e9   : > { %16905 = vpow2.f32 %v6101_v45 }
 0x7ea   : > { %16907 = vrcp.f32 %v6103_v0  ;;  %v6116_v37 = vand.u32 2147483648, %v6103_v0  ;;  %vm6110_vm8 = vweird.f32 %v6103_v0  ;;  %v6114_v14 = vand.u32 2147483647, %v6103_v0 }
 0x7ec   : > { %v6117_v23 = vor.u32 1.1754944e-38, %v6116_v37  ;;  %vm6115_vm7 = vcmp.eq.f32.partialorder %v6114_v14, 8.507059e+37 }
 0x7ef   : > { %v16906_v50 = vpop.eup %16905 }
 0x7f0   : > { %v16908_v54 = vpop.eup %16907  ;;  %v6104_v18 = vadd.f32 1.0, %v16906_v50  ;;  %v13693_v50 = vld [vmem:[#allocation28 + $0x68] sm:$0xf0] }
 0x7f1   : > { %v6106_v26 = vmul.f32 %v16908_v54, %v6103_v0  ;;  %vm6111_vm6 = vweird.f32 %v16908_v54 }
 0x7f2   : > { %16909 = vrcp.f32 %v6104_v18  ;;  %vm6112_vm11 = vmor %vm6110_vm8, %vm6111_vm6  ;;  %v6131_v36 = vand.u32 2147483648, %v6104_v18  ;;  %v6129_v34 = vand.u32 2147483647, %v6104_v18  ;;  %vm6125_vm13 = vweird.f32 %v6104_v18 }
 0x7f3   : > { %v6107_v49 = vsub.f32 1.0, %v6106_v26  ;;  %v13685_v26 = vld [vmem:[#allocation28 + $0x58] sm:$0xf0] }
 0x7f4   : > { %v6132_v28 = vor.u32 1.1754944e-38, %v6131_v36  ;;  %vm6130_vm15 = vcmp.eq.f32.partialorder %v6129_v34, 8.507059e+37  ;;  %v13656_v36 = vor.u32 %v15973_v9, %v13653_v35 }
 0x7f5   : > { %v6108_v40 = vmul.f32 %v16908_v54, %v6107_v49  ;;  %v13680_v49 = vor.u32 %v15979_v27, %v13677_v7 }
 0x7f7   : > { %v6109_v13 = vadd.f32 %v16908_v54, %v6108_v40 }
 0x7f8   : > { %v16910_v39 = vpop.eup %16909 }
 0x7f9   : > { %v6121_v47 = vmul.f32 %v16910_v39, %v6104_v18  ;;  %v6113_v10 = vsel %vm6112_vm11, %v16908_v54, %v6109_v13  ;;  %vm6126_vm12 = vweird.f32 %v16910_v39  ;;  %v13696_v54 = vor.u32 %v15983_v25, %v13693_v50  ;;  %v15981_v18 = vld [vmem:[#allocation28 + $0x54] sm:$0xf] }
 0x7fa   : > { %v6118_v11 = vsel %vm6115_vm7, %v6117_v23, %v6113_v10  ;;  %vm6127_vm14 = vmor %vm6125_vm13, %vm6126_vm12  ;;  %v13688_v52 = vor.u32 %v15981_v18, %v13685_v26  ;;  %v15977_v13 = vld [vmem:[#allocation28 + $0x34] sm:$0xf] }
 0x7fb   : > { %v6122_v30 = vsub.f32 1.0, %v6121_v47  ;;  %v6135_v63 = vmul.f32 %v6118_v11, %v19418_v21  ;;  %v15968_v21 = vld [vmem:[#allocation25 + $0x28] sm:$0xff]  ;;  %v15975_v47 = vld [vmem:[#allocation28 + $0x24] sm:$0xf] }
 0x7fc   : > { %6657 = vmatpush.bf16.msra.mxu2 %v15968_v21  ;;  %v13664_v51 = vor.u32 %v15975_v47, %v13661_v20  ;;  %v16017_v47 = vld [vmem:[#allocation31 + $0x74] sm:$0xf]  ;;  %v13829_v20 = vld [vmem:[#allocation31 + $0x78] sm:$0xf0] }
 0x7fd   : > { %v6123_v46 = vmul.f32 %v16910_v39, %v6122_v30  ;;  %v19426_v1 = vadd.f32 %v6293_v6, %v6135_v63  ;;  %v13832_v9 = vor.u32 %v16017_v47, %v13829_v20  ;;  %v13603_v20 = vld [vmem:[#allocation28 + $0xb0] sm:$0xf] }
 0x7ff   : > { %v6124_v5 = vadd.f32 %v16910_v39, %v6123_v46 }
 0x800   : > { %6658 = vmatpush.bf16.msra.mxu2 %v15967_v12 }
 0x801   : > { %v6128_v61 = vsel %vm6127_vm14, %v16910_v39, %v6124_v5  ;;  %v13669_v39 = vld [vmem:[#allocation28 + $0x38] sm:$0xf0]  ;;  %v13648_v5 = vor.u32 %v15971_v58, %v13645_v3  ;;  %v16011_v58 = vld [vmem:[#allocation31 + $0x44] sm:$0xf]  ;;  %v13805_v3 = vld [vmem:[#allocation31 + $0x48] sm:$0xf0] }
 0x802   : > { %v6133_v4 = vsel %vm6130_vm15, %v6132_v28, %v6128_v61  ;;  %v13672_v37 = vor.u32 %v15977_v13, %v13669_v39 }
 0x803   : > { %v6136_v8 = vmul.f32 %v6133_v4, %v19421_v59  ;;  %v15965_v59 = vld [vmem:[#allocation25 + $0x10] sm:$0xff]  ;;  %v6511_v4 = vpop.f32.mrf.mxu1 }
 0x804   : > { %6659 = vmatpush.bf16.msra.mxu2 %v15966_v22 }
 0x805   : > { %v19428_v45 = vadd.f32 %v6295_v15, %v6136_v8  ;;  %v6573_v15 = vpop.f32.mrf.mxu0 }
 0x807   : > { %v19432_v0 = vpack.c.bf16 %v19428_v45, %v19426_v1 }
 0x808   : > { %6660 = vmatpush.bf16.msra.mxu2 %v15965_v59 }
 0x809   : > { %6376 = vmatmul.bf16.vlgmr.msrb.gmra.mxu3 %v19432_v0  ;;  %6940 = vmatmul.bf16.vlgmr.msrb.gmra.mxu0 %v19432_v0 }
 0x80b   : > { %v6513_v60 = vpop.f32.mrf.mxu1 }
 0x80c   : > { %6661 = vmatpush.bf16.msra.mxu2 %v15964_v56 }
 0x80d   : > { %v6575_v18 = vpop.f32.mrf.mxu0 }
 0x80e   : > { %v6576_v27 = vadd.f32 %v6575_v18, %v6513_v60  ;;  %v13637_v60 = vld [vmem:[#allocation28 + $0xf8] sm:$0xf0]  ;;  %v13629_v18 = vld [vmem:[#allocation28 + $0xe8] sm:$0xf0] }
 0x810   : > { %6662 = vmatpush.bf16.msra.mxu2 %v15963_v24 }
 0x814   : > { %6946 = vmatpush.bf16.msrb.mxu2 %v13704_v32 }
 0x818   : > { %6947 = vmatpush.bf16.msrb.mxu2 %v13696_v54 }
 0x819   : > { %7278 = vmatmul.bf16.vlgmr.msra.gmra.mxu0 %v18512_v57 }
 0x81c   : > { %6948 = vmatpush.bf16.msrb.mxu2 %v13688_v52  ;;  %v6574_v52 = vadd.f32 %v6573_v15, %v6511_v4  ;;  %v13781_v15 = vld [vmem:[#allocation31 + $0x18] sm:$0xf0] }
 0x820   : > { %6949 = vmatpush.bf16.msrb.mxu2 %v13680_v49 }
 0x824   : > { %6950 = vmatpush.bf16.msrb.mxu2 %v13672_v37 }
 0x828   : > { %6951 = vmatpush.bf16.msrb.mxu2 %v13664_v51 }
 0x82c   : > { %6952 = vmatpush.bf16.msrb.mxu2 %v13656_v36  ;;  %v13821_v36 = vld [vmem:[#allocation31 + $0x68] sm:$0xf0] }
 0x830   : > { %6953 = vmatpush.bf16.msrb.mxu2 %v13648_v5  ;;  %v13808_v5 = vor.u32 %v16011_v58, %v13805_v3  ;;  %v13587_v3 = vld [vmem:[#allocation28 + $0x90] sm:$0xf] }
 0x88c   : > { %v6377_v40 = vpop.f32.mrf.mxu3 }
 0x88d   : > { %v19437_v33 = vadd.f32 %v16756_v38, %v6377_v40 }
 0x88f   : > { %v6382_v41 = vsub.f32 0.0, %v19437_v33 }
 0x891   : > { %v6384_v14 = vmul.f32 1.442695, %v6382_v41 }
 0x893   : > { %16911 = vpow2.f32 %v6384_v14 }
 0x894   : > { %v6379_v10 = vpop.f32.mrf.mxu3 }
 0x895   : > { %v6380_v30 = vadd.f32 %v16756_v38, %v6379_v10  ;;  %v16755_v38 = vld [vmem:[#allocation2 + $0x22] ss:$0 sm:$0xff] }
 0x896   : > { %v6582_v41 = vadd.f32 %v16755_v38, %v6574_v52  ;;  %v6583_v37 = vadd.f32 %v16755_v38, %v6576_v27  ;;  %v13619_v52 = vld [vmem:[#allocation28 + $0xd0] sm:$0xf]  ;;  %v15998_v38 = vld [vmem:[#allocation28 + $0xd4] sm:$0xf0]  ;;  %v15997_v27 = vld [vmem:[#allocation28 + $0xd4] sm:$0xf] }
 0x897   : > { %v6383_v23 = vsub.f32 0.0, %v6380_v30 }
 0x899   : > { %v16912_v46 = vpop.eup %16911  ;;  %v6386_v34 = vmul.f32 1.442695, %v6383_v23  ;;  %v16015_v23 = vld [vmem:[#allocation31 + $0x64] sm:$0xf] }
 0x89a   : > { %v6388_v11 = vadd.f32 1.0, %v16912_v46  ;;  %v13824_v46 = vor.u32 %v16015_v23, %v13821_v36  ;;  %v13595_v36 = vld [vmem:[#allocation28 + $0xa0] sm:$0xf] }
 0x89b   : > { %16913 = vpow2.f32 %v6386_v34  ;;  %v16013_v34 = vld [vmem:[#allocation31 + $0x54] sm:$0xf] }
 0x89c   : > { %16915 = vrcp.f32 %v6388_v11  ;;  %v6401_v22 = vand.u32 2147483648, %v6388_v11  ;;  %vm6395_vm9 = vweird.f32 %v6388_v11  ;;  %v6399_v59 = vand.u32 2147483647, %v6388_v11 }
 0x89e   : > { %v6402_v32 = vor.u32 1.1754944e-38, %v6401_v22  ;;  %vm6400_vm1 = vcmp.eq.f32.partialorder %v6399_v59, 8.507059e+37  ;;  %v13635_v59 = vld [vmem:[#allocation28 + $0xf0] sm:$0xf] }
 0x8a1   : > { %v16914_v28 = vpop.eup %16913 }
 0x8a2   : > { %v16916_v63 = vpop.eup %16915  ;;  %v6389_v61 = vadd.f32 1.0, %v16914_v28  ;;  %v13797_v28 = vld [vmem:[#allocation31 + $0x38] sm:$0xf0] }
 0x8a3   : > { %v6391_v17 = vmul.f32 %v16916_v63, %v6388_v11  ;;  %vm6396_vm10 = vweird.f32 %v16916_v63  ;;  %v13813_v11 = vld [vmem:[#allocation31 + $0x58] sm:$0xf0] }
 0x8a4   : > { %16917 = vrcp.f32 %v6389_v61  ;;  %vm6397_vm0 = vmor %vm6395_vm9, %vm6396_vm10  ;;  %v6416_v25 = vand.u32 2147483648, %v6389_v61  ;;  %v6414_v54 = vand.u32 2147483647, %v6389_v61  ;;  %vm6410_vm3 = vweird.f32 %v6389_v61 }
 0x8a5   : > { %v6392_v6 = vsub.f32 1.0, %v6391_v17  ;;  %v13789_v17 = vld [vmem:[#allocation31 + $0x28] sm:$0xf0] }
 0x8a6   : > { %v6417_v49 = vor.u32 1.1754944e-38, %v6416_v25  ;;  %vm6415_vm5 = vcmp.eq.f32.partialorder %v6414_v54, 8.507059e+37  ;;  %v16000_v25 = vld [vmem:[#allocation28 + $0xe4] sm:$0xf0] }
 0x8a7   : > { %v6393_v8 = vmul.f32 %v16916_v63, %v6392_v6  ;;  %v16005_v6 = vld [vmem:[#allocation31 + $0x14] sm:$0xf] }
 0x8a9   : > { %v6394_v21 = vadd.f32 %v16916_v63, %v6393_v8  ;;  %v13784_v8 = vor.u32 %v16005_v6, %v13781_v15  ;;  %v15988_v6 = vld [vmem:[#allocation28 + $0x84] sm:$0xf0]  ;;  %v15987_v15 = vld [vmem:[#allocation28 + $0x84] sm:$0xf] }
 0x8aa   : > { %v16918_v12 = vpop.eup %16917 }
 0x8ab   : > { %v6406_v56 = vmul.f32 %v16918_v12, %v6389_v61  ;;  %v6398_v24 = vsel %vm6397_vm0, %v16916_v63, %v6394_v21  ;;  %vm6411_vm2 = vweird.f32 %v16918_v12  ;;  %v16007_v61 = vld [vmem:[#allocation31 + $0x24] sm:$0xf] }
 0x8ac   : > { %v6403_v26 = vsel %vm6400_vm1, %v6402_v32, %v6398_v24  ;;  %vm6412_vm4 = vmor %vm6410_vm3, %vm6411_vm2  ;;  %v13792_v4 = vor.u32 %v16007_v61, %v13789_v17  ;;  %v16003_v21 = vld [vmem:[#allocation31 + $0x4] sm:$0xf]  ;;  %v16001_v24 = vld [vmem:[#allocation28 + $0xf4] sm:$0xf] }
 0x8ad   : > { %v6407_v62 = vsub.f32 1.0, %v6406_v56  ;;  %v6420_v40 = vmul.f32 %v6403_v26, %v19437_v33  ;;  %v13816_v33 = vor.u32 %v16013_v34, %v13813_v11  ;;  %v16002_v56 = vld [vmem:[#allocation28 + $0xf4] sm:$0xf0]  ;;  %v13640_v32 = vor.u32 %v16001_v24, %v13637_v60  ;;  %v15991_v34 = vld [vmem:[#allocation28 + $0xa4] sm:$0xf] }
 0x8ae   : > { %v16757_v17 = vld [vmem:[#allocation2 + $0x21] ss:$0 sm:$0xff]  ;;  %v13765_v60 = vld [vmem:[#allocation31 + $0xf8] sm:$0xf0] }
 0x8af   : > { %v6408_v50 = vmul.f32 %v16918_v12, %v6407_v62  ;;  %v6584_v51 = vadd.f32 %v6582_v41, %v6420_v40  ;;  %v13636_v62 = vor.u32 %v16002_v56, %v13635_v59  ;;  %6838 = vmatpush.bf16.msrb.mxu1 %v13640_v32  ;;  %v15995_v41 = vld [vmem:[#allocation28 + $0xc4] sm:$0xf] }
 0x8b1   : > { %v6409_v7 = vadd.f32 %v16918_v12, %v6408_v50  ;;  %6824 = vmatpush.bf16.msra.mxu3 %v13636_v62  ;;  %v15999_v50 = vld [vmem:[#allocation28 + $0xe4] sm:$0xf]  ;;  %v16033_v62 = vld [vmem:[#allocation31 + $0xf4] sm:$0xf] }
 0x8b2   : > { %v13632_v26 = vor.u32 %v15999_v50, %v13629_v18  ;;  %v13755_v50 = vld [vmem:[#allocation31 + $0xe0] sm:$0xf] }
 0x8b3   : > { %v6413_v13 = vsel %vm6412_vm4, %v16918_v12, %v6409_v7  ;;  %v13773_v12 = vld [vmem:[#allocation31 + $0x8] sm:$0xf0]  ;;  %v13620_v7 = vor.u32 %v15998_v38, %v13619_v52 }
 0x8b4   : > { %v6418_v39 = vsel %vm6415_vm5, %v6417_v49, %v6413_v13  ;;  %v13776_v22 = vor.u32 %v16003_v21, %v13773_v12  ;;  %6839 = vmatpush.bf16.msrb.mxu1 %v13632_v26  ;;  %v13621_v49 = vld [vmem:[#allocation28 + $0xd8] sm:$0xf0]  ;;  %v13611_v13 = vld [vmem:[#allocation28 + $0xc0] sm:$0xf]  ;;  %v13581_v21 = vld [vmem:[#allocation28 + $0x88] sm:$0xf0] }
 0x8b5   : > { %v6421_v14 = vmul.f32 %v6418_v39, %v6380_v30  ;;  %v16009_v30 = vld [vmem:[#allocation31 + $0x34] sm:$0xf]  ;;  %v13624_v40 = vor.u32 %v15997_v27, %v13621_v49  ;;  %v15996_v39 = vld [vmem:[#allocation28 + $0xc4] sm:$0xf0]  ;;  %v13763_v12 = vld [vmem:[#allocation31 + $0xf0] sm:$0xf]  ;;  %v13584_v56 = vor.u32 %v15987_v15, %v13581_v21 }
 0x8b6   : > { %v13800_v63 = vor.u32 %v16009_v30, %v13797_v28  ;;  %v15989_v30 = vld [vmem:[#allocation28 + $0x94] sm:$0xf]  ;;  %v16031_v26 = vld [vmem:[#allocation31 + $0xe4] sm:$0xf]  ;;  %v13757_v52 = vld [vmem:[#allocation31 + $0xe8] sm:$0xf0] }
 0x8b7   : > { %v6585_v10 = vadd.f32 %v6583_v37, %v6421_v14  ;;  %v13612_v37 = vor.u32 %v15996_v39, %v13611_v13  ;;  %v13613_v14 = vld [vmem:[#allocation28 + $0xc8] sm:$0xf0]  ;;  %v13760_v27 = vor.u32 %v16031_v26, %v13757_v52  ;;  %v16030_v49 = vld [vmem:[#allocation31 + $0xd4] sm:$0xf0]  ;;  %v13715_v15 = vld [vmem:[#allocation31 + $0x90] sm:$0xf] }
 0x8b8   : > { %6840 = vmatpush.bf16.msrb.mxu1 %v13624_v40  ;;  %v13616_v47 = vor.u32 %v15995_v41, %v13613_v14  ;;  %v16029_v40 = vld [vmem:[#allocation31 + $0xd4] sm:$0xf]  ;;  %v13749_v41 = vld [vmem:[#allocation31 + $0xd8] sm:$0xf0] }
 0x8b9   : > { %v6602_v35 = vpack.c.bf16 %v6585_v10, %v6584_v51  ;;  %v15994_v51 = vld [vmem:[#allocation28 + $0xb4] sm:$0xf0]  ;;  %v15993_v10 = vld [vmem:[#allocation28 + $0xb4] sm:$0xf]  ;;  %v13752_v14 = vor.u32 %v16029_v40, %v13749_v41 }
 0x8ba   : > { %v16021_v21 = vld [vmem:[#allocation31 + $0x94] sm:$0xf] }
 0x8bb   : > { %6663 = vmatmul.bf16.vlgmr.msra.gmra.mxu2 %v6602_v35  ;;  %v13605_v35 = vld [vmem:[#allocation28 + $0xb8] sm:$0xf0] }
 0x8bc   : > { %7284 = vmatpush.bf16.msra.mxu2 %v13832_v9  ;;  %6841 = vmatpush.bf16.msrb.mxu1 %v13616_v47  ;;  %v13604_v9 = vor.u32 %v15994_v51, %v13603_v20  ;;  %v13608_v23 = vor.u32 %v15993_v10, %v13605_v35  ;;  %v13739_v20 = vld [vmem:[#allocation31 + $0xc0] sm:$0xf]  ;;  %v16028_v51 = vld [vmem:[#allocation31 + $0xc4] sm:$0xf0]  ;;  %v13741_v35 = vld [vmem:[#allocation31 + $0xc8] sm:$0xf0] }
 0x8bd   : > { %v13740_v10 = vor.u32 %v16028_v51, %v13739_v20 }
 0x8c0   : > { %7285 = vmatpush.bf16.msra.mxu2 %v13824_v46  ;;  %6842 = vmatpush.bf16.msrb.mxu1 %v13608_v23  ;;  %v15992_v46 = vld [vmem:[#allocation28 + $0xa4] sm:$0xf0] }
 0x8c1   : > { %v13596_v11 = vor.u32 %v15992_v46, %v13595_v36 }
 0x8c4   : > { %7286 = vmatpush.bf16.msra.mxu2 %v13816_v33  ;;  %v13597_v33 = vld [vmem:[#allocation28 + $0xa8] sm:$0xf0] }
 0x8c5   : > { %v13600_v58 = vor.u32 %v15991_v34, %v13597_v33  ;;  %v16026_v33 = vld [vmem:[#allocation31 + $0xb4] sm:$0xf0] }
 0x8c7   : > { %6843 = vmatpush.bf16.msrb.mxu1 %v13600_v58  ;;  %v16025_v58 = vld [vmem:[#allocation31 + $0xb4] sm:$0xf] }
 0x8c8   : > { %7287 = vmatpush.bf16.msra.mxu2 %v13808_v5  ;;  %v15990_v5 = vld [vmem:[#allocation28 + $0x94] sm:$0xf0] }
 0x8c9   : > { %v13588_v28 = vor.u32 %v15990_v5, %v13587_v3  ;;  %v13733_v3 = vld [vmem:[#allocation31 + $0xb8] sm:$0xf0] }
 0x8cb   : > { %6954 = vmatmul.bf16.vlgmr.msrb.gmra.mxu2 %v19432_v0  ;;  %v13627_v0 = vld [vmem:[#allocation28 + $0xe0] sm:$0xf] }
 0x8cc   : > { %7288 = vmatpush.bf16.msra.mxu2 %v13800_v63  ;;  %v13628_v54 = vor.u32 %v16000_v25, %v13627_v0  ;;  %v13589_v63 = vld [vmem:[#allocation28 + $0x98] sm:$0xf0]  ;;  %v13768_v0 = vor.u32 %v16033_v62, %v13765_v60 }
 0x8cd   : > { %v13592_v61 = vor.u32 %v15989_v30, %v13589_v63  ;;  %v13736_v30 = vor.u32 %v16025_v58, %v13733_v3  ;;  %v16024_v63 = vld [vmem:[#allocation31 + $0xa4] sm:$0xf0]  ;;  %v16066_v3 = vld [vmem:[#allocation30 + $0xf4] sm:$0xf0] }
 0x8ce   : > { %6825 = vmatpush.bf16.msra.mxu3 %v13628_v54  ;;  %v16032_v54 = vld [vmem:[#allocation31 + $0xe4] sm:$0xf0] }
 0x8cf   : > { %6844 = vmatpush.bf16.msrb.mxu1 %v13592_v61  ;;  %v13756_v18 = vor.u32 %v16032_v54, %v13755_v50  ;;  %v16023_v61 = vld [vmem:[#allocation31 + $0xa4] sm:$0xf]  ;;  %v13709_v54 = vld [vmem:[#allocation31 + $0x88] sm:$0xf0] }
 0x8d0   : > { %7289 = vmatpush.bf16.msra.mxu2 %v13792_v4  ;;  %v13579_v4 = vld [vmem:[#allocation28 + $0x80] sm:$0xf]  ;;  %v16019_v50 = vld [vmem:[#allocation31 + $0x84] sm:$0xf] }
 0x8d2   : > { %6826 = vmatpush.bf16.msra.mxu3 %v13620_v7  ;;  %v13747_v7 = vld [vmem:[#allocation31 + $0xd0] sm:$0xf] }
 0x8d3   : > { %6845 = vmatpush.bf16.msrb.mxu1 %v13584_v56  ;;  %v13748_v39 = vor.u32 %v16030_v49, %v13747_v7 }
 0x8d4   : > { %7290 = vmatpush.bf16.msra.mxu2 %v13784_v8  ;;  %v13580_v8 = vor.u32 %v15988_v6, %v13579_v4 }
 0x8d6   : > { %6827 = vmatpush.bf16.msra.mxu3 %v13612_v37 }
 0x8d7   : > { %7176 = vmatpush.bf16.msra.mxu1 %v13768_v0  ;;  %v13707_v0 = vld [vmem:[#allocation31 + $0x80] sm:$0xf] }
 0x8d8   : > { %7291 = vmatpush.bf16.msra.mxu2 %v13776_v22  ;;  %v16034_v22 = vld [vmem:[#allocation31 + $0xf4] sm:$0xf0] }
 0x8d9   : > { %v13764_v24 = vor.u32 %v16034_v22, %v13763_v12  ;;  %v13717_v12 = vld [vmem:[#allocation31 + $0x98] sm:$0xf0] }
 0x8da   : > { %6828 = vmatpush.bf16.msra.mxu3 %v13604_v9  ;;  %v16027_v9 = vld [vmem:[#allocation31 + $0xc4] sm:$0xf]  ;;  %v13720_v60 = vor.u32 %v16021_v21, %v13717_v12  ;;  %v16050_v21 = vld [vmem:[#allocation30 + $0x74] sm:$0xf0]  ;;  %v16049_v12 = vld [vmem:[#allocation30 + $0x74] sm:$0xf] }
 0x8db   : > { %7292 = vmatmul.bf16.vlgmr.msra.gmra.mxu2 %v18512_v57  ;;  %7177 = vmatpush.bf16.msra.mxu1 %v13760_v27  ;;  %v13744_v46 = vor.u32 %v16027_v9, %v13741_v35 }
 0x8de   : > { %6829 = vmatpush.bf16.msra.mxu3 %v13596_v11  ;;  %v13731_v11 = vld [vmem:[#allocation31 + $0xb0] sm:$0xf] }
 0x8df   : > { %7178 = vmatpush.bf16.msra.mxu1 %v13752_v14  ;;  %v13732_v5 = vor.u32 %v16026_v33, %v13731_v11 }
 0x8e2   : > { %6830 = vmatpush.bf16.msra.mxu3 %v13588_v28  ;;  %v13723_v28 = vld [vmem:[#allocation31 + $0xa0] sm:$0xf] }
 0x8e3   : > { %7179 = vmatpush.bf16.msra.mxu1 %v13744_v46  ;;  %v13724_v4 = vor.u32 %v16024_v63, %v13723_v28  ;;  %v13947_v63 = vld [vmem:[#allocation30 + $0xe0] sm:$0xf] }
 0x8e6   : > { %6831 = vmatpush.bf16.msra.mxu3 %v13580_v8  ;;  %v16022_v8 = vld [vmem:[#allocation31 + $0x94] sm:$0xf0] }
 0x8e7   : > { %7180 = vmatpush.bf16.msra.mxu1 %v13736_v30  ;;  %v13716_v62 = vor.u32 %v16022_v8, %v13715_v15  ;;  %v13891_v8 = vld [vmem:[#allocation30 + $0x70] sm:$0xf] }
 0x8ea   : > { %7162 = vmatpush.bf16.msrb.mxu3 %v13764_v24 }
 0x8ee   : > { %7163 = vmatpush.bf16.msrb.mxu3 %v13756_v18 }
 0x8f2   : > { %7164 = vmatpush.bf16.msrb.mxu3 %v13748_v39 }
 0x8f6   : > { %7165 = vmatpush.bf16.msrb.mxu3 %v13740_v10 }
 0x8fa   : > { %7166 = vmatpush.bf16.msrb.mxu3 %v13732_v5  ;;  %v16065_v5 = vld [vmem:[#allocation30 + $0xf4] sm:$0xf] }
 0x8fe   : > { %7167 = vmatpush.bf16.msrb.mxu3 %v13724_v4 }
 0x902   : > { %7168 = vmatpush.bf16.msrb.mxu3 %v13716_v62  ;;  %v16062_v62 = vld [vmem:[#allocation30 + $0xd4] sm:$0xf0] }
 0x93e   : > { %v6664_v59 = vpop.f32.mrf.mxu2 }
 0x93f   : > { %v19443_v32 = vadd.f32 %v16757_v17, %v6664_v59 }
 0x941   : > { %v6669_v25 = vsub.f32 0.0, %v19443_v32 }
 0x943   : > { %v6671_v38 = vmul.f32 1.442695, %v6669_v25  ;;  %v16020_v25 = vld [vmem:[#allocation31 + $0x84] sm:$0xf0] }
 0x944   : > { %v13708_v52 = vor.u32 %v16020_v25, %v13707_v0  ;;  %v16061_v25 = vld [vmem:[#allocation30 + $0xd4] sm:$0xf] }
 0x945   : > { %16919 = vpow2.f32 %v6671_v38  ;;  %v13712_v38 = vor.u32 %v16019_v50, %v13709_v54  ;;  %v13941_v50 = vld [vmem:[#allocation30 + $0xd8] sm:$0xf0] }
 0x946   : > { %v6666_v13 = vpop.f32.mrf.mxu2  ;;  %7169 = vmatpush.bf16.msrb.mxu3 %v13708_v52  ;;  %v13944_v54 = vor.u32 %v16061_v25, %v13941_v50  ;;  %v16047_v52 = vld [vmem:[#allocation30 + $0x64] sm:$0xf] }
 0x947   : > { %v19446_v37 = vadd.f32 %v16757_v17, %v6666_v13  ;;  %v13725_v17 = vld [vmem:[#allocation31 + $0xa8] sm:$0xf0] }
 0x948   : > { %v13728_v6 = vor.u32 %v16023_v61, %v13725_v17  ;;  %v16064_v61 = vld [vmem:[#allocation30 + $0xe4] sm:$0xf0]  ;;  %v16063_v17 = vld [vmem:[#allocation30 + $0xe4] sm:$0xf] }
 0x949   : > { %v6670_v47 = vsub.f32 0.0, %v19446_v37  ;;  %v13948_v4 = vor.u32 %v16064_v61, %v13947_v63  ;;  %v13867_v63 = vld [vmem:[#allocation30 + $0x40] sm:$0xf]  ;;  %v16044_v61 = vld [vmem:[#allocation30 + $0x44] sm:$0xf0] }
 0x94a   : > { %7181 = vmatpush.bf16.msra.mxu1 %v13728_v6  ;;  %v13949_v6 = vld [vmem:[#allocation30 + $0xe8] sm:$0xf0] }
 0x94b   : > { %v16920_v23 = vpop.eup %16919  ;;  %v6673_v36 = vmul.f32 1.442695, %v6670_v47  ;;  %v13952_v15 = vor.u32 %v16063_v17, %v13949_v6  ;;  %v16043_v17 = vld [vmem:[#allocation30 + $0x44] sm:$0xf]  ;;  %v13868_v6 = vor.u32 %v16044_v61, %v13867_v63 }
 0x94c   : > { %v6675_v34 = vadd.f32 1.0, %v16920_v23 }
 0x94d   : > { %16921 = vpow2.f32 %v6673_v36 }
 0x94e   : > { %16923 = vrcp.f32 %v6675_v34  ;;  %7182 = vmatpush.bf16.msra.mxu1 %v13720_v60  ;;  %v6688_v49 = vand.u32 2147483648, %v6675_v34  ;;  %vm6682_vm8 = vweird.f32 %v6675_v34  ;;  %v6686_v40 = vand.u32 2147483647, %v6675_v34  ;;  %v19461_v60 = vld [vmem:[#allocation2 + $0x23] sm:$0x3] }
 0x950   : > { %v6689_v14 = vor.u32 1.1754944e-38, %v6688_v49  ;;  %vm6687_vm7 = vcmp.eq.f32.partialorder %v6686_v40, 8.507059e+37  ;;  %v13931_v49 = vld [vmem:[#allocation30 + $0xc0] sm:$0xf]  ;;  %v16060_v40 = vld [vmem:[#allocation30 + $0xc4] sm:$0xf0] }
 0x952   : > { %7183 = vmatpush.bf16.msra.mxu1 %v13712_v38 }
 0x953   : > { %v16922_v22 = vpop.eup %16921 }
 0x954   : > { %v16924_v59 = vpop.eup %16923  ;;  %v6676_v56 = vadd.f32 1.0, %v16922_v22  ;;  %v13892_v22 = vor.u32 %v16050_v21, %v13891_v8  ;;  %v6962_v21 = vperm.slane %v19461_v60, 0 }
 0x955   : > { %v6678_v24 = vmul.f32 %v16924_v59, %v6675_v34  ;;  %vm6683_vm6 = vweird.f32 %v16924_v59 }
 0x956   : > { %16925 = vrcp.f32 %v6676_v56  ;;  %vm6684_vm11 = vmor %vm6682_vm8, %vm6683_vm6  ;;  %v6703_v47 = vand.u32 2147483648, %v6676_v56  ;;  %v6701_v51 = vand.u32 2147483647, %v6676_v56  ;;  %vm6697_vm13 = vweird.f32 %v6676_v56 }
 0x957   : > { %v6679_v18 = vsub.f32 1.0, %v6678_v24  ;;  %v13939_v24 = vld [vmem:[#allocation30 + $0xd0] sm:$0xf] }
 0x958   : > { %v6704_v35 = vor.u32 1.1754944e-38, %v6703_v47  ;;  %vm6702_vm15 = vcmp.eq.f32.partialorder %v6701_v51, 8.507059e+37  ;;  %v13940_v0 = vor.u32 %v16062_v62, %v13939_v24  ;;  %v13933_v47 = vld [vmem:[#allocation30 + $0xc8] sm:$0xf0]  ;;  %v13875_v51 = vld [vmem:[#allocation30 + $0x50] sm:$0xf] }
 0x959   : > { %v6680_v26 = vmul.f32 %v16924_v59, %v6679_v18  ;;  %v13883_v18 = vld [vmem:[#allocation30 + $0x60] sm:$0xf]  ;;  %v16055_v62 = vld [vmem:[#allocation30 + $0xa4] sm:$0xf] }
 0x95b   : > { %v6681_v27 = vadd.f32 %v16924_v59, %v6680_v26  ;;  %v16048_v26 = vld [vmem:[#allocation30 + $0x64] sm:$0xf0] }
 0x95c   : > { %v16926_v7 = vpop.eup %16925  ;;  %v13884_v38 = vor.u32 %v16048_v26, %v13883_v18  ;;  %v13859_v18 = vld [vmem:[#allocation30 + $0x30] sm:$0xf]  ;;  %v16042_v26 = vld [vmem:[#allocation30 + $0x34] sm:$0xf0] }
 0x95d   : > { %v6693_v13 = vmul.f32 %v16926_v7, %v6676_v56  ;;  %v6685_v39 = vsel %vm6684_vm11, %v16924_v59, %v6681_v27  ;;  %vm6698_vm12 = vweird.f32 %v16926_v7  ;;  %v13893_v59 = vld [vmem:[#allocation30 + $0x78] sm:$0xf0]  ;;  %v13885_v27 = vld [vmem:[#allocation30 + $0x68] sm:$0xf0] }
 0x95e   : > { %v6690_v10 = vsel %vm6687_vm7, %v6689_v14, %v6685_v39  ;;  %vm6699_vm14 = vmor %vm6697_vm13, %vm6698_vm12  ;;  %v13896_v56 = vor.u32 %v16049_v12, %v13893_v59  ;;  %v6955_v39 = vpop.f32.mrf.mxu2  ;;  %v13932_v14 = vor.u32 %v16060_v40, %v13931_v49  ;;  %v16056_v59 = vld [vmem:[#allocation30 + $0xa4] sm:$0xf0]  ;;  %v13861_v49 = vld [vmem:[#allocation30 + $0x38] sm:$0xf0] }
 0x95f   : > { %v6694_v41 = vsub.f32 1.0, %v6693_v13  ;;  %v6707_v23 = vmul.f32 %v6690_v10, %v19443_v32  ;;  %v13955_v32 = vld [vmem:[#allocation30 + $0xf0] sm:$0xf]  ;;  %v16059_v13 = vld [vmem:[#allocation30 + $0xc4] sm:$0xf] }
 0x960   : > { %v13956_v30 = vor.u32 %v16066_v3, %v13955_v32  ;;  %7540 = vmatpush.bf16.msrb.mxu0 %v13896_v56  ;;  %v16046_v10 = vld [vmem:[#allocation30 + $0x54] sm:$0xf0]  ;;  %v16057_v3 = vld [vmem:[#allocation30 + $0xb4] sm:$0xf] }
 0x961   : > { %v6695_v20 = vmul.f32 %v16926_v7, %v6694_v41  ;;  %v19452_v11 = vadd.f32 %v6707_v23, %v19426_v1  ;;  %v6963_v41 = vperm.slane %v19461_v60, 1  ;;  %v13876_v23 = vor.u32 %v16046_v10, %v13875_v51  ;;  %v16058_v32 = vld [vmem:[#allocation30 + $0xb4] sm:$0xf0]  ;;  %v13909_v10 = vld [vmem:[#allocation30 + $0x98] sm:$0xf0] }
 0x963   : > { %v6696_v9 = vadd.f32 %v16926_v7, %v6695_v20  ;;  %v13936_v20 = vor.u32 %v16059_v13, %v13933_v47  ;;  %v16054_v47 = vld [vmem:[#allocation30 + $0x94] sm:$0xf0] }
 0x965   : > { %v6700_v36 = vsel %vm6699_vm14, %v16926_v7, %v6696_v9  ;;  %v13888_v7 = vor.u32 %v16047_v52, %v13885_v27  ;;  %v16045_v9 = vld [vmem:[#allocation30 + $0x54] sm:$0xf]  ;;  %v13860_v27 = vor.u32 %v16042_v26, %v13859_v18  ;;  %v13835_v26 = vld [vmem:[#allocation30] sm:$0xf] }
 0x966   : > { %v6705_v46 = vsel %vm6702_vm15, %v6704_v35, %v6700_v36  ;;  %v13877_v36 = vld [vmem:[#allocation30 + $0x58] sm:$0xf0]  ;;  %v6957_v52 = vpop.f32.mrf.mxu2 }
 0x967   : > { %v6708_v34 = vmul.f32 %v6705_v46, %v19446_v37  ;;  %v13957_v37 = vld [vmem:[#allocation30 + $0xf8] sm:$0xf0]  ;;  %7541 = vmatpush.bf16.msrb.mxu0 %v13888_v7  ;;  %v16041_v7 = vld [vmem:[#allocation30 + $0x34] sm:$0xf] }
 0x968   : > { %v13960_v28 = vor.u32 %v16065_v5, %v13957_v37 }
 0x969   : > { %v19455_v33 = vadd.f32 %v6708_v34, %v19428_v45  ;;  %v13880_v34 = vor.u32 %v16045_v9, %v13877_v36  ;;  %v13851_v36 = vld [vmem:[#allocation30 + $0x20] sm:$0xf] }
 0x96a   : > { %7554 = vmatpush.bf16.msrb.mxu2 %v13960_v28 }
 0x96b   : > { %v6743_v58 = vpack.c.bf16 %v19455_v33, %v19452_v11  ;;  %7542 = vmatpush.bf16.msrb.mxu0 %v13880_v34 }
 0x96d   : > { %6832 = vmatmul.bf16.vlgmr.msra.gmra.mxu3 %v6743_v58  ;;  %6846 = vmatmul.bf16.vlgmr.msrb.gmra.mxu1 %v6743_v58  ;;  %v13923_v58 = vld [vmem:[#allocation30 + $0xb0] sm:$0xf] }
 0x96e   : > { %7526 = vmatpush.bf16.msrb.mxu1 %v13956_v30  ;;  %7555 = vmatpush.bf16.msrb.mxu2 %v13952_v15  ;;  %v13924_v5 = vor.u32 %v16058_v32, %v13923_v58  ;;  %v13925_v30 = vld [vmem:[#allocation30 + $0xb8] sm:$0xf0]  ;;  %v13869_v15 = vld [vmem:[#allocation30 + $0x48] sm:$0xf0]  ;;  %v16039_v58 = vld [vmem:[#allocation30 + $0x24] sm:$0xf] }
 0x96f   : > { %7512 = vmatpush.bf16.msra.mxu3 %v13892_v22  ;;  %v13928_v28 = vor.u32 %v16057_v3, %v13925_v30  ;;  %v13872_v12 = vor.u32 %v16043_v17, %v13869_v15  ;;  %v13915_v22 = vld [vmem:[#allocation30 + $0xa0] sm:$0xf]  ;;  %v13853_v32 = vld [vmem:[#allocation30 + $0x28] sm:$0xf0]  ;;  %v16052_v17 = vld [vmem:[#allocation30 + $0x84] sm:$0xf0] }
 0x970   : > { %v13916_v24 = vor.u32 %v16056_v59, %v13915_v22  ;;  %v13856_v30 = vor.u32 %v16039_v58, %v13853_v32  ;;  %v13843_v22 = vld [vmem:[#allocation30 + $0x10] sm:$0xf]  ;;  %v16038_v59 = vld [vmem:[#allocation30 + $0x14] sm:$0xf0] }
 0x971   : > { %7543 = vmatpush.bf16.msrb.mxu0 %v13872_v12 }
 0x972   : > { %7527 = vmatpush.bf16.msrb.mxu1 %v13948_v4  ;;  %7556 = vmatpush.bf16.msrb.mxu2 %v13944_v54  ;;  %v6941_v4 = vpop.f32.mrf.mxu0 }
 0x973   : > { %7513 = vmatpush.bf16.msra.mxu3 %v13884_v38 }
 0x976   : > { %7528 = vmatpush.bf16.msrb.mxu1 %v13940_v0  ;;  %7557 = vmatpush.bf16.msrb.mxu2 %v13936_v20  ;;  %v13917_v0 = vld [vmem:[#allocation30 + $0xa8] sm:$0xf0]  ;;  %v16053_v20 = vld [vmem:[#allocation30 + $0x94] sm:$0xf] }
 0x977   : > { %7514 = vmatpush.bf16.msra.mxu3 %v13876_v23  ;;  %v13920_v54 = vor.u32 %v16055_v62, %v13917_v0  ;;  %v13912_v23 = vor.u32 %v16053_v20, %v13909_v10  ;;  %v13844_v62 = vor.u32 %v16038_v59, %v13843_v22  ;;  %v16037_v0 = vld [vmem:[#allocation30 + $0x14] sm:$0xf] }
 0x97a   : > { %7529 = vmatpush.bf16.msrb.mxu1 %v13932_v14  ;;  %7558 = vmatpush.bf16.msrb.mxu2 %v13928_v28  ;;  %v13907_v14 = vld [vmem:[#allocation30 + $0x90] sm:$0xf]  ;;  %v13899_v28 = vld [vmem:[#allocation30 + $0x80] sm:$0xf]  ;;  %v6943_v63 = vpop.f32.mrf.mxu0 }
 0x97b   : > { %7515 = vmatpush.bf16.msra.mxu3 %v13868_v6  ;;  %v13908_v51 = vor.u32 %v16054_v47, %v13907_v14  ;;  %v13900_v12 = vor.u32 %v16052_v17, %v13899_v28 }
 0x97d   : > { %7170 = vmatmul.bf16.vlgmr.msrb.gmra.mxu3 %v18495_v43  ;;  %7184 = vmatmul.bf16.vlgmr.msra.gmra.mxu1 %v18495_v43 }
 0x97e   : > { %7530 = vmatpush.bf16.msrb.mxu1 %v13924_v5  ;;  %7559 = vmatpush.bf16.msrb.mxu2 %v13920_v54 }
 0x97f   : > { %7516 = vmatpush.bf16.msra.mxu3 %v13860_v27  ;;  %v16035_v27 = vld [vmem:[#allocation30 + $0x4] sm:$0xf] }
 0x982   : > { %7531 = vmatpush.bf16.msrb.mxu1 %v13916_v24  ;;  %7560 = vmatpush.bf16.msrb.mxu2 %v13912_v23  ;;  %v7293_v23 = vpop.f32.mrf.mxu2 }
 0x986   : > { %7532 = vmatpush.bf16.msrb.mxu1 %v13908_v51 }
 0x98a   : > { %7533 = vmatpush.bf16.msrb.mxu1 %v13900_v12 }
 0x9ea   : > { %v6847_v35 = vpop.f32.mrf.mxu1 }
 0x9eb   : > { %v6956_v46 = vadd.f32 %v6955_v39, %v6847_v35  ;;  %v13864_v39 = vor.u32 %v16041_v7, %v13861_v49  ;;  %v13837_v7 = vld [vmem:[#allocation30 + $0x8] sm:$0xf0] }
 0x9ed   : > { %v19466_v37 = vadd.f32 %v6963_v41, %v6956_v46  ;;  %7544 = vmatpush.bf16.msrb.mxu0 %v13864_v39  ;;  %v16040_v46 = vld [vmem:[#allocation30 + $0x24] sm:$0xf0]  ;;  %v13840_v39 = vor.u32 %v16035_v27, %v13837_v7 }
 0x9ee   : > { %v13852_v34 = vor.u32 %v16040_v46, %v13851_v36 }
 0x9ef   : > { %v6971_v8 = vsub.f32 0.0, %v19466_v37 }
 0x9f0   : > { %v6833_v56 = vpop.f32.mrf.mxu3  ;;  %7517 = vmatpush.bf16.msra.mxu3 %v13852_v34 }
 0x9f1   : > { %v6976_v25 = vmul.f32 1.442695, %v6971_v8  ;;  %v6942_v50 = vadd.f32 %v6941_v4, %v6833_v56  ;;  %v13901_v4 = vld [vmem:[#allocation30 + $0x88] sm:$0xf0]  ;;  %7545 = vmatpush.bf16.msrb.mxu0 %v13856_v30 }
 0x9f2   : > { %v6849_v38 = vpop.f32.mrf.mxu1 }
 0x9f3   : > { %16927 = vpow2.f32 %v6976_v25  ;;  %v19472_v40 = vadd.f32 %v6962_v21, %v6942_v50  ;;  %v6958_v13 = vadd.f32 %v6957_v52, %v6849_v38  ;;  %v13845_v25 = vld [vmem:[#allocation30 + $0x18] sm:$0xf0]  ;;  %v16036_v52 = vld [vmem:[#allocation30 + $0x4] sm:$0xf0] }
 0x9f4   : > { %v13848_v54 = vor.u32 %v16037_v0, %v13845_v25  ;;  %7518 = vmatpush.bf16.msra.mxu3 %v13844_v62  ;;  %v13836_v38 = vor.u32 %v16036_v52, %v13835_v26  ;;  %v7295_v52 = vpop.f32.mrf.mxu2 }
 0x9f5   : > { %v6970_v9 = vsub.f32 0.0, %v19472_v40  ;;  %v19477_v35 = vadd.f32 %v6963_v41, %v6958_v13  ;;  %v16051_v41 = vld [vmem:[#allocation30 + $0x84] sm:$0xf] }
 0x9f6   : > { %v13904_v24 = vor.u32 %v16051_v41, %v13901_v4  ;;  %7546 = vmatpush.bf16.msrb.mxu0 %v13848_v54 }
 0x9f7   : > { %v6974_v3 = vmul.f32 1.442695, %v6970_v9  ;;  %v6973_v5 = vsub.f32 0.0, %v19477_v35 }
 0x9f8   : > { %v6835_v61 = vpop.f32.mrf.mxu3  ;;  %7561 = vmatpush.bf16.msrb.mxu2 %v13904_v24  ;;  %7519 = vmatpush.bf16.msra.mxu3 %v13836_v38 }
 0x9f9   : > { %v16928_v6 = vpop.eup %16927  ;;  %16929 = vpow2.f32 %v6974_v3  ;;  %v6980_v15 = vmul.f32 1.442695, %v6973_v5  ;;  %v6944_v8 = vadd.f32 %v6943_v63, %v6835_v61  ;;  %v19493_v5 = vld [vmem:[#allocation2 + $0x27] sm:$0x3]  ;;  %v7279_v61 = vpop.f32.mrf.mxu0 }
 0x9fa   : > { %v19480_v56 = vadd.f32 1.0, %v16928_v6  ;;  %7547 = vmatpush.bf16.msrb.mxu0 %v13840_v39  ;;  %v7185_v10 = vpop.f32.mrf.mxu1 }
 0x9fb   : > { %16931 = vpow2.f32 %v6980_v15  ;;  %v19484_v50 = vadd.f32 %v6962_v21, %v6944_v8  ;;  %v7301_v15 = vperm.slane %v19493_v5, 1  ;;  %v7300_v8 = vperm.slane %v19493_v5, 0 }
 0x9fc   : > { %16933 = vrcp.f32 %v19480_v56  ;;  %v7012_v3 = vand.u32 2147483648, %v19480_v56  ;;  %vm7006_vm9 = vweird.f32 %v19480_v56  ;;  %v7010_v17 = vand.u32 2147483647, %v19480_v56 }
 0x9fd   : > { %v6972_v18 = vsub.f32 0.0, %v19484_v50  ;;  %v7294_v7 = vadd.f32 %v7293_v23, %v7185_v10 }
 0x9fe   : > { %v7013_v22 = vor.u32 1.1754944e-38, %v7012_v3  ;;  %vm7011_vm2 = vcmp.eq.f32.partialorder %v7010_v17, 8.507059e+37 }
 0x9ff   : > { %v16930_v49 = vpop.eup %16929  ;;  %v6978_v13 = vmul.f32 1.442695, %v6972_v18 }
 0xa00   : > { %v6982_v60 = vadd.f32 1.0, %v16930_v49  ;;  %v7171_v30 = vpop.f32.mrf.mxu3  ;;  %v14059_v49 = vld [vmem:[#allocation33 + $0x2c0] sm:$0xf] }
 0xa01   : > { %v16932_v21 = vpop.eup %16931  ;;  %16935 = vpow2.f32 %v6978_v13  ;;  %v7281_v3 = vpop.f32.mrf.mxu0  ;;  %v16157_v13 = vld [vmem:[#allocation33 + $0x2cc] sm:$0xf0] }
 0xa02   : > { %v16934_v14 = vpop.eup %16933  ;;  %16937 = vrcp.f32 %v6982_v60  ;;  %v6985_v20 = vadd.f32 1.0, %v16932_v21  ;;  %v6995_v59 = vand.u32 2147483647, %v6982_v60  ;;  %v6997_v0 = vand.u32 2147483648, %v6982_v60  ;;  %v7187_v25 = vpop.f32.mrf.mxu1 }
 0xa03   : > { %v7002_v47 = vmul.f32 %v16934_v14, %v19480_v56  ;;  %vm7007_vm10 = vweird.f32 %v16934_v14  ;;  %vm6991_vm4 = vweird.f32 %v6982_v60  ;;  %v7296_v21 = vadd.f32 %v7295_v52, %v7187_v25  ;;  %v16161_v25 = vld [vmem:[#allocation33 + $0x2ec] sm:$0xf0]  ;;  %v16162_v52 = vld [vmem:[#allocation33 + $0x2f4] sm:$0xf0] }
 0xa04   : > { %16939 = vrcp.f32 %v6985_v20  ;;  %vm19497_vm0 = vmor %vm7006_vm9, %vm7007_vm10  ;;  %v7042_v56 = vand.u32 2147483648, %v6985_v20  ;;  %v7040_v26 = vand.u32 2147483647, %v6985_v20  ;;  %vm19510_vm6 = vcmp.eq.f32.partialorder %v6995_v59, 8.507059e+37 }
 0xa05   : > { %v7003_v51 = vsub.f32 1.0, %v7002_v47  ;;  %vm7036_vm8 = vweird.f32 %v6985_v20  ;;  %v6998_v47 = vor.u32 1.1754944e-38, %v6997_v0  ;;  %v7307_v17 = vadd.f32 %v7301_v15, %v7296_v21 }
 0xa06   : > { %vm7041_vm7 = vcmp.eq.f32.partialorder %v7040_v26, 8.507059e+37  ;;  %v14060_v21 = vor.u32 %v16157_v13, %v14059_v49  ;;  %v13995_v49 = vld [vmem:[#allocation33 + $0x240] sm:$0xf]  ;;  %v16141_v13 = vld [vmem:[#allocation33 + $0x24c] sm:$0xf0] }
 0xa07   : > { %v16936_v9 = vpop.eup %16935  ;;  %v7004_v36 = vmul.f32 %v16934_v14, %v7003_v51 }
 0xa08   : > { %v16938_v46 = vpop.eup %16937  ;;  %v19489_v34 = vadd.f32 1.0, %v16936_v9 }
 0xa09   : > { %v6987_v58 = vmul.f32 %v16938_v46, %v6982_v60  ;;  %v7005_v32 = vadd.f32 %v16934_v14, %v7004_v36  ;;  %vm6992_vm1 = vweird.f32 %v16938_v46  ;;  %v7043_v60 = vor.u32 1.1754944e-38, %v7042_v56  ;;  %v7173_v36 = vpop.f32.mrf.mxu3 }
 0xa0a   : > { %16941 = vrcp.f32 %v19489_v34  ;;  %v16940_v28 = vpop.eup %16939  ;;  %vm19506_vm5 = vmor %vm6991_vm4, %vm6992_vm1  ;;  %v7027_v23 = vand.u32 2147483648, %v19489_v34  ;;  %vm7021_vm13 = vweird.f32 %v19489_v34 }
 0xa0b   : > { %v6988_v63 = vsub.f32 1.0, %v6987_v58  ;;  %v7032_v41 = vmul.f32 %v16940_v28, %v6985_v20  ;;  %v7009_v12 = vsel %vm19497_vm0, %v16934_v14, %v7005_v32  ;;  %vm7037_vm3 = vweird.f32 %v16940_v28 }
 0xa0c   : > { %v7014_v38 = vsel %vm7011_vm2, %v7013_v22, %v7009_v12  ;;  %vm7038_vm11 = vmor %vm7036_vm8, %vm7037_vm3  ;;  %v7025_v20 = vand.u32 2147483647, %v19489_v34  ;;  %v7028_v4 = vor.u32 1.1754944e-38, %v7027_v23  ;;  %v14069_v23 = vld [vmem:[#allocation33 + $0x2d8] sm:$0xf0] }
 0xa0d   : > { %v6989_v6 = vmul.f32 %v16938_v46, %v6988_v63  ;;  %v7033_v24 = vsub.f32 1.0, %v7032_v41  ;;  %v7047_v10 = vmul.f32 %v7014_v38, %v19466_v37  ;;  %v7305_v63 = vadd.f32 %v7301_v15, %v7294_v7  ;;  %v16160_v7 = vld [vmem:[#allocation33 + $0x2ec] sm:$0xf] }
 0xa0e   : > { %v7280_v37 = vadd.f32 %v7279_v61, %v7171_v30  ;;  %vm7026_vm15 = vcmp.eq.f32.partialorder %v7025_v20, 8.507059e+37  ;;  %v14075_v61 = vld [vmem:[#allocation33 + $0x2e0] sm:$0xf]  ;;  %v16151_v20 = vld [vmem:[#allocation33 + $0x2a4] sm:$0xf] }
 0xa0f   : > { %v6990_v62 = vadd.f32 %v16938_v46, %v6989_v6  ;;  %v7034_v18 = vmul.f32 %v16940_v28, %v7033_v24  ;;  %v7309_v6 = vadd.f32 %v7305_v63, %v7047_v10  ;;  %v14076_v26 = vor.u32 %v16161_v25, %v14075_v61  ;;  %v16154_v63 = vld [vmem:[#allocation33 + $0x2b4] sm:$0xf0]  ;;  %v14011_v61 = vld [vmem:[#allocation33 + $0x260] sm:$0xf]  ;;  %v16145_v25 = vld [vmem:[#allocation33 + $0x26c] sm:$0xf0] }
 0xa10   : > { %v16942_v54 = vpop.eup %16941 }
 0xa11   : > { %v7017_v27 = vmul.f32 %v16942_v54, %v19489_v34  ;;  %v7035_v39 = vadd.f32 %v16940_v28, %v7034_v18  ;;  %v6994_v14 = vsel %vm19506_vm5, %v16938_v46, %v6990_v62  ;;  %vm7022_vm12 = vweird.f32 %v16942_v54  ;;  %v16159_v18 = vld [vmem:[#allocation33 + $0x2e4] sm:$0xf]  ;;  %7909 = vmatpush.bf16.msrb.mxu3 %v14076_v26 }
 0xa12   : > { %v6999_v46 = vsel %vm19510_vm6, %v6998_v47, %v6994_v14  ;;  %vm7023_vm14 = vmor %vm7021_vm13, %vm7022_vm12  ;;  %v14061_v14 = vld [vmem:[#allocation33 + $0x2d0] sm:$0xf0]  ;;  %v14067_v47 = vld [vmem:[#allocation33 + $0x2c8] sm:$0xf]  ;;  %v14012_v26 = vor.u32 %v16145_v25, %v14011_v61 }
 0xa13   : > { %v7018_v51 = vsub.f32 1.0, %v7017_v27  ;;  %v7039_v9 = vsel %vm7038_vm11, %v16940_v28, %v7035_v39  ;;  %v7282_v28 = vadd.f32 %v7281_v3, %v7173_v36  ;;  %v7046_v22 = vmul.f32 %v6999_v46, %v19472_v40  ;;  %v14077_v40 = vld [vmem:[#allocation33 + $0x2f0] sm:$0xf0]  ;;  %v16155_v39 = vld [vmem:[#allocation33 + $0x2c4] sm:$0xf] }
 0xa14   : > { %v7044_v58 = vsel %vm7041_vm7, %v7043_v60, %v7039_v9  ;;  %v14080_v38 = vor.u32 %v16159_v18, %v14077_v40  ;;  %v16158_v60 = vld [vmem:[#allocation33 + $0x2d4] sm:$0xf0]  ;;  %v16156_v9 = vld [vmem:[#allocation33 + $0x2cc] sm:$0xf]  ;;  %v14045_v46 = vld [vmem:[#allocation33 + $0x2b0] sm:$0xf0] }
 0xa15   : > { %v7019_v32 = vmul.f32 %v16942_v54, %v7018_v51  ;;  %v7049_v5 = vmul.f32 %v7044_v58, %v19477_v35  ;;  %v7304_v35 = vadd.f32 %v7300_v8, %v7280_v37  ;;  %v7306_v56 = vadd.f32 %v7300_v8, %v7282_v28  ;;  %7910 = vmatpush.bf16.msrb.mxu3 %v14060_v21  ;;  %v14043_v58 = vld [vmem:[#allocation33 + $0x2a0] sm:$0xf]  ;;  %v16152_v37 = vld [vmem:[#allocation33 + $0x2ac] sm:$0xf]  ;;  %v14053_v28 = vld [vmem:[#allocation33 + $0x2b8] sm:$0xf0] }
 0xa16   : > { %7923 = vmatpush.bf16.msra.mxu1 %v14080_v38  ;;  %v14064_v51 = vor.u32 %v16155_v39, %v14061_v14  ;;  %v14068_v10 = vor.u32 %v16158_v60, %v14067_v47  ;;  %v14072_v36 = vor.u32 %v16156_v9, %v14069_v23  ;;  %v16143_v18 = vld [vmem:[#allocation33 + $0x264] sm:$0xf]  ;;  %v14013_v40 = vld [vmem:[#allocation33 + $0x270] sm:$0xf0]  ;;  %v13996_v21 = vor.u32 %v16141_v13, %v13995_v49  ;;  %v14003_v47 = vld [vmem:[#allocation33 + $0x248] sm:$0xf] }
 0xa17   : > { %v7020_v41 = vadd.f32 %v16942_v54, %v7019_v32  ;;  %v7311_v12 = vadd.f32 %v7307_v17, %v7049_v5  ;;  %v7308_v15 = vadd.f32 %v7304_v35, %v7046_v22  ;;  %v16153_v32 = vld [vmem:[#allocation33 + $0x2ac] sm:$0xf0]  ;;  %v14051_v5 = vld [vmem:[#allocation33 + $0x2a8] sm:$0xf]  ;;  %v14048_v17 = vor.u32 %v16151_v20, %v14045_v46  ;;  %v16147_v22 = vld [vmem:[#allocation33 + $0x284] sm:$0xf] }
 0xa18   : > { %v14044_v3 = vor.u32 %v16153_v32, %v14043_v58  ;;  %v14016_v38 = vor.u32 %v16143_v18, %v14013_v40  ;;  %v16139_v39 = vld [vmem:[#allocation33 + $0x244] sm:$0xf]  ;;  %v13997_v14 = vld [vmem:[#allocation33 + $0x250] sm:$0xf0]  ;;  %v16142_v60 = vld [vmem:[#allocation33 + $0x254] sm:$0xf0] }
 0xa19   : > { %v7024_v59 = vsel %vm7023_vm14, %v16942_v54, %v7020_v41  ;;  %v7345_v62 = vpack.c.bf16 %v7311_v12, %v7309_v6  ;;  %v14083_v54 = vld [vmem:[#allocation33 + $0x2e8] sm:$0xf]  ;;  %v14052_v41 = vor.u32 %v16154_v63, %v14051_v5  ;;  %v14027_v6 = vld [vmem:[#allocation33 + $0x280] sm:$0xf]  ;;  %v16149_v12 = vld [vmem:[#allocation33 + $0x28c] sm:$0xf0] }
 0xa1a   : > { %v7029_v24 = vsel %vm7026_vm15, %v7028_v4, %v7024_v59  ;;  %v14084_v27 = vor.u32 %v16162_v52, %v14083_v54  ;;  %7924 = vmatpush.bf16.msra.mxu1 %v14064_v51  ;;  %7911 = vmatpush.bf16.msrb.mxu3 %v14044_v3  ;;  %v14056_v4 = vor.u32 %v16152_v37, %v14053_v28  ;;  %v14019_v54 = vld [vmem:[#allocation33 + $0x268] sm:$0xf]  ;;  %v16146_v52 = vld [vmem:[#allocation33 + $0x274] sm:$0xf0]  ;;  %v16140_v9 = vld [vmem:[#allocation33 + $0x24c] sm:$0xf] }
 0xa1b   : > { %v7048_v0 = vmul.f32 %v7029_v24, %v19484_v50  ;;  %7534 = vmatmul.bf16.vlgmr.msrb.gmra.mxu1 %v7345_v62  ;;  %7562 = vmatmul.bf16.vlgmr.msrb.gmra.mxu2 %v7345_v62  ;;  %v14085_v50 = vld [vmem:[#allocation33 + $0x2f8] sm:$0xf0]  ;;  %v14028_v59 = vor.u32 %v16149_v12, %v14027_v6  ;;  %v14029_v24 = vld [vmem:[#allocation33 + $0x290] sm:$0xf0]  ;;  %v14035_v62 = vld [vmem:[#allocation33 + $0x288] sm:$0xf]  ;;  %v14000_v51 = vor.u32 %v16139_v39, %v13997_v14 }
 0xa1c   : > { %v14088_v8 = vor.u32 %v16160_v7, %v14085_v50  ;;  %7937 = vmatpush.bf16.msra.mxu0 %v14084_v27  ;;  %v14032_v35 = vor.u32 %v16147_v22, %v14029_v24  ;;  %v14020_v27 = vor.u32 %v16146_v52, %v14019_v54  ;;  %v16144_v7 = vld [vmem:[#allocation33 + $0x26c] sm:$0xf]  ;;  %v14021_v50 = vld [vmem:[#allocation33 + $0x278] sm:$0xf0]  ;;  %v13979_v58 = vld [vmem:[#allocation33 + $0x220] sm:$0xf] }
 0xa1d   : > { %v7310_v34 = vadd.f32 %v7306_v56, %v7048_v0  ;;  %v16150_v0 = vld [vmem:[#allocation33 + $0x294] sm:$0xf0]  ;;  %v14005_v23 = vld [vmem:[#allocation33 + $0x258] sm:$0xf0]  ;;  %v16137_v32 = vld [vmem:[#allocation33 + $0x22c] sm:$0xf0] }
 0xa1e   : > { %7951 = vmatpush.bf16.msra.mxu2 %v14088_v8  ;;  %7925 = vmatpush.bf16.msra.mxu1 %v14048_v17  ;;  %v14036_v56 = vor.u32 %v16150_v0, %v14035_v62  ;;  %v14024_v8 = vor.u32 %v16144_v7, %v14021_v50  ;;  %v16135_v20 = vld [vmem:[#allocation33 + $0x224] sm:$0xf]  ;;  %v13980_v3 = vor.u32 %v16137_v32, %v13979_v58  ;;  %v13981_v46 = vld [vmem:[#allocation33 + $0x230] sm:$0xf0]  ;;  %v13987_v5 = vld [vmem:[#allocation33 + $0x228] sm:$0xf] }
 0xa1f   : > { %v7344_v30 = vpack.c.bf16 %v7310_v34, %v7308_v15  ;;  %v16148_v15 = vld [vmem:[#allocation33 + $0x28c] sm:$0xf]  ;;  %v14037_v34 = vld [vmem:[#allocation33 + $0x298] sm:$0xf0]  ;;  %7912 = vmatpush.bf16.msrb.mxu3 %v14028_v59  ;;  %v16138_v63 = vld [vmem:[#allocation33 + $0x234] sm:$0xf0]  ;;  %v13984_v17 = vor.u32 %v16135_v20, %v13981_v46 }
 0xa20   : > { %7938 = vmatpush.bf16.msra.mxu0 %v14068_v10  ;;  %v14004_v10 = vor.u32 %v16142_v60, %v14003_v47  ;;  %v16136_v37 = vld [vmem:[#allocation33 + $0x22c] sm:$0xf]  ;;  %v13989_v28 = vld [vmem:[#allocation33 + $0x238] sm:$0xf0]  ;;  %v13963_v6 = vld [vmem:[#allocation33 + $0x200] sm:$0xf] }
 0xa21   : > { %7520 = vmatmul.bf16.vlgmr.msra.gmra.mxu3 %v7344_v30  ;;  %7548 = vmatmul.bf16.vlgmr.msrb.gmra.mxu0 %v7344_v30  ;;  %v14040_v30 = vor.u32 %v16148_v15, %v14037_v34  ;;  %v16133_v12 = vld [vmem:[#allocation33 + $0x20c] sm:$0xf0]  ;;  %v16131_v22 = vld [vmem:[#allocation33 + $0x204] sm:$0xf]  ;;  %v13965_v24 = vld [vmem:[#allocation33 + $0x210] sm:$0xf0] }
 0xa22   : > { %7952 = vmatpush.bf16.msra.mxu2 %v14072_v36  ;;  %7926 = vmatpush.bf16.msra.mxu1 %v14032_v35  ;;  %v14008_v36 = vor.u32 %v16140_v9, %v14005_v23  ;;  %v13964_v59 = vor.u32 %v16133_v12, %v13963_v6  ;;  %v13971_v62 = vld [vmem:[#allocation33 + $0x208] sm:$0xf]  ;;  %v16134_v0 = vld [vmem:[#allocation33 + $0x214] sm:$0xf0]  ;;  %v13968_v35 = vor.u32 %v16131_v22, %v13965_v24  ;;  %v16132_v15 = vld [vmem:[#allocation33 + $0x20c] sm:$0xf] }
 0xa23   : > { %7913 = vmatpush.bf16.msrb.mxu3 %v14012_v26  ;;  %v13973_v34 = vld [vmem:[#allocation33 + $0x218] sm:$0xf0]  ;;  %v16097_v25 = vld [vmem:[#allocation33 + $0xec] sm:$0xf0]  ;;  %v14331_v18 = vld [vmem:[#allocation33 + $0x1e0] sm:$0xf] }
 0xa24   : > { %7939 = vmatpush.bf16.msra.mxu0 %v14052_v41  ;;  %v13988_v41 = vor.u32 %v16138_v63, %v13987_v5  ;;  %v13976_v61 = vor.u32 %v16132_v15, %v13973_v34  ;;  %v16129_v26 = vld [vmem:[#allocation33 + $0x1ec] sm:$0xf0]  ;;  %v16095_v52 = vld [vmem:[#allocation33 + $0xe4] sm:$0xf]  ;;  %v14333_v50 = vld [vmem:[#allocation33 + $0x1f0] sm:$0xf0] }
 0xa25   : > { %v14332_v54 = vor.u32 %v16129_v26, %v14331_v18  ;;  %v16093_v49 = vld [vmem:[#allocation33 + $0xcc] sm:$0xf0]  ;;  %v16091_v47 = vld [vmem:[#allocation33 + $0xc4] sm:$0xf]  ;;  %v14317_v9 = vld [vmem:[#allocation33 + $0x1d0] sm:$0xf0] }
 0xa26   : > { %7953 = vmatpush.bf16.msra.mxu2 %v14056_v4  ;;  %7927 = vmatpush.bf16.msra.mxu1 %v14016_v38  ;;  %v13992_v4 = vor.u32 %v16136_v37, %v13989_v28  ;;  %v14205_v38 = vld [vmem:[#allocation33 + $0xf0] sm:$0xf0]  ;;  %v16125_v14 = vld [vmem:[#allocation33 + $0x1cc] sm:$0xf0]  ;;  %v14171_v32 = vld [vmem:[#allocation33 + $0xa0] sm:$0xf] }
 0xa27   : > { %7914 = vmatpush.bf16.msrb.mxu3 %v13996_v21  ;;  %v14208_v7 = vor.u32 %v16095_v52, %v14205_v38  ;;  %v14315_v21 = vld [vmem:[#allocation33 + $0x1c0] sm:$0xf]  ;;  %v19525_v23 = vld [vmem:[#allocation2 + $0x25] sm:$0x3]  ;;  %v16089_v20 = vld [vmem:[#allocation33 + $0xac] sm:$0xf0] }
 0xa28   : > { %7940 = vmatpush.bf16.msra.mxu0 %v14036_v56  ;;  %v13972_v56 = vor.u32 %v16134_v0, %v13971_v62  ;;  %v14316_v60 = vor.u32 %v16125_v14, %v14315_v21  ;;  %v14172_v46 = vor.u32 %v16089_v20, %v14171_v32  ;;  %v16121_v5 = vld [vmem:[#allocation33 + $0x1ac] sm:$0xf0]  ;;  %v16087_v63 = vld [vmem:[#allocation33 + $0xa4] sm:$0xf]  ;;  %v14301_v6 = vld [vmem:[#allocation33 + $0x1b0] sm:$0xf0] }
 0xa29   : > { %v14155_v22 = vld [vmem:[#allocation33 + $0x80] sm:$0xf]  ;;  %v16083_v15 = vld [vmem:[#allocation33 + $0x84] sm:$0xf]  ;;  %v14285_v26 = vld [vmem:[#allocation33 + $0x190] sm:$0xf0] }
 0xa2a   : > { %7954 = vmatpush.bf16.msra.mxu2 %v14040_v30  ;;  %7928 = vmatpush.bf16.msra.mxu1 %v14000_v51  ;;  %v14203_v30 = vld [vmem:[#allocation33 + $0xe0] sm:$0xf]  ;;  %v14189_v51 = vld [vmem:[#allocation33 + $0xd0] sm:$0xf0]  ;;  %v16081_v38 = vld [vmem:[#allocation33 + $0x6c] sm:$0xf0] }
 0xa2b   : > { %7915 = vmatpush.bf16.msrb.mxu3 %v13980_v3  ;;  %v14204_v40 = vor.u32 %v16097_v25, %v14203_v30  ;;  %v14299_v3 = vld [vmem:[#allocation33 + $0x1a0] sm:$0xf]  ;;  %v16115_v25 = vld [vmem:[#allocation33 + $0x184] sm:$0xf]  ;;  %v16109_v32 = vld [vmem:[#allocation33 + $0x14c] sm:$0xf0] }
 0xa2c   : > { %7941 = vmatpush.bf16.msra.mxu0 %v14020_v27  ;;  %v16127_v27 = vld [vmem:[#allocation33 + $0x1e4] sm:$0xf]  ;;  %v14300_v37 = vor.u32 %v16121_v5, %v14299_v3  ;;  %v14139_v52 = vld [vmem:[#allocation33 + $0x60] sm:$0xf]  ;;  %v14125_v5 = vld [vmem:[#allocation33 + $0x50] sm:$0xf0] }
 0xa2d   : > { %v14336_v13 = vor.u32 %v16127_v27, %v14333_v50  ;;  %v14267_v27 = vld [vmem:[#allocation33 + $0x160] sm:$0xf]  ;;  %v16113_v50 = vld [vmem:[#allocation33 + $0x16c] sm:$0xf0]  ;;  %v16111_v14 = vld [vmem:[#allocation33 + $0x164] sm:$0xf] }
 0xa2e   : > { %7955 = vmatpush.bf16.msra.mxu2 %v14024_v8  ;;  %7929 = vmatpush.bf16.msra.mxu1 %v13984_v17  ;;  %v14187_v8 = vld [vmem:[#allocation33 + $0xc0] sm:$0xf]  ;;  %v14173_v17 = vld [vmem:[#allocation33 + $0xb0] sm:$0xf0] }
 0xa2f   : > { %7916 = vmatpush.bf16.msrb.mxu3 %v13964_v59  ;;  %v14188_v39 = vor.u32 %v16093_v49, %v14187_v8  ;;  %v14176_v28 = vor.u32 %v16087_v63, %v14173_v17  ;;  %v16085_v59 = vld [vmem:[#allocation33 + $0x8c] sm:$0xf0]  ;;  %v16079_v8 = vld [vmem:[#allocation33 + $0x64] sm:$0xf]  ;;  %v14141_v49 = vld [vmem:[#allocation33 + $0x70] sm:$0xf0] }
 0xa30   : > { %7942 = vmatpush.bf16.msra.mxu0 %v14004_v10  ;;  %v16123_v10 = vld [vmem:[#allocation33 + $0x1c4] sm:$0xf]  ;;  %v14156_v0 = vor.u32 %v16085_v59, %v14155_v22  ;;  %v14144_v21 = vor.u32 %v16079_v8, %v14141_v49  ;;  %v14107_v22 = vld [vmem:[#allocation33 + $0x20] sm:$0xf]  ;;  %v16073_v59 = vld [vmem:[#allocation33 + $0x2c] sm:$0xf0] }
 0xa31   : > { %v14320_v58 = vor.u32 %v16123_v10, %v14317_v9  ;;  %v14123_v10 = vld [vmem:[#allocation33 + $0x40] sm:$0xf]  ;;  %v16067_v49 = vld [vmem:[#allocation33 + $0x4] sm:$0xf] }
 0xa32   : > { %7956 = vmatpush.bf16.msra.mxu2 %v14008_v36  ;;  %7930 = vmatpush.bf16.msra.mxu1 %v13968_v35  ;;  %v14192_v36 = vor.u32 %v16091_v47, %v14189_v51  ;;  %v14283_v35 = vld [vmem:[#allocation33 + $0x180] sm:$0xf]  ;;  %v14269_v47 = vld [vmem:[#allocation33 + $0x170] sm:$0xf0] }
 0xa33   : > { %8285 = vmatpush.bf16.msra.mxu3 %v14204_v40 }
 0xa34   : > { %7943 = vmatpush.bf16.msra.mxu0 %v13988_v41  ;;  %v7348_v41 = vperm.slane %v19525_v23, 0 }
 0xa36   : > { %7957 = vmatpush.bf16.msra.mxu2 %v13992_v4  ;;  %8299 = vmatpush.bf16.msrb.mxu1 %v14332_v54  ;;  %v16119_v4 = vld [vmem:[#allocation33 + $0x1a4] sm:$0xf]  ;;  %v14288_v54 = vor.u32 %v16115_v25, %v14285_v26 }
 0xa37   : > { %8286 = vmatpush.bf16.msra.mxu3 %v14188_v39  ;;  %v14304_v12 = vor.u32 %v16119_v4, %v14301_v6  ;;  %v14268_v39 = vor.u32 %v16113_v50, %v14267_v27  ;;  %v14253_v4 = vld [vmem:[#allocation33 + $0x150] sm:$0xf0]  ;;  %v16101_v50 = vld [vmem:[#allocation33 + $0x10c] sm:$0xf0] }
 0xa38   : > { %7944 = vmatpush.bf16.msra.mxu0 %v13972_v56  ;;  %v16117_v56 = vld [vmem:[#allocation33 + $0x18c] sm:$0xf0] }
 0xa39   : > { %v14284_v30 = vor.u32 %v16117_v56, %v14283_v35  ;;  %v16071_v56 = vld [vmem:[#allocation33 + $0x24] sm:$0xf] }
 0xa3a   : > { %7958 = vmatpush.bf16.msra.mxu2 %v13976_v61  ;;  %8300 = vmatpush.bf16.msrb.mxu1 %v14316_v60  ;;  %v14157_v61 = vld [vmem:[#allocation33 + $0x90] sm:$0xf0]  ;;  %v14272_v60 = vor.u32 %v16111_v14, %v14269_v47 }
 0xa3b   : > { %8287 = vmatpush.bf16.msra.mxu3 %v14172_v46  ;;  %v14160_v18 = vor.u32 %v16083_v15, %v14157_v61  ;;  %v16075_v46 = vld [vmem:[#allocation33 + $0x44] sm:$0xf]  ;;  %v14109_v15 = vld [vmem:[#allocation33 + $0x30] sm:$0xf0] }
 0xa3c   : > { %8313 = vmatpush.bf16.msrb.mxu0 %v14208_v7  ;;  %v14140_v7 = vor.u32 %v16081_v38, %v14139_v52  ;;  %v14237_v61 = vld [vmem:[#allocation33 + $0x130] sm:$0xf0]  ;;  %v16069_v52 = vld [vmem:[#allocation33 + $0xc] sm:$0xf0] }
 0xa3e   : > { %8327 = vmatpush.bf16.msrb.mxu2 %v14336_v13  ;;  %8301 = vmatpush.bf16.msrb.mxu1 %v14300_v37  ;;  %v14128_v37 = vor.u32 %v16075_v46, %v14125_v5 }
 0xa3f   : > { %8288 = vmatpush.bf16.msra.mxu3 %v14156_v0  ;;  %v14108_v0 = vor.u32 %v16073_v59, %v14107_v22 }
 0xa40   : > { %8314 = vmatpush.bf16.msrb.mxu0 %v14192_v36  ;;  %v16077_v36 = vld [vmem:[#allocation33 + $0x4c] sm:$0xf0] }
 0xa41   : > { %v14124_v3 = vor.u32 %v16077_v36, %v14123_v10 }
 0xa42   : > { %8328 = vmatpush.bf16.msrb.mxu2 %v14320_v58  ;;  %8302 = vmatpush.bf16.msrb.mxu1 %v14284_v30  ;;  %v14251_v58 = vld [vmem:[#allocation33 + $0x140] sm:$0xf]  ;;  %v16103_v30 = vld [vmem:[#allocation33 + $0x124] sm:$0xf] }
 0xa43   : > { %8289 = vmatpush.bf16.msra.mxu3 %v14140_v7  ;;  %v14252_v17 = vor.u32 %v16109_v32, %v14251_v58  ;;  %v14240_v26 = vor.u32 %v16103_v30, %v14237_v61  ;;  %v14219_v7 = vld [vmem:[#allocation33 + $0x100] sm:$0xf] }
 0xa44   : > { %8315 = vmatpush.bf16.msrb.mxu0 %v14176_v28  ;;  %v16107_v28 = vld [vmem:[#allocation33 + $0x144] sm:$0xf]  ;;  %v14220_v8 = vor.u32 %v16101_v50, %v14219_v7 }
 0xa46   : > { %8329 = vmatpush.bf16.msrb.mxu2 %v14304_v12  ;;  %8303 = vmatpush.bf16.msrb.mxu1 %v14268_v39  ;;  %v14256_v12 = vor.u32 %v16107_v28, %v14253_v4  ;;  %v16099_v39 = vld [vmem:[#allocation33 + $0x104] sm:$0xf] }
 0xa47   : > { %8290 = vmatpush.bf16.msra.mxu3 %v14124_v3 }
 0xa48   : > { %8316 = vmatpush.bf16.msrb.mxu0 %v14160_v18 }
 0xa4a   : > { %8330 = vmatpush.bf16.msrb.mxu2 %v14288_v54  ;;  %8304 = vmatpush.bf16.msrb.mxu1 %v14252_v17  ;;  %v14091_v54 = vld [vmem:[#allocation33] sm:$0xf]  ;;  %v7349_v17 = vperm.slane %v19525_v23, 1 }
 0xa4b   : > { %8291 = vmatpush.bf16.msra.mxu3 %v14108_v0  ;;  %v14092_v27 = vor.u32 %v16069_v52, %v14091_v54  ;;  %v14339_v54 = vld [vmem:[#allocation33 + $0x1e8] sm:$0xf]  ;;  %v16130_v52 = vld [vmem:[#allocation33 + $0x1f4] sm:$0xf0] }
 0xa4c   : > { %8317 = vmatpush.bf16.msrb.mxu0 %v14144_v21  ;;  %v14221_v21 = vld [vmem:[#allocation33 + $0x110] sm:$0xf0] }
 0xa4d   : > { %v14224_v47 = vor.u32 %v16099_v39, %v14221_v21 }
 0xa4e   : > { %8331 = vmatpush.bf16.msrb.mxu2 %v14272_v60 }
 0xa4f   : > { %8292 = vmatpush.bf16.msra.mxu3 %v14092_v27 }
 0xa50   : > { %8318 = vmatpush.bf16.msrb.mxu0 %v14128_v37 }
 0xa52   : > { %8332 = vmatpush.bf16.msrb.mxu2 %v14256_v12 }
 0xa56   : > { %8333 = vmatpush.bf16.msrb.mxu2 %v14240_v26  ;;  %v16098_v26 = vld [vmem:[#allocation33 + $0xf4] sm:$0xf0] }
 0xa5a   : > { %8334 = vmatpush.bf16.msrb.mxu2 %v14224_v47  ;;  %v14195_v47 = vld [vmem:[#allocation33 + $0xc8] sm:$0xf] }
 0xa98   : > { %v7535_v24 = vpop.f32.mrf.mxu1 }
 0xa9e   : > { %v7549_v58 = vpop.f32.mrf.mxu0  ;;  %v7563_v37 = vpop.f32.mrf.mxu2 }
 0xaa0   : > { %v7537_v63 = vpop.f32.mrf.mxu1 }
 0xaa4   : > { %v7521_v62 = vpop.f32.mrf.mxu3 }
 0xaa5   : > { %v7522_v34 = vadd.f32 %v7521_v62, %v7348_v41  ;;  %v16105_v62 = vld [vmem:[#allocation33 + $0x12c] sm:$0xf0] }
 0xaa6   : > { %v7551_v0 = vpop.f32.mrf.mxu0  ;;  %v7565_v7 = vpop.f32.mrf.mxu2 }
 0xaa7   : > { %v19528_v40 = vadd.f32 %v7535_v24, %v7522_v34  ;;  %v14235_v24 = vld [vmem:[#allocation33 + $0x120] sm:$0xf]  ;;  %v14112_v34 = vor.u32 %v16071_v56, %v14109_v15  ;;  %v7552_v23 = vadd.f32 %v7551_v0, %v7349_v17 }
 0xaa8   : > { %v14236_v35 = vor.u32 %v16105_v62, %v14235_v24 }
 0xaa9   : > { %v7568_v13 = vsub.f32 0.0, %v19528_v40  ;;  %8319 = vmatpush.bf16.msrb.mxu0 %v14112_v34 }
 0xaaa   : > { %8305 = vmatpush.bf16.msrb.mxu1 %v14236_v35 }
 0xaab   : > { %v7572_v51 = vmul.f32 1.442695, %v7568_v13  ;;  %v14093_v13 = vld [vmem:[#allocation33 + $0x10] sm:$0xf0] }
 0xaac   : > { %v7523_v9 = vpop.f32.mrf.mxu3  ;;  %v14096_v14 = vor.u32 %v16067_v49, %v14093_v13  ;;  %v14341_v49 = vld [vmem:[#allocation33 + $0x1f8] sm:$0xf0]  ;;  %v19545_v13 = vadd.f32 %v7565_v7, %v7552_v23 }
 0xaad   : > { %16943 = vpow2.f32 %v7572_v51  ;;  %v7524_v20 = vadd.f32 %v7523_v9, %v7348_v41 }
 0xaae   : > { %8306 = vmatpush.bf16.msrb.mxu1 %v14220_v8  ;;  %8320 = vmatpush.bf16.msrb.mxu0 %v14096_v14  ;;  %v16128_v8 = vld [vmem:[#allocation33 + $0x1ec] sm:$0xf]  ;;  %v14340_v14 = vor.u32 %v16130_v52, %v14339_v54  ;;  %v14293_v52 = vld [vmem:[#allocation33 + $0x198] sm:$0xf0] }
 0xaaf   : > { %v19531_v6 = vadd.f32 %v7537_v63, %v7524_v20  ;;  %v16116_v54 = vld [vmem:[#allocation33 + $0x18c] sm:$0xf] }
 0xab1   : > { %v7570_v41 = vsub.f32 0.0, %v19531_v6 }
 0xab3   : > { %v16944_v25 = vpop.eup %16943  ;;  %v7576_v18 = vmul.f32 1.442695, %v7570_v41  ;;  %v7550_v41 = vadd.f32 %v7549_v58, %v7349_v17  ;;  %v16124_v58 = vld [vmem:[#allocation33 + $0x1cc] sm:$0xf]  ;;  %v16090_v17 = vld [vmem:[#allocation33 + $0xb4] sm:$0xf0] }
 0xab4   : > { %v7580_v38 = vadd.f32 1.0, %v16944_v25 }
 0xab5   : > { %16945 = vpow2.f32 %v7576_v18  ;;  %v19536_v61 = vadd.f32 %v7563_v37, %v7550_v41  ;;  %v14211_v18 = vld [vmem:[#allocation33 + $0xe8] sm:$0xf] }
 0xab6   : > { %16947 = vrcp.f32 %v7580_v38  ;;  %v7595_v46 = vand.u32 2147483648, %v7580_v38  ;;  %vm7589_vm9 = vweird.f32 %v7580_v38  ;;  %v7593_v5 = vand.u32 2147483647, %v7580_v38 }
 0xab7   : > { %v7569_v39 = vsub.f32 0.0, %v19536_v61  ;;  %v14212_v21 = vor.u32 %v16098_v26, %v14211_v18  ;;  %v16084_v18 = vld [vmem:[#allocation33 + $0x8c] sm:$0xf]  ;;  %v14165_v26 = vld [vmem:[#allocation33 + $0x98] sm:$0xf0] }
 0xab8   : > { %v7596_v12 = vor.u32 1.1754944e-38, %v7595_v46  ;;  %vm7594_vm1 = vcmp.eq.f32.partialorder %v7593_v5, 8.507059e+37 }
 0xabb   : > { %v16946_v60 = vpop.eup %16945 }
 0xabc   : > { %v16948_v51 = vpop.eup %16947  ;;  %v7582_v10 = vadd.f32 1.0, %v16946_v60  ;;  %v16094_v60 = vld [vmem:[#allocation33 + $0xd4] sm:$0xf0] }
 0xabd   : > { %v7585_v9 = vmul.f32 %v16948_v51, %v7580_v38  ;;  %vm7590_vm10 = vweird.f32 %v16948_v51  ;;  %v16096_v38 = vld [vmem:[#allocation33 + $0xec] sm:$0xf]  ;;  %v14196_v46 = vor.u32 %v16094_v60, %v14195_v47  ;;  %v14149_v47 = vld [vmem:[#allocation33 + $0x78] sm:$0xf0] }
 0xabe   : > { %16949 = vrcp.f32 %v7582_v10  ;;  %vm7591_vm0 = vmor %vm7589_vm9, %vm7590_vm10  ;;  %v7625_v22 = vand.u32 2147483648, %v7582_v10  ;;  %v7623_v24 = vand.u32 2147483647, %v7582_v10  ;;  %vm7619_vm3 = vweird.f32 %v7582_v10  ;;  %v16112_v60 = vld [vmem:[#allocation33 + $0x16c] sm:$0xf] }
 0xabf   : > { %v7586_v36 = vsub.f32 1.0, %v7585_v9  ;;  %v16126_v9 = vld [vmem:[#allocation33 + $0x1d4] sm:$0xf0] }
 0xac0   : > { %v7626_v56 = vor.u32 1.1754944e-38, %v7625_v22  ;;  %vm7624_vm5 = vcmp.eq.f32.partialorder %v7623_v24, 8.507059e+37  ;;  %v16088_v22 = vld [vmem:[#allocation33 + $0xac] sm:$0xf] }
 0xac1   : > { %v7587_v32 = vmul.f32 %v16948_v51, %v7586_v36  ;;  %v14197_v36 = vld [vmem:[#allocation33 + $0xd8] sm:$0xf0]  ;;  %v16120_v24 = vld [vmem:[#allocation33 + $0x1ac] sm:$0xf] }
 0xac3   : > { %v7588_v20 = vadd.f32 %v16948_v51, %v7587_v32  ;;  %v14325_v32 = vld [vmem:[#allocation33 + $0x1d8] sm:$0xf0] }
 0xac4   : > { %v16950_v3 = vpop.eup %16949 }
 0xac5   : > { %v7615_v63 = vmul.f32 %v16950_v3, %v7582_v10  ;;  %v7592_v28 = vsel %vm7591_vm0, %v16948_v51, %v7588_v20  ;;  %vm7620_vm2 = vweird.f32 %v16950_v3  ;;  %v14344_v51 = vor.u32 %v16128_v8, %v14341_v49  ;;  %v14323_v10 = vld [vmem:[#allocation33 + $0x1c8] sm:$0xf]  ;;  %v16082_v8 = vld [vmem:[#allocation33 + $0x74] sm:$0xf0] }
 0xac6   : > { %v7597_v62 = vsel %vm7594_vm1, %v7596_v12, %v7592_v28  ;;  %vm7621_vm4 = vmor %vm7619_vm3, %vm7620_vm2  ;;  %v7571_v20 = vsub.f32 0.0, %v19545_v13  ;;  %v14324_v5 = vor.u32 %v16126_v9, %v14323_v10  ;;  %v14328_v28 = vor.u32 %v16124_v58, %v14325_v32  ;;  %v16122_v12 = vld [vmem:[#allocation33 + $0x1b4] sm:$0xf0] }
 0xac7   : > { %v7616_v4 = vsub.f32 1.0, %v7615_v63  ;;  %v7644_v15 = vmul.f32 %v7597_v62, %v19528_v40  ;;  %v14213_v40 = vld [vmem:[#allocation33 + $0xf8] sm:$0xf0]  ;;  %v14179_v63 = vld [vmem:[#allocation33 + $0xa8] sm:$0xf]  ;;  %v14168_v49 = vor.u32 %v16084_v18, %v14165_v26 }
 0xac8   : > { %v14309_v62 = vld [vmem:[#allocation33 + $0x1b8] sm:$0xf0]  ;;  %v7578_v41 = vmul.f32 1.442695, %v7571_v20  ;;  %v14180_v0 = vor.u32 %v16090_v17, %v14179_v63  ;;  %v16108_v17 = vld [vmem:[#allocation33 + $0x14c] sm:$0xf] }
 0xac9   : > { %v7617_v59 = vmul.f32 %v16950_v3, %v7616_v4  ;;  %v19540_v27 = vadd.f32 %v7644_v15, %v19426_v1  ;;  %v14216_v1 = vor.u32 %v16096_v38, %v14213_v40  ;;  %v14307_v4 = vld [vmem:[#allocation33 + $0x1a8] sm:$0xf]  ;;  %v16086_v15 = vld [vmem:[#allocation33 + $0x94] sm:$0xf0]  ;;  %v14312_v23 = vor.u32 %v16120_v24, %v14309_v62  ;;  %v14133_v63 = vld [vmem:[#allocation33 + $0x58] sm:$0xf0] }
 0xaca   : > { %v14147_v40 = vld [vmem:[#allocation33 + $0x68] sm:$0xf]  ;;  %v16074_v24 = vld [vmem:[#allocation33 + $0x34] sm:$0xf0] }
 0xacb   : > { %v7618_v35 = vadd.f32 %v16950_v3, %v7617_v59  ;;  %20533 = vst [vmem:[#allocation83_spill] sm:$0xff] %v19540_v27  ;;  %v14181_v59 = vld [vmem:[#allocation33 + $0xb8] sm:$0xf0]  ;;  %v14148_v10 = vor.u32 %v16082_v8, %v14147_v40  ;;  %v16070_v26 = vld [vmem:[#allocation33 + $0x14] sm:$0xf0] }
 0xacc   : > { %v16068_v40 = vld [vmem:[#allocation33 + $0xc] sm:$0xf]  ;;  %v14101_v8 = vld [vmem:[#allocation33 + $0x18] sm:$0xf0] }
 0xacd   : > { %v7622_v34 = vsel %vm7621_vm4, %v16950_v3, %v7618_v35  ;;  %v7574_v3 = vmul.f32 1.442695, %v7569_v39  ;;  %v14308_v35 = vor.u32 %v16122_v12, %v14307_v4  ;;  %v14296_v39 = vor.u32 %v16116_v54, %v14293_v52  ;;  %v14227_v54 = vld [vmem:[#allocation33 + $0x108] sm:$0xf]  ;;  %v16102_v52 = vld [vmem:[#allocation33 + $0x114] sm:$0xf0] }
 0xace   : > { %v7627_v30 = vsel %vm7624_vm5, %v7626_v56, %v7622_v34  ;;  %v14163_v56 = vld [vmem:[#allocation33 + $0x88] sm:$0xf]  ;;  %v14184_v34 = vor.u32 %v16088_v22, %v14181_v59 }
 0xacf   : > { %v7646_v25 = vmul.f32 %v7627_v30, %v19531_v6  ;;  %v14291_v30 = vld [vmem:[#allocation33 + $0x188] sm:$0xf]  ;;  %16951 = vpow2.f32 %v7574_v3  ;;  %v14164_v38 = vor.u32 %v16086_v15, %v14163_v56  ;;  %v16072_v56 = vld [vmem:[#allocation33 + $0x2c] sm:$0xf]  ;;  %v14117_v15 = vld [vmem:[#allocation33 + $0x38] sm:$0xf0] }
 0xad0   : > { %16953 = vpow2.f32 %v7578_v41  ;;  %v14259_v3 = vld [vmem:[#allocation33 + $0x148] sm:$0xf] }
 0xad1   : > { %v19543_v50 = vadd.f32 %v7646_v25, %v19428_v45  ;;  %v16092_v45 = vld [vmem:[#allocation33 + $0xcc] sm:$0xf]  ;;  %v16118_v25 = vld [vmem:[#allocation33 + $0x194] sm:$0xf0]  ;;  %v14115_v59 = vld [vmem:[#allocation33 + $0x28] sm:$0xf] }
 0xad2   : > { %v14200_v37 = vor.u32 %v16092_v45, %v14197_v36  ;;  %v14292_v7 = vor.u32 %v16118_v25, %v14291_v30  ;;  %v14131_v45 = vld [vmem:[#allocation33 + $0x48] sm:$0xf]  ;;  %v16078_v36 = vld [vmem:[#allocation33 + $0x54] sm:$0xf0]  ;;  %v14116_v25 = vor.u32 %v16074_v24, %v14115_v59 }
 0xad3   : > { %20534 = vst [vmem:[#allocation84_spill] sm:$0xff] %v19543_v50  ;;  %v7748_v6 = vpack.c.bf16 %v19543_v50, %v19540_v27  ;;  %v14132_v12 = vor.u32 %v16078_v36, %v14131_v45  ;;  %v14099_v30 = vld [vmem:[#allocation33 + $0x8] sm:$0xf]  ;;  %v14469_v45 = vld [vmem:[#allocation33 + $0x3f8] sm:$0xf0]  ;;  %v14104_v36 = vor.u32 %v16068_v40, %v14101_v8 }
 0xad4   : > { %v14451_v59 = vld [vmem:[#allocation33 + $0x3c8] sm:$0xf]  ;;  %v16190_v24 = vld [vmem:[#allocation33 + $0x3d4] sm:$0xf0]  ;;  %v16297_v27 = vld [vmem:[#allocation34 + $0x12c] sm:$0xf0] }
 0xad5   : > { %7917 = vmatmul.bf16.vlgmr.msrb.gmra.mxu3 %v7748_v6  ;;  %7931 = vmatmul.bf16.vlgmr.msra.gmra.mxu1 %v7748_v6 }
 0xad6   : > { %7945 = vmatmul.bf16.vlgmr.msra.gmra.mxu0 %v7748_v6  ;;  %7959 = vmatmul.bf16.vlgmr.msra.gmra.mxu2 %v7748_v6  ;;  %v14275_v6 = vld [vmem:[#allocation33 + $0x168] sm:$0xf] }
 0xad7   : > { %8341 = vmatpush.bf16.msrb.mxu3 %v14212_v21  ;;  %8355 = vmatpush.bf16.msra.mxu1 %v14340_v14  ;;  %v16114_v21 = vld [vmem:[#allocation33 + $0x174] sm:$0xf0]  ;;  %v16080_v14 = vld [vmem:[#allocation33 + $0x6c] sm:$0xf] }
 0xad8   : > { %8369 = vmatpush.bf16.msra.mxu0 %v14216_v1  ;;  %8383 = vmatpush.bf16.msra.mxu2 %v14344_v51  ;;  %v14277_v1 = vld [vmem:[#allocation33 + $0x178] sm:$0xf0]  ;;  %v16952_v51 = vpop.eup %16951  ;;  %v14276_v9 = vor.u32 %v16114_v21, %v14275_v6  ;;  %v14152_v32 = vor.u32 %v16080_v14, %v14149_v47  ;;  %v14459_v6 = vld [vmem:[#allocation33 + $0x3e0] sm:$0xf]  ;;  %v16193_v21 = vld [vmem:[#allocation33 + $0x3ec] sm:$0xf0] }
 0xad9   : > { %v16954_v58 = vpop.eup %16953  ;;  %v14280_v20 = vor.u32 %v16112_v60, %v14277_v1  ;;  %v16191_v14 = vld [vmem:[#allocation33 + $0x3e4] sm:$0xf]  ;;  %v14461_v47 = vld [vmem:[#allocation33 + $0x3f0] sm:$0xf0]  ;;  %v14467_v60 = vld [vmem:[#allocation33 + $0x3e8] sm:$0xf]  ;;  %v14100_v1 = vor.u32 %v16070_v26, %v14099_v30  ;;  %v14452_v30 = vor.u32 %v16190_v24, %v14451_v59 }
 0xada   : > { %v19557_v4 = vadd.f32 1.0, %v16954_v58  ;;  %v14429_v26 = vld [vmem:[#allocation33 + $0x3b0] sm:$0xf0]  ;;  %v16176_v59 = vld [vmem:[#allocation33 + $0x36c] sm:$0xf] }
 0xadb   : > { %8342 = vmatpush.bf16.msrb.mxu3 %v14196_v46  ;;  %8356 = vmatpush.bf16.msra.mxu1 %v14324_v5  ;;  %v16110_v46 = vld [vmem:[#allocation33 + $0x154] sm:$0xf0]  ;;  %v16076_v5 = vld [vmem:[#allocation33 + $0x4c] sm:$0xf]  ;;  %v14405_v24 = vld [vmem:[#allocation33 + $0x378] sm:$0xf0] }
 0xadc   : > { %8370 = vmatpush.bf16.msra.mxu0 %v14200_v37  ;;  %8384 = vmatpush.bf16.msra.mxu2 %v14328_v28  ;;  %v14261_v37 = vld [vmem:[#allocation33 + $0x158] sm:$0xf0]  ;;  %v19555_v28 = vadd.f32 1.0, %v16952_v51  ;;  %v14260_v22 = vor.u32 %v16110_v46, %v14259_v3  ;;  %v14136_v62 = vor.u32 %v16076_v5, %v14133_v63  ;;  %v14228_v51 = vor.u32 %v16102_v52, %v14227_v54  ;;  %v14443_v46 = vld [vmem:[#allocation33 + $0x3c0] sm:$0xf] }
 0xadd   : > { %v14264_v41 = vor.u32 %v16108_v17, %v14261_v37  ;;  %v14464_v3 = vor.u32 %v16191_v14, %v14461_v47  ;;  %v16189_v5 = vld [vmem:[#allocation33 + $0x3cc] sm:$0xf0]  ;;  %v14435_v54 = vld [vmem:[#allocation33 + $0x3a8] sm:$0xf]  ;;  %v16186_v52 = vld [vmem:[#allocation33 + $0x3b4] sm:$0xf0]  ;;  %vm7634_vm11 = vweird.f32 %v19557_v4 }
 0xade   : > { %16955 = vrcp.f32 %v19555_v28  ;;  %v14436_v14 = vor.u32 %v16186_v52, %v14435_v54  ;;  %v16174_v52 = vld [vmem:[#allocation33 + $0x354] sm:$0xf0]  ;;  %vm7604_vm7 = vweird.f32 %v19555_v28 }
 0xadf   : > { %8343 = vmatpush.bf16.msrb.mxu3 %v14180_v0  ;;  %8357 = vmatpush.bf16.msra.mxu1 %v14308_v35  ;;  %v14243_v0 = vld [vmem:[#allocation33 + $0x128] sm:$0xf]  ;;  %v16106_v35 = vld [vmem:[#allocation33 + $0x134] sm:$0xf0]  ;;  %16957 = vrcp.f32 %v19557_v4 }
 0xae0   : > { %8371 = vmatpush.bf16.msra.mxu0 %v14184_v34  ;;  %8385 = vmatpush.bf16.msra.mxu2 %v14312_v23  ;;  %v16104_v34 = vld [vmem:[#allocation33 + $0x12c] sm:$0xf]  ;;  %v14245_v23 = vld [vmem:[#allocation33 + $0x138] sm:$0xf0]  ;;  %v14244_v18 = vor.u32 %v16106_v35, %v14243_v0 }
 0xae3   : > { %8344 = vmatpush.bf16.msrb.mxu3 %v14164_v38  ;;  %8358 = vmatpush.bf16.msra.mxu1 %v14292_v7  ;;  %v14120_v38 = vor.u32 %v16072_v56, %v14117_v15  ;;  %v14248_v7 = vor.u32 %v16104_v34, %v14245_v23  ;;  %v14444_v56 = vor.u32 %v16189_v5, %v14443_v46  ;;  %v14427_v34 = vld [vmem:[#allocation33 + $0x3a0] sm:$0xf]  ;;  %v16185_v23 = vld [vmem:[#allocation33 + $0x3ac] sm:$0xf0]  ;;  %v16175_v5 = vld [vmem:[#allocation33 + $0x364] sm:$0xf] }
 0xae4   : > { %8372 = vmatpush.bf16.msra.mxu0 %v14168_v49  ;;  %8386 = vmatpush.bf16.msra.mxu2 %v14296_v39  ;;  %v16100_v49 = vld [vmem:[#allocation33 + $0x10c] sm:$0xf]  ;;  %v14229_v39 = vld [vmem:[#allocation33 + $0x118] sm:$0xf0] }
 0xae5   : > { %8293 = vmatmul.bf16.vlgmr.msra.gmra.mxu3 %v19397_v48  ;;  %8307 = vmatmul.bf16.vlgmr.msrb.gmra.mxu1 %v19407_v55  ;;  %v14232_v58 = vor.u32 %v16100_v49, %v14229_v39  ;;  %v14428_v49 = vor.u32 %v16185_v23, %v14427_v34  ;;  %v16173_v34 = vld [vmem:[#allocation33 + $0x34c] sm:$0xf0] }
 0xae6   : > { %8321 = vmatmul.bf16.vlgmr.msrb.gmra.mxu0 %v19397_v48  ;;  %8335 = vmatmul.bf16.vlgmr.msrb.gmra.mxu2 %v19407_v55 }
 0xae7   : > { %8345 = vmatpush.bf16.msrb.mxu3 %v14148_v10  ;;  %8359 = vmatpush.bf16.msra.mxu1 %v14276_v9  ;;  %v16194_v10 = vld [vmem:[#allocation33 + $0x3f4] sm:$0xf0]  ;;  %v16192_v9 = vld [vmem:[#allocation33 + $0x3ec] sm:$0xf] }
 0xae8   : > { %8373 = vmatpush.bf16.msra.mxu0 %v14152_v32  ;;  %8387 = vmatpush.bf16.msra.mxu2 %v14280_v20  ;;  %v19561_v32 = vpop.eup %16955  ;;  %v14460_v20 = vor.u32 %v16193_v21, %v14459_v6  ;;  %v14468_v17 = vor.u32 %v16194_v10, %v14467_v60  ;;  %v14472_v37 = vor.u32 %v16192_v9, %v14469_v45  ;;  %v14411_v6 = vld [vmem:[#allocation33 + $0x380] sm:$0xf]  ;;  %v16181_v21 = vld [vmem:[#allocation33 + $0x38c] sm:$0xf0]  ;;  %v16179_v60 = vld [vmem:[#allocation33 + $0x384] sm:$0xf] }
 0xae9   : > { %v19563_v63 = vpop.eup %16957  ;;  %v7600_v0 = vmul.f32 %v19561_v32, %v19555_v28  ;;  %v16182_v10 = vld [vmem:[#allocation33 + $0x394] sm:$0xf0]  ;;  %v16180_v9 = vld [vmem:[#allocation33 + $0x38c] sm:$0xf]  ;;  %v14412_v45 = vor.u32 %v16181_v21, %v14411_v6  ;;  %vm7605_vm8 = vweird.f32 %v19561_v32 }
 0xaea   : > { %v7630_v35 = vmul.f32 %v19563_v63, %v19557_v4  ;;  %vm7635_vm6 = vweird.f32 %v19563_v63  ;;  %vm19597_vm14 = vmor %vm7604_vm7, %vm7605_vm8 }
 0xaeb   : > { %8346 = vmatpush.bf16.msrb.mxu3 %v14132_v12  ;;  %8360 = vmatpush.bf16.msra.mxu1 %v14260_v22  ;;  %v16187_v12 = vld [vmem:[#allocation33 + $0x3c4] sm:$0xf]  ;;  %v14445_v22 = vld [vmem:[#allocation33 + $0x3d0] sm:$0xf0]  ;;  %v7601_v40 = vsub.f32 1.0, %v7600_v0  ;;  %vm19587_vm12 = vmor %vm7634_vm11, %vm7635_vm6 }
 0xaec   : > { %8374 = vmatpush.bf16.msra.mxu0 %v14136_v62  ;;  %8388 = vmatpush.bf16.msra.mxu2 %v14264_v41  ;;  %v16188_v62 = vld [vmem:[#allocation33 + $0x3cc] sm:$0xf]  ;;  %v14453_v41 = vld [vmem:[#allocation33 + $0x3d8] sm:$0xf0]  ;;  %v14448_v15 = vor.u32 %v16187_v12, %v14445_v22  ;;  %v7631_v8 = vsub.f32 1.0, %v7630_v35 }
 0xaed   : > { %v7602_v12 = vmul.f32 %v19561_v32, %v7601_v40  ;;  %v16178_v22 = vld [vmem:[#allocation33 + $0x374] sm:$0xf0]  ;;  %v7608_v40 = vand.u32 2147483647, %v19555_v28 }
 0xaef   : > { %8347 = vmatpush.bf16.msrb.mxu3 %v14116_v25  ;;  %8361 = vmatpush.bf16.msra.mxu1 %v14244_v18  ;;  %v14456_v25 = vor.u32 %v16188_v62, %v14453_v41  ;;  %v16183_v18 = vld [vmem:[#allocation33 + $0x3a4] sm:$0xf]  ;;  %v7638_v62 = vand.u32 2147483647, %v19557_v4  ;;  %v7640_v41 = vand.u32 2147483648, %v19557_v4  ;;  %v7603_v54 = vadd.f32 %v19561_v32, %v7602_v12 }
 0xaf0   : > { %8375 = vmatpush.bf16.msra.mxu0 %v14120_v38  ;;  %8389 = vmatpush.bf16.msra.mxu2 %v14248_v7  ;;  %v16184_v38 = vld [vmem:[#allocation33 + $0x3ac] sm:$0xf]  ;;  %v14437_v7 = vld [vmem:[#allocation33 + $0x3b8] sm:$0xf0]  ;;  %v14432_v39 = vor.u32 %v16183_v18, %v14429_v26  ;;  %v14381_v18 = vld [vmem:[#allocation33 + $0x350] sm:$0xf0] }
 0xaf1   : > { %v14440_v47 = vor.u32 %v16184_v38, %v14437_v7  ;;  %v14387_v26 = vld [vmem:[#allocation33 + $0x348] sm:$0xf]  ;;  %v16172_v38 = vld [vmem:[#allocation33 + $0x34c] sm:$0xf]  ;;  %v14389_v7 = vld [vmem:[#allocation33 + $0x358] sm:$0xf0] }
 0xaf2   : > { %vm19591_vm13 = vcmp.eq.f32.partialorder %v7638_v62, 8.507059e+37  ;;  %v7641_v6 = vor.u32 1.1754944e-38, %v7640_v41  ;;  %vm7609_vm15 = vcmp.eq.f32.partialorder %v7608_v40, 8.507059e+37  ;;  %v14349_v12 = vld [vmem:[#allocation33 + $0x310] sm:$0xf0] }
 0xaf3   : > { %8348 = vmatpush.bf16.msrb.mxu3 %v14100_v1  ;;  %8362 = vmatpush.bf16.msra.mxu1 %v14228_v51  ;;  %v14413_v1 = vld [vmem:[#allocation33 + $0x390] sm:$0xf0]  ;;  %v14419_v51 = vld [vmem:[#allocation33 + $0x388] sm:$0xf]  ;;  %v16166_v62 = vld [vmem:[#allocation33 + $0x314] sm:$0xf0] }
 0xaf4   : > { %8376 = vmatpush.bf16.msra.mxu0 %v14104_v36  ;;  %8390 = vmatpush.bf16.msra.mxu2 %v14232_v58  ;;  %v14416_v36 = vor.u32 %v16179_v60, %v14413_v1  ;;  %v14395_v58 = vld [vmem:[#allocation33 + $0x360] sm:$0xf]  ;;  %v16169_v60 = vld [vmem:[#allocation33 + $0x32c] sm:$0xf0]  ;;  %v14388_v1 = vor.u32 %v16174_v52, %v14387_v26  ;;  %v16164_v41 = vld [vmem:[#allocation33 + $0x30c] sm:$0xf] }
 0xaf5   : > { %v16256_v52 = vld [vmem:[#allocation36 + $0x1ec] sm:$0xf]  ;;  %v16253_v4 = vld [vmem:[#allocation36 + $0x1cc] sm:$0xf0] }
 0xaf6   : > { %8349 = vmatmul.bf16.vlgmr.msrb.gmra.mxu3 %v19397_v48  ;;  %8363 = vmatmul.bf16.vlgmr.msra.gmra.mxu1 %v19407_v55 }
 0xaf7   : > { %8590 = vmatpush.bf16.msra.mxu3 %v14460_v20  ;;  %8604 = vmatpush.bf16.msrb.mxu1 %v14464_v3  ;;  %v16177_v20 = vld [vmem:[#allocation33 + $0x36c] sm:$0xf0]  ;;  %v14420_v3 = vor.u32 %v16182_v10, %v14419_v51  ;;  %v14392_v51 = vor.u32 %v16172_v38, %v14389_v7  ;;  %v16167_v10 = vld [vmem:[#allocation33 + $0x324] sm:$0xf]  ;;  %v14597_v38 = vld [vmem:[#allocation36 + $0x1f8] sm:$0xf0] }
 0xaf8   : > { %8618 = vmatpush.bf16.msrb.mxu0 %v14468_v17  ;;  %8632 = vmatpush.bf16.msrb.mxu2 %v14472_v37  ;;  %v14397_v17 = vld [vmem:[#allocation33 + $0x370] sm:$0xf0]  ;;  %v14403_v37 = vld [vmem:[#allocation33 + $0x368] sm:$0xf]  ;;  %v14396_v35 = vor.u32 %v16177_v20, %v14395_v58 }
 0xaf9   : > { %8377 = vmatmul.bf16.vlgmr.msra.gmra.mxu0 %v19397_v48  ;;  %8391 = vmatmul.bf16.vlgmr.msra.gmra.mxu2 %v19407_v55  ;;  %v14421_v48 = vld [vmem:[#allocation33 + $0x398] sm:$0xf0]  ;;  %v7632_v55 = vmul.f32 %v19563_v63, %v7631_v8  ;;  %v14404_v23 = vor.u32 %v16178_v22, %v14403_v37  ;;  %v7610_v8 = vand.u32 2147483648, %v19555_v28  ;;  %v16163_v37 = vld [vmem:[#allocation33 + $0x304] sm:$0xf] }
 0xafa   : > { %v14424_v46 = vor.u32 %v16180_v9, %v14421_v48  ;;  %v14365_v9 = vld [vmem:[#allocation33 + $0x330] sm:$0xf0]  ;;  %v14371_v48 = vld [vmem:[#allocation33 + $0x328] sm:$0xf]  ;;  %v14352_v26 = vor.u32 %v16163_v37, %v14349_v12  ;;  %v14539_v37 = vld [vmem:[#allocation36 + $0x180] sm:$0xf] }
 0xafb   : > { %8591 = vmatpush.bf16.msra.mxu3 %v14444_v56  ;;  %8605 = vmatpush.bf16.msrb.mxu1 %v14448_v15  ;;  %v7633_v0 = vadd.f32 %v19563_v63, %v7632_v55  ;;  %v14400_v56 = vor.u32 %v16175_v5, %v14397_v17  ;;  %v14379_v15 = vld [vmem:[#allocation33 + $0x340] sm:$0xf]  ;;  %v7607_v55 = vsel %vm19597_vm14, %v19561_v32, %v7603_v54  ;;  %v7611_v58 = vor.u32 1.1754944e-38, %v7610_v8  ;;  %v16165_v17 = vld [vmem:[#allocation33 + $0x30c] sm:$0xf0] }
 0xafc   : > { %8619 = vmatpush.bf16.msrb.mxu0 %v14452_v30  ;;  %8633 = vmatpush.bf16.msrb.mxu2 %v14456_v25  ;;  %v14408_v30 = vor.u32 %v16176_v59, %v14405_v24  ;;  %v16171_v25 = vld [vmem:[#allocation33 + $0x344] sm:$0xf]  ;;  %v14380_v21 = vor.u32 %v16173_v34, %v14379_v15  ;;  %v14368_v5 = vor.u32 %v16167_v10, %v14365_v9  ;;  %v14355_v24 = vld [vmem:[#allocation33 + $0x308] sm:$0xf]  ;;  %v16257_v15 = vld [vmem:[#allocation36 + $0x1ec] sm:$0xf0] }
 0xafd   : > { %v7637_v28 = vsel %vm19587_vm12, %v19563_v63, %v7633_v0  ;;  %v16168_v63 = vld [vmem:[#allocation33 + $0x32c] sm:$0xf]  ;;  %v7612_v22 = vsel %vm7609_vm15, %v7611_v58, %v7607_v55  ;;  %v16255_v34 = vld [vmem:[#allocation36 + $0x1e4] sm:$0xf]  ;;  %v16258_v54 = vld [vmem:[#allocation36 + $0x1f4] sm:$0xf0]  ;;  %v14356_v7 = vor.u32 %v16166_v62, %v14355_v24 }
 0xafe   : > { %v7642_v20 = vsel %vm19591_vm13, %v7641_v6, %v7637_v28  ;;  %v16251_v6 = vld [vmem:[#allocation36 + $0x1c4] sm:$0xf]  ;;  %v16249_v55 = vld [vmem:[#allocation36 + $0x1ac] sm:$0xf0]  ;;  %v14563_v58 = vld [vmem:[#allocation36 + $0x1a8] sm:$0xf] }
 0xaff   : > { %8592 = vmatpush.bf16.msra.mxu3 %v14428_v49  ;;  %8606 = vmatpush.bf16.msrb.mxu1 %v14432_v39  ;;  %v7647_v0 = vmul.f32 %v7642_v20, %v19545_v13  ;;  %v14571_v39 = vld [vmem:[#allocation36 + $0x1c0] sm:$0xf]  ;;  %v16250_v20 = vld [vmem:[#allocation36 + $0x1b4] sm:$0xf0]  ;;  %v16245_v12 = vld [vmem:[#allocation36 + $0x18c] sm:$0xf0] }
 0xb00   : > { %8620 = vmatpush.bf16.msrb.mxu0 %v14436_v14  ;;  %8634 = vmatpush.bf16.msrb.mxu2 %v14440_v47  ;;  %v14384_v14 = vor.u32 %v16171_v25, %v14381_v18  ;;  %v14363_v47 = vld [vmem:[#allocation33 + $0x320] sm:$0xf]  ;;  %v7645_v25 = vmul.f32 %v7612_v22, %v19536_v61  ;;  %v14600_v61 = vor.u32 %v16256_v52, %v14597_v38  ;;  %v14541_v24 = vld [vmem:[#allocation36 + $0x190] sm:$0xf0]  ;;  %v14547_v62 = vld [vmem:[#allocation36 + $0x188] sm:$0xf] }
 0xb01   : > { %v19612_v13 = vadd.f32 %v7647_v0, %v19455_v33  ;;  %v14572_v10 = vor.u32 %v16253_v4, %v14571_v39  ;;  %v14564_v22 = vor.u32 %v16250_v20, %v14563_v58  ;;  %v16244_v0 = vld [vmem:[#allocation36 + $0x18c] sm:$0xf]  ;;  %v16242_v52 = vld [vmem:[#allocation36 + $0x174] sm:$0xf0]  ;;  %v16237_v39 = vld [vmem:[#allocation36 + $0x14c] sm:$0xf0] }
 0xb02   : > { %v16240_v38 = vld [vmem:[#allocation36 + $0x16c] sm:$0xf]  ;;  %v14501_v20 = vld [vmem:[#allocation36 + $0x138] sm:$0xf0] }
 0xb03   : > { %8593 = vmatpush.bf16.msra.mxu3 %v14412_v45  ;;  %8607 = vmatpush.bf16.msrb.mxu1 %v14416_v36  ;;  %v16170_v45 = vld [vmem:[#allocation33 + $0x334] sm:$0xf0]  ;;  %v14373_v36 = vld [vmem:[#allocation33 + $0x338] sm:$0xf0]  ;;  %20541 = vst [vmem:[#allocation85_spill] sm:$0xff] %v19612_v13 }
 0xb04   : > { %8621 = vmatpush.bf16.msrb.mxu0 %v14420_v3  ;;  %8635 = vmatpush.bf16.msrb.mxu2 %v14424_v46  ;;  %v14347_v3 = vld [vmem:[#allocation33 + $0x300] sm:$0xf]  ;;  %v14364_v46 = vor.u32 %v16169_v60, %v14363_v47  ;;  %v14372_v32 = vor.u32 %v16170_v45, %v14371_v48  ;;  %v14376_v59 = vor.u32 %v16168_v63, %v14373_v36  ;;  %v16254_v60 = vld [vmem:[#allocation36 + $0x1d4] sm:$0xf0]  ;;  %v16247_v63 = vld [vmem:[#allocation36 + $0x1a4] sm:$0xf] }
 0xb05   : > { %v14348_v18 = vor.u32 %v16165_v17, %v14347_v3  ;;  %v19615_v47 = vadd.f32 %v7645_v25, %v19452_v11  ;;  %v14555_v48 = vld [vmem:[#allocation36 + $0x1a0] sm:$0xf]  ;;  %v14557_v36 = vld [vmem:[#allocation36 + $0x1b0] sm:$0xf0]  ;;  %v16248_v3 = vld [vmem:[#allocation36 + $0x1ac] sm:$0xf] }
 0xb06   : > { %v14560_v17 = vor.u32 %v16247_v63, %v14557_v36  ;;  %v14499_v63 = vld [vmem:[#allocation36 + $0x128] sm:$0xf]  ;;  %v16234_v36 = vld [vmem:[#allocation36 + $0x134] sm:$0xf0]  ;;  %v16232_v58 = vld [vmem:[#allocation36 + $0x12c] sm:$0xf] }
 0xb07   : > { %8594 = vmatpush.bf16.msra.mxu3 %v14396_v35  ;;  %8608 = vmatpush.bf16.msrb.mxu1 %v14400_v56  ;;  %v14357_v35 = vld [vmem:[#allocation33 + $0x318] sm:$0xf0]  ;;  %v14587_v56 = vld [vmem:[#allocation36 + $0x1e0] sm:$0xf]  ;;  %20542 = vst [vmem:[#allocation86_spill] sm:$0xff] %v19615_v47  ;;  %v8429_v33 = vpack.c.bf16 %v19612_v13, %v19615_v47 }
 0xb08   : > { %8622 = vmatpush.bf16.msrb.mxu0 %v14404_v23  ;;  %8636 = vmatpush.bf16.msrb.mxu2 %v14408_v30  ;;  %v14589_v23 = vld [vmem:[#allocation36 + $0x1f0] sm:$0xf0]  ;;  %v14595_v30 = vld [vmem:[#allocation36 + $0x1e8] sm:$0xf]  ;;  %v14360_v40 = vor.u32 %v16164_v41, %v14357_v35  ;;  %v14588_v8 = vor.u32 %v16257_v15, %v14587_v56  ;;  %v16246_v41 = vld [vmem:[#allocation36 + $0x194] sm:$0xf0]  ;;  %v14540_v56 = vor.u32 %v16245_v12, %v14539_v37 }
 0xb09   : > { %v14592_v49 = vor.u32 %v16255_v34, %v14589_v23  ;;  %v14596_v28 = vor.u32 %v16258_v54, %v14595_v30  ;;  %v14549_v35 = vld [vmem:[#allocation36 + $0x198] sm:$0xf0]  ;;  %v14523_v34 = vld [vmem:[#allocation36 + $0x160] sm:$0xf]  ;;  %v16241_v23 = vld [vmem:[#allocation36 + $0x16c] sm:$0xf0]  ;;  %v14548_v30 = vor.u32 %v16246_v41, %v14547_v62 }
 0xb0a   : > { %v14552_v25 = vor.u32 %v16244_v0, %v14549_v35  ;;  %v14531_v54 = vld [vmem:[#allocation36 + $0x168] sm:$0xf]  ;;  %v16227_v37 = vld [vmem:[#allocation36 + $0x104] sm:$0xf]  ;;  %v14477_v12 = vld [vmem:[#allocation36 + $0x110] sm:$0xf0] }
 0xb0b   : > { %8595 = vmatpush.bf16.msra.mxu3 %v14380_v21  ;;  %8609 = vmatpush.bf16.msrb.mxu1 %v14384_v14  ;;  %v14573_v21 = vld [vmem:[#allocation36 + $0x1d0] sm:$0xf0]  ;;  %v14579_v14 = vld [vmem:[#allocation36 + $0x1c8] sm:$0xf]  ;;  %v14532_v4 = vor.u32 %v16242_v52, %v14531_v54  ;;  %v16228_v62 = vld [vmem:[#allocation36 + $0x10c] sm:$0xf] }
 0xb0c   : > { %8623 = vmatpush.bf16.msrb.mxu0 %v14388_v1  ;;  %8637 = vmatpush.bf16.msrb.mxu2 %v14392_v51  ;;  %v16252_v1 = vld [vmem:[#allocation36 + $0x1cc] sm:$0xf]  ;;  %v14581_v51 = vld [vmem:[#allocation36 + $0x1d8] sm:$0xf0]  ;;  %v14576_v9 = vor.u32 %v16251_v6, %v14573_v21  ;;  %v14580_v11 = vor.u32 %v16254_v60, %v14579_v14  ;;  %v14509_v6 = vld [vmem:[#allocation36 + $0x150] sm:$0xf0] }
 0xb0d   : > { %v14584_v45 = vor.u32 %v16252_v1, %v14581_v51  ;;  %v14515_v21 = vld [vmem:[#allocation36 + $0x148] sm:$0xf]  ;;  %v16238_v14 = vld [vmem:[#allocation36 + $0x154] sm:$0xf0]  ;;  %v16236_v60 = vld [vmem:[#allocation36 + $0x14c] sm:$0xf] }
 0xb0e   : > { %v14517_v1 = vld [vmem:[#allocation36 + $0x158] sm:$0xf0]  ;;  %v14715_v0 = vld [vmem:[#allocation36 + $0xe0] sm:$0xf]  ;;  %v16225_v35 = vld [vmem:[#allocation36 + $0xec] sm:$0xf0] }
 0xb0f   : > { %8596 = vmatpush.bf16.msra.mxu3 %v14364_v46  ;;  %8610 = vmatpush.bf16.msrb.mxu1 %v14368_v5  ;;  %v14565_v46 = vld [vmem:[#allocation36 + $0x1b8] sm:$0xf0]  ;;  %v14556_v5 = vor.u32 %v16249_v55, %v14555_v48  ;;  %v14516_v48 = vor.u32 %v16238_v14, %v14515_v21  ;;  %v14520_v55 = vor.u32 %v16236_v60, %v14517_v1  ;;  %v16220_v21 = vld [vmem:[#allocation36 + $0xcc] sm:$0xf] }
 0xb10   : > { %8624 = vmatpush.bf16.msrb.mxu0 %v14372_v32  ;;  %8638 = vmatpush.bf16.msrb.mxu2 %v14376_v59  ;;  %v14568_v32 = vor.u32 %v16248_v3, %v14565_v46  ;;  %v16243_v59 = vld [vmem:[#allocation36 + $0x184] sm:$0xf]  ;;  %v14475_v3 = vld [vmem:[#allocation36 + $0x100] sm:$0xf]  ;;  %v14485_v41 = vld [vmem:[#allocation36 + $0x118] sm:$0xf0] }
 0xb11   : > { %v14544_v15 = vor.u32 %v16243_v59, %v14541_v24  ;;  %v14483_v59 = vld [vmem:[#allocation36 + $0x108] sm:$0xf]  ;;  %v16230_v24 = vld [vmem:[#allocation36 + $0x114] sm:$0xf0]  ;;  %v14488_v52 = vor.u32 %v16228_v62, %v14485_v41  ;;  %v14709_v14 = vld [vmem:[#allocation36 + $0xd8] sm:$0xf0] }
 0xb12   : > { %v14484_v54 = vor.u32 %v16230_v24, %v14483_v59  ;;  %v16212_v59 = vld [vmem:[#allocation36 + $0x8c] sm:$0xf]  ;;  %v14677_v24 = vld [vmem:[#allocation36 + $0x98] sm:$0xf0]  ;;  %v14651_v41 = vld [vmem:[#allocation36 + $0x60] sm:$0xf] }
 0xb13   : > { %8597 = vmatpush.bf16.msra.mxu3 %v14348_v18  ;;  %8611 = vmatpush.bf16.msrb.mxu1 %v14352_v26  ;;  %v16239_v18 = vld [vmem:[#allocation36 + $0x164] sm:$0xf]  ;;  %v14525_v26 = vld [vmem:[#allocation36 + $0x170] sm:$0xf0] }
 0xb14   : > { %8625 = vmatpush.bf16.msrb.mxu0 %v14356_v7  ;;  %8639 = vmatpush.bf16.msrb.mxu2 %v14360_v40  ;;  %v14533_v7 = vld [vmem:[#allocation36 + $0x178] sm:$0xf0]  ;;  %v14524_v40 = vor.u32 %v16241_v23, %v14523_v34  ;;  %v14723_v34 = vld [vmem:[#allocation36 + $0xe8] sm:$0xf] }
 0xb16   : > { %8598 = vmatmul.bf16.vlgmr.msra.gmra.mxu3 %v8429_v33  ;;  %8612 = vmatmul.bf16.vlgmr.msrb.gmra.mxu1 %v8429_v33 }
 0xb17   : > { %9056 = vmatpush.bf16.msrb.mxu3 %v14588_v8  ;;  %9070 = vmatpush.bf16.msra.mxu1 %v14592_v49  ;;  %v14528_v8 = vor.u32 %v16239_v18, %v14525_v26  ;;  %v14507_v49 = vld [vmem:[#allocation36 + $0x140] sm:$0xf]  ;;  %v16224_v18 = vld [vmem:[#allocation36 + $0xec] sm:$0xf]  ;;  %v14725_v26 = vld [vmem:[#allocation36 + $0xf8] sm:$0xf0] }
 0xb18   : > { %9084 = vmatpush.bf16.msra.mxu0 %v14596_v28  ;;  %9098 = vmatpush.bf16.msra.mxu2 %v14600_v61  ;;  %v14536_v28 = vor.u32 %v16240_v38, %v14533_v7  ;;  %v16235_v61 = vld [vmem:[#allocation36 + $0x144] sm:$0xf]  ;;  %v14508_v51 = vor.u32 %v16237_v39, %v14507_v49  ;;  %v14716_v38 = vor.u32 %v16225_v35, %v14715_v0  ;;  %v16209_v0 = vld [vmem:[#allocation36 + $0x6c] sm:$0xf0] }
 0xb19   : > { %8626 = vmatmul.bf16.vlgmr.msrb.gmra.mxu0 %v8429_v33  ;;  %8640 = vmatmul.bf16.vlgmr.msrb.gmra.mxu2 %v8429_v33  ;;  %v14512_v33 = vor.u32 %v16235_v61, %v14509_v6  ;;  %v14728_v39 = vor.u32 %v16224_v18, %v14725_v26  ;;  %v14707_v61 = vld [vmem:[#allocation36 + $0xc8] sm:$0xf]  ;;  %v16222_v6 = vld [vmem:[#allocation36 + $0xd4] sm:$0xf0]  ;;  %v14661_v18 = vld [vmem:[#allocation36 + $0x78] sm:$0xf0]  ;;  %v14652_v26 = vor.u32 %v16209_v0, %v14651_v41 }
 0xb1b   : > { %9057 = vmatpush.bf16.msrb.mxu3 %v14572_v10  ;;  %9071 = vmatpush.bf16.msra.mxu1 %v14576_v9  ;;  %v14491_v10 = vld [vmem:[#allocation36 + $0x120] sm:$0xf]  ;;  %v16233_v9 = vld [vmem:[#allocation36 + $0x12c] sm:$0xf0] }
 0xb1c   : > { %9085 = vmatpush.bf16.msra.mxu0 %v14580_v11  ;;  %9099 = vmatpush.bf16.msra.mxu2 %v14584_v45  ;;  %v16231_v11 = vld [vmem:[#allocation36 + $0x124] sm:$0xf]  ;;  %v14493_v45 = vld [vmem:[#allocation36 + $0x130] sm:$0xf0]  ;;  %v14492_v46 = vor.u32 %v16233_v9, %v14491_v10  ;;  %v14708_v10 = vor.u32 %v16222_v6, %v14707_v61  ;;  %v14712_v9 = vor.u32 %v16220_v21, %v14709_v14  ;;  %v14645_v61 = vld [vmem:[#allocation36 + $0x58] sm:$0xf0] }
 0xb1d   : > { %v14619_v14 = vld [vmem:[#allocation36 + $0x20] sm:$0xf] }
 0xb1f   : > { %9058 = vmatpush.bf16.msrb.mxu3 %v14556_v5  ;;  %9072 = vmatpush.bf16.msra.mxu1 %v14560_v17  ;;  %v14496_v5 = vor.u32 %v16231_v11, %v14493_v45  ;;  %v16229_v17 = vld [vmem:[#allocation36 + $0x10c] sm:$0xf0]  ;;  %v14691_v11 = vld [vmem:[#allocation36 + $0xa8] sm:$0xf]  ;;  %v16218_v45 = vld [vmem:[#allocation36 + $0xb4] sm:$0xf0] }
 0xb20   : > { %9086 = vmatpush.bf16.msra.mxu0 %v14564_v22  ;;  %9100 = vmatpush.bf16.msra.mxu2 %v14568_v32  ;;  %v14500_v22 = vor.u32 %v16234_v36, %v14499_v63  ;;  %v14504_v32 = vor.u32 %v16232_v58, %v14501_v20  ;;  %v14476_v23 = vor.u32 %v16229_v17, %v14475_v3  ;;  %v16216_v63 = vld [vmem:[#allocation36 + $0xac] sm:$0xf]  ;;  %v14693_v36 = vld [vmem:[#allocation36 + $0xb8] sm:$0xf0]  ;;  %v14667_v3 = vld [vmem:[#allocation36 + $0x80] sm:$0xf] }
 0xb21   : > { %v14696_v17 = vor.u32 %v16216_v63, %v14693_v36  ;;  %v14603_v36 = vld [vmem:[#allocation36] sm:$0xf] }
 0xb23   : > { %9059 = vmatpush.bf16.msrb.mxu3 %v14540_v56  ;;  %9073 = vmatpush.bf16.msra.mxu1 %v14544_v15  ;;  %v16223_v56 = vld [vmem:[#allocation36 + $0xe4] sm:$0xf]  ;;  %v14717_v15 = vld [vmem:[#allocation36 + $0xf0] sm:$0xf0] }
 0xb24   : > { %9087 = vmatpush.bf16.msra.mxu0 %v14548_v30  ;;  %9101 = vmatpush.bf16.msra.mxu2 %v14552_v25  ;;  %v14480_v30 = vor.u32 %v16227_v37, %v14477_v12  ;;  %v16226_v25 = vld [vmem:[#allocation36 + $0xf4] sm:$0xf0]  ;;  %v14720_v7 = vor.u32 %v16223_v56, %v14717_v15  ;;  %v16211_v37 = vld [vmem:[#allocation36 + $0x84] sm:$0xf]  ;;  %v14669_v12 = vld [vmem:[#allocation36 + $0x90] sm:$0xf0]  ;;  %v14680_v56 = vor.u32 %v16212_v59, %v14677_v24 }
 0xb25   : > { %v14724_v49 = vor.u32 %v16226_v25, %v14723_v34  ;;  %v16207_v15 = vld [vmem:[#allocation36 + $0x64] sm:$0xf]  ;;  %v14653_v34 = vld [vmem:[#allocation36 + $0x70] sm:$0xf0]  ;;  %v16208_v25 = vld [vmem:[#allocation36 + $0x6c] sm:$0xf] }
 0xb27   : > { %9060 = vmatpush.bf16.msrb.mxu3 %v14524_v40  ;;  %9074 = vmatpush.bf16.msra.mxu1 %v14528_v8  ;;  %v14699_v40 = vld [vmem:[#allocation36 + $0xc0] sm:$0xf]  ;;  %v16221_v8 = vld [vmem:[#allocation36 + $0xcc] sm:$0xf0] }
 0xb28   : > { %9088 = vmatpush.bf16.msra.mxu0 %v14532_v4  ;;  %9102 = vmatpush.bf16.msra.mxu2 %v14536_v28  ;;  %v16219_v4 = vld [vmem:[#allocation36 + $0xc4] sm:$0xf]  ;;  %v14701_v28 = vld [vmem:[#allocation36 + $0xd0] sm:$0xf0]  ;;  %v14700_v60 = vor.u32 %v16221_v8, %v14699_v40  ;;  %v14664_v40 = vor.u32 %v16208_v25, %v14661_v18 }
 0xb29   : > { %v14704_v1 = vor.u32 %v16219_v4, %v14701_v28  ;;  %v16203_v8 = vld [vmem:[#allocation36 + $0x44] sm:$0xf]  ;;  %v16206_v4 = vld [vmem:[#allocation36 + $0x54] sm:$0xf0]  ;;  %v16204_v28 = vld [vmem:[#allocation36 + $0x4c] sm:$0xf] }
 0xb2b   : > { %9061 = vmatpush.bf16.msrb.mxu3 %v14508_v51  ;;  %9075 = vmatpush.bf16.msra.mxu1 %v14512_v33  ;;  %v14683_v51 = vld [vmem:[#allocation36 + $0xa0] sm:$0xf]  ;;  %v16217_v33 = vld [vmem:[#allocation36 + $0xac] sm:$0xf0] }
 0xb2c   : > { %9089 = vmatpush.bf16.msra.mxu0 %v14516_v48  ;;  %9103 = vmatpush.bf16.msra.mxu2 %v14520_v55  ;;  %v16215_v48 = vld [vmem:[#allocation36 + $0xa4] sm:$0xf]  ;;  %v14685_v55 = vld [vmem:[#allocation36 + $0xb0] sm:$0xf0]  ;;  %v14684_v58 = vor.u32 %v16217_v33, %v14683_v51  ;;  %v14648_v51 = vor.u32 %v16204_v28, %v14645_v61  ;;  %v19633_v61 = vld [vmem:[#allocation2 + $0x29] sm:$0xf] }
 0xb2d   : > { %v14688_v20 = vor.u32 %v16215_v48, %v14685_v55  ;;  %v16199_v33 = vld [vmem:[#allocation36 + $0x24] sm:$0xf]  ;;  %v16202_v48 = vld [vmem:[#allocation36 + $0x34] sm:$0xf0]  ;;  %v16200_v55 = vld [vmem:[#allocation36 + $0x2c] sm:$0xf] }
 0xb2f   : > { %9062 = vmatpush.bf16.msrb.mxu3 %v14492_v46  ;;  %9076 = vmatpush.bf16.msra.mxu1 %v14496_v5  ;;  %v16213_v46 = vld [vmem:[#allocation36 + $0x8c] sm:$0xf0]  ;;  %v14692_v5 = vor.u32 %v16218_v45, %v14691_v11  ;;  %v14629_v11 = vld [vmem:[#allocation36 + $0x38] sm:$0xf0] }
 0xb30   : > { %9090 = vmatpush.bf16.msra.mxu0 %v14500_v22  ;;  %9104 = vmatpush.bf16.msra.mxu2 %v14504_v32  ;;  %v14675_v22 = vld [vmem:[#allocation36 + $0x88] sm:$0xf]  ;;  %v16214_v32 = vld [vmem:[#allocation36 + $0x94] sm:$0xf0]  ;;  %v14668_v62 = vor.u32 %v16213_v46, %v14667_v3  ;;  %v14632_v3 = vor.u32 %v16200_v55, %v14629_v11  ;;  %v16195_v46 = vld [vmem:[#allocation36 + $0x4] sm:$0xf] }
 0xb31   : > { %v14676_v35 = vor.u32 %v16214_v32, %v14675_v22  ;;  %v14613_v22 = vld [vmem:[#allocation36 + $0x18] sm:$0xf0]  ;;  %v14971_v11 = vld [vmem:[#allocation34 + $0x1e0] sm:$0xf] }
 0xb33   : > { %9063 = vmatpush.bf16.msrb.mxu3 %v14476_v23  ;;  %9077 = vmatpush.bf16.msra.mxu1 %v14480_v30  ;;  %v14659_v23 = vld [vmem:[#allocation36 + $0x68] sm:$0xf]  ;;  %v16210_v30 = vld [vmem:[#allocation36 + $0x74] sm:$0xf0] }
 0xb34   : > { %9091 = vmatpush.bf16.msra.mxu0 %v14484_v54  ;;  %9105 = vmatpush.bf16.msra.mxu2 %v14488_v52  ;;  %v14656_v54 = vor.u32 %v16207_v15, %v14653_v34  ;;  %v14635_v52 = vld [vmem:[#allocation36 + $0x40] sm:$0xf] }
 0xb36   : > { %9064 = vmatmul.bf16.vlgmr.msrb.gmra.mxu3 %v18495_v43  ;;  %9078 = vmatmul.bf16.vlgmr.msra.gmra.mxu1 %v18495_v43 }
 0xb37   : > { %9272 = vmatpush.bf16.msra.mxu3 %v14716_v38  ;;  %9286 = vmatpush.bf16.msrb.mxu1 %v14720_v7  ;;  %v16205_v38 = vld [vmem:[#allocation36 + $0x4c] sm:$0xf0]  ;;  %v14660_v7 = vor.u32 %v16210_v30, %v14659_v23 }
 0xb38   : > { %9300 = vmatpush.bf16.msrb.mxu0 %v14724_v49  ;;  %9314 = vmatpush.bf16.msrb.mxu2 %v14728_v39  ;;  %v14637_v49 = vld [vmem:[#allocation36 + $0x50] sm:$0xf0]  ;;  %v14643_v39 = vld [vmem:[#allocation36 + $0x48] sm:$0xf]  ;;  %v14636_v6 = vor.u32 %v16205_v38, %v14635_v52 }
 0xb39   : > { %9092 = vmatmul.bf16.vlgmr.msra.gmra.mxu0 %v18495_v43  ;;  %9106 = vmatmul.bf16.vlgmr.msra.gmra.mxu2 %v18495_v43  ;;  %v14672_v43 = vor.u32 %v16211_v37, %v14669_v12  ;;  %v14640_v21 = vor.u32 %v16203_v8, %v14637_v49  ;;  %v16198_v37 = vld [vmem:[#allocation36 + $0x14] sm:$0xf0]  ;;  %v16196_v12 = vld [vmem:[#allocation36 + $0xc] sm:$0xf] }
 0xb3b   : > { %9273 = vmatpush.bf16.msra.mxu3 %v14700_v60  ;;  %9287 = vmatpush.bf16.msrb.mxu1 %v14704_v1  ;;  %v16201_v60 = vld [vmem:[#allocation36 + $0x2c] sm:$0xf0]  ;;  %v14644_v1 = vor.u32 %v16206_v4, %v14643_v39 }
 0xb3c   : > { %9301 = vmatpush.bf16.msrb.mxu0 %v14708_v10  ;;  %9315 = vmatpush.bf16.msrb.mxu2 %v14712_v9  ;;  %v14621_v10 = vld [vmem:[#allocation36 + $0x30] sm:$0xf0]  ;;  %v14627_v9 = vld [vmem:[#allocation36 + $0x28] sm:$0xf]  ;;  %v14620_v45 = vor.u32 %v16201_v60, %v14619_v14 }
 0xb3d   : > { %v14624_v63 = vor.u32 %v16199_v33, %v14621_v10 }
 0xb3f   : > { %9274 = vmatpush.bf16.msra.mxu3 %v14684_v58  ;;  %9288 = vmatpush.bf16.msrb.mxu1 %v14688_v20  ;;  %v16197_v58 = vld [vmem:[#allocation36 + $0xc] sm:$0xf0]  ;;  %v14628_v20 = vor.u32 %v16202_v48, %v14627_v9  ;;  %v8658_v9 = vperm.slane %v19633_v61, 2 }
 0xb40   : > { %9302 = vmatpush.bf16.msrb.mxu0 %v14692_v5  ;;  %9316 = vmatpush.bf16.msrb.mxu2 %v14696_v17  ;;  %v14605_v5 = vld [vmem:[#allocation36 + $0x10] sm:$0xf0]  ;;  %v14611_v17 = vld [vmem:[#allocation36 + $0x8] sm:$0xf]  ;;  %v14604_v32 = vor.u32 %v16197_v58, %v14603_v36 }
 0xb41   : > { %v14608_v59 = vor.u32 %v16195_v46, %v14605_v5  ;;  %v14612_v24 = vor.u32 %v16198_v37, %v14611_v17 }
 0xb43   : > { %9275 = vmatpush.bf16.msra.mxu3 %v14668_v62  ;;  %9289 = vmatpush.bf16.msrb.mxu1 %v14672_v43  ;;  %v14616_v62 = vor.u32 %v16196_v12, %v14613_v22 }
 0xb44   : > { %9303 = vmatpush.bf16.msrb.mxu0 %v14676_v35  ;;  %9317 = vmatpush.bf16.msrb.mxu2 %v14680_v56 }
 0xb47   : > { %9276 = vmatpush.bf16.msra.mxu3 %v14652_v26  ;;  %9290 = vmatpush.bf16.msrb.mxu1 %v14656_v54 }
 0xb48   : > { %9304 = vmatpush.bf16.msrb.mxu0 %v14660_v7  ;;  %9318 = vmatpush.bf16.msrb.mxu2 %v14664_v40 }
 0xb4b   : > { %9277 = vmatpush.bf16.msra.mxu3 %v14636_v6  ;;  %9291 = vmatpush.bf16.msrb.mxu1 %v14640_v21 }
 0xb4c   : > { %9305 = vmatpush.bf16.msrb.mxu0 %v14644_v1  ;;  %9319 = vmatpush.bf16.msrb.mxu2 %v14648_v51  ;;  %v8657_v1 = vperm.slane %v19633_v61, 1 }
 0xb4f   : > { %9278 = vmatpush.bf16.msra.mxu3 %v14620_v45  ;;  %9292 = vmatpush.bf16.msrb.mxu1 %v14624_v63  ;;  %v16321_v45 = vld [vmem:[#allocation34 + $0x1ec] sm:$0xf0]  ;;  %v15099_v63 = vld [vmem:[#allocation34 + $0x2e0] sm:$0xf] }
 0xb50   : > { %9306 = vmatpush.bf16.msrb.mxu0 %v14628_v20  ;;  %9320 = vmatpush.bf16.msrb.mxu2 %v14632_v3  ;;  %v14972_v58 = vor.u32 %v16321_v45, %v14971_v11  ;;  %v16353_v20 = vld [vmem:[#allocation34 + $0x2ec] sm:$0xf0]  ;;  %v15067_v45 = vld [vmem:[#allocation34 + $0x2a0] sm:$0xf] }
 0xb51   : > { %v15100_v46 = vor.u32 %v16353_v20, %v15099_v63  ;;  %v16313_v11 = vld [vmem:[#allocation34 + $0x1ac] sm:$0xf0] }
 0xb52   : > { %v7932_v43 = vpop.f32.mrf.mxu1 }
 0xb53   : > { %9279 = vmatpush.bf16.msra.mxu3 %v14604_v32  ;;  %9293 = vmatpush.bf16.msrb.mxu1 %v14608_v59  ;;  %v7946_v41 = vpop.f32.mrf.mxu0 }
 0xb54   : > { %9307 = vmatpush.bf16.msrb.mxu0 %v14612_v24  ;;  %9321 = vmatpush.bf16.msrb.mxu2 %v14616_v62  ;;  %v8656_v24 = vperm.slane %v19633_v61, 0  ;;  %v14955_v62 = vld [vmem:[#allocation34 + $0x1c0] sm:$0xf] }
 0xb56   : > { %9280 = vmatmul.bf16.vlgmr.msra.gmra.mxu3 %v18512_v57  ;;  %9294 = vmatmul.bf16.vlgmr.msrb.gmra.mxu1 %v18512_v57 }
 0xb57   : > { %9308 = vmatmul.bf16.vlgmr.msrb.gmra.mxu0 %v18512_v57  ;;  %9322 = vmatmul.bf16.vlgmr.msrb.gmra.mxu2 %v18512_v57 }
 0xb58   : > { %v7918_v0 = vpop.f32.mrf.mxu3  ;;  %10150 = vmatpush.bf16.msra.mxu1 %v14972_v58  ;;  %10164 = vmatpush.bf16.msra.mxu0 %v15100_v46  ;;  %v16345_v58 = vld [vmem:[#allocation34 + $0x2ac] sm:$0xf0] }
 0xb59   : > { %v7960_v35 = vpop.f32.mrf.mxu2 }
 0xb5a   : > { %v7934_v56 = vpop.f32.mrf.mxu1 }
 0xb5b   : > { %v7948_v15 = vpop.f32.mrf.mxu0 }
 0xb60   : > { %v7920_v34 = vpop.f32.mrf.mxu3 }
 0xb61   : > { %v19627_v23 = vpop.f32.mrf.mxu2 }
 0xb62   : > { %v8308_v30 = vpop.f32.mrf.mxu1 }
 0xb63   : > { %v8322_v25 = vpop.f32.mrf.mxu0 }
 0xb64   : > { %v8323_v6 = vadd.f32 %v8322_v25, %v7932_v43  ;;  %v16317_v43 = vld [vmem:[#allocation34 + $0x1cc] sm:$0xf0] }
 0xb65   : > { %v14956_v25 = vor.u32 %v16317_v43, %v14955_v62  ;;  %v15211_v43 = vld [vmem:[#allocation34 + $0x3c0] sm:$0xf] }
 0xb67   : > { %10151 = vmatpush.bf16.msra.mxu1 %v14956_v25 }
 0xb68   : > { %v8294_v18 = vpop.f32.mrf.mxu3 }
 0xb69   : > { %v8336_v26 = vpop.f32.mrf.mxu2  ;;  %v8295_v51 = vadd.f32 %v8294_v18, %v7918_v0  ;;  %v15083_v18 = vld [vmem:[#allocation34 + $0x2c0] sm:$0xf] }
 0xb6a   : > { %v19629_v54 = vpop.f32.mrf.mxu1  ;;  %v8337_v14 = vadd.f32 %v8336_v26, %v8323_v6  ;;  %v16349_v26 = vld [vmem:[#allocation34 + $0x2cc] sm:$0xf0] }
 0xb6b   : > { %v8324_v52 = vpop.f32.mrf.mxu0  ;;  %v8309_v12 = vadd.f32 %v8308_v30, %v8295_v51  ;;  %v16385_v51 = vld [vmem:[#allocation34 + $0x3ec] sm:$0xf0] }
 0xb6c   : > { %v8325_v22 = vadd.f32 %v8324_v52, %v7934_v56  ;;  %v15084_v52 = vor.u32 %v16349_v26, %v15083_v18  ;;  %v14923_v18 = vld [vmem:[#allocation34 + $0x180] sm:$0xf] }
 0xb6e   : > { %10165 = vmatpush.bf16.msra.mxu0 %v15084_v52 }
 0xb70   : > { %v8296_v38 = vpop.f32.mrf.mxu3 }
 0xb71   : > { %v8338_v7 = vpop.f32.mrf.mxu2  ;;  %v8297_v32 = vadd.f32 %v8296_v38, %v7920_v34  ;;  %v14843_v38 = vld [vmem:[#allocation34 + $0xe0] sm:$0xf] }
 0xb72   : > { %v8339_v30 = vadd.f32 %v8338_v7, %v8325_v22 }
 0xb73   : > { %v8364_v40 = vpop.f32.mrf.mxu1 }
 0xb76   : > { %v8378_v57 = vpop.f32.mrf.mxu0 }
 0xb77   : > { %v8379_v5 = vadd.f32 %v8378_v57, %v7960_v35  ;;  %v16289_v57 = vld [vmem:[#allocation34 + $0xec] sm:$0xf0] }
 0xb79   : > { %v8350_v8 = vpop.f32.mrf.mxu3 }
 0xb7a   : > { %v8351_v28 = vadd.f32 %v8350_v8, %v7946_v41 }
 0xb7b   : > { %v8366_v39 = vpop.f32.mrf.mxu1 }
 0xb7c   : > { %v8392_v49 = vpop.f32.mrf.mxu2  ;;  %v8365_v10 = vadd.f32 %v8364_v40, %v8351_v28 }
 0xb7d   : > { %v8393_v41 = vadd.f32 %v8392_v49, %v8379_v5  ;;  %v14844_v49 = vor.u32 %v16289_v57, %v14843_v38  ;;  %v15068_v5 = vor.u32 %v16345_v58, %v15067_v45  ;;  %v15051_v57 = vld [vmem:[#allocation34 + $0x280] sm:$0xf] }
 0xb7e   : > { %v19631_v4 = vpop.f32.mrf.mxu0 }
 0xb7f   : > { %10136 = vmatpush.bf16.msrb.mxu3 %v14844_v49  ;;  %10166 = vmatpush.bf16.msra.mxu0 %v15068_v5  ;;  %v8381_v58 = vadd.f32 %v19631_v4, %v19627_v23 }
 0xb81   : > { %v8352_v21 = vpop.f32.mrf.mxu3 }
 0xb82   : > { %v8353_v17 = vadd.f32 %v8352_v21, %v7948_v15  ;;  %v8659_v15 = vperm.slane %v19633_v61, 3 }
 0xb84   : > { %v19635_v60 = vpop.f32.mrf.mxu2  ;;  %v8367_v21 = vadd.f32 %v8366_v39, %v8353_v17  ;;  %v14827_v17 = vld [vmem:[#allocation34 + $0xc0] sm:$0xf] }
 0xb93   : > { %v8613_v33 = vpop.f32.mrf.mxu1 }
 0xb94   : > { %v8647_v48 = vadd.f32 %v8613_v33, %v8337_v14  ;;  %v15227_v14 = vld [vmem:[#allocation34 + $0x3e0] sm:$0xf] }
 0xb96   : > { %v8627_v55 = vpop.f32.mrf.mxu0  ;;  %v19641_v3 = vadd.f32 %v8657_v1, %v8647_v48  ;;  %v15228_v48 = vor.u32 %v16385_v51, %v15227_v14  ;;  %v14811_v14 = vld [vmem:[#allocation34 + $0xa0] sm:$0xf]  ;;  %v16281_v51 = vld [vmem:[#allocation34 + $0xac] sm:$0xf0] }
 0xb97   : > { %v8648_v36 = vadd.f32 %v8627_v55, %v8365_v10  ;;  %v14939_v55 = vld [vmem:[#allocation34 + $0x1a0] sm:$0xf]  ;;  %v14812_v45 = vor.u32 %v16281_v51, %v14811_v14  ;;  %v16369_v51 = vld [vmem:[#allocation34 + $0x36c] sm:$0xf0] }
 0xb98   : > { %v8673_v59 = vsub.f32 0.0, %v19641_v3  ;;  %10178 = vmatpush.bf16.msra.mxu2 %v15228_v48  ;;  %v14907_v48 = vld [vmem:[#allocation34 + $0x160] sm:$0xf] }
 0xb99   : > { %v19645_v37 = vadd.f32 %v8658_v9, %v8648_v36  ;;  %v8599_v35 = vpop.f32.mrf.mxu3  ;;  %v14940_v36 = vor.u32 %v16313_v11, %v14939_v55  ;;  %v16305_v11 = vld [vmem:[#allocation34 + $0x16c] sm:$0xf0] }
 0xb9a   : > { %v8682_v40 = vmul.f32 1.442695, %v8673_v59  ;;  %v8646_v56 = vadd.f32 %v8599_v35, %v8309_v12  ;;  %v16285_v12 = vld [vmem:[#allocation34 + $0xcc] sm:$0xf0]  ;;  %v14908_v5 = vor.u32 %v16305_v11, %v14907_v48  ;;  %v14973_v11 = vld [vmem:[#allocation34 + $0x1f0] sm:$0xf0] }
 0xb9b   : > { %v8674_v0 = vsub.f32 0.0, %v19645_v37  ;;  %v8615_v6 = vpop.f32.mrf.mxu1  ;;  %10152 = vmatpush.bf16.msra.mxu1 %v14940_v36  ;;  %v14828_v62 = vor.u32 %v16285_v12, %v14827_v17 }
 0xb9c   : > { %v8641_v34 = vpop.f32.mrf.mxu2  ;;  %16959 = vpow2.f32 %v8682_v40  ;;  %v19653_v33 = vadd.f32 %v8656_v24, %v8646_v56  ;;  %v8651_v7 = vadd.f32 %v8615_v6, %v8339_v30  ;;  %v16309_v56 = vld [vmem:[#allocation34 + $0x18c] sm:$0xf0] }
 0xb9d   : > { %v8684_v8 = vmul.f32 1.442695, %v8674_v0  ;;  %v8649_v28 = vadd.f32 %v8641_v34, %v8393_v41  ;;  %v16381_v41 = vld [vmem:[#allocation34 + $0x3cc] sm:$0xf0]  ;;  %10137 = vmatpush.bf16.msrb.mxu3 %v14828_v62  ;;  %v14924_v38 = vor.u32 %v16309_v56, %v14923_v18 }
 0xb9e   : > { %v8629_v10 = vpop.f32.mrf.mxu0  ;;  %v8672_v20 = vsub.f32 0.0, %v19653_v33  ;;  %v19662_v46 = vadd.f32 %v8657_v1, %v8651_v7  ;;  %v8311_v1 = vadd.f32 %v19629_v54, %v8297_v32  ;;  %v15212_v25 = vor.u32 %v16381_v41, %v15211_v43  ;;  %v15195_v7 = vld [vmem:[#allocation34 + $0x3a0] sm:$0xf] }
 0xb9f   : > { %16961 = vpow2.f32 %v8684_v8  ;;  %v19657_v39 = vadd.f32 %v8659_v15, %v8649_v28  ;;  %v8652_v63 = vadd.f32 %v8629_v10, %v8367_v21  ;;  %v16341_v8 = vld [vmem:[#allocation34 + $0x28c] sm:$0xf0]  ;;  %10153 = vmatpush.bf16.msra.mxu1 %v14924_v38  ;;  %v8395_v43 = vadd.f32 %v19635_v60, %v8381_v58  ;;  %v15179_v58 = vld [vmem:[#allocation34 + $0x380] sm:$0xf] }
 0xba0   : > { %v8680_v0 = vmul.f32 1.442695, %v8672_v20  ;;  %v8677_v35 = vsub.f32 0.0, %v19662_v46  ;;  %10179 = vmatpush.bf16.msra.mxu2 %v15212_v25  ;;  %v15052_v49 = vor.u32 %v16341_v8, %v15051_v57  ;;  %v16377_v10 = vld [vmem:[#allocation34 + $0x3ac] sm:$0xf0] }
 0xba1   : > { %20543 = vst [vmem:[#allocation87_spill] sm:$0xff] %v19657_v39  ;;  %v8675_v22 = vsub.f32 0.0, %v19657_v39  ;;  %v19667_v59 = vadd.f32 %v8658_v9, %v8652_v63  ;;  %v8601_v40 = vpop.f32.mrf.mxu3  ;;  %v16337_v63 = vld [vmem:[#allocation34 + $0x26c] sm:$0xf0]  ;;  %v15196_v20 = vor.u32 %v16377_v10, %v15195_v7  ;;  %10138 = vmatpush.bf16.msrb.mxu3 %v14812_v45  ;;  %v15053_v39 = vld [vmem:[#allocation34 + $0x290] sm:$0xf0] }
 0xba2   : > { %v16960_v9 = vpop.eup %16959  ;;  %v8690_v34 = vmul.f32 1.442695, %v8677_v35  ;;  %v8650_v52 = vadd.f32 %v8601_v40, %v8311_v1  ;;  %16963 = vpow2.f32 %v8680_v0  ;;  %10167 = vmatpush.bf16.msra.mxu0 %v15052_v49 }
 0xba3   : > { %v8686_v26 = vmul.f32 1.442695, %v8675_v22  ;;  %v8678_v30 = vsub.f32 0.0, %v19667_v59  ;;  %v19672_v6 = vadd.f32 1.0, %v16960_v9  ;;  %10154 = vmatpush.bf16.msra.mxu1 %v14908_v5  ;;  %v14891_v5 = vld [vmem:[#allocation34 + $0x140] sm:$0xf] }
 0xba4   : > { %v19678_v21 = vadd.f32 %v8656_v24, %v8650_v52  ;;  %v15035_v24 = vld [vmem:[#allocation34 + $0x260] sm:$0xf]  ;;  %v8643_v12 = vpop.f32.mrf.mxu2  ;;  %10180 = vmatpush.bf16.msra.mxu2 %v15196_v20  ;;  %v16373_v20 = vld [vmem:[#allocation34 + $0x38c] sm:$0xf0] }
 0xba5   : > { %v16962_v28 = vpop.eup %16961  ;;  %v8692_v54 = vmul.f32 1.442695, %v8678_v30  ;;  %16965 = vpow2.f32 %v8686_v26  ;;  %v15036_v22 = vor.u32 %v16337_v63, %v15035_v24  ;;  %v8653_v25 = vadd.f32 %v8643_v12, %v8395_v43  ;;  %v14795_v63 = vld [vmem:[#allocation34 + $0x80] sm:$0xf] }
 0xba6   : > { %v19674_v32 = vadd.f32 1.0, %v16962_v28  ;;  %20544 = vst [vmem:[#allocation88_spill] sm:$0xff] %v19678_v21  ;;  %16967 = vrcp.f32 %v19672_v6  ;;  %v8676_v55 = vsub.f32 0.0, %v19678_v21  ;;  %v8730_v9 = vand.u32 2147483648, %v19672_v6  ;;  %v15019_v43 = vld [vmem:[#allocation34 + $0x240] sm:$0xf] }
 0xba7   : > { %16969 = vpow2.f32 %v8690_v34  ;;  %10168 = vmatpush.bf16.msra.mxu0 %v15036_v22  ;;  %v19705_v40 = vadd.f32 %v8659_v15, %v8653_v25  ;;  %v8728_v38 = vand.u32 2147483647, %v19672_v6  ;;  %vm8724_vm10 = vweird.f32 %v19672_v6  ;;  %v16301_v22 = vld [vmem:[#allocation34 + $0x14c] sm:$0xf0] }
 0xba8   : > { %16971 = vpow2.f32 %v8692_v54  ;;  %v16964_v36 = vpop.eup %16963  ;;  %v8688_v41 = vmul.f32 1.442695, %v8676_v55  ;;  %v8745_v34 = vand.u32 2147483648, %v19674_v32  ;;  %v19717_v28 = vor.u32 1.1754944e-38, %v8730_v9 }
 0xba9   : > { %16973 = vrcp.f32 %v19674_v32  ;;  %v19688_v1 = vadd.f32 1.0, %v16964_v36  ;;  %20545 = vst [vmem:[#allocation89_spill] sm:$0xff] %v19705_v40  ;;  %v8679_v8 = vsub.f32 0.0, %v19705_v40  ;;  %v8743_v54 = vand.u32 2147483647, %v19674_v32 }
 0xbaa   : > { %16975 = vpow2.f32 %v8688_v41  ;;  %v19720_v49 = vor.u32 1.1754944e-38, %v8745_v34  ;;  %vm19732_vm9 = vcmp.eq.f32.partialorder %v8728_v38, 8.507059e+37  ;;  %v16277_v36 = vld [vmem:[#allocation34 + $0x8c] sm:$0xf0]  ;;  %vm8739_vm1 = vweird.f32 %v19674_v32  ;;  %v14925_v40 = vld [vmem:[#allocation34 + $0x190] sm:$0xf0] }
 0xbab   : > { %v16966_v17 = vpop.eup %16965  ;;  %16977 = vrcp.f32 %v19688_v1  ;;  %v8715_v7 = vand.u32 2147483648, %v19688_v1  ;;  %v8694_v24 = vmul.f32 1.442695, %v8679_v8  ;;  %v16333_v41 = vld [vmem:[#allocation34 + $0x24c] sm:$0xf0]  ;;  %vm8709_vm2 = vweird.f32 %v19688_v1 }
 0xbac   : > { %v19685_v62 = vpop.eup %16967  ;;  %v19694_v18 = vadd.f32 1.0, %v16966_v17  ;;  %v19769_v38 = vld [vmem:[#allocation34 + $0x6c] sm:$0xf0]  ;;  %vm19796_vm6 = vcmp.eq.f32.partialorder %v8743_v54, 8.507059e+37  ;;  %v14796_v47 = vor.u32 %v16277_v36, %v14795_v63  ;;  %v14892_v50 = vor.u32 %v16301_v22, %v14891_v5  ;;  %v19808_v54 = vld [vmem:[#allocation34 + $0x340] sm:$0xf] }
 0xbad   : > { %v16970_v0 = vpop.eup %16969  ;;  %v8720_v4 = vmul.f32 %v19685_v62, %v19672_v6  ;;  %vm8725_vm0 = vweird.f32 %v19685_v62  ;;  %v14875_v6 = vld [vmem:[#allocation34 + $0x120] sm:$0xf]  ;;  %v15020_v2 = vor.u32 %v16333_v41, %v15019_v43  ;;  %v19817_v5 = vld [vmem:[#allocation34 + $0x34c] sm:$0xf0] }
 0xbae   : > { %v16972_v35 = vpop.eup %16971  ;;  %v19696_v26 = vadd.f32 1.0, %v16970_v0  ;;  %16979 = vrcp.f32 %v19694_v18  ;;  %v8760_v10 = vand.u32 2147483648, %v19694_v18  ;;  %vm19777_vm4 = vmor %vm8724_vm10, %vm8725_vm0  ;;  %vm8754_vm5 = vweird.f32 %v19694_v18  ;;  %10139 = vmatpush.bf16.msrb.mxu3 %v14796_v47  ;;  %10155 = vmatpush.bf16.msra.mxu1 %v14892_v50  ;;  %v16325_v50 = vld [vmem:[#allocation34 + $0x20c] sm:$0xf0] }
 0xbaf   : > { %v19690_v23 = vpop.eup %16973  ;;  %v19698_v60 = vadd.f32 1.0, %v16972_v35  ;;  %v8721_v56 = vsub.f32 1.0, %v8720_v4  ;;  %10169 = vmatpush.bf16.msra.mxu0 %v15020_v2  ;;  %v14876_v41 = vor.u32 %v16297_v27, %v14875_v6  ;;  %v15004_v2 = vor.u32 %v16329_v31, %v15003_v29  ;;  %v14987_v27 = vld [vmem:[#allocation34 + $0x200] sm:$0xf]  ;;  %v15101_v31 = vld [vmem:[#allocation34 + $0x2f0] sm:$0xf0] }
 0xbb0   : > { %v8735_v30 = vmul.f32 %v19690_v23, %v19674_v32  ;;  %16981 = vrcp.f32 %v19696_v26  ;;  %v16976_v52 = vpop.eup %16975  ;;  %v8790_v4 = vand.u32 2147483648, %v19696_v26  ;;  %vm8740_vm3 = vweird.f32 %v19690_v23  ;;  %v16361_v22 = vld [vmem:[#allocation34 + $0x32c] sm:$0xf0]  ;;  %v20077_v29 = vld [vmem:[#allocation34 + $0x84] sm:$0xf] }
 0xbb1   : > { %16983 = vrcp.f32 %v19698_v60  ;;  %v8722_v61 = vmul.f32 %v19685_v62, %v8721_v56  ;;  %v19715_v15 = vpop.eup %16977  ;;  %v19727_v48 = vadd.f32 1.0, %v16976_v52  ;;  %v19759_v56 = vor.u32 1.1754944e-38, %v8715_v7  ;;  %vm19823_vm8 = vmor %vm8739_vm1, %vm8740_vm3 }
 0xbb2   : > { %v8736_v57 = vsub.f32 1.0, %v8735_v30  ;;  %v19747_v0 = vmul.f32 %v19715_v15, %v19688_v1  ;;  %v19756_v30 = vld [vmem:[#allocation34 + $0x60] sm:$0xf]  ;;  %v19761_v9 = vor.u32 1.1754944e-38, %v8760_v10  ;;  %v15180_v7 = vor.u32 %v16373_v20, %v15179_v58  ;;  %10156 = vmatpush.bf16.msra.mxu1 %v14876_v41  ;;  %v19891_v41 = vld [vmem:[#allocation34 + $0x1c4] sm:$0xf] }
 0xbb3   : > { %v19740_v12 = vadd.f32 %v19685_v62, %v8722_v61  ;;  %16985 = vrcp.f32 %v19727_v48  ;;  %v19767_v52 = vpop.f32.mrf.mxu1  ;;  %v19802_v42 = vor.u32 1.1754944e-38, %v8790_v4  ;;  %v8803_v36 = vand.u32 2147483647, %v19698_v60  ;;  %10170 = vmatpush.bf16.msra.mxu0 %v15004_v2 }
 0xbb4   : > { %v19722_v14 = vpop.eup %16979  ;;  %v8737_v45 = vmul.f32 %v19690_v23, %v8736_v57  ;;  %v19771_v57 = vld [vmem:[#allocation34 + $0x360] sm:$0xf]  ;;  %16987 = vpow2.f32 %v8694_v24  ;;  %v8706_v24 = vsub.f32 1.0, %v19747_v0  ;;  %10181 = vmatpush.bf16.msra.mxu2 %v15180_v7  ;;  %v14780_v58 = vor.u32 %v19769_v38, %v19756_v30  ;;  %v19832_v0 = vld [vmem:[#allocation34 + $0x10c] sm:$0xf0] }
 0xbb5   : > { %v19752_v35 = vmul.f32 %v19722_v14, %v19694_v18  ;;  %v8727_v13 = vsel %vm19777_vm4, %v19685_v62, %v19740_v12  ;;  %v19806_v62 = vld [vmem:[#allocation34 + $0x4c] sm:$0xf0]  ;;  %v15164_v20 = vor.u32 %v16369_v51, %v19771_v57  ;;  %vm8710_vm11 = vweird.f32 %v19715_v15  ;;  %v19830_v51 = vld [vmem:[#allocation34 + $0x100] sm:$0xf]  ;;  %v19846_v30 = vld [vmem:[#allocation34 + $0x1e4] sm:$0xf] }
 0xbb6   : > { %v19729_v55 = vpop.eup %16981  ;;  %v19782_v61 = vadd.f32 %v19690_v23, %v8737_v45  ;;  %v19790_v25 = vpop.f32.mrf.mxu0  ;;  %v8805_v43 = vand.u32 2147483648, %v19698_v60  ;;  %v19837_v32 = vsel %vm19732_vm9, %v19717_v28, %v8727_v13  ;;  %vm8755_vm7 = vweird.f32 %v19722_v14  ;;  %v16351_v57 = vld [vmem:[#allocation34 + $0x2e4] sm:$0xf]  ;;  %vm19861_vm13 = vmor %vm8709_vm2, %vm8710_vm11  ;;  %10140 = vmatpush.bf16.msrb.mxu3 %v14780_v58  ;;  %v16265_v58 = vld [vmem:[#allocation34 + $0x2c] sm:$0xf0] }
 0xbb7   : > { %v19737_v17 = vpop.eup %16983  ;;  %v19765_v34 = vmul.f32 %v19729_v55, %v19696_v26  ;;  %v8751_v16 = vsub.f32 1.0, %v19752_v35  ;;  %v8707_v38 = vmul.f32 %v19715_v15, %v8706_v24  ;;  %vm8785_vm12 = vweird.f32 %v19729_v55  ;;  %vm19882_vm15 = vmor %vm8754_vm5, %vm8755_vm7  ;;  %v20041_v45 = vld [vmem:[#allocation34 + $0x3a4] sm:$0xf] }
 0xbb8   : > { %v19788_v10 = vmul.f32 %v19737_v17, %v19698_v60  ;;  %v8742_v35 = vsel %vm19823_vm8, %v19690_v23, %v19782_v61  ;;  %10182 = vmatpush.bf16.msra.mxu2 %v15164_v20  ;;  %v14764_v61 = vor.u32 %v19806_v62, %v19804_v19  ;;  %v15148_v7 = vor.u32 %v19817_v5, %v19808_v54  ;;  %v15131_v20 = vld [vmem:[#allocation34 + $0x320] sm:$0xf]  ;;  %v19938_v62 = vld [vmem:[#allocation34 + $0xe4] sm:$0xf] }
 0xbb9   : > { %v19810_v12 = vpop.eup %16985  ;;  %v8781_v63 = vsub.f32 1.0, %v19765_v34  ;;  %v19844_v4 = vpop.f32.mrf.mxu3  ;;  %v8752_v13 = vmul.f32 %v19722_v14, %v8751_v16  ;;  %vm8784_vm14 = vweird.f32 %v19696_v26  ;;  %v14860_v24 = vor.u32 %v19832_v0, %v19830_v51  ;;  %v19893_v51 = vld [vmem:[#allocation34 + $0x1d0] sm:$0xf0] }
 0xbba   : > { %v8796_v47 = vsub.f32 1.0, %v19788_v10  ;;  %v16988_v34 = vpop.eup %16987  ;;  %v19853_v28 = vmul.f32 %v19810_v12, %v19727_v48  ;;  %v19872_v10 = vld [vmem:[#allocation34 + $0x20] sm:$0xf]  ;;  %v14976_v5 = vor.u32 %v19846_v30, %v14973_v11  ;;  %v8747_v0 = vsel %vm19796_vm6, %v19720_v49, %v8742_v35  ;;  %vm19905_vm10 = vmor %vm8784_vm14, %vm8785_vm12  ;;  %v15085_v11 = vld [vmem:[#allocation34 + $0x2d0] sm:$0xf0]  ;;  %10141 = vmatpush.bf16.msrb.mxu3 %v14764_v61 }
 0xbbb   : > { %v8782_v16 = vmul.f32 %v19729_v55, %v8781_v63  ;;  %v19866_v8 = vadd.f32 1.0, %v16988_v34  ;;  %v14988_v63 = vor.u32 %v16325_v50, %v14987_v27  ;;  %v19888_v54 = vpop.f32.mrf.mxu1  ;;  %v19899_v2 = vadd.f32 %v19715_v15, %v8707_v38  ;;  %v16347_v38 = vld [vmem:[#allocation34 + $0x2c4] sm:$0xf]  ;;  %10157 = vmatpush.bf16.msra.mxu1 %v14860_v24  ;;  %v19940_v61 = vld [vmem:[#allocation34 + $0xf0] sm:$0xf0] }
 0xbbc   : > { %v19855_v23 = vpop.f32.mrf.mxu2  ;;  %v8797_v6 = vmul.f32 %v19737_v17, %v8796_v47  ;;  %v15104_v47 = vor.u32 %v16351_v57, %v15101_v31  ;;  %v20560_v50 = vand.u32 2147483647, %v19696_v26  ;;  %vm19915_vm0 = vcmp.eq.f32.partialorder %v8803_v36, 8.507059e+37  ;;  %10183 = vmatpush.bf16.msra.mxu2 %v15148_v7  ;;  %v19928_v36 = vld [vmem:[#allocation34] sm:$0xf] }
 0xbbd   : > { %16989 = vrcp.f32 %v19866_v8  ;;  %v19919_v49 = vor.u32 1.1754944e-38, %v8805_v43  ;;  %v8766_v35 = vsub.f32 1.0, %v19853_v28  ;;  %v19925_v57 = vadd.f32 %v19729_v55, %v8782_v16  ;;  %v19932_v43 = vld [vmem:[#allocation34 + $0x300] sm:$0xf]  ;;  %10171 = vmatpush.bf16.msra.mxu0 %v14988_v63  ;;  %v16357_v16 = vld [vmem:[#allocation34 + $0x30c] sm:$0xf0] }
 0xbbe   : > { %vm19911_vm9 = vcmp.eq.f32.partialorder %v20560_v50, 8.507059e+37  ;;  %v19922_v34 = vpop.f32.mrf.mxu0  ;;  %v14748_v26 = vor.u32 %v16265_v58, %v19872_v10  ;;  %v15132_v31 = vor.u32 %v16361_v22, %v15131_v20  ;;  %v19930_v50 = vld [vmem:[#allocation34 + $0xc] sm:$0xf0]  ;;  %v19935_v28 = vadd.f32 %v19737_v17, %v8797_v6  ;;  %v16383_v63 = vld [vmem:[#allocation34 + $0x3e4] sm:$0xf] }
 0xbbf   : > { %vm8800_vm1 = vweird.f32 %v19737_v17  ;;  %v20565_v7 = vand.u32 2147483647, %v19688_v1  ;;  %v19949_v58 = vadd.f32 %v19722_v14, %v8752_v13  ;;  %v20568_v6 = vand.u32 2147483647, %v19694_v18  ;;  %10206 = vmatpush.bf16.msrb.mxu1 %v14976_v5  ;;  %v15229_v22 = vld [vmem:[#allocation34 + $0x3f0] sm:$0xf0] }
 0xbc0   : > { %vm8799_vm4 = vweird.f32 %v19698_v60  ;;  %v14960_v1 = vor.u32 %v19891_v41, %v19893_v51  ;;  %v15088_v24 = vor.u32 %v16347_v38, %v15085_v11  ;;  %v19962_v13 = vmul.f32 %v19837_v32, %v19641_v3  ;;  %v16343_v41 = vld [vmem:[#allocation34 + $0x2a4] sm:$0xf]  ;;  %v15069_v51 = vld [vmem:[#allocation34 + $0x2b0] sm:$0xf0]  ;;  %10142 = vmatpush.bf16.msrb.mxu3 %v14748_v26  ;;  %10184 = vmatpush.bf16.msra.mxu2 %v15132_v31 }
 0xbc1   : > { %vm19944_vm2 = vcmp.eq.f32.partialorder %v20565_v7, 8.507059e+37  ;;  %vm19953_vm3 = vcmp.eq.f32.partialorder %v20568_v6, 8.507059e+37  ;;  %10220 = vmatpush.bf16.msrb.mxu0 %v15104_v47  ;;  %v16311_v7 = vld [vmem:[#allocation34 + $0x1a4] sm:$0xf]  ;;  %v19965_v18 = vmul.f32 %v8747_v0, %v19645_v37  ;;  %v8767_v47 = vmul.f32 %v19810_v12, %v8766_v35  ;;  %v14941_v6 = vld [vmem:[#allocation34 + $0x1b0] sm:$0xf0]  ;;  %vm19982_vm5 = vmor %vm8799_vm4, %vm8800_vm1  ;;  %v19987_v0 = vpop.f32.mrf.mxu3 }
 0xbc2   : > { %v8787_v3 = vsel %vm19905_vm10, %v19729_v55, %v19925_v57  ;;  %v8775_v32 = vand.u32 2147483648, %v19727_v48  ;;  %v14732_v35 = vor.u32 %v19930_v50, %v19928_v36  ;;  %v15116_v27 = vor.u32 %v16357_v16, %v19932_v43  ;;  %v19992_v55 = vld [vmem:[#allocation34 + $0xc4] sm:$0xf]  ;;  %v19994_v11 = vld [vmem:[#allocation34 + $0xd0] sm:$0xf0] }
 0xbc3   : > { %v19972_v38 = vpop.eup %16989  ;;  %v8802_v60 = vsel %vm19982_vm5, %v19737_v17, %v19935_v28  ;;  %v20573_v57 = vand.u32 2147483647, %v19727_v48  ;;  %v14848_v36 = vor.u32 %v19938_v62, %v19940_v61  ;;  %v15232_v50 = vor.u32 %v16383_v63, %v15229_v22  ;;  %v20012_v43 = vld [vmem:[#allocation34 + $0x3c4] sm:$0xf]  ;;  %v15213_v16 = vld [vmem:[#allocation34 + $0x3d0] sm:$0xf0]  ;;  %10207 = vmatpush.bf16.msrb.mxu1 %v14960_v1 }
 0xbc4   : > { %v8810_v26 = vmul.f32 %v19972_v38, %v19866_v8  ;;  %v20008_v31 = vpop.f32.mrf.mxu2  ;;  %v20014_v37 = vld [vmem:[#allocation2 + $0x31] sm:$0xf]  ;;  %v8757_v17 = vsel %vm19882_vm15, %v19722_v14, %v19949_v58  ;;  %v14944_v28 = vor.u32 %v16311_v7, %v14941_v6  ;;  %v8768_v61 = vadd.f32 %v19810_v12, %v8767_v47  ;;  %10143 = vmatpush.bf16.msrb.mxu3 %v14732_v35  ;;  %v20034_v7 = vld [vmem:[#allocation34 + $0xb0] sm:$0xf0] }
 0xbc5   : > { %vm20002_vm6 = vcmp.eq.f32.partialorder %v20573_v57, 8.507059e+37  ;;  %10221 = vmatpush.bf16.msrb.mxu0 %v15088_v24  ;;  %v15072_v57 = vor.u32 %v16343_v41, %v15069_v51  ;;  %v16339_v62 = vld [vmem:[#allocation34 + $0x284] sm:$0xf]  ;;  %vm8770_vm8 = vweird.f32 %v19810_v12  ;;  %v8818_v22 = vand.u32 2147483647, %v19866_v8  ;;  %10185 = vmatpush.bf16.msra.mxu2 %v15116_v27 }
 0xbc6   : > { %v8811_v63 = vsub.f32 1.0, %v8810_v26  ;;  %v8792_v14 = vsel %vm19911_vm9, %v19802_v42, %v8787_v3  ;;  %v8807_v19 = vsel %vm19915_vm0, %v19919_v49, %v8802_v60  ;;  %v8776_v58 = vor.u32 1.1754944e-38, %v8775_v32  ;;  %v20032_v24 = vld [vmem:[#allocation34 + $0xa4] sm:$0xf]  ;;  %v15197_v49 = vld [vmem:[#allocation34 + $0x3b0] sm:$0xf0] }
 0xbc7   : > { %v9331_v1 = vperm.slane %v20014_v37, 1  ;;  %vm8769_vm11 = vweird.f32 %v19727_v48  ;;  %v14832_v42 = vor.u32 %v19992_v55, %v19994_v11  ;;  %v15216_v30 = vor.u32 %v20012_v43, %v15213_v16  ;;  %v20043_v6 = vld [vmem:[#allocation34 + $0x164] sm:$0xf]  ;;  %10208 = vmatpush.bf16.msrb.mxu1 %v14944_v28  ;;  %v14909_v35 = vld [vmem:[#allocation34 + $0x170] sm:$0xf0] }
 0xbc8   : > { %v8812_v47 = vmul.f32 %v19972_v38, %v8811_v63  ;;  %10192 = vmatpush.bf16.msra.mxu3 %v14848_v36  ;;  %vm20047_vm7 = vmor %vm8769_vm11, %vm8770_vm8  ;;  %v8820_v48 = vand.u32 2147483648, %v19866_v8  ;;  %v9332_v51 = vperm.slane %v20014_v37, 2  ;;  %v14928_v3 = vor.u32 %v20020_v53, %v14925_v40  ;;  %v16335_v27 = vld [vmem:[#allocation34 + $0x264] sm:$0xf]  ;;  %v15181_v26 = vld [vmem:[#allocation34 + $0x390] sm:$0xf0] }
 0xbc9   : > { %10234 = vmatpush.bf16.msrb.mxu2 %v15232_v50  ;;  %10222 = vmatpush.bf16.msrb.mxu0 %v15072_v57  ;;  %v15056_v32 = vor.u32 %v16339_v62, %v15053_v39  ;;  %v20578_v55 = vsel %vm19861_vm13, %v19715_v15, %v19899_v2  ;;  %v20067_v60 = vsel %vm19953_vm3, %v19761_v9, %v8757_v17  ;;  %vm20072_vm12 = vcmp.eq.f32.partialorder %v8818_v22, 8.507059e+37  ;;  %v15037_v15 = vld [vmem:[#allocation34 + $0x270] sm:$0xf0]  ;;  %v20085_v20 = vld [vmem:[#allocation34 + $0x384] sm:$0xf] }
 0xbca   : > { %v20062_v11 = vsel %vm19944_vm2, %v19759_v56, %v20578_v55  ;;  %v8772_v53 = vsel %vm20047_vm7, %v19810_v12, %v8768_v61  ;;  %v20079_v56 = vld [vmem:[#allocation34 + $0x90] sm:$0xf0]  ;;  %v8829_v2 = vmul.f32 %v8792_v14, %v19662_v46  ;;  %v8830_v9 = vmul.f32 %v8807_v19, %v19667_v59  ;;  %v20087_v36 = vld [vmem:[#allocation34 + $0x144] sm:$0xf] }
 0xbcb   : > { %vm8815_vm13 = vweird.f32 %v19972_v38  ;;  %vm8814_vm14 = vweird.f32 %v19866_v8  ;;  %v14816_v46 = vor.u32 %v20032_v24, %v20034_v7  ;;  %v15200_v59 = vor.u32 %v20041_v45, %v15197_v49  ;;  %v14893_v50 = vld [vmem:[#allocation34 + $0x150] sm:$0xf0]  ;;  %10209 = vmatpush.bf16.msrb.mxu1 %v14928_v3  ;;  %v20099_v62 = vld [vmem:[#allocation34 + $0x64] sm:$0xf] }
 0xbcc   : > { %10193 = vmatpush.bf16.msra.mxu3 %v14832_v42  ;;  %v20096_v43 = vsel %vm20002_vm6, %v8776_v58, %v8772_v53  ;;  %v8821_v16 = vor.u32 1.1754944e-38, %v8820_v48  ;;  %v14912_v17 = vor.u32 %v20043_v6, %v14909_v35  ;;  %v15040_v28 = vor.u32 %v16335_v27, %v15037_v15  ;;  %vm20105_vm15 = vmor %vm8814_vm14, %vm8815_vm13  ;;  %v20115_v58 = vld [vmem:[#allocation34 + $0x70] sm:$0xf0]  ;;  %v20117_v24 = vld [vmem:[#allocation34 + $0x364] sm:$0xf] }
 0xbcd   : > { %10235 = vmatpush.bf16.msrb.mxu2 %v15216_v30  ;;  %10223 = vmatpush.bf16.msrb.mxu0 %v15056_v32  ;;  %v14800_v63 = vor.u32 %v20077_v29, %v20079_v56  ;;  %v15184_v22 = vor.u32 %v20085_v20, %v15181_v26  ;;  %v15165_v30 = vld [vmem:[#allocation34 + $0x370] sm:$0xf0]  ;;  %v20123_v45 = vld [vmem:[#allocation34 + $0x124] sm:$0xf]  ;;  %v9330_v41 = vperm.slane %v20014_v37, 0  ;;  %v9333_v35 = vperm.slane %v20014_v37, 3 }
 0xbce   : > { %v20125_v49 = vld [vmem:[#allocation34 + $0x130] sm:$0xf0]  ;;  %v16327_v48 = vld [vmem:[#allocation34 + $0x224] sm:$0xf]  ;;  %v14784_v27 = vor.u32 %v20099_v62, %v20115_v58  ;;  %v15168_v53 = vor.u32 %v20117_v24, %v15165_v30  ;;  %v14963_v30 = vld [vmem:[#allocation34 + $0x1c8] sm:$0xf] }
 0xbcf   : > { %v15005_v3 = vld [vmem:[#allocation34 + $0x230] sm:$0xf0]  ;;  %10210 = vmatpush.bf16.msrb.mxu1 %v14912_v17  ;;  %v16363_v20 = vld [vmem:[#allocation34 + $0x344] sm:$0xf]  ;;  %v14979_v17 = vld [vmem:[#allocation34 + $0x1e8] sm:$0xf] }
 0xbd0   : > { %10194 = vmatpush.bf16.msra.mxu3 %v14816_v46  ;;  %v15008_v29 = vor.u32 %v16327_v48, %v15005_v3  ;;  %v14765_v56 = vld [vmem:[#allocation34 + $0x50] sm:$0xf0]  ;;  %v16323_v46 = vld [vmem:[#allocation34 + $0x204] sm:$0xf] }
 0xbd1   : > { %10236 = vmatpush.bf16.msrb.mxu2 %v15200_v59  ;;  %10224 = vmatpush.bf16.msrb.mxu0 %v15040_v28  ;;  %v15149_v26 = vld [vmem:[#allocation34 + $0x350] sm:$0xf0]  ;;  %v16259_v3 = vld [vmem:[#allocation34 + $0x4] sm:$0xf] }
 0xbd2   : > { %v14989_v59 = vld [vmem:[#allocation34 + $0x210] sm:$0xf0]  ;;  %v15152_v61 = vor.u32 %v16363_v20, %v15149_v26  ;;  %v16286_v20 = vld [vmem:[#allocation34 + $0xd4] sm:$0xf0] }
 0xbd3   : > { %v9295_v44 = vpop.f32.mrf.mxu1  ;;  %v20585_v28 = vld [vmem:[#allocation89_spill] sm:$0xff] }
 0xbd4   : > { %v9309_v21 = vpop.f32.mrf.mxu0  ;;  %v9296_v40 = vadd.f32 %v9295_v44, %v19767_v52  ;;  %v8813_v44 = vadd.f32 %v19972_v38, %v8812_v47  ;;  %v14896_v47 = vor.u32 %v20087_v36, %v14893_v50  ;;  %10195 = vmatpush.bf16.msra.mxu3 %v14800_v63  ;;  %v16291_v36 = vld [vmem:[#allocation34 + $0x104] sm:$0xf]  ;;  %v15107_v63 = vld [vmem:[#allocation34 + $0x2e8] sm:$0xf]  ;;  %v14749_v24 = vld [vmem:[#allocation34 + $0x30] sm:$0xf0] }
 0xbd5   : > { %v9310_v10 = vadd.f32 %v9309_v21, %v19790_v25  ;;  %v16331_v21 = vld [vmem:[#allocation34 + $0x244] sm:$0xf]  ;;  %v15021_v25 = vld [vmem:[#allocation34 + $0x250] sm:$0xf0]  ;;  %10237 = vmatpush.bf16.msrb.mxu2 %v15184_v22  ;;  %v14992_v22 = vor.u32 %v16323_v46, %v14989_v59  ;;  %v16310_v46 = vld [vmem:[#allocation34 + $0x194] sm:$0xf0] }
 0xbd6   : > { %v9339_v5 = vadd.f32 %v9331_v1, %v9296_v40  ;;  %v15024_v42 = vor.u32 %v16331_v21, %v15021_v25  ;;  %10211 = vmatpush.bf16.msrb.mxu1 %v14896_v47  ;;  %v20583_v50 = vld [vmem:[#allocation87_spill] sm:$0xff]  ;;  %v20584_v21 = vld [vmem:[#allocation88_spill] sm:$0xff] }
 0xbd7   : > { %v9340_v8 = vadd.f32 %v9332_v51, %v9310_v10  ;;  %v8828_v25 = vmul.f32 %v20096_v43, %v20584_v21  ;;  %v16263_v43 = vld [vmem:[#allocation34 + $0x24] sm:$0xf]  ;;  %v15059_v59 = vld [vmem:[#allocation34 + $0x288] sm:$0xf] }
 0xbd8   : > { %10225 = vmatpush.bf16.msrb.mxu0 %v15024_v42  ;;  %10196 = vmatpush.bf16.msra.mxu3 %v14784_v27  ;;  %v14851_v27 = vld [vmem:[#allocation34 + $0xe8] sm:$0xf] }
 0xbd9   : > { %v9281_v12 = vpop.f32.mrf.mxu3  ;;  %10238 = vmatpush.bf16.msrb.mxu2 %v15168_v53  ;;  %v14819_v21 = vld [vmem:[#allocation34 + $0xa8] sm:$0xf] }
 0xbda   : > { %v9323_v52 = vpop.f32.mrf.mxu2  ;;  %v9282_v6 = vadd.f32 %v9281_v12, %v19844_v4  ;;  %v9347_v4 = vadd.f32 %v9339_v5, %v19962_v13  ;;  %v16322_v5 = vld [vmem:[#allocation34 + $0x1f4] sm:$0xf0] }
 0xbdb   : > { %v9297_v57 = vpop.f32.mrf.mxu1  ;;  %v9324_v32 = vadd.f32 %v9323_v52, %v19855_v23  ;;  %v9348_v23 = vadd.f32 %v9340_v8, %v19965_v18  ;;  %v8824_v52 = vmul.f32 %v20062_v11, %v19653_v33  ;;  %v16354_v33 = vld [vmem:[#allocation34 + $0x2f4] sm:$0xf0]  ;;  %v16359_v8 = vld [vmem:[#allocation34 + $0x324] sm:$0xf]  ;;  %v14980_v47 = vor.u32 %v16322_v5, %v14979_v17 }
 0xbdc   : > { %v9298_v14 = vadd.f32 %v9297_v57, %v19888_v54  ;;  %v9311_v19 = vpop.f32.mrf.mxu0  ;;  %v8817_v54 = vsel %vm20105_vm15, %v19972_v38, %v8813_v44  ;;  %v9338_v10 = vadd.f32 %v9330_v41, %v9282_v6  ;;  %10226 = vmatpush.bf16.msrb.mxu0 %v15008_v29  ;;  %v15108_v42 = vor.u32 %v16354_v33, %v15107_v63  ;;  %v15091_v6 = vld [vmem:[#allocation34 + $0x2c8] sm:$0xf]  ;;  %v16338_v5 = vld [vmem:[#allocation34 + $0x274] sm:$0xf0] }
 0xbdd   : > { %v9312_v7 = vadd.f32 %v9311_v19, %v19922_v34  ;;  %v8822_v40 = vsel %vm20072_vm12, %v8821_v16, %v8817_v54  ;;  %v9341_v39 = vadd.f32 %v9333_v35, %v9324_v32  ;;  %v16318_v54 = vld [vmem:[#allocation34 + $0x1d4] sm:$0xf0]  ;;  %10239 = vmatpush.bf16.msrb.mxu2 %v15152_v61  ;;  %v14733_v32 = vld [vmem:[#allocation34 + $0x10] sm:$0xf0]  ;;  %v15075_v29 = vld [vmem:[#allocation34 + $0x2a8] sm:$0xf] }
 0xbde   : > { %v9343_v34 = vadd.f32 %v9331_v1, %v9298_v14  ;;  %v14880_v1 = vor.u32 %v20123_v45, %v20125_v49  ;;  %v8831_v57 = vmul.f32 %v8822_v40, %v20585_v28  ;;  %v9346_v14 = vadd.f32 %v9338_v10, %v8824_v52  ;;  %v16386_v40 = vld [vmem:[#allocation34 + $0x3f4] sm:$0xf0]  ;;  %v15203_v28 = vld [vmem:[#allocation34 + $0x3a8] sm:$0xf] }
 0xbdf   : > { %v9344_v38 = vadd.f32 %v9332_v51, %v9312_v7  ;;  %v16267_v51 = vld [vmem:[#allocation34 + $0x44] sm:$0xf]  ;;  %v15133_v7 = vld [vmem:[#allocation34 + $0x330] sm:$0xf0]  ;;  %v16342_v52 = vld [vmem:[#allocation34 + $0x294] sm:$0xf0] }
 0xbe0   : > { %v9351_v55 = vadd.f32 %v9343_v34, %v8829_v2  ;;  %10212 = vmatpush.bf16.msrb.mxu1 %v14880_v1  ;;  %v14752_v34 = vor.u32 %v16263_v43, %v14749_v24  ;;  %v15136_v48 = vor.u32 %v16359_v8, %v15133_v7  ;;  %10227 = vmatpush.bf16.msrb.mxu0 %v14992_v22  ;;  %v15235_v1 = vld [vmem:[#allocation34 + $0x3e8] sm:$0xf]  ;;  %v16302_v24 = vld [vmem:[#allocation34 + $0x154] sm:$0xf0] }
 0xbe1   : > { %v9352_v15 = vadd.f32 %v9344_v38, %v8830_v9  ;;  %v9283_v37 = vpop.f32.mrf.mxu3  ;;  %v14861_v9 = vld [vmem:[#allocation34 + $0x110] sm:$0xf0]  ;;  %v15060_v17 = vor.u32 %v16342_v52, %v15059_v59  ;;  %v15043_v61 = vld [vmem:[#allocation34 + $0x268] sm:$0xf]  ;;  %v16334_v7 = vld [vmem:[#allocation34 + $0x254] sm:$0xf0] }
 0xbe2   : > { %v20147_v13 = vpack.c.bf16 %v9351_v55, %v9347_v4  ;;  %v9284_v2 = vadd.f32 %v9283_v37, %v19987_v0  ;;  %v9325_v12 = vpop.f32.mrf.mxu2  ;;  %v8827_v0 = vmul.f32 %v20067_v60, %v20583_v50  ;;  %v14864_v60 = vor.u32 %v16291_v36, %v14861_v9  ;;  %v15117_v38 = vld [vmem:[#allocation34 + $0x310] sm:$0xf0]  ;;  %v16290_v4 = vld [vmem:[#allocation34 + $0xf4] sm:$0xf0]  ;;  %10240 = vmatpush.bf16.msrb.mxu2 %v15136_v48  ;;  %v14931_v9 = vld [vmem:[#allocation34 + $0x188] sm:$0xf] }
 0xbe3   : > { %v20150_v44 = vpack.c.bf16 %v9352_v15, %v9348_v23  ;;  %v9326_v18 = vadd.f32 %v9325_v12, %v20008_v31  ;;  %v14768_v31 = vor.u32 %v16267_v51, %v14765_v56  ;;  %v14964_v55 = vor.u32 %v16318_v54, %v14963_v30  ;;  %v14947_v23 = vld [vmem:[#allocation34 + $0x1a8] sm:$0xf]  ;;  %v16314_v15 = vld [vmem:[#allocation34 + $0x1b4] sm:$0xf0] }
 0xbe4   : > { %v9342_v16 = vadd.f32 %v9330_v41, %v9284_v2  ;;  %10158 = vmatmul.bf16.vlgmr.msra.gmra.mxu1 %v20147_v13  ;;  %v9349_v19 = vadd.f32 %v9341_v39, %v8827_v0  ;;  %v16350_v41 = vld [vmem:[#allocation34 + $0x2d4] sm:$0xf0]  ;;  %v14736_v51 = vor.u32 %v16259_v3, %v14733_v32  ;;  %v14852_v10 = vor.u32 %v16290_v4, %v14851_v27  ;;  %v14835_v12 = vld [vmem:[#allocation34 + $0xc8] sm:$0xf] }
 0xbe5   : > { %v9345_v62 = vadd.f32 %v9333_v35, %v9326_v18  ;;  %10172 = vmatmul.bf16.vlgmr.msra.gmra.mxu0 %v20150_v44  ;;  %10197 = vmatpush.bf16.msra.mxu3 %v14768_v31  ;;  %v16355_v35 = vld [vmem:[#allocation34 + $0x304] sm:$0xf]  ;;  %v15092_v53 = vor.u32 %v16350_v41, %v15091_v6  ;;  %v16346_v37 = vld [vmem:[#allocation34 + $0x2b4] sm:$0xf0]  ;;  %v15236_v2 = vor.u32 %v16386_v40, %v15235_v1  ;;  %v15219_v39 = vld [vmem:[#allocation34 + $0x3c8] sm:$0xf] }
 0xbe6   : > { %v9350_v11 = vadd.f32 %v9342_v16, %v8828_v25  ;;  %10213 = vmatpush.bf16.msrb.mxu1 %v14864_v60  ;;  %10276 = vmatpush.bf16.msra.mxu0 %v15108_v42  ;;  %v15120_v56 = vor.u32 %v16355_v35, %v15117_v38  ;;  %v14948_v26 = vor.u32 %v16314_v15, %v14947_v23  ;;  %v16382_v18 = vld [vmem:[#allocation34 + $0x3d4] sm:$0xf0]  ;;  %v15027_v8 = vld [vmem:[#allocation34 + $0x248] sm:$0xf] }
 0xbe7   : > { %v9353_v58 = vadd.f32 %v9345_v62, %v8831_v57  ;;  %v15076_v36 = vor.u32 %v16346_v37, %v15075_v29  ;;  %v14836_v50 = vor.u32 %v16286_v20, %v14835_v12  ;;  %v15220_v0 = vor.u32 %v16382_v18, %v15219_v39  ;;  %v16282_v25 = vld [vmem:[#allocation34 + $0xb4] sm:$0xf0]  ;;  %v14915_v62 = vld [vmem:[#allocation34 + $0x168] sm:$0xf]  ;;  %v16352_v12 = vld [vmem:[#allocation34 + $0x2ec] sm:$0xf] }
 0xbe8   : > { %v20162_v45 = vpack.c.bf16 %v9350_v11, %v9346_v14  ;;  %10241 = vmatpush.bf16.msrb.mxu2 %v15120_v56  ;;  %v14932_v16 = vor.u32 %v16310_v46, %v14931_v9  ;;  %v16378_v57 = vld [vmem:[#allocation34 + $0x3b4] sm:$0xf0]  ;;  %v14820_v63 = vor.u32 %v16282_v25, %v14819_v21  ;;  %v14803_v11 = vld [vmem:[#allocation34 + $0x88] sm:$0xf]  ;;  %v15044_v43 = vor.u32 %v16338_v5, %v15043_v61  ;;  %v15109_v20 = vld [vmem:[#allocation34 + $0x2f8] sm:$0xf0] }
 0xbe9   : > { %v20164_v49 = vpack.c.bf16 %v9353_v58, %v9349_v19  ;;  %10198 = vmatpush.bf16.msra.mxu3 %v14752_v34  ;;  %v16306_v31 = vld [vmem:[#allocation34 + $0x174] sm:$0xf0]  ;;  %v15204_v33 = vor.u32 %v16378_v57, %v15203_v28  ;;  %v15187_v14 = vld [vmem:[#allocation34 + $0x388] sm:$0xf]  ;;  %v15028_v41 = vor.u32 %v16334_v7, %v15027_v8  ;;  %v16316_v21 = vld [vmem:[#allocation34 + $0x1cc] sm:$0xf] }
 0xbea   : > { %10262 = vmatpush.bf16.msra.mxu1 %v14980_v47  ;;  %10144 = vmatmul.bf16.vlgmr.msrb.gmra.mxu3 %v20162_v45  ;;  %v16278_v60 = vld [vmem:[#allocation34 + $0x94] sm:$0xf0]  ;;  %v14916_v22 = vor.u32 %v16306_v31, %v14915_v62  ;;  %v14899_v58 = vld [vmem:[#allocation34 + $0x148] sm:$0xf]  ;;  %v14965_v25 = vld [vmem:[#allocation34 + $0x1d8] sm:$0xf0] }
 0xbeb   : > { %10186 = vmatmul.bf16.vlgmr.msra.gmra.mxu2 %v20164_v49  ;;  %10277 = vmatpush.bf16.msra.mxu0 %v15092_v53  ;;  %v16374_v19 = vld [vmem:[#allocation34 + $0x394] sm:$0xf0]  ;;  %v14804_v47 = vor.u32 %v16278_v60, %v14803_v11  ;;  %v14787_v30 = vld [vmem:[#allocation34 + $0x68] sm:$0xf]  ;;  %v14900_v6 = vor.u32 %v16302_v24, %v14899_v58  ;;  %v14968_v11 = vor.u32 %v16316_v21, %v14965_v25  ;;  %v16344_v58 = vld [vmem:[#allocation34 + $0x2ac] sm:$0xf] }
 0xbec   : > { %10290 = vmatpush.bf16.msra.mxu2 %v15236_v2  ;;  %v15188_v42 = vor.u32 %v16374_v19, %v15187_v14  ;;  %v16274_v54 = vld [vmem:[#allocation34 + $0x74] sm:$0xf0]  ;;  %v15171_v34 = vld [vmem:[#allocation34 + $0x368] sm:$0xf]  ;;  %v14981_v2 = vld [vmem:[#allocation34 + $0x1f8] sm:$0xf0] }
 0xbed   : > { %10199 = vmatpush.bf16.msra.mxu3 %v14736_v51  ;;  %v16370_v48 = vld [vmem:[#allocation34 + $0x374] sm:$0xf0]  ;;  %v14883_v3 = vld [vmem:[#allocation34 + $0x128] sm:$0xf]  ;;  %v14788_v27 = vor.u32 %v16274_v54, %v14787_v30  ;;  %v16312_v14 = vld [vmem:[#allocation34 + $0x1ac] sm:$0xf] }
 0xbee   : > { %10263 = vmatpush.bf16.msra.mxu1 %v14964_v55  ;;  %v16298_v32 = vld [vmem:[#allocation34 + $0x134] sm:$0xf0]  ;;  %v15011_v35 = vld [vmem:[#allocation34 + $0x228] sm:$0xf]  ;;  %v15172_v4 = vor.u32 %v16370_v48, %v15171_v34  ;;  %v14949_v19 = vld [vmem:[#allocation34 + $0x1b8] sm:$0xf0] }
 0xbef   : > { %10278 = vmatpush.bf16.msra.mxu0 %v15076_v36  ;;  %v16330_v38 = vld [vmem:[#allocation34 + $0x234] sm:$0xf0]  ;;  %v14771_v55 = vld [vmem:[#allocation34 + $0x48] sm:$0xf]  ;;  %v14884_v40 = vor.u32 %v16298_v32, %v14883_v3  ;;  %v15077_v24 = vld [vmem:[#allocation34 + $0x2b8] sm:$0xf0] }
 0xbf0   : > { %10291 = vmatpush.bf16.msra.mxu2 %v15220_v0  ;;  %v16270_v53 = vld [vmem:[#allocation34 + $0x54] sm:$0xf0]  ;;  %v15155_v1 = vld [vmem:[#allocation34 + $0x348] sm:$0xf]  ;;  %v15012_v23 = vor.u32 %v16330_v38, %v15011_v35  ;;  %v15112_v0 = vor.u32 %v16352_v12, %v15109_v20  ;;  %v16284_v30 = vld [vmem:[#allocation34 + $0xcc] sm:$0xf] }
 0xbf1   : > { %10248 = vmatpush.bf16.msrb.mxu3 %v14852_v10  ;;  %v16366_v15 = vld [vmem:[#allocation34 + $0x354] sm:$0xf0]  ;;  %v14867_v29 = vld [vmem:[#allocation34 + $0x108] sm:$0xf]  ;;  %v16320_v10 = vld [vmem:[#allocation34 + $0x1ec] sm:$0xf] }
 0xbf2   : > { %10264 = vmatpush.bf16.msra.mxu1 %v14948_v26  ;;  %v16294_v37 = vld [vmem:[#allocation34 + $0x114] sm:$0xf0]  ;;  %v14995_v51 = vld [vmem:[#allocation34 + $0x208] sm:$0xf]  ;;  %v14772_v26 = vor.u32 %v16270_v53, %v14771_v55  ;;  %v15156_v36 = vor.u32 %v16366_v15, %v15155_v1  ;;  %v14837_v54 = vld [vmem:[#allocation34 + $0xd8] sm:$0xf0] }
 0xbf3   : > { %10279 = vmatpush.bf16.msra.mxu0 %v15060_v17  ;;  %v16326_v56 = vld [vmem:[#allocation34 + $0x214] sm:$0xf0]  ;;  %v14755_v39 = vld [vmem:[#allocation34 + $0x28] sm:$0xf]  ;;  %v14868_v18 = vor.u32 %v16294_v37, %v14867_v29  ;;  %v15093_v17 = vld [vmem:[#allocation34 + $0x2d8] sm:$0xf0] }
 0xbf4   : > { %10214 = vmatmul.bf16.vlgmr.msrb.gmra.mxu1 %v20147_v13  ;;  %10292 = vmatpush.bf16.msra.mxu2 %v15204_v33  ;;  %v14996_v9 = vor.u32 %v16326_v56, %v14995_v51  ;;  %v16266_v46 = vld [vmem:[#allocation34 + $0x34] sm:$0xf0]  ;;  %v15139_v59 = vld [vmem:[#allocation34 + $0x328] sm:$0xf]  ;;  %v14853_v33 = vld [vmem:[#allocation34 + $0xf8] sm:$0xf0] }
 0xbf5   : > { %10228 = vmatmul.bf16.vlgmr.msrb.gmra.mxu0 %v20150_v44  ;;  %10249 = vmatpush.bf16.msrb.mxu3 %v14836_v50  ;;  %v16362_v52 = vld [vmem:[#allocation34 + $0x334] sm:$0xf0]  ;;  %v14984_v50 = vor.u32 %v16320_v10, %v14981_v2  ;;  %v14756_v28 = vor.u32 %v16266_v46, %v14755_v39  ;;  %v14739_v62 = vld [vmem:[#allocation34 + $0x8] sm:$0xf]  ;;  %v16380_v34 = vld [vmem:[#allocation34 + $0x3cc] sm:$0xf] }
 0xbf6   : > { %10265 = vmatpush.bf16.msra.mxu1 %v14932_v16  ;;  %v16348_v16 = vld [vmem:[#allocation34 + $0x2cc] sm:$0xf]  ;;  %v15140_v57 = vor.u32 %v16362_v52, %v15139_v59  ;;  %v16262_v31 = vld [vmem:[#allocation34 + $0x14] sm:$0xf0]  ;;  %v15123_v61 = vld [vmem:[#allocation34 + $0x308] sm:$0xf] }
 0xbf7   : > { %10280 = vmatpush.bf16.msra.mxu0 %v15044_v43  ;;  %v16358_v5 = vld [vmem:[#allocation34 + $0x314] sm:$0xf0]  ;;  %v15096_v60 = vor.u32 %v16348_v16, %v15093_v17  ;;  %v15237_v43 = vld [vmem:[#allocation34 + $0x3f8] sm:$0xf0]  ;;  %v14740_v8 = vor.u32 %v16262_v31, %v14739_v62  ;;  %v16308_v3 = vld [vmem:[#allocation34 + $0x18c] sm:$0xf] }
 0xbf8   : > { %10293 = vmatpush.bf16.msra.mxu2 %v15188_v42  ;;  %v15124_v7 = vor.u32 %v16358_v5, %v15123_v61  ;;  %v15221_v48 = vld [vmem:[#allocation34 + $0x3d8] sm:$0xf0]  ;;  %v16340_v35 = vld [vmem:[#allocation34 + $0x28c] sm:$0xf] }
 0xbf9   : > { %10250 = vmatpush.bf16.msrb.mxu3 %v14820_v63  ;;  %v16288_v63 = vld [vmem:[#allocation34 + $0xec] sm:$0xf]  ;;  %v14933_v32 = vld [vmem:[#allocation34 + $0x198] sm:$0xf0] }
 0xbfa   : > { %10266 = vmatpush.bf16.msra.mxu1 %v14916_v22  ;;  %10200 = vmatmul.bf16.vlgmr.msra.gmra.mxu3 %v20162_v45  ;;  %v16384_v22 = vld [vmem:[#allocation34 + $0x3ec] sm:$0xf]  ;;  %v15061_v38 = vld [vmem:[#allocation34 + $0x298] sm:$0xf0]  ;;  %v14936_v1 = vor.u32 %v16308_v3, %v14933_v32 }
 0xbfb   : > { %10242 = vmatmul.bf16.vlgmr.msrb.gmra.mxu2 %v20164_v49  ;;  %10281 = vmatpush.bf16.msra.mxu0 %v15028_v41  ;;  %v15240_v42 = vor.u32 %v16384_v22, %v15237_v43  ;;  %v15080_v41 = vor.u32 %v16344_v58, %v15077_v24  ;;  %v16280_v55 = vld [vmem:[#allocation34 + $0xac] sm:$0xf]  ;;  %v14821_v53 = vld [vmem:[#allocation34 + $0xb8] sm:$0xf0] }
 0xbfc   : > { %10294 = vmatpush.bf16.msra.mxu2 %v15172_v4  ;;  %v15224_v4 = vor.u32 %v16380_v34, %v15221_v48  ;;  %v15205_v15 = vld [vmem:[#allocation34 + $0x3b8] sm:$0xf0]  ;;  %v16304_v29 = vld [vmem:[#allocation34 + $0x16c] sm:$0xf]  ;;  %v14824_v10 = vor.u32 %v16280_v55, %v14821_v53  ;;  %v16393_v53 = vld [vmem:[#allocation37 + $0x30] sm:$0xff] }
 0xbfd   : > { %10251 = vmatpush.bf16.msrb.mxu3 %v14804_v47  ;;  %v14856_v47 = vor.u32 %v16288_v63, %v14853_v33  ;;  %v14917_v37 = vld [vmem:[#allocation34 + $0x178] sm:$0xf0]  ;;  %v16336_v51 = vld [vmem:[#allocation34 + $0x26c] sm:$0xf] }
 0xbfe   : > { %10267 = vmatpush.bf16.msra.mxu1 %v14900_v6  ;;  %v14952_v6 = vor.u32 %v16312_v14, %v14949_v19  ;;  %v15045_v56 = vld [vmem:[#allocation34 + $0x278] sm:$0xf0]  ;;  %v16276_v12 = vld [vmem:[#allocation34 + $0x8c] sm:$0xf] }
 0xbff   : > { %10282 = vmatpush.bf16.msra.mxu0 %v15012_v23  ;;  %v16376_v23 = vld [vmem:[#allocation34 + $0x3ac] sm:$0xf]  ;;  %v14805_v20 = vld [vmem:[#allocation34 + $0x98] sm:$0xf0] }
 0xc00   : > { %10295 = vmatpush.bf16.msra.mxu2 %v15156_v36  ;;  %v15208_v2 = vor.u32 %v16376_v23, %v15205_v15  ;;  %v15048_v36 = vor.u32 %v16336_v51, %v15045_v56  ;;  %v16372_v39 = vld [vmem:[#allocation34 + $0x38c] sm:$0xf]  ;;  %v14901_v46 = vld [vmem:[#allocation34 + $0x158] sm:$0xf0] }
 0xc01   : > { %10252 = vmatpush.bf16.msrb.mxu3 %v14788_v27  ;;  %v14840_v27 = vor.u32 %v16284_v30, %v14837_v54  ;;  %v16332_v59 = vld [vmem:[#allocation34 + $0x24c] sm:$0xf]  ;;  %v15029_v52 = vld [vmem:[#allocation34 + $0x258] sm:$0xf0] }
 0xc02   : > { %10268 = vmatpush.bf16.msra.mxu1 %v14884_v40  ;;  %v15064_v40 = vor.u32 %v16340_v35, %v15061_v38  ;;  %v16272_v21 = vld [vmem:[#allocation34 + $0x6c] sm:$0xf]  ;;  %v14789_v25 = vld [vmem:[#allocation34 + $0x78] sm:$0xf0]  ;;  %v15032_v17 = vor.u32 %v16332_v59, %v15029_v52 }
 0xc03   : > { %10283 = vmatpush.bf16.msra.mxu0 %v14996_v9  ;;  %v16300_v9 = vld [vmem:[#allocation34 + $0x14c] sm:$0xf]  ;;  %v14885_v31 = vld [vmem:[#allocation34 + $0x138] sm:$0xf0]  ;;  %v14792_v63 = vor.u32 %v16272_v21, %v14789_v25 }
 0xc04   : > { %10296 = vmatpush.bf16.msra.mxu2 %v15140_v57  ;;  %v14904_v16 = vor.u32 %v16300_v9, %v14901_v46  ;;  %v15173_v57 = vld [vmem:[#allocation34 + $0x378] sm:$0xf0]  ;;  %v16296_v62 = vld [vmem:[#allocation34 + $0x12c] sm:$0xf]  ;;  %v16425_v9 = vld [vmem:[#allocation37 + $0x130] sm:$0xff] }
 0xc05   : > { %10253 = vmatpush.bf16.msrb.mxu3 %v14772_v26  ;;  %v14920_v26 = vor.u32 %v16304_v29, %v14917_v37  ;;  %v16328_v61 = vld [vmem:[#allocation34 + $0x22c] sm:$0xf]  ;;  %v15013_v5 = vld [vmem:[#allocation34 + $0x238] sm:$0xf0]  ;;  %v14888_v22 = vor.u32 %v16296_v62, %v14885_v31  ;;  %v16401_v29 = vld [vmem:[#allocation37 + $0x70] sm:$0xff] }
 0xc06   : > { %10269 = vmatpush.bf16.msra.mxu1 %v14868_v18  ;;  %10284 = vmatmul.bf16.vlgmr.msra.gmra.mxu0 %v20150_v44  ;;  %v15189_v18 = vld [vmem:[#allocation34 + $0x398] sm:$0xf0]  ;;  %v15016_v43 = vor.u32 %v16328_v61, %v15013_v5  ;;  %v16364_v14 = vld [vmem:[#allocation34 + $0x34c] sm:$0xf]  ;;  %v16391_v37 = vld [vmem:[#allocation37 + $0x20] sm:$0xff] }
 0xc07   : > { %10332 = vmatpush.bf16.msrb.mxu0 %v15112_v0  ;;  %v15192_v0 = vor.u32 %v16372_v39, %v15189_v18  ;;  %v15157_v19 = vld [vmem:[#allocation34 + $0x358] sm:$0xf0]  ;;  %v16292_v58 = vld [vmem:[#allocation34 + $0x10c] sm:$0xf] }
 0xc08   : > { %10297 = vmatpush.bf16.msra.mxu2 %v15124_v7  ;;  %v14869_v24 = vld [vmem:[#allocation34 + $0x118] sm:$0xf0]  ;;  %v16264_v30 = vld [vmem:[#allocation34 + $0x2c] sm:$0xf] }
 0xc09   : > { %10254 = vmatpush.bf16.msrb.mxu3 %v14756_v28  ;;  %10270 = vmatmul.bf16.vlgmr.msra.gmra.mxu1 %v20147_v13  ;;  %v16368_v28 = vld [vmem:[#allocation34 + $0x36c] sm:$0xf]  ;;  %v14997_v7 = vld [vmem:[#allocation34 + $0x218] sm:$0xf0]  ;;  %v14872_v54 = vor.u32 %v16292_v58, %v14869_v24 }
 0xc0a   : > { %10318 = vmatpush.bf16.msrb.mxu1 %v14984_v50  ;;  %v14808_v50 = vor.u32 %v16276_v12, %v14805_v20  ;;  %v15176_v33 = vor.u32 %v16368_v28, %v15173_v57  ;;  %v16360_v34 = vld [vmem:[#allocation34 + $0x32c] sm:$0xf]  ;;  %v15141_v48 = vld [vmem:[#allocation34 + $0x338] sm:$0xf0]  ;;  %v16397_v12 = vld [vmem:[#allocation37 + $0x50] sm:$0xff] }
 0xc0b   : > { %10333 = vmatpush.bf16.msrb.mxu0 %v15096_v60  ;;  %10298 = vmatmul.bf16.vlgmr.msra.gmra.mxu2 %v20164_v49  ;;  %v14773_v60 = vld [vmem:[#allocation34 + $0x58] sm:$0xf0]  ;;  %v15144_v35 = vor.u32 %v16360_v34, %v15141_v48  ;;  %v16260_v38 = vld [vmem:[#allocation34 + $0xc] sm:$0xf]  ;;  %v16387_v20 = vld [vmem:[#allocation37] sm:$0xff] }
 0xc0c   : > { %10346 = vmatpush.bf16.msrb.mxu2 %v15240_v42  ;;  %v15160_v42 = vor.u32 %v16364_v14, %v15157_v19  ;;  %v16394_v3 = vld [vmem:[#allocation37 + $0x38] sm:$0xff]  ;;  %v16392_v15 = vld [vmem:[#allocation37 + $0x28] sm:$0xff]  ;;  %v16419_v34 = vld [vmem:[#allocation37 + $0x100] sm:$0xff] }
 0xc0d   : > { %10255 = vmatpush.bf16.msrb.mxu3 %v14740_v8  ;;  %v16324_v8 = vld [vmem:[#allocation34 + $0x20c] sm:$0xf]  ;;  %v15125_v55 = vld [vmem:[#allocation34 + $0x318] sm:$0xf0]  ;;  %v16431_v48 = vld [vmem:[#allocation37 + $0x160] sm:$0xff] }
 0xc0e   : > { %10319 = vmatpush.bf16.msrb.mxu1 %v14968_v11  ;;  %v16268_v11 = vld [vmem:[#allocation34 + $0x4c] sm:$0xf]  ;;  %v16402_v23 = vld [vmem:[#allocation37 + $0x78] sm:$0xff] }
 0xc0f   : > { %10334 = vmatpush.bf16.msrb.mxu0 %v15080_v41  ;;  %v14757_v41 = vld [vmem:[#allocation34 + $0x38] sm:$0xf0]  ;;  %v16400_v51 = vld [vmem:[#allocation37 + $0x68] sm:$0xff] }
 0xc10   : > { %10256 = vmatmul.bf16.vlgmr.msrb.gmra.mxu3 %v20162_v45  ;;  %10347 = vmatpush.bf16.msrb.mxu2 %v15224_v4  ;;  %v14760_v32 = vor.u32 %v16264_v30, %v14757_v41  ;;  %v16356_v4 = vld [vmem:[#allocation34 + $0x30c] sm:$0xf]  ;;  %v16390_v56 = vld [vmem:[#allocation37 + $0x18] sm:$0xff] }
 0xc11   : > { %10304 = vmatpush.bf16.msra.mxu3 %v14856_v47  ;;  %v14776_v47 = vor.u32 %v16268_v11, %v14773_v60  ;;  %v16426_v39 = vld [vmem:[#allocation37 + $0x138] sm:$0xff] }
 0xc12   : > { %10320 = vmatpush.bf16.msrb.mxu1 %v14952_v6  ;;  %v15000_v6 = vor.u32 %v16324_v8, %v14997_v7  ;;  %v20182_v18 = vld [vmem:[#allocation2 + $0x2d] sm:$0xf]  ;;  %v16420_v8 = vld [vmem:[#allocation37 + $0x108] sm:$0xff] }
 0xc13   : > { %10335 = vmatpush.bf16.msrb.mxu0 %v15064_v40  ;;  %v15128_v40 = vor.u32 %v16356_v4, %v15125_v55  ;;  %v9488_v59 = vperm.slane %v20182_v18, 0  ;;  %v16422_v62 = vld [vmem:[#allocation37 + $0x118] sm:$0xff]  ;;  %v9489_v24 = vperm.slane %v20182_v18, 1  ;;  %v16432_v7 = vld [vmem:[#allocation37 + $0x168] sm:$0xff] }
 0xc14   : > { %10348 = vmatpush.bf16.msrb.mxu2 %v15208_v2  ;;  %v16388_v2 = vld [vmem:[#allocation37 + $0x8] sm:$0xff]  ;;  %v16434_v31 = vld [vmem:[#allocation37 + $0x178] sm:$0xff] }
 0xc15   : > { %10305 = vmatpush.bf16.msra.mxu3 %v14840_v27  ;;  %v14741_v27 = vld [vmem:[#allocation34 + $0x18] sm:$0xf0] }
 0xc16   : > { %10321 = vmatpush.bf16.msrb.mxu1 %v14936_v1  ;;  %v14744_v1 = vor.u32 %v16260_v38, %v14741_v27  ;;  %v16410_v38 = vld [vmem:[#allocation37 + $0xb8] sm:$0xff] }
 0xc17   : > { %10336 = vmatpush.bf16.msrb.mxu0 %v15048_v36  ;;  %v20587_v36 = vld [vmem:[#allocation76_spill] sm:$0xff] }
 0xc18   : > { %10349 = vmatpush.bf16.msrb.mxu2 %v15192_v0 }
 0xc19   : > { %10306 = vmatpush.bf16.msra.mxu3 %v14824_v10  ;;  %v16398_v10 = vld [vmem:[#allocation37 + $0x58] sm:$0xff] }
 0xc1a   : > { %10322 = vmatpush.bf16.msrb.mxu1 %v14920_v26  ;;  %v16395_v26 = vld [vmem:[#allocation37 + $0x40] sm:$0xff] }
 0xc1b   : > { %10337 = vmatpush.bf16.msrb.mxu0 %v15032_v17 }
 0xc1c   : > { %10350 = vmatpush.bf16.msrb.mxu2 %v15176_v33 }
 0xc1d   : > { %10307 = vmatpush.bf16.msra.mxu3 %v14808_v50  ;;  %v16424_v50 = vld [vmem:[#allocation37 + $0x128] sm:$0xff] }
 0xc1e   : > { %10323 = vmatpush.bf16.msrb.mxu1 %v14904_v16  ;;  %v16423_v16 = vld [vmem:[#allocation37 + $0x120] sm:$0xff] }
 0xc1f   : > { %10338 = vmatpush.bf16.msrb.mxu0 %v15016_v43  ;;  %v16433_v43 = vld [vmem:[#allocation37 + $0x170] sm:$0xff] }
 0xc20   : > { %10351 = vmatpush.bf16.msrb.mxu2 %v15160_v42 }
 0xc21   : > { %10308 = vmatpush.bf16.msra.mxu3 %v14792_v63 }
 0xc22   : > { %10324 = vmatpush.bf16.msrb.mxu1 %v14888_v22  ;;  %v16421_v22 = vld [vmem:[#allocation37 + $0x110] sm:$0xff] }
 0xc23   : > { %10339 = vmatpush.bf16.msrb.mxu0 %v15000_v6 }
 0xc24   : > { %10352 = vmatpush.bf16.msrb.mxu2 %v15144_v35 }
 0xc25   : > { %10309 = vmatpush.bf16.msra.mxu3 %v14776_v47 }
 0xc26   : > { %10325 = vmatpush.bf16.msrb.mxu1 %v14872_v54  ;;  %10340 = vmatmul.bf16.vlgmr.msrb.gmra.mxu0 %v20150_v44  ;;  %v16389_v44 = vld [vmem:[#allocation37 + $0x10] sm:$0xff] }
 0xc27   : > { %10942 = vmatpush.bf16.msra.mxu0 %v16394_v3 }
 0xc28   : > { %10353 = vmatpush.bf16.msrb.mxu2 %v15128_v40  ;;  %v16409_v40 = vld [vmem:[#allocation37 + $0xb0] sm:$0xff] }
 0xc29   : > { %10310 = vmatpush.bf16.msra.mxu3 %v14760_v32  ;;  %10326 = vmatmul.bf16.vlgmr.msrb.gmra.mxu1 %v20147_v13  ;;  %v16399_v13 = vld [vmem:[#allocation37 + $0x60] sm:$0xff] }
 0xc2a   : > { %10736 = vmatpush.bf16.msra.mxu1 %v16434_v31 }
 0xc2b   : > { %10943 = vmatpush.bf16.msra.mxu0 %v16393_v53  ;;  %10354 = vmatmul.bf16.vlgmr.msrb.gmra.mxu2 %v20164_v49  ;;  %v20586_v49 = vld [vmem:[#allocation75_spill] sm:$0xff]  ;;  %v16430_v53 = vld [vmem:[#allocation37 + $0x158] sm:$0xff] }
 0xc2c   : > { %10956 = vmatpush.bf16.msra.mxu2 %v16402_v23 }
 0xc2d   : > { %10311 = vmatpush.bf16.msra.mxu3 %v14744_v1 }
 0xc2e   : > { %10737 = vmatpush.bf16.msra.mxu1 %v16433_v43 }
 0xc2f   : > { %10944 = vmatpush.bf16.msra.mxu0 %v16392_v15 }
 0xc30   : > { %10312 = vmatmul.bf16.vlgmr.msra.gmra.mxu3 %v20162_v45  ;;  %10957 = vmatpush.bf16.msra.mxu2 %v16401_v29  ;;  %v16396_v45 = vld [vmem:[#allocation37 + $0x48] sm:$0xff] }
 0xc31   : > { %10722 = vmatpush.bf16.msrb.mxu3 %v16426_v39 }
 0xc32   : > { %10738 = vmatpush.bf16.msra.mxu1 %v16432_v7  ;;  %v16441_v7 = vld [vmem:[#allocation37 + $0x1b0] sm:$0xff] }
 0xc33   : > { %10945 = vmatpush.bf16.msra.mxu0 %v16391_v37 }
 0xc34   : > { %10958 = vmatpush.bf16.msra.mxu2 %v16400_v51  ;;  %v16429_v51 = vld [vmem:[#allocation37 + $0x150] sm:$0xff] }
 0xc35   : > { %10723 = vmatpush.bf16.msrb.mxu3 %v16425_v9 }
 0xc36   : > { %10739 = vmatpush.bf16.msra.mxu1 %v16431_v48 }
 0xc37   : > { %10946 = vmatpush.bf16.msra.mxu0 %v16390_v56 }
 0xc38   : > { %10959 = vmatpush.bf16.msra.mxu2 %v16399_v13 }
 0xc39   : > { %10724 = vmatpush.bf16.msrb.mxu3 %v16424_v50  ;;  %v9490_v50 = vperm.slane %v20182_v18, 2 }
 0xc3a   : > { %10740 = vmatpush.bf16.msra.mxu1 %v16430_v53 }
 0xc3b   : > { %10947 = vmatpush.bf16.msra.mxu0 %v16389_v44 }
 0xc3c   : > { %10960 = vmatpush.bf16.msra.mxu2 %v16398_v10  ;;  %v16408_v10 = vld [vmem:[#allocation37 + $0xa8] sm:$0xff] }
 0xc3d   : > { %10725 = vmatpush.bf16.msrb.mxu3 %v16423_v16 }
 0xc3e   : > { %10741 = vmatpush.bf16.msra.mxu1 %v16429_v51 }
 0xc3f   : > { %10948 = vmatpush.bf16.msra.mxu0 %v16388_v2 }
 0xc40   : > { %10961 = vmatpush.bf16.msra.mxu2 %v16397_v12 }
 0xc41   : > { %10726 = vmatpush.bf16.msrb.mxu3 %v16422_v62  ;;  %v16442_v62 = vld [vmem:[#allocation37 + $0x1b8] sm:$0xff] }
 0xc43   : > { %10949 = vmatpush.bf16.msra.mxu0 %v16387_v20 }
 0xc44   : > { %10962 = vmatpush.bf16.msra.mxu2 %v16396_v45 }
 0xc45   : > { %10727 = vmatpush.bf16.msrb.mxu3 %v16421_v22 }
 0xc46   : > { %10950 = vmatmul.bf16.vlgmr.msra.gmra.mxu0 %v20586_v49 }
 0xc47   : > { %11063 = vmatpush.bf16.msrb.mxu0 %v16442_v62  ;;  %v1428_v62 = vld [vmem:[%s20226_s2 + $0x8] sm:$0xff] }
 0xc48   : > { %10963 = vmatpush.bf16.msra.mxu2 %v16395_v26 }
 0xc49   : > { %10728 = vmatpush.bf16.msrb.mxu3 %v16420_v8  ;;  %v16417_v8 = vld [vmem:[#allocation37 + $0xf0] sm:$0xff] }
 0xc4b   : > { %10964 = vmatmul.bf16.vlgmr.msra.gmra.mxu2 %v20587_v36  ;;  %v16428_v36 = vld [vmem:[#allocation37 + $0x148] sm:$0xff]  ;;  %11064 = vmatpush.bf16.msrb.mxu0 %v16441_v7  ;;  %v16437_v7 = vld [vmem:[#allocation37 + $0x190] sm:$0xff] }
 0xc4c   : > { %10742 = vmatpush.bf16.msra.mxu1 %v16428_v36 }
 0xc4d   : > { %10729 = vmatpush.bf16.msrb.mxu3 %v16419_v34 }
 0xc51   : > { %10970 = vmatpush.bf16.msra.mxu3 %v16410_v38  ;;  %v16404_v38 = vld [vmem:[#allocation37 + $0x88] sm:$0xff] }
 0xc55   : > { %10971 = vmatpush.bf16.msra.mxu3 %v16409_v40 }
 0xc59   : > { %10972 = vmatpush.bf16.msra.mxu3 %v16408_v10 }
 0xc61   : > { %v10159_v46 = vpop.f32.mrf.mxu1 }
 0xc62   : > { %v10173_v52 = vpop.f32.mrf.mxu0 }
 0xc69   : > { %v10161_v57 = vpop.f32.mrf.mxu1 }
 0xc6a   : > { %v10175_v5 = vpop.f32.mrf.mxu0 }
 0xc6d   : > { %v10145_v0 = vpop.f32.mrf.mxu3 }
 0xc6e   : > { %v10187_v21 = vpop.f32.mrf.mxu2  ;;  %v10146_v25 = vadd.f32 %v10145_v0, %v9488_v59  ;;  %v16427_v0 = vld [vmem:[#allocation37 + $0x140] sm:$0xff] }
 0xc6f   : > { %10743 = vmatpush.bf16.msra.mxu1 %v16427_v0 }
 0xc70   : > { %v10160_v17 = vadd.f32 %v10159_v46, %v10146_v25  ;;  %v16407_v46 = vld [vmem:[#allocation37 + $0xa0] sm:$0xff] }
 0xc71   : > { %v10215_v42 = vpop.f32.mrf.mxu1  ;;  %10973 = vmatpush.bf16.msra.mxu3 %v16407_v46 }
 0xc72   : > { %v10174_v28 = vadd.f32 %v10173_v52, %v10160_v17  ;;  %v10229_v41 = vpop.f32.mrf.mxu0 }
 0xc74   : > { %v20185_v61 = vadd.f32 %v10187_v21, %v10174_v28  ;;  %v16406_v28 = vld [vmem:[#allocation37 + $0x98] sm:$0xff] }
 0xc75   : > { %v10147_v63 = vpop.f32.mrf.mxu3  ;;  %10974 = vmatpush.bf16.msra.mxu3 %v16406_v28  ;;  %v16438_v28 = vld [vmem:[#allocation37 + $0x198] sm:$0xff] }
 0xc76   : > { %v10360_v33 = vsub.f32 0.0, %v20185_v61  ;;  %v10148_v11 = vadd.f32 %v10147_v63, %v9488_v59  ;;  %v10189_v60 = vpop.f32.mrf.mxu2 }
 0xc78   : > { %v10368_v14 = vmul.f32 1.442695, %v10360_v33  ;;  %v10162_v19 = vadd.f32 %v10161_v57, %v10148_v11  ;;  %v16418_v57 = vld [vmem:[#allocation37 + $0xf8] sm:$0xff] }
 0xc79   : > { %v10217_v37 = vpop.f32.mrf.mxu1  ;;  %10984 = vmatpush.bf16.msrb.mxu1 %v16418_v57 }
 0xc7a   : > { %16991 = vpow2.f32 %v10368_v14  ;;  %v10176_v58 = vadd.f32 %v10175_v5, %v10162_v19  ;;  %v10231_v20 = vpop.f32.mrf.mxu0 }
 0xc7c   : > { %v20189_v47 = vadd.f32 %v10189_v60, %v10176_v58 }
 0xc7d   : > { %v10201_v30 = vpop.f32.mrf.mxu3  ;;  %10985 = vmatpush.bf16.msrb.mxu1 %v16417_v8  ;;  %v16413_v8 = vld [vmem:[#allocation37 + $0xd0] sm:$0xff] }
 0xc7e   : > { %v10364_v54 = vsub.f32 0.0, %v20189_v47  ;;  %v10202_v6 = vadd.f32 %v10201_v30, %v9489_v24  ;;  %v10243_v4 = vpop.f32.mrf.mxu2 }
 0xc80   : > { %v16992_v3 = vpop.eup %16991  ;;  %v10376_v32 = vmul.f32 1.442695, %v10364_v54  ;;  %v10216_v35 = vadd.f32 %v10215_v42, %v10202_v6 }
 0xc81   : > { %v20192_v27 = vadd.f32 1.0, %v16992_v3 }
 0xc82   : > { %16993 = vpow2.f32 %v10376_v32  ;;  %v10230_v55 = vadd.f32 %v10229_v41, %v10216_v35 }
 0xc83   : > { %16995 = vrcp.f32 %v20192_v27  ;;  %v10403_v16 = vand.u32 2147483648, %v20192_v27  ;;  %vm10397_vm9 = vweird.f32 %v20192_v27  ;;  %v10401_v5 = vand.u32 2147483647, %v20192_v27  ;;  %v10285_v41 = vpop.f32.mrf.mxu0 }
 0xc84   : > { %v20195_v1 = vadd.f32 %v10243_v4, %v10230_v55  ;;  %v16440_v4 = vld [vmem:[#allocation37 + $0x1a8] sm:$0xff] }
 0xc85   : > { %v10203_v23 = vpop.f32.mrf.mxu3  ;;  %v10404_v43 = vor.u32 1.1754944e-38, %v10403_v16  ;;  %vm10402_vm1 = vcmp.eq.f32.partialorder %v10401_v5, 8.507059e+37  ;;  %11065 = vmatpush.bf16.msrb.mxu0 %v16440_v4  ;;  %v16412_v4 = vld [vmem:[#allocation37 + $0xc8] sm:$0xff] }
 0xc86   : > { %v10361_v15 = vsub.f32 0.0, %v20195_v1  ;;  %v10204_v29 = vadd.f32 %v10203_v23, %v9489_v24  ;;  %v10245_v26 = vpop.f32.mrf.mxu2  ;;  %v10271_v19 = vpop.f32.mrf.mxu1  ;;  %v16405_v24 = vld [vmem:[#allocation37 + $0x90] sm:$0xff] }
 0xc87   : > { %10975 = vmatpush.bf16.msra.mxu3 %v16405_v24 }
 0xc88   : > { %v16994_v56 = vpop.eup %16993  ;;  %v10370_v13 = vmul.f32 1.442695, %v10361_v15  ;;  %v10218_v44 = vadd.f32 %v10217_v37, %v10204_v29  ;;  %v1427_v15 = vld [vmem:[%s20226_s2] sm:$0xff] }
 0xc89   : > { %v16996_v2 = vpop.eup %16995  ;;  %v20198_v12 = vadd.f32 1.0, %v16994_v56 }
 0xc8a   : > { %v10393_v45 = vmul.f32 %v16996_v2, %v20192_v27  ;;  %16997 = vpow2.f32 %v10370_v13  ;;  %v10232_v49 = vadd.f32 %v10231_v20, %v10218_v44  ;;  %vm10398_vm10 = vweird.f32 %v16996_v2  ;;  %v16416_v27 = vld [vmem:[#allocation37 + $0xe8] sm:$0xff]  ;;  %v16439_v20 = vld [vmem:[#allocation37 + $0x1a0] sm:$0xff] }
 0xc8b   : > { %16999 = vrcp.f32 %v20198_v12  ;;  %vm20212_vm0 = vmor %vm10397_vm9, %vm10398_vm10  ;;  %v10461_v42 = vand.u32 2147483647, %v20198_v12  ;;  %v10463_v30 = vand.u32 2147483648, %v20198_v12  ;;  %vm10457_vm3 = vweird.f32 %v20198_v12  ;;  %10976 = vmatpush.bf16.msra.mxu3 %v16404_v38  ;;  %10986 = vmatpush.bf16.msrb.mxu1 %v16416_v27 }
 0xc8c   : > { %v10394_v39 = vsub.f32 1.0, %v10393_v45  ;;  %v20202_v9 = vadd.f32 %v10245_v26, %v10232_v49  ;;  %v11166_v45 = vmul.f32 -0.25, %v1427_v15  ;;  %v20591_v26 = vld [vmem:[#allocation79_spill] sm:$0xff]  ;;  %11066 = vmatpush.bf16.msrb.mxu0 %v16439_v20  ;;  %v11173_v38 = vmul.f32 0.5, %v1428_v62  ;;  %v20595_v20 = vld [vmem:[#allocation81_spill] sm:$0xff] }
 0xc8d   : > { %v10464_v40 = vor.u32 1.1754944e-38, %v10463_v30  ;;  %vm10462_vm5 = vcmp.eq.f32.partialorder %v10461_v42, 8.507059e+37 }
 0xc8e   : > { %v10395_v59 = vmul.f32 %v16996_v2, %v10394_v39  ;;  %v10365_v52 = vsub.f32 0.0, %v20202_v9  ;;  %v10299_v35 = vpop.f32.mrf.mxu2  ;;  %v20592_v39 = vld [vmem:[#allocation80_spill] sm:$0xff]  ;;  %v11168_v33 = vmul.f32 %v11166_v45, %v1427_v15 }
 0xc90   : > { %v16998_v21 = vpop.eup %16997  ;;  %v10396_v25 = vadd.f32 %v16996_v2, %v10395_v59  ;;  %v10378_v17 = vmul.f32 1.442695, %v10365_v52  ;;  %v10273_v52 = vpop.f32.mrf.mxu1  ;;  %11067 = vmatpush.bf16.msrb.mxu0 %v16438_v28 }
 0xc91   : > { %v17000_v31 = vpop.eup %16999  ;;  %v20209_v63 = vadd.f32 1.0, %v16998_v21 }
 0xc92   : > { %v10453_v11 = vmul.f32 %v17000_v31, %v20198_v12  ;;  %17001 = vpow2.f32 %v10378_v17  ;;  %v10400_v22 = vsel %vm20212_vm0, %v16996_v2, %v10396_v25  ;;  %vm10458_vm2 = vweird.f32 %v17000_v31  ;;  %v16403_v2 = vld [vmem:[#allocation37 + $0x80] sm:$0xff]  ;;  %v16414_v17 = vld [vmem:[#allocation37 + $0xd8] sm:$0xff] }
 0xc93   : > { %v10257_v60 = vpop.f32.mrf.mxu3  ;;  %17003 = vrcp.f32 %v20209_v63  ;;  %v10405_v54 = vsel %vm10402_vm1, %v10404_v43, %v10400_v22  ;;  %vm10459_vm4 = vmor %vm10457_vm3, %vm10458_vm2  ;;  %v16415_v12 = vld [vmem:[#allocation37 + $0xe0] sm:$0xff]  ;;  %10977 = vmatpush.bf16.msra.mxu3 %v16403_v2  ;;  %vm10412_vm8 = vweird.f32 %v20209_v63 }
 0xc94   : > { %v10454_v14 = vsub.f32 1.0, %v10453_v11  ;;  %v10258_v58 = vadd.f32 %v10257_v60, %v9490_v50  ;;  %v10512_v53 = vmul.f32 %v10405_v54, %v20185_v61  ;;  %10987 = vmatpush.bf16.msrb.mxu1 %v16415_v12  ;;  %v10416_v11 = vand.u32 2147483647, %v20209_v63  ;;  %11068 = vmatpush.bf16.msrb.mxu0 %v16437_v7 }
 0xc95   : > { %v11175_v12 = vmul.f32 0.1, %v11173_v38 }
 0xc96   : > { %v10455_v6 = vmul.f32 %v17000_v31, %v10454_v14  ;;  %v10272_v34 = vadd.f32 %v10271_v19, %v10258_v58  ;;  %v10520_v36 = vadd.f32 %v10512_v53, %v20591_v26  ;;  %v10301_v22 = vpop.f32.mrf.mxu2  ;;  %v11167_v19 = vmul.f32 -0.25, %v1428_v62 }
 0xc97   : > { %vm10417_vm7 = vcmp.eq.f32.partialorder %v10416_v11, 8.507059e+37 }
 0xc98   : > { %v17002_v48 = vpop.eup %17001  ;;  %v10456_v3 = vadd.f32 %v17000_v31, %v10455_v6  ;;  %v10286_v32 = vadd.f32 %v10285_v41, %v10272_v34  ;;  %10988 = vmatpush.bf16.msrb.mxu1 %v16414_v17  ;;  %v11170_v34 = vmul.f32 19.9, %v11168_v33  ;;  %v11169_v53 = vmul.f32 %v11167_v19, %v1428_v62 }
 0xc99   : > { %v20229_v55 = vpop.eup %17003  ;;  %v20233_v23 = vadd.f32 1.0, %v17002_v48 }
 0xc9a   : > { %v10460_v29 = vsel %vm10459_vm4, %v17000_v31, %v10456_v3  ;;  %v10408_v37 = vmul.f32 %v20229_v55, %v20209_v63  ;;  %v20238_v51 = vadd.f32 %v10299_v35, %v10286_v32  ;;  %vm10413_vm6 = vweird.f32 %v20229_v55 }
 0xc9b   : > { %v10259_v56 = vpop.f32.mrf.mxu3  ;;  %v10465_v13 = vsel %vm10462_vm5, %v10464_v40, %v10460_v29  ;;  %17005 = vrcp.f32 %v20233_v23  ;;  %v10418_v31 = vand.u32 2147483648, %v20209_v63  ;;  %vm20257_vm11 = vmor %vm10412_vm8, %vm10413_vm6  ;;  %v10476_v30 = vand.u32 2147483647, %v20233_v23 }
 0xc9c   : > { %v10516_v61 = vmul.f32 %v10465_v13, %v20189_v47  ;;  %v10409_v44 = vsub.f32 1.0, %v10408_v37  ;;  %v10362_v10 = vsub.f32 0.0, %v20238_v51  ;;  %v10260_v49 = vadd.f32 %v10259_v56, %v9490_v50  ;;  %v10287_v50 = vpop.f32.mrf.mxu0  ;;  %10989 = vmatpush.bf16.msrb.mxu1 %v16413_v8 }
 0xc9d   : > { %v11172_v47 = vmul.f32 0.5, %v1427_v15  ;;  %v10419_v42 = vor.u32 1.1754944e-38, %v10418_v31  ;;  %v10478_v54 = vand.u32 2147483648, %v20233_v23  ;;  %vm10472_vm13 = vweird.f32 %v20233_v23  ;;  %v16448_v31 = vld [vmem:[#allocation37 + $0x1e8] sm:$0xff] }
 0xc9e   : > { %v10522_v46 = vadd.f32 %v10516_v61, %v20592_v39  ;;  %v10410_v59 = vmul.f32 %v20229_v55, %v10409_v44  ;;  %v10372_v0 = vmul.f32 1.442695, %v10362_v10  ;;  %v10274_v21 = vadd.f32 %v10273_v52, %v10260_v49  ;;  %v16411_v61 = vld [vmem:[#allocation37 + $0xc0] sm:$0xff]  ;;  %v16450_v10 = vld [vmem:[#allocation37 + $0x1f8] sm:$0xff]  ;;  %v16449_v52 = vld [vmem:[#allocation37 + $0x1f0] sm:$0xff] }
 0xc9f   : > { %v11174_v58 = vmul.f32 0.1, %v11172_v47  ;;  %vm10477_vm15 = vcmp.eq.f32.partialorder %v10476_v30, 8.507059e+37  ;;  %v10479_v40 = vor.u32 1.1754944e-38, %v10478_v54  ;;  %v16435_v44 = vld [vmem:[#allocation37 + $0x180] sm:$0xff]  ;;  %v20596_v49 = vld [vmem:[#allocation82_spill] sm:$0xff]  ;;  %11144 = vmatpush.bf16.msrb.mxu2 %v16450_v10 }
 0xca0   : > { %v10624_v25 = vpack.c.bf16 %v10522_v46, %v10520_v36  ;;  %v10411_v16 = vadd.f32 %v20229_v55, %v10410_v59  ;;  %17007 = vpow2.f32 %v10372_v0  ;;  %v10288_v5 = vadd.f32 %v10287_v50, %v10274_v21  ;;  %10990 = vmatpush.bf16.msrb.mxu1 %v16412_v4  ;;  %v20597_v50 = vld [vmem:[#allocation77_spill] sm:$0xff]  ;;  %v16446_v4 = vld [vmem:[#allocation37 + $0x1d8] sm:$0xff] }
 0xca1   : > { %v17006_v57 = vpop.eup %17005  ;;  %v11176_v37 = vsub.f32 %v11170_v34, %v11174_v58  ;;  %v11171_v2 = vmul.f32 19.9, %v11169_v53  ;;  %v16447_v58 = vld [vmem:[#allocation37 + $0x1e0] sm:$0xff] }
 0xca2   : > { %v10468_v60 = vmul.f32 %v17006_v57, %v20233_v23  ;;  %10730 = vmatmul.bf16.vlgmr.msrb.gmra.mxu3 %v10624_v25  ;;  %v20261_v14 = vadd.f32 %v10301_v22, %v10288_v5  ;;  %v10415_v63 = vsel %vm20257_vm11, %v20229_v55, %v10411_v16  ;;  %vm10473_vm12 = vweird.f32 %v17006_v57  ;;  %v16436_v55 = vld [vmem:[#allocation37 + $0x188] sm:$0xff] }
 0xca3   : > { %v10420_v3 = vsel %vm10417_vm7, %v10419_v42, %v10415_v63  ;;  %vm10474_vm14 = vmor %vm10472_vm13, %vm10473_vm12  ;;  %11069 = vmatpush.bf16.msrb.mxu0 %v16436_v55  ;;  %v9491_v23 = vperm.slane %v20182_v18, 3  ;;  %v11177_v17 = vsub.f32 %v11171_v2, %v11175_v12  ;;  %11145 = vmatpush.bf16.msrb.mxu2 %v16449_v52 }
 0xca4   : > { %v10469_v24 = vsub.f32 1.0, %v10468_v60  ;;  %v10366_v6 = vsub.f32 0.0, %v20261_v14  ;;  %v10513_v15 = vmul.f32 %v10420_v3, %v20195_v1  ;;  %10991 = vmatpush.bf16.msrb.mxu1 %v16411_v61  ;;  %v10341_v25 = vpop.f32.mrf.mxu0  ;;  %v16445_v61 = vld [vmem:[#allocation37 + $0x1d0] sm:$0xff] }
 0xca6   : > { %v17008_v41 = vpop.eup %17007  ;;  %v10470_v48 = vmul.f32 %v17006_v57, %v10469_v24  ;;  %v10380_v35 = vmul.f32 1.442695, %v10366_v6  ;;  %v10521_v45 = vadd.f32 %v10513_v15, %v20595_v20  ;;  %v10327_v18 = vpop.f32.mrf.mxu1 }
 0xca7   : > { %v20269_v32 = vadd.f32 1.0, %v17008_v41  ;;  %11070 = vmatpush.bf16.msrb.mxu0 %v16435_v44  ;;  %11146 = vmatpush.bf16.msrb.mxu2 %v16448_v31 }
 0xca8   : > { %v10471_v27 = vadd.f32 %v17006_v57, %v10470_v48 }
 0xca9   : > { %17009 = vrcp.f32 %v20269_v32  ;;  %v10433_v60 = vand.u32 2147483648, %v20269_v32  ;;  %vm10427_vm9 = vweird.f32 %v20269_v32  ;;  %v10431_v24 = vand.u32 2147483647, %v20269_v32 }
 0xcaa   : > { %v10475_v29 = vsel %vm10474_vm14, %v17006_v57, %v10471_v27  ;;  %17011 = vpow2.f32 %v10380_v35 }
 0xcab   : > { %v10480_v56 = vsel %vm10477_vm15, %v10479_v40, %v10475_v29  ;;  %17013 = vtanh.f32 %v11176_v37  ;;  %v10434_v41 = vor.u32 1.1754944e-38, %v10433_v60  ;;  %11147 = vmatpush.bf16.msrb.mxu2 %v16447_v58  ;;  %vm10432_vm1 = vcmp.eq.f32.partialorder %v10431_v24, 8.507059e+37 }
 0xcac   : > { %v10517_v13 = vmul.f32 %v10480_v56, %v20202_v9  ;;  %v10343_v27 = vpop.f32.mrf.mxu0 }
 0xcae   : > { %v10523_v1 = vadd.f32 %v10517_v13, %v20596_v49  ;;  %v10355_v62 = vpop.f32.mrf.mxu2  ;;  %v10329_v30 = vpop.f32.mrf.mxu1  ;;  %v20600_v49 = vld [vmem:[#allocation78_spill] sm:$0xff] }
 0xcaf   : > { %v17010_v26 = vpop.eup %17009  ;;  %11148 = vmatpush.bf16.msrb.mxu2 %v16446_v4 }
 0xcb0   : > { %v17012_v39 = vpop.eup %17011  ;;  %v10625_v46 = vpack.c.bf16 %v10523_v1, %v10521_v45  ;;  %v10423_v9 = vmul.f32 %v17010_v26, %v20269_v32  ;;  %vm10428_vm10 = vweird.f32 %v17010_v26 }
 0xcb1   : > { %v20279_v0 = vadd.f32 1.0, %v17012_v39  ;;  %v20281_v47 = vpop.eup %17013  ;;  %vm20297_vm0 = vmor %vm10427_vm9, %vm10428_vm10 }
 0xcb2   : > { %v10424_v21 = vsub.f32 1.0, %v10423_v9  ;;  %10744 = vmatmul.bf16.vlgmr.msra.gmra.mxu1 %v10625_v46  ;;  %10978 = vmatmul.bf16.vlgmr.msra.gmra.mxu3 %v20597_v50  ;;  %v20286_v5 = vsub.f32 1.0, %v20281_v47  ;;  %v20605_v46 = vld [vmem:[#allocation86_spill] sm:$0xff] }
 0xcb3   : > { %v10313_v36 = vpop.f32.mrf.mxu3  ;;  %17015 = vrcp.f32 %v20279_v0  ;;  %v10491_v35 = vand.u32 2147483647, %v20279_v0  ;;  %v10493_v38 = vand.u32 2147483648, %v20279_v0  ;;  %vm10487_vm3 = vweird.f32 %v20279_v0  ;;  %11149 = vmatpush.bf16.msrb.mxu2 %v16445_v61 }
 0xcb4   : > { %v10314_v59 = vadd.f32 %v10313_v36, %v9491_v23  ;;  %v10425_v28 = vmul.f32 %v17010_v26, %v10424_v21  ;;  %17017 = vtanh.f32 %v11177_v17  ;;  %v11195_v12 = vand.u32 2147483648, %v20286_v5  ;;  %v20603_v21 = vld [vmem:[#allocation83_spill] sm:$0xff] }
 0xcb5   : > { %17019 = vrcp.f32 %v20286_v5  ;;  %vm10492_vm4 = vcmp.eq.f32.partialorder %v10491_v35, 8.507059e+37  ;;  %vm11189_vm6 = vweird.f32 %v20286_v5  ;;  %v11193_v1 = vand.u32 2147483647, %v20286_v5 }
 0xcb6   : > { %v10328_v16 = vadd.f32 %v10327_v18, %v10314_v59  ;;  %v10426_v11 = vadd.f32 %v17010_v26, %v10425_v28  ;;  %v10357_v29 = vpop.f32.mrf.mxu2  ;;  %v16444_v18 = vld [vmem:[#allocation37 + $0x1c8] sm:$0xff]  ;;  %v11180_v59 = vmul.f32 -2.0, %v20281_v47  ;;  %v11196_v52 = vor.u32 1.1754944e-38, %v11195_v12  ;;  %v16443_v28 = vld [vmem:[#allocation37 + $0x1c0] sm:$0xff] }
 0xcb7   : > { %vm11194_vm7 = vcmp.eq.f32.partialorder %v11193_v1, 8.507059e+37  ;;  %11150 = vmatpush.bf16.msrb.mxu2 %v16444_v18  ;;  %v20606_v18 = vld [vmem:[#allocation85_spill] sm:$0xff] }
 0xcb8   : > { %v10342_v57 = vadd.f32 %v10341_v25, %v10328_v16  ;;  %v10430_v6 = vsel %vm20297_vm0, %v17010_v26, %v10426_v11  ;;  %v20604_v16 = vld [vmem:[#allocation84_spill] sm:$0xff] }
 0xcb9   : > { %v17016_v63 = vpop.eup %17015  ;;  %v10435_v40 = vsel %vm10432_vm1, %v10434_v41, %v10430_v6 }
 0xcba   : > { %v20288_v33 = vadd.f32 %v10355_v62, %v10342_v57  ;;  %v20295_v8 = vpop.eup %17017  ;;  %v10483_v42 = vmul.f32 %v17016_v63, %v20279_v0  ;;  %vm10488_vm2 = vweird.f32 %v17016_v63  ;;  %v10514_v44 = vmul.f32 %v10435_v40, %v20238_v51 }
 0xcbb   : > { %v10315_v22 = vpop.f32.mrf.mxu3  ;;  %v20305_v48 = vsub.f32 1.0, %v20295_v8  ;;  %v17020_v3 = vpop.eup %17019  ;;  %vm10489_vm5 = vmor %vm10487_vm3, %vm10488_vm2  ;;  %v17830_v57 = vmov 0   ;;  %11151 = vmatpush.bf16.msrb.mxu2 %v16443_v28 }
 0xcbc   : > { %v10363_v43 = vsub.f32 0.0, %v20288_v33  ;;  %v10316_v19 = vadd.f32 %v10315_v22, %v9491_v23  ;;  %v10484_v32 = vsub.f32 1.0, %v10483_v42  ;;  %v11185_v53 = vmul.f32 %v17020_v3, %v20286_v5  ;;  %16746 = vset.pattern.permute.xlu0 %v17830_v57 }
 0xcbd   : > { %v10494_v23 = vor.u32 1.1754944e-38, %v10493_v38  ;;  %vm11190_vm8 = vweird.f32 %v17020_v3  ;;  %v10524_v25 = vadd.f32 %v10514_v44, %v20603_v21  ;;  %vm11204_vm12 = vweird.f32 %v20305_v48 }
 0xcbe   : > { %v10374_v54 = vmul.f32 1.442695, %v10363_v43  ;;  %v10330_v34 = vadd.f32 %v10329_v30, %v10316_v19  ;;  %v10485_v15 = vmul.f32 %v17016_v63, %v10484_v32  ;;  %v11186_v56 = vsub.f32 1.0, %v11185_v53  ;;  %vm20322_vm11 = vmor %vm11189_vm6, %vm11190_vm8 }
 0xcbf   : > { %v11210_v11 = vand.u32 2147483648, %v20305_v48  ;;  %v11208_v22 = vand.u32 2147483647, %v20305_v48  ;;  %v11181_v30 = vmul.f32 -2.0, %v20295_v8 }
 0xcc0   : > { %17021 = vpow2.f32 %v10374_v54  ;;  %v10344_v55 = vadd.f32 %v10343_v27, %v10330_v34  ;;  %v10486_v13 = vadd.f32 %v17016_v63, %v10485_v15  ;;  %v11187_v2 = vmul.f32 %v17020_v3, %v11186_v56 }
 0xcc1   : > { %17023 = vrcp.f32 %v20305_v48  ;;  %v11211_v42 = vor.u32 1.1754944e-38, %v11210_v11  ;;  %vm11209_vm15 = vcmp.eq.f32.partialorder %v11208_v22, 8.507059e+37 }
 0xcc2   : > { %v20310_v37 = vadd.f32 %v10357_v29, %v10344_v55  ;;  %v10490_v45 = vsel %vm10489_vm5, %v17016_v63, %v10486_v13  ;;  %10992 = vmatmul.bf16.vlgmr.msrb.gmra.mxu1 %v20600_v49  ;;  %v11188_v51 = vadd.f32 %v17020_v3, %v11187_v2 }
 0xcc3   : > { %v10495_v26 = vsel %vm10492_vm4, %v10494_v23, %v10490_v45 }
 0xcc4   : > { %v10367_v10 = vsub.f32 0.0, %v20310_v37  ;;  %v10518_v9 = vmul.f32 %v10495_v26, %v20261_v14  ;;  %v11192_v17 = vsel %vm20322_vm11, %v17020_v3, %v11188_v51 }
 0xcc5   : > { %v11197_v14 = vsel %vm11194_vm7, %v11196_v52, %v11192_v17 }
 0xcc6   : > { %v17022_v20 = vpop.eup %17021  ;;  %v10382_v39 = vmul.f32 1.442695, %v10367_v10  ;;  %v10525_v50 = vadd.f32 %v10518_v9, %v20604_v16  ;;  %v11198_v47 = vmul.f32 %v11197_v14, %v11180_v59 }
 0xcc7   : > { %v20320_v36 = vadd.f32 1.0, %v17022_v20  ;;  %v17024_v0 = vpop.eup %17023 }
 0xcc8   : > { %v11014_v62 = vpack.c.bf16 %v10525_v50, %v10524_v25  ;;  %v11200_v31 = vmul.f32 %v17024_v0, %v20305_v48  ;;  %vm11205_vm13 = vweird.f32 %v17024_v0  ;;  %vm11220_vm9 = vweird.f32 %v11198_v47  ;;  %v10951_v50 = vpop.f32.mrf.mxu0 }
 0xcc9   : > { %17025 = vrcp.f32 %v20320_v36  ;;  %vm11206_vm14 = vmor %vm11204_vm12, %vm11205_vm13  ;;  %v10448_v38 = vand.u32 2147483648, %v20320_v36  ;;  %vm10442_vm1 = vweird.f32 %v20320_v36  ;;  %v10446_v8 = vand.u32 2147483647, %v20320_v36 }
 0xcca   : > { %17027 = vpow2.f32 %v10382_v39  ;;  %11071 = vmatmul.bf16.vlgmr.msrb.gmra.mxu0 %v11014_v62  ;;  %v11201_v5 = vsub.f32 1.0, %v11200_v31 }
 0xccb   : > { %17029 = vrsqrt.f32 %v11198_v47  ;;  %v10449_v29 = vor.u32 1.1754944e-38, %v10448_v38  ;;  %vm10447_vm4 = vcmp.eq.f32.partialorder %v10446_v8, 8.507059e+37 }
 0xccc   : > { %v11202_v58 = vmul.f32 %v17024_v0, %v11201_v5 }
 0xcce   : > { %v11203_v7 = vadd.f32 %v17024_v0, %v11202_v58  ;;  %v10965_v57 = vpop.f32.mrf.mxu2 }
 0xccf   : > { %v17026_v60 = vpop.eup %17025 }
 0xcd0   : > { %v17028_v43 = vpop.eup %17027  ;;  %v10438_v19 = vmul.f32 %v17026_v60, %v20320_v36  ;;  %v11207_v41 = vsel %vm11206_vm14, %v17024_v0, %v11203_v7  ;;  %vm10443_vm10 = vweird.f32 %v17026_v60  ;;  %v10953_v62 = vpop.f32.mrf.mxu0 }
 0xcd1   : > { %v10391_v63 = vadd.f32 1.0, %v17028_v43  ;;  %v17030_v54 = vpop.eup %17029  ;;  %v11212_v3 = vsel %vm11209_vm15, %v11211_v42, %v11207_v41  ;;  %vm10444_vm2 = vmor %vm10442_vm1, %vm10443_vm10  ;;  %v16758_v42 = vld [vmem:[#allocation2 + $0x35] ss:$0 sm:$0xff] }
 0xcd2   : > { %v10439_v24 = vsub.f32 1.0, %v10438_v19  ;;  %v11215_v34 = vmul.f32 %v17030_v54, %v11198_v47  ;;  %v11213_v48 = vmul.f32 %v11212_v3, %v11181_v30  ;;  %vm11221_vm0 = vweird.f32 %v17030_v54 }
 0xcd3   : > { %17031 = vrcp.f32 %v10391_v63  ;;  %vm11222_vm3 = vmor %vm11220_vm9, %vm11221_vm0  ;;  %v10508_v56 = vand.u32 2147483648, %v10391_v63  ;;  %v10506_v61 = vand.u32 2147483647, %v10391_v63  ;;  %vm10502_vm6 = vweird.f32 %v10391_v63 }
 0xcd4   : > { %v10440_v6 = vmul.f32 %v17026_v60, %v10439_v24  ;;  %v11216_v32 = vmul.f32 %v17030_v54, %v11215_v34  ;;  %17033 = vrsqrt.f32 %v11213_v48  ;;  %vm11230_vm7 = vweird.f32 %v11213_v48 }
 0xcd5   : > { %v10509_v45 = vor.u32 1.1754944e-38, %v10508_v56  ;;  %vm10507_vm11 = vcmp.eq.f32.partialorder %v10506_v61, 8.507059e+37 }
 0xcd6   : > { %v10441_v35 = vadd.f32 %v17026_v60, %v10440_v6  ;;  %v11217_v4 = vmul.f32 0.5, %v11216_v32 }
 0xcd8   : > { %v11218_v53 = vsub.f32 1.5, %v11217_v4  ;;  %v10445_v40 = vsel %vm10444_vm2, %v17026_v60, %v10441_v35  ;;  %v10967_v60 = vpop.f32.mrf.mxu2 }
 0xcd9   : > { %v17032_v27 = vpop.eup %17031  ;;  %v10450_v10 = vsel %vm10447_vm4, %v10449_v29, %v10445_v40 }
 0xcda   : > { %v10498_v55 = vmul.f32 %v17032_v27, %v10391_v63  ;;  %v11219_v13 = vmul.f32 %v17030_v54, %v11218_v53  ;;  %vm10503_vm5 = vweird.f32 %v17032_v27  ;;  %v17034_v44 = vpop.eup %17033  ;;  %v10515_v49 = vmul.f32 %v10450_v10, %v20288_v33 }
 0xcdb   : > { %v11225_v20 = vmul.f32 %v17034_v44, %v11213_v48  ;;  %vm10504_vm8 = vmor %vm10502_vm6, %vm10503_vm5  ;;  %vm11231_vm12 = vweird.f32 %v17034_v44 }
 0xcdc   : > { %v10499_v15 = vsub.f32 1.0, %v10498_v55  ;;  %v11223_v2 = vsel %vm11222_vm3, %v17030_v54, %v11219_v13  ;;  %v10526_v9 = vadd.f32 %v10515_v49, %v20605_v46  ;;  %vm11232_vm13 = vmor %vm11230_vm7, %vm11231_vm12 }
 0xcdd   : > { %11236 = vperm.xlu0 %16746, %v11223_v2   ;;  %v11226_v26 = vmul.f32 %v17034_v44, %v11225_v20 }
 0xcde   : > { %v10500_v23 = vmul.f32 %v17032_v27, %v10499_v15 }
 0xcdf   : > { %v11227_v51 = vmul.f32 0.5, %v11226_v26 }
 0xce0   : > { %v10501_v12 = vadd.f32 %v17032_v27, %v10500_v23 }
 0xce1   : > { %v11228_v52 = vsub.f32 1.5, %v11227_v51 }
 0xce2   : > { %v10505_v1 = vsel %vm10504_vm8, %v17032_v27, %v10501_v12 }
 0xce3   : > { %v10510_v36 = vsel %vm10507_vm11, %v10509_v45, %v10505_v1  ;;  %v11229_v21 = vmul.f32 %v17034_v44, %v11228_v52 }
 0xce4   : > { %v10519_v39 = vmul.f32 %v10510_v36, %v20310_v37 }
 0xce5   : > { %v11233_v25 = vsel %vm11232_vm13, %v17034_v44, %v11229_v21 }
 0xce6   : > { %v10527_v59 = vadd.f32 %v10519_v39, %v20606_v18  ;;  %11241 = vperm.xlu0 %16746, %v11233_v25  }
 0xce8   : > { %v11095_v0 = vpack.c.bf16 %v10527_v59, %v10526_v9 }
 0xcea   : > { %11152 = vmatmul.bf16.vlgmr.msrb.gmra.mxu2 %v11095_v0 }
 0xd25   : > { %v10731_v33 = vpop.f32.mrf.mxu3 }
 0xd2d   : > { %v10733_v17 = vpop.f32.mrf.mxu3 }
 0xd2f   : > { %v10745_v16 = vpop.f32.mrf.mxu1 }
 0xd30   : > { %v10746_v37 = vadd.f32 %v10745_v16, %v10731_v33 }
 0xd32   : > { %v10952_v14 = vadd.f32 %v10951_v50, %v10746_v37 }
 0xd34   : > { %v10966_v31 = vadd.f32 %v10965_v57, %v10952_v14 }
 0xd35   : > { %v10979_v47 = vpop.f32.mrf.mxu3 }
 0xd36   : > { %v10980_v22 = vadd.f32 %v10979_v47, %v10966_v31 }
 0xd37   : > { %v10747_v28 = vpop.f32.mrf.mxu1 }
 0xd38   : > { %v10748_v5 = vadd.f32 %v10747_v28, %v10733_v17 }
 0xd3a   : > { %v10954_v43 = vadd.f32 %v10953_v62, %v10748_v5 }
 0xd3c   : > { %v10968_v63 = vadd.f32 %v10967_v60, %v10954_v43 }
 0xd3d   : > { %v10981_v24 = vpop.f32.mrf.mxu3 }
 0xd3e   : > { %v10982_v6 = vadd.f32 %v10981_v24, %v10968_v63 }
 0xd3f   : > { %v10993_v11 = vpop.f32.mrf.mxu1 }
 0xd40   : > { %v10994_v19 = vadd.f32 %v10993_v11, %v10980_v22 }
 0xd47   : > { %v11072_v58 = vpop.f32.mrf.mxu0  ;;  %v10995_v30 = vpop.f32.mrf.mxu1 }
 0xd48   : > { %v11077_v7 = vadd.f32 %v11072_v58, %v10994_v19  ;;  %v10996_v3 = vadd.f32 %v10995_v30, %v10982_v6 }
 0xd4f   : > { %v11237_v34 = vpop.permute.xlu0 %11236  ;;  %v11074_v35 = vpop.f32.mrf.mxu0 }
 0xd50   : > { %v11078_v38 = vadd.f32 %v11074_v35, %v10996_v3 }
 0xd58   : > { %v11242_v55 = vpop.permute.xlu0 %11241 }
 0xd6d   : > { %v11153_v54 = vpop.f32.mrf.mxu2 }
 0xd6e   : > { %v11158_v41 = vadd.f32 %v11153_v54, %v11077_v7 }
 0xd70   : > { %v11164_v32 = vadd.f32 %v16758_v42, %v11158_v41 }
 0xd72   : > { %v11244_v48 = vmul.f32 %v11237_v34, %v11164_v32 }
 0xd74   : > { %11246 = vst [vmem:[%s1419_s15] sm:$0xff] %v11244_v48 }
 0xd75   : > { %v11155_v27 = vpop.f32.mrf.mxu2 }
 0xd76   : > { %v11159_v4 = vadd.f32 %v11155_v27, %v11078_v38 }
 0xd78   : > { %v11165_v8 = vadd.f32 %v16758_v42, %v11159_v4 }
 0xd7a   : > { %v11245_v53 = vmul.f32 %v11242_v55, %v11165_v8 }
 0xd7c   : > { %11247 = vst [vmem:[%s1419_s15 + $0x8] sm:$0xff] %v11245_v53 }
 0xd7d PF: > { %s86_s22 = sadd.s32 1, %s17767_s22  }
 0xd7e   : > { %p83_p3 = scmp.ge.s32.totalorder %s86_s22, 4  }
 0xd80   :  { %85 = sbr.rel (!%p83_p3) target bundleno = 69 (0x45), region = 311 }
 0xd85   :  { %11270 = vsyncpa [#allocation3], 1 }
 0xd86   :  { %11272 = vsyncpa [#allocation3 + $0x1], 1 }
 0xd87   :  { %11273 = vsyncpa [#allocation5], 1 }
 0xd88   :  { %11274 = vsyncpa [#allocation8], 1 }
 0xd89   :  { %11275 = vsyncpa [#allocation11], 1 }
 0xd8a   :  { %11276 = vsyncpa [#allocation14], 1 }
 0xd8b   :  { %11277 = vsyncpa [#allocation17], 1 }
 0xd8c   :  { %11278 = vsyncpa [#allocation20], 1 }
 0xd8d   :  { %11279 = vsyncpa [#allocation23], 1 }
 0xd8e   :  { %11280 = vsyncpa [#allocation26], 1 }
 0xd8f   :  { %11281 = vsyncpa [#allocation29], 1 }
 0xd90   :  { %11282 = vsyncpa [#allocation32], 1 }
 0xd91   :  { %11283 = vsyncpa [#allocation35], 1 }
 0xd92   :  { %11284 = vsyncpa [#allocation38], 1 }

</bundles_post_ra>
